<compile_context>
chip_gen: v7x
topology: tpu7x:2x2x1
jax: 0.10.0
libtpu: 0.0.40
codegen_flags: <defaults>
</compile_context>

<pallas_src>
import functools

import jax
import jax.numpy as jnp
from jax.experimental import pallas as pl
from jax.experimental.pallas import tpu as pltpu

_BF16 = jnp.bfloat16
_VMEM_LIMIT = 48 * 1024 * 1024  # below v7x's 64 MiB physical VMEM, safe everywhere


def _compiler_params(sem):
    return pltpu.CompilerParams(dimension_semantics=sem,
                                vmem_limit_bytes=_VMEM_LIMIT)


def _act(y, act):
    if act == "relu":
        return jnp.maximum(y, 0.0)
    if act == "tanh":
        return jnp.tanh(y)
    return y


# ---------------------------------------------------------------------------
# Kernel 1: im2col matmul + scale/shift + activation (7x7 head conv)
# ---------------------------------------------------------------------------
def _matmul_bn_act_kernel(x_ref, w_ref, scale_ref, shift_ref, o_ref, *, act):
    acc = jnp.dot(x_ref[0], w_ref[...], preferred_element_type=jnp.float32)
    y = acc * scale_ref[...] + shift_ref[...]
    o_ref[0] = _act(y, act).astype(o_ref.dtype)


def _matmul_bn_act(x2d, w, scale, shift, *, act, out_dtype):
    n, m, k = x2d.shape
    cout = w.shape[1]
    return pl.pallas_call(
        functools.partial(_matmul_bn_act_kernel, act=act),
        out_shape=jax.ShapeDtypeStruct((n, m, cout), out_dtype),
        grid_spec=pltpu.PrefetchScalarGridSpec(
            num_scalar_prefetch=0, grid=(n,),
            in_specs=[
                pl.BlockSpec((1, m, k), lambda b: (b, 0, 0)),
                pl.BlockSpec((k, cout), lambda b: (0, 0)),
                pl.BlockSpec((1, cout), lambda b: (0, 0)),
                pl.BlockSpec((1, cout), lambda b: (0, 0)),
            ],
            out_specs=pl.BlockSpec((1, m, cout), lambda b: (b, 0, 0)),
        ),
        compiler_params=_compiler_params(("parallel",)),
    )(x2d, w, scale, shift)


# ---------------------------------------------------------------------------
# Kernel 2: generic fused KHxKW stride-1 conv over a pre-padded input
#           (used for the stride-2 downsamples via space-to-depth and the
#            ConvTranspose2d layers via output-phase packing)
# ---------------------------------------------------------------------------
def _conv_bn_act_kernel(x_ref, w_ref, scale_ref, shift_ref, o_ref, *,
                        kh, kw, ho, wo, act, fold_rows):
    wp = x_ref.shape[2]
    cin = x_ref.shape[3]
    cout = o_ref.shape[3]
    rows = [x_ref[0, ky:ky + ho] for ky in range(kh)]       # (ho, wp, cin) slabs
    acc = jnp.zeros((ho, wo, cout), jnp.float32)
    if fold_rows:
        # fold the KH row taps into the contraction dimension (deep K for MXU)
        rcat = rows[0] if kh == 1 else jnp.concatenate(rows, axis=-1)
        rcat = rcat.reshape(ho * wp, kh * cin)
        for kx in range(kw):
            prod = jnp.dot(rcat, w_ref[kx], preferred_element_type=jnp.float32)
            acc = acc + prod.reshape(ho, wp, cout)[:, kx:kx + wo, :]
    else:
        for ky in range(kh):
            rflat = rows[ky].reshape(ho * wp, cin)
            for kx in range(kw):
                prod = jnp.dot(rflat, w_ref[ky * kw + kx],
                               preferred_element_type=jnp.float32)
                acc = acc + prod.reshape(ho, wp, cout)[:, kx:kx + wo, :]
    y = acc * scale_ref[...] + shift_ref[...]
    o_ref[0] = _act(y, act).astype(o_ref.dtype)


def _fused_conv(x_pad, w_taps, scale, shift, *, kh, kw, ho, wo, act,
                fold_rows, out_dtype):
    n, hp, wp, cin = x_pad.shape
    cout = w_taps.shape[-1]
    kern = functools.partial(_conv_bn_act_kernel, kh=kh, kw=kw, ho=ho, wo=wo,
                             act=act, fold_rows=fold_rows)
    return pl.pallas_call(
        kern,
        out_shape=jax.ShapeDtypeStruct((n, ho, wo, cout), out_dtype),
        grid_spec=pltpu.PrefetchScalarGridSpec(
            num_scalar_prefetch=0, grid=(n,),
            in_specs=[
                pl.BlockSpec((1, hp, wp, cin), lambda b: (b, 0, 0, 0)),
                pl.BlockSpec(w_taps.shape, lambda b: (0, 0, 0)),
                pl.BlockSpec((1, cout), lambda b: (0, 0)),
                pl.BlockSpec((1, cout), lambda b: (0, 0)),
            ],
            out_specs=pl.BlockSpec((1, ho, wo, cout), lambda b: (b, 0, 0, 0)),
        ),
        compiler_params=_compiler_params(("parallel",)),
    )(x_pad, w_taps, scale, shift)


# ---------------------------------------------------------------------------
# Kernel 3: fully fused ResNet trunk (all blocks in one pallas_call)
#   grid = (batch, n_blocks); the residual stream is the resident output
#   block, reflect padding + both convs + BN + ReLU + skip-add all in VMEM.
# ---------------------------------------------------------------------------
def _resnet_trunk_kernel(x_ref, w1_ref, w2_ref, s1_ref, b1_ref, s2_ref, b2_ref,
                         y_ref, xp_ref, *, hb, wb, c):
    blk = pl.program_id(1)

    @pl.when(blk == 0)
    def _():
        y_ref[...] = x_ref[...]

    wp = wb + 2

    def write_reflect_pad(v):                       # v: (hb, wb, c) f32
        xp_ref[1:hb + 1, 1:wb + 1, :] = v
        xp_ref[0, 1:wb + 1, :] = v[1]
        xp_ref[hb + 1, 1:wb + 1, :] = v[hb - 2]
        xp_ref[:, 0, :] = xp_ref[:, 2, :]
        xp_ref[:, wb + 1, :] = xp_ref[:, wb - 1, :]

    def conv3x3(w_ref):                             # w_ref: (1, 3, 3c, c) bf16
        rcat = jnp.concatenate(
            [xp_ref[0:hb], xp_ref[1:hb + 1], xp_ref[2:hb + 2]], axis=-1)
        rcat = rcat.reshape(hb * wp, 3 * c).astype(w_ref.dtype)
        acc = jnp.zeros((hb, wb, c), jnp.float32)
        for kx in range(3):
            prod = jnp.dot(rcat, w_ref[0, kx], preferred_element_type=jnp.float32)
            acc = acc + prod.reshape(hb, wp, c)[:, kx:kx + wb, :]
        return acc

    y_in = y_ref[0].astype(jnp.float32)             # residual stream (VMEM resident)
    write_reflect_pad(y_in)
    h = conv3x3(w1_ref) * s1_ref[0] + b1_ref[0]
    h = jnp.maximum(h, 0.0)
    write_reflect_pad(h)
    h = conv3x3(w2_ref) * s2_ref[0] + b2_ref[0]
    y_ref[0] = (y_in + h).astype(y_ref.dtype)


def _resnet_trunk(x, w1, w2, s1, b1, s2, b2):
    n, hb, wb, c = x.shape
    nb = w1.shape[0]
    kern = functools.partial(_resnet_trunk_kernel, hb=hb, wb=wb, c=c)
    return pl.pallas_call(
        kern,
        out_shape=jax.ShapeDtypeStruct((n, hb, wb, c), x.dtype),
        grid_spec=pltpu.PrefetchScalarGridSpec(
            num_scalar_prefetch=0, grid=(n, nb),
            in_specs=[
                pl.BlockSpec((1, hb, wb, c), lambda b, k: (b, 0, 0, 0)),
                pl.BlockSpec((1, 3, 3 * c, c), lambda b, k: (k, 0, 0, 0)),
                pl.BlockSpec((1, 3, 3 * c, c), lambda b, k: (k, 0, 0, 0)),
                pl.BlockSpec((1, 1, c), lambda b, k: (k, 0, 0)),
                pl.BlockSpec((1, 1, c), lambda b, k: (k, 0, 0)),
                pl.BlockSpec((1, 1, c), lambda b, k: (k, 0, 0)),
                pl.BlockSpec((1, 1, c), lambda b, k: (k, 0, 0)),
            ],
            out_specs=pl.BlockSpec((1, hb, wb, c), lambda b, k: (b, 0, 0, 0)),
            scratch_shapes=[pltpu.VMEM((hb + 2, wb + 2, c), jnp.float32)],
        ),
        compiler_params=_compiler_params(("parallel", "arbitrary")),
    )(x, w1, w2, s1, b1, s2, b2)


# ---------------------------------------------------------------------------
# Kernel 4: tail 7x7 conv as a transposed im2col matmul + bias + tanh
#           (output is lane-dense and already NCHW)
# ---------------------------------------------------------------------------
def _tail_kernel(xt_ref, wt_ref, bias_ref, o_ref):
    acc = jnp.dot(wt_ref[...], xt_ref[0], preferred_element_type=jnp.float32)
    o_ref[0] = jnp.tanh(acc + bias_ref[...]).astype(o_ref.dtype)


# ---------------------------------------------------------------------------
# Wrapper-side layout plumbing (weight packing, padding, phase packing)
# ---------------------------------------------------------------------------
def _oihw_to_hwio(w):
    return jnp.transpose(w, (2, 3, 1, 0))


def _bn_fold(bn, eps=1e-5):
    scale = bn["gamma"] * jax.lax.rsqrt(bn["var"] + eps)
    shift = bn["beta"] - bn["mean"] * scale
    return scale.astype(jnp.float32), shift.astype(jnp.float32)


def _reflect_pad(x, p):
    return jnp.pad(x, ((0, 0), (p, p), (p, p), (0, 0)), mode="reflect")


def _unfold_taps(w_taps, kh, kw):
    """(kw, kh*cin, cout) row-folded layout -> (kh*kw, cin, cout) per-tap."""
    _, mid, cout = w_taps.shape
    cin = mid // kh
    return (w_taps.reshape(kw, kh, cin, cout)
            .transpose(1, 0, 2, 3).reshape(kh * kw, cin, cout))


def _head_layer(x_nhwc, w_oihw, bn):
    """ReflectionPad(3) -> Conv7x7 -> BN -> ReLU, as one im2col matmul kernel."""
    n, h, w, cin = x_nhwc.shape
    k = w_oihw.shape[-1]
    cout = w_oihw.shape[0]
    xr = _reflect_pad(x_nhwc, (k - 1) // 2).astype(_BF16)
    cols = jnp.concatenate(
        [xr[:, ky:ky + h, kx:kx + w, :] for ky in range(k) for kx in range(k)],
        axis=-1)
    x2d = cols.reshape(n, h * w, k * k * cin)
    w2d = _oihw_to_hwio(w_oihw).reshape(k * k * cin, cout).astype(_BF16)
    s, b = _bn_fold(bn)
    out = _matmul_bn_act(x2d, w2d, s.reshape(1, cout), b.reshape(1, cout),
                         act="relu", out_dtype=_BF16)
    return out.reshape(n, h, w, cout)


def _down_layer(x, w_oihw, bn):
    """Conv3x3 stride 2 pad 1 -> BN -> ReLU, as a 2x2 conv over space-to-depth."""
    n, h, w, c = x.shape
    cout = w_oihw.shape[0]
    xp = jnp.pad(x, ((0, 0), (1, 1), (1, 1), (0, 0)))
    hs, ws = (h + 2) // 2, (w + 2) // 2
    xs = xp.reshape(n, hs, 2, ws, 2, c).transpose(0, 1, 3, 2, 4, 5)
    xs = xs.reshape(n, hs, ws, 4 * c)
    w_hwio = _oihw_to_hwio(w_oihw)                         # (3, 3, c, cout)
    w4 = jnp.zeros((2, 2, 2, 2, c, cout), w_hwio.dtype)    # [dy, dx, py, px, c, co]
    for dy in range(2):
        for dx in range(2):
            for py in range(2):
                for px in range(2):
                    ky, kx = 2 * dy + py, 2 * dx + px
                    if ky < 3 and kx < 3:
                        w4 = w4.at[dy, dx, py, px].set(w_hwio[ky, kx])
    # kernel's row-folded layout: w_taps[kx][(dy, py, px, c), co]
    w_taps = (jnp.transpose(w4, (1, 0, 2, 3, 4, 5))
              .reshape(2, 8 * c, cout).astype(_BF16))
    fold = (4 * c) % 128 == 0
    if not fold:
        w_taps = _unfold_taps(w_taps, 2, 2)
    s, b = _bn_fold(bn)
    return _fused_conv(xs, w_taps, s.reshape(1, cout), b.reshape(1, cout),
                       kh=2, kw=2, ho=h // 2, wo=w // 2, act="relu",
                       fold_rows=fold, out_dtype=_BF16)


def _up_layer(x, w_t, bn):
    """ConvTranspose2d(k=3,s=2,p=1,op=1) -> BN -> ReLU via 4-output-phase packing."""
    n, h, w, cin = x.shape
    cout = w_t.shape[1]
    xz = jnp.pad(x, ((0, 0), (0, 1), (0, 1), (0, 0)))      # bottom/right zero halo
    wk = jnp.transpose(w_t, (2, 3, 0, 1))                   # (ky, kx, cin, cout)
    zz = jnp.zeros((cin, cout), wk.dtype)
    # output phases (py,px) = 00,01,10,11 packed along the output channel axis
    a0 = jnp.concatenate([wk[1, 1], wk[1, 2], wk[2, 1], wk[2, 2]], axis=-1)
    a1 = jnp.concatenate([zz,       zz,       wk[0, 1], wk[0, 2]], axis=-1)
    b0 = jnp.concatenate([zz,       wk[1, 0], zz,       wk[2, 0]], axis=-1)
    b1 = jnp.concatenate([zz,       zz,       zz,       wk[0, 0]], axis=-1)
    w_taps = jnp.stack([jnp.concatenate([a0, a1], axis=0),
                        jnp.concatenate([b0, b1], axis=0)], axis=0).astype(_BF16)
    fold = cin % 128 == 0
    if not fold:
        w_taps = _unfold_taps(w_taps, 2, 2)
    s, b = _bn_fold(bn)
    s4 = jnp.tile(s, 4).reshape(1, 4 * cout)
    b4 = jnp.tile(b, 4).reshape(1, 4 * cout)
    y4 = _fused_conv(xz, w_taps, s4, b4, kh=2, kw=2, ho=h, wo=w, act="relu",
                     fold_rows=fold, out_dtype=_BF16)
    # interleave the 4 output phases back to full resolution
    y4 = y4.reshape(n, h, w, 2, 2, cout).transpose(0, 1, 3, 2, 4, 5)
    return y4.reshape(n, 2 * h, 2 * w, cout)


def _pack_block_w(w_oihw):
    """(c, c, 3, 3) OIHW -> (3[kx], 3c[(ky,c)], c) row-folded layout."""
    w_hwio = _oihw_to_hwio(w_oihw)                          # (ky, kx, ci, co)
    c, co = w_hwio.shape[2], w_hwio.shape[3]
    return jnp.transpose(w_hwio, (1, 0, 2, 3)).reshape(3, 3 * c, co)


def _trunk_layer(x, blocks):
    n, hb, wb, c = x.shape
    w1 = jnp.stack([_pack_block_w(bp["w1"]) for bp in blocks]).astype(_BF16)
    w2 = jnp.stack([_pack_block_w(bp["w2"]) for bp in blocks]).astype(_BF16)
    f1 = [_bn_fold(bp["bn1"]) for bp in blocks]
    f2 = [_bn_fold(bp["bn2"]) for bp in blocks]
    s1 = jnp.stack([f[0] for f in f1])[:, None, :]
    b1 = jnp.stack([f[1] for f in f1])[:, None, :]
    s2 = jnp.stack([f[0] for f in f2])[:, None, :]
    b2 = jnp.stack([f[1] for f in f2])[:, None, :]
    return _resnet_trunk(x, w1, w2, s1, b1, s2, b2)


def _tail_layer(x, w_oihw, bias):
    """ReflectionPad(3) -> Conv7x7 (+bias) -> Tanh, transposed im2col matmul."""
    n, h, w, cin = x.shape
    k = w_oihw.shape[-1]
    cout = w_oihw.shape[0]
    xr = _reflect_pad(x, (k - 1) // 2)
    p = jnp.stack([xr[:, ky:ky + h, kx:kx + w, :]
                   for ky in range(k) for kx in range(k)], axis=1)
    xt = jnp.transpose(p, (0, 1, 4, 2, 3)).reshape(n, k * k * cin, h * w)
    xt = xt.astype(_BF16)
    wt = jnp.transpose(w_oihw, (0, 2, 3, 1)).reshape(cout, k * k * cin)
    wt = wt.astype(_BF16)
    bias2 = bias.reshape(cout, 1).astype(jnp.float32)
    out = pl.pallas_call(
        _tail_kernel,
        out_shape=jax.ShapeDtypeStruct((n, cout, h * w), jnp.float32),
        grid_spec=pltpu.PrefetchScalarGridSpec(
            num_scalar_prefetch=0, grid=(n,),
            in_specs=[
                pl.BlockSpec((1, k * k * cin, h * w), lambda b: (b, 0, 0)),
                pl.BlockSpec((cout, k * k * cin), lambda b: (0, 0)),
                pl.BlockSpec((cout, 1), lambda b: (0, 0)),
            ],
            out_specs=pl.BlockSpec((1, cout, h * w), lambda b: (b, 0, 0)),
        ),
        compiler_params=_compiler_params(("parallel",)),
    )(xt, wt, bias2)
    return out.reshape(n, cout, h, w)                       # already NCHW


# ---------------------------------------------------------------------------
# ResnetGenerator forward (Pallas)
# ---------------------------------------------------------------------------
def resnet_generator_pallas(params, x_nchw):
    y = jnp.transpose(x_nchw, (0, 2, 3, 1)).astype(jnp.float32)   # NHWC
    y = _head_layer(y, params["head"]["w"], params["head"]["bn"])
    for d in params["down"]:
        y = _down_layer(y, d["w"], d["bn"])
    y = _trunk_layer(y, params["blocks"])
    for u in params["up"]:
        y = _up_layer(y, u["w"], u["bn"])
    return _tail_layer(y, params["tail"]["w"], params["tail"]["b"])


# ---------------------------------------------------------------------------
# Pure-JAX reference (lax.conv path). bf16_ops=True mirrors the kernel's
# mixed-precision policy (bf16 matmul operands / bf16 inter-layer activations,
# f32 accumulation) so the comparison stays tight; bf16_ops=False is the
# original all-f32 module used as a loose sanity bound.
# ---------------------------------------------------------------------------
def _bn_apply_ref(y, bn, eps=1e-5):
    return (y - bn["mean"]) * jax.lax.rsqrt(bn["var"] + eps) * bn["gamma"] + bn["beta"]


def _conv_ref(x, w_hwio, stride, padding, *, bf16_ops):
    if bf16_ops:
        x = x.astype(_BF16)
        w_hwio = w_hwio.astype(_BF16)
    return jax.lax.conv_general_dilated(
        x, w_hwio, window_strides=(stride, stride), padding=padding,
        dimension_numbers=("NHWC", "HWIO", "NHWC"),
        preferred_element_type=jnp.float32,
        precision=jax.lax.Precision.HIGHEST)


def _convt_to_hwio(w):
    return jnp.transpose(jnp.flip(w, axis=(2, 3)), (2, 3, 0, 1))


def _convt_ref(x, w_hwio_flipped, *, bf16_ops, k=3, s=2, p=1, op=1):
    if bf16_ops:
        x = x.astype(_BF16)
        w_hwio_flipped = w_hwio_flipped.astype(_BF16)
    lo, hi = k - 1 - p, k - 1 - p + op
    return jax.lax.conv_general_dilated(
        x, w_hwio_flipped, window_strides=(1, 1),
        padding=((lo, hi), (lo, hi)), lhs_dilation=(s, s),
        dimension_numbers=("NHWC", "HWIO", "NHWC"),
        preferred_element_type=jnp.float32,
        precision=jax.lax.Precision.HIGHEST)


def resnet_generator_ref(params, x_nchw, *, bf16_ops):
    q = (lambda a: a.astype(_BF16).astype(jnp.float32)) if bf16_ops else (lambda a: a)
    y = jnp.transpose(x_nchw, (0, 2, 3, 1)).astype(jnp.float32)

    y = _conv_ref(_reflect_pad(y, 3), _oihw_to_hwio(params["head"]["w"]),
                  1, "VALID", bf16_ops=bf16_ops)
    y = q(jax.nn.relu(_bn_apply_ref(y, params["head"]["bn"])))

    for d in params["down"]:
        y = _conv_ref(y, _oihw_to_hwio(d["w"]), 2, ((1, 1), (1, 1)),
                      bf16_ops=bf16_ops)
        y = q(jax.nn.relu(_bn_apply_ref(y, d["bn"])))

    for blk in params["blocks"]:
        h = _conv_ref(_reflect_pad(y, 1), _oihw_to_hwio(blk["w1"]), 1, "VALID",
                      bf16_ops=bf16_ops)
        h = jax.nn.relu(_bn_apply_ref(h, blk["bn1"]))
        h = _conv_ref(_reflect_pad(h, 1), _oihw_to_hwio(blk["w2"]), 1, "VALID",
                      bf16_ops=bf16_ops)
        h = _bn_apply_ref(h, blk["bn2"])
        y = q(y + h)

    for u in params["up"]:
        y = _convt_ref(y, _convt_to_hwio(u["w"]), bf16_ops=bf16_ops)
        y = q(jax.nn.relu(_bn_apply_ref(y, u["bn"])))

    y = _conv_ref(_reflect_pad(y, 3), _oihw_to_hwio(params["tail"]["w"]),
                  1, "VALID", bf16_ops=bf16_ops)
    y = jnp.tanh(y + params["tail"]["b"])
    return jnp.transpose(y, (0, 3, 1, 2))


# ---------------------------------------------------------------------------
# Parameter init (PyTorch layouts: Conv2d OIHW, ConvTranspose2d (Cin,Cout,K,K))
# ---------------------------------------------------------------------------
def init_generator_params(key, input_nc, output_nc, ngf, n_blocks):
    keys = iter(jax.random.split(key, 16 + 4 * n_blocks))

    def conv_w(k, cout, cin, ks):
        return jax.random.normal(k, (cout, cin, ks, ks), jnp.float32) / float(cin * ks * ks) ** 0.5

    def bn_p(k, c):
        k1, k2, k3, k4 = jax.random.split(k, 4)
        return dict(
            gamma=1.0 + 0.1 * jax.random.normal(k1, (c,), jnp.float32),
            beta=0.1 * jax.random.normal(k2, (c,), jnp.float32),
            mean=0.1 * jax.random.normal(k3, (c,), jnp.float32),
            var=1.0 + 0.1 * jax.random.uniform(k4, (c,), jnp.float32),
        )

    params = {"head": dict(w=conv_w(next(keys), ngf, input_nc, 7),
                           bn=bn_p(next(keys), ngf))}

    params["down"] = []
    mult = 1
    for _ in range(2):
        cin, cout = ngf * mult, ngf * mult * 2
        params["down"].append(dict(w=conv_w(next(keys), cout, cin, 3),
                                   bn=bn_p(next(keys), cout)))
        mult *= 2

    dim = ngf * mult
    params["blocks"] = []
    for _ in range(n_blocks):
        params["blocks"].append(dict(
            w1=conv_w(next(keys), dim, dim, 3), bn1=bn_p(next(keys), dim),
            w2=conv_w(next(keys), dim, dim, 3), bn2=bn_p(next(keys), dim)))

    params["up"] = []
    for _ in range(2):
        cin, cout = ngf * mult, (ngf * mult) // 2
        wt = jax.random.normal(next(keys), (cin, cout, 3, 3), jnp.float32) / float(cin * 9) ** 0.5
        params["up"].append(dict(w=wt, bn=bn_p(next(keys), cout)))
        mult //= 2

    params["tail"] = dict(
        w=conv_w(next(keys), output_nc, ngf, 7),
        b=0.1 * jax.random.normal(next(keys), (output_nc,), jnp.float32))
    return params


# ---------------------------------------------------------------------------
if __name__ == "__main__":
    key = jax.random.PRNGKey(0)
    kp, kx = jax.random.split(key)

    # Small demo config: batch=2, 3->3 channels, 16x16 images, ngf=32
    # (bottleneck channels = 128 = lane width), 3 ResNet blocks.
    N, input_nc, output_nc, H, W = 2, 3, 3, 16, 16
    ngf, n_blocks = 32, 3

    params = init_generator_params(kp, input_nc, output_nc, ngf, n_blocks)
    x = jax.random.normal(kx, (N, input_nc, H, W), jnp.float32)

    out = jax.block_until_ready(jax.jit(resnet_generator_pallas)(params, x))

    ref_bf16 = jax.block_until_ready(
        jax.jit(functools.partial(resnet_generator_ref, bf16_ops=True))(params, x))
    ref_f32 = jax.block_until_ready(
        jax.jit(functools.partial(resnet_generator_ref, bf16_ops=False))(params, x))

    assert out.shape == (N, output_nc, H, W), out.shape
    err_bf16 = float(jnp.max(jnp.abs(out - ref_bf16)))
    err_f32 = float(jnp.max(jnp.abs(out - ref_f32)))
    # The mixed-precision reference quantizes at the same points as the kernel,
    # so this check is tight; the f32 bound is the deliberate bf16-operand
    # tolerance for the whole 16-conv network.
    assert err_bf16 < 5e-3, f"mismatch vs bf16-operand reference: {err_bf16}"
    assert err_f32 < 1.5e-1, f"mismatch vs f32 reference: {err_f32}"

    print("KERNEL_OK")
</pallas_src>

<mosaic_0001>
module attributes {stable_mosaic.version = 11 : i64} {
  func.func @_matmul_bn_act_kernel(%arg0: i32, %arg1: memref<1x256x147xbf16, #tpu.memory_space<vmem>>, %arg2: memref<147x32xbf16, #tpu.memory_space<vmem>>, %arg3: memref<1x32xf32, #tpu.memory_space<vmem>>, %arg4: memref<1x32xf32, #tpu.memory_space<vmem>>, %arg5: memref<1x256x32xbf16, #tpu.memory_space<vmem>>) attributes {dimension_semantics = [#tpu.dimension_semantics<parallel>], iteration_bounds = array<i64: 2>, scalar_prefetch = 0 : i64, scratch_operands = 0 : i64, tpu.core_type = #tpu.core_type<tc>, window_params = [{transform_indices = @transform_0, window_bounds = array<i64: 1, 256, 147>}, {pipeline_mode = #tpu.pipeline_mode<synchronous>, transform_indices = @transform_1, window_bounds = array<i64: 147, 32>}, {pipeline_mode = #tpu.pipeline_mode<synchronous>, transform_indices = @transform_2, window_bounds = array<i64: 1, 32>}, {pipeline_mode = #tpu.pipeline_mode<synchronous>, transform_indices = @transform_3, window_bounds = array<i64: 1, 32>}, {transform_indices = @transform_4, window_bounds = array<i64: 1, 256, 32>}]} {
    %c0 = arith.constant 0 : index
    %c0_0 = arith.constant 0 : index
    %c0_1 = arith.constant 0 : index
    %0 = vector.load %arg1[%c0, %c0_0, %c0_1] : memref<1x256x147xbf16, #tpu.memory_space<vmem>>, vector<1x256x147xbf16>
    %1 = vector.shape_cast %0 : vector<1x256x147xbf16> to vector<256x147xbf16>
    %c0_2 = arith.constant 0 : index
    %c0_3 = arith.constant 0 : index
    %2 = vector.load %arg2[%c0_2, %c0_3] : memref<147x32xbf16, #tpu.memory_space<vmem>>, vector<147x32xbf16>
    %cst = arith.constant dense<0.000000e+00> : vector<256x32xf32>
    %3 = tpu.matmul %1, %2, %cst {dimension_numbers = #tpu.dot_dimension_numbers<[1], [0], [0], [1], [0, 0, 1, 1], [], []>} : vector<256x147xbf16>, vector<147x32xbf16>, vector<256x32xf32> -> vector<256x32xf32>
    %c0_4 = arith.constant 0 : index
    %c0_5 = arith.constant 0 : index
    %4 = vector.load %arg3[%c0_4, %c0_5] : memref<1x32xf32, #tpu.memory_space<vmem>>, vector<1x32xf32>
    %5 = vector.broadcast %4 : vector<1x32xf32> to vector<256x32xf32>
    %6 = arith.mulf %3, %5 : vector<256x32xf32>
    %c0_6 = arith.constant 0 : index
    %c0_7 = arith.constant 0 : index
    %7 = vector.load %arg4[%c0_6, %c0_7] : memref<1x32xf32, #tpu.memory_space<vmem>>, vector<1x32xf32>
    %8 = vector.broadcast %7 : vector<1x32xf32> to vector<256x32xf32>
    %9 = arith.addf %6, %8 : vector<256x32xf32>
    %cst_8 = arith.constant 0.000000e+00 : f32
    %10 = vector.broadcast %cst_8 : f32 to vector<256x32xf32>
    %11 = arith.maximumf %9, %10 : vector<256x32xf32>
    %12 = arith.truncf %11 : vector<256x32xf32> to vector<256x32xbf16>
    %c0_9 = arith.constant 0 : index
    %c0_10 = arith.constant 0 : index
    %c0_11 = arith.constant 0 : index
    %13 = vector.load %arg5[%c0_9, %c0_10, %c0_11] : memref<1x256x32xbf16, #tpu.memory_space<vmem>>, vector<1x256x32xbf16>
    %14 = vector.shape_cast %13 : vector<1x256x32xbf16> to vector<256x32xbf16>
    %15 = vector.shape_cast %12 : vector<256x32xbf16> to vector<1x256x32xbf16>
    tpu.vector_store %arg5[%c0_9, %c0_10, %c0_11], %15 {strides = array<i32>} : memref<1x256x32xbf16, #tpu.memory_space<vmem>>, vector<1x256x32xbf16>,
    return
  }
  func.func @transform_0(%arg0: i32) -> (i32, i32, i32) {
    %c0_i32 = arith.constant 0 : i32
    %c0_i32_0 = arith.constant 0 : i32
    %c0_i32_1 = arith.constant 0 : i32
    return %arg0, %c0_i32, %c0_i32_0 : i32, i32, i32
  }
  func.func @transform_1(%arg0: i32) -> (i32, i32) {
    %c0_i32 = arith.constant 0 : i32
    %c0_i32_0 = arith.constant 0 : i32
    %c0_i32_1 = arith.constant 0 : i32
    return %c0_i32, %c0_i32_0 : i32, i32
  }
  func.func @transform_2(%arg0: i32) -> (i32, i32) {
    %c0_i32 = arith.constant 0 : i32
    %c0_i32_0 = arith.constant 0 : i32
    %c0_i32_1 = arith.constant 0 : i32
    return %c0_i32, %c0_i32_0 : i32, i32
  }
  func.func @transform_3(%arg0: i32) -> (i32, i32) {
    %c0_i32 = arith.constant 0 : i32
    %c0_i32_0 = arith.constant 0 : i32
    %c0_i32_1 = arith.constant 0 : i32
    return %c0_i32, %c0_i32_0 : i32, i32
  }
  func.func @transform_4(%arg0: i32) -> (i32, i32, i32) {
    %c0_i32 = arith.constant 0 : i32
    %c0_i32_0 = arith.constant 0 : i32
    %c0_i32_1 = arith.constant 0 : i32
    return %arg0, %c0_i32, %c0_i32_0 : i32, i32, i32
  }
}

module attributes {stable_mosaic.version = 11 : i64} {
  func.func @_conv_bn_act_kernel(%arg0: i32, %arg1: memref<1x9x9x128xbf16, #tpu.memory_space<vmem>>, %arg2: memref<2x256x64xbf16, #tpu.memory_space<vmem>>, %arg3: memref<1x64xf32, #tpu.memory_space<vmem>>, %arg4: memref<1x64xf32, #tpu.memory_space<vmem>>, %arg5: memref<1x8x8x64xbf16, #tpu.memory_space<vmem>>) attributes {dimension_semantics = [#tpu.dimension_semantics<parallel>], iteration_bounds = array<i64: 2>, scalar_prefetch = 0 : i64, scratch_operands = 0 : i64, tpu.core_type = #tpu.core_type<tc>, window_params = [{transform_indices = @transform_0, window_bounds = array<i64: 1, 9, 9, 128>}, {pipeline_mode = #tpu.pipeline_mode<synchronous>, transform_indices = @transform_1, window_bounds = array<i64: 2, 256, 64>}, {pipeline_mode = #tpu.pipeline_mode<synchronous>, transform_indices = @transform_2, window_bounds = array<i64: 1, 64>}, {pipeline_mode = #tpu.pipeline_mode<synchronous>, transform_indices = @transform_3, window_bounds = array<i64: 1, 64>}, {transform_indices = @transform_4, window_bounds = array<i64: 1, 8, 8, 64>}]} {
    %c0 = arith.constant 0 : index
    %c0_0 = arith.constant 0 : index
    %c0_1 = arith.constant 0 : index
    %c0_2 = arith.constant 0 : index
    %0 = vector.load %arg1[%c0, %c0_0, %c0_1, %c0_2] : memref<1x9x9x128xbf16, #tpu.memory_space<vmem>>, vector<1x8x9x128xbf16>
    %1 = vector.shape_cast %0 : vector<1x8x9x128xbf16> to vector<8x9x128xbf16>
    %c0_3 = arith.constant 0 : index
    %c1 = arith.constant 1 : index
    %c0_4 = arith.constant 0 : index
    %c0_5 = arith.constant 0 : index
    %2 = vector.load %arg1[%c0_3, %c1, %c0_4, %c0_5] : memref<1x9x9x128xbf16, #tpu.memory_space<vmem>>, vector<1x8x9x128xbf16>
    %3 = vector.shape_cast %2 : vector<1x8x9x128xbf16> to vector<8x9x128xbf16>
    %cst = arith.constant 0.000000e+00 : f32
    %4 = vector.broadcast %cst : f32 to vector<8x8x64xf32>
    %5 = tpu.concatenate %1, %3 in 2 : vector<8x9x128xbf16>, vector<8x9x128xbf16> -> vector<8x9x256xbf16>
    %6 = vector.shape_cast %5 : vector<8x9x256xbf16> to vector<72x256xbf16>
    %c0_6 = arith.constant 0 : index
    %c0_7 = arith.constant 0 : index
    %c0_8 = arith.constant 0 : index
    %7 = vector.load %arg2[%c0_6, %c0_7, %c0_8] : memref<2x256x64xbf16, #tpu.memory_space<vmem>>, vector<1x256x64xbf16>
    %8 = vector.shape_cast %7 : vector<1x256x64xbf16> to vector<256x64xbf16>
    %cst_9 = arith.constant dense<0.000000e+00> : vector<72x64xf32>
    %9 = tpu.matmul %6, %8, %cst_9 {dimension_numbers = #tpu.dot_dimension_numbers<[1], [0], [0], [1], [0, 0, 1, 1], [], []>} : vector<72x256xbf16>, vector<256x64xbf16>, vector<72x64xf32> -> vector<72x64xf32>
    %10 = vector.shape_cast %9 : vector<72x64xf32> to vector<8x9x64xf32>
    %11 = vector.extract_strided_slice %10 {offsets = [0, 0, 0], sizes = [8, 8, 64], strides = [1, 1, 1]} : vector<8x9x64xf32> to vector<8x8x64xf32>
    %12 = arith.addf %4, %11 : vector<8x8x64xf32>
    %c1_10 = arith.constant 1 : index
    %c0_11 = arith.constant 0 : index
    %c0_12 = arith.constant 0 : index
    %13 = vector.load %arg2[%c1_10, %c0_11, %c0_12] : memref<2x256x64xbf16, #tpu.memory_space<vmem>>, vector<1x256x64xbf16>
    %14 = vector.shape_cast %13 : vector<1x256x64xbf16> to vector<256x64xbf16>
    %cst_13 = arith.constant dense<0.000000e+00> : vector<72x64xf32>
    %15 = tpu.matmul %6, %14, %cst_13 {dimension_numbers = #tpu.dot_dimension_numbers<[1], [0], [0], [1], [0, 0, 1, 1], [], []>} : vector<72x256xbf16>, vector<256x64xbf16>, vector<72x64xf32> -> vector<72x64xf32>
    %16 = vector.shape_cast %15 : vector<72x64xf32> to vector<8x9x64xf32>
    %17 = vector.extract_strided_slice %16 {offsets = [0, 1, 0], sizes = [8, 8, 64], strides = [1, 1, 1]} : vector<8x9x64xf32> to vector<8x8x64xf32>
    %18 = arith.addf %12, %17 : vector<8x8x64xf32>
    %c0_14 = arith.constant 0 : index
    %c0_15 = arith.constant 0 : index
    %19 = vector.load %arg3[%c0_14, %c0_15] : memref<1x64xf32, #tpu.memory_space<vmem>>, vector<1x64xf32>
    %20 = vector.shape_cast %19 : vector<1x64xf32> to vector<1x1x64xf32>
    %21 = vector.broadcast %20 : vector<1x1x64xf32> to vector<8x8x64xf32>
    %22 = arith.mulf %18, %21 : vector<8x8x64xf32>
    %c0_16 = arith.constant 0 : index
    %c0_17 = arith.constant 0 : index
    %23 = vector.load %arg4[%c0_16, %c0_17] : memref<1x64xf32, #tpu.memory_space<vmem>>, vector<1x64xf32>
    %24 = vector.shape_cast %23 : vector<1x64xf32> to vector<1x1x64xf32>
    %25 = vector.broadcast %24 : vector<1x1x64xf32> to vector<8x8x64xf32>
    %26 = arith.addf %22, %25 : vector<8x8x64xf32>
    %cst_18 = arith.constant 0.000000e+00 : f32
    %27 = vector.broadcast %cst_18 : f32 to vector<8x8x64xf32>
    %28 = arith.maximumf %26, %27 : vector<8x8x64xf32>
    %29 = arith.truncf %28 : vector<8x8x64xf32> to vector<8x8x64xbf16>
    %c0_19 = arith.constant 0 : index
    %c0_20 = arith.constant 0 : index
    %c0_21 = arith.constant 0 : index
    %c0_22 = arith.constant 0 : index
    %30 = vector.load %arg5[%c0_19, %c0_20, %c0_21, %c0_22] : memref<1x8x8x64xbf16, #tpu.memory_space<vmem>>, vector<1x8x8x64xbf16>
    %31 = vector.shape_cast %30 : vector<1x8x8x64xbf16> to vector<8x8x64xbf16>
    %32 = vector.shape_cast %29 : vector<8x8x64xbf16> to vector<1x8x8x64xbf16>
    tpu.vector_store %arg5[%c0_19, %c0_20, %c0_21, %c0_22], %32 {strides = array<i32>} : memref<1x8x8x64xbf16, #tpu.memory_space<vmem>>, vector<1x8x8x64xbf16>,
    return
  }
  func.func @transform_0(%arg0: i32) -> (i32, i32, i32, i32) {
    %c0_i32 = arith.constant 0 : i32
    %c0_i32_0 = arith.constant 0 : i32
    %c0_i32_1 = arith.constant 0 : i32
    %c0_i32_2 = arith.constant 0 : i32
    return %arg0, %c0_i32, %c0_i32_0, %c0_i32_1 : i32, i32, i32, i32
  }
  func.func @transform_1(%arg0: i32) -> (i32, i32, i32) {
    %c0_i32 = arith.constant 0 : i32
    %c0_i32_0 = arith.constant 0 : i32
    %c0_i32_1 = arith.constant 0 : i32
    %c0_i32_2 = arith.constant 0 : i32
    return %c0_i32, %c0_i32_0, %c0_i32_1 : i32, i32, i32
  }
  func.func @transform_2(%arg0: i32) -> (i32, i32) {
    %c0_i32 = arith.constant 0 : i32
    %c0_i32_0 = arith.constant 0 : i32
    %c0_i32_1 = arith.constant 0 : i32
    return %c0_i32, %c0_i32_0 : i32, i32
  }
  func.func @transform_3(%arg0: i32) -> (i32, i32) {
    %c0_i32 = arith.constant 0 : i32
    %c0_i32_0 = arith.constant 0 : i32
    %c0_i32_1 = arith.constant 0 : i32
    return %c0_i32, %c0_i32_0 : i32, i32
  }
  func.func @transform_4(%arg0: i32) -> (i32, i32, i32, i32) {
    %c0_i32 = arith.constant 0 : i32
    %c0_i32_0 = arith.constant 0 : i32
    %c0_i32_1 = arith.constant 0 : i32
    %c0_i32_2 = arith.constant 0 : i32
    return %arg0, %c0_i32, %c0_i32_0, %c0_i32_1 : i32, i32, i32, i32
  }
}

module attributes {stable_mosaic.version = 11 : i64} {
  func.func @_conv_bn_act_kernel(%arg0: i32, %arg1: memref<1x5x5x256xbf16, #tpu.memory_space<vmem>>, %arg2: memref<2x512x128xbf16, #tpu.memory_space<vmem>>, %arg3: memref<1x128xf32, #tpu.memory_space<vmem>>, %arg4: memref<1x128xf32, #tpu.memory_space<vmem>>, %arg5: memref<1x4x4x128xbf16, #tpu.memory_space<vmem>>) attributes {dimension_semantics = [#tpu.dimension_semantics<parallel>], iteration_bounds = array<i64: 2>, scalar_prefetch = 0 : i64, scratch_operands = 0 : i64, tpu.core_type = #tpu.core_type<tc>, window_params = [{transform_indices = @transform_0, window_bounds = array<i64: 1, 5, 5, 256>}, {pipeline_mode = #tpu.pipeline_mode<synchronous>, transform_indices = @transform_1, window_bounds = array<i64: 2, 512, 128>}, {pipeline_mode = #tpu.pipeline_mode<synchronous>, transform_indices = @transform_2, window_bounds = array<i64: 1, 128>}, {pipeline_mode = #tpu.pipeline_mode<synchronous>, transform_indices = @transform_3, window_bounds = array<i64: 1, 128>}, {transform_indices = @transform_4, window_bounds = array<i64: 1, 4, 4, 128>}]} {
    %c0 = arith.constant 0 : index
    %c0_0 = arith.constant 0 : index
    %c0_1 = arith.constant 0 : index
    %c0_2 = arith.constant 0 : index
    %0 = vector.load %arg1[%c0, %c0_0, %c0_1, %c0_2] : memref<1x5x5x256xbf16, #tpu.memory_space<vmem>>, vector<1x4x5x256xbf16>
    %1 = vector.shape_cast %0 : vector<1x4x5x256xbf16> to vector<4x5x256xbf16>
    %c0_3 = arith.constant 0 : index
    %c1 = arith.constant 1 : index
    %c0_4 = arith.constant 0 : index
    %c0_5 = arith.constant 0 : index
    %2 = vector.load %arg1[%c0_3, %c1, %c0_4, %c0_5] : memref<1x5x5x256xbf16, #tpu.memory_space<vmem>>, vector<1x4x5x256xbf16>
    %3 = vector.shape_cast %2 : vector<1x4x5x256xbf16> to vector<4x5x256xbf16>
    %cst = arith.constant 0.000000e+00 : f32
    %4 = vector.broadcast %cst : f32 to vector<4x4x128xf32>
    %5 = tpu.concatenate %1, %3 in 2 : vector<4x5x256xbf16>, vector<4x5x256xbf16> -> vector<4x5x512xbf16>
    %6 = vector.shape_cast %5 : vector<4x5x512xbf16> to vector<20x512xbf16>
    %c0_6 = arith.constant 0 : index
    %c0_7 = arith.constant 0 : index
    %c0_8 = arith.constant 0 : index
    %7 = vector.load %arg2[%c0_6, %c0_7, %c0_8] : memref<2x512x128xbf16, #tpu.memory_space<vmem>>, vector<1x512x128xbf16>
    %8 = vector.shape_cast %7 : vector<1x512x128xbf16> to vector<512x128xbf16>
    %cst_9 = arith.constant dense<0.000000e+00> : vector<20x128xf32>
    %9 = tpu.matmul %6, %8, %cst_9 {dimension_numbers = #tpu.dot_dimension_numbers<[1], [0], [0], [1], [0, 0, 1, 1], [], []>} : vector<20x512xbf16>, vector<512x128xbf16>, vector<20x128xf32> -> vector<20x128xf32>
    %10 = vector.shape_cast %9 : vector<20x128xf32> to vector<4x5x128xf32>
    %11 = vector.extract_strided_slice %10 {offsets = [0, 0, 0], sizes = [4, 4, 128], strides = [1, 1, 1]} : vector<4x5x128xf32> to vector<4x4x128xf32>
    %12 = arith.addf %4, %11 : vector<4x4x128xf32>
    %c1_10 = arith.constant 1 : index
    %c0_11 = arith.constant 0 : index
    %c0_12 = arith.constant 0 : index
    %13 = vector.load %arg2[%c1_10, %c0_11, %c0_12] : memref<2x512x128xbf16, #tpu.memory_space<vmem>>, vector<1x512x128xbf16>
    %14 = vector.shape_cast %13 : vector<1x512x128xbf16> to vector<512x128xbf16>
    %cst_13 = arith.constant dense<0.000000e+00> : vector<20x128xf32>
    %15 = tpu.matmul %6, %14, %cst_13 {dimension_numbers = #tpu.dot_dimension_numbers<[1], [0], [0], [1], [0, 0, 1, 1], [], []>} : vector<20x512xbf16>, vector<512x128xbf16>, vector<20x128xf32> -> vector<20x128xf32>
    %16 = vector.shape_cast %15 : vector<20x128xf32> to vector<4x5x128xf32>
    %17 = vector.extract_strided_slice %16 {offsets = [0, 1, 0], sizes = [4, 4, 128], strides = [1, 1, 1]} : vector<4x5x128xf32> to vector<4x4x128xf32>
    %18 = arith.addf %12, %17 : vector<4x4x128xf32>
    %c0_14 = arith.constant 0 : index
    %c0_15 = arith.constant 0 : index
    %19 = vector.load %arg3[%c0_14, %c0_15] : memref<1x128xf32, #tpu.memory_space<vmem>>, vector<1x128xf32>
    %20 = vector.shape_cast %19 : vector<1x128xf32> to vector<1x1x128xf32>
    %21 = vector.broadcast %20 : vector<1x1x128xf32> to vector<4x4x128xf32>
    %22 = arith.mulf %18, %21 : vector<4x4x128xf32>
    %c0_16 = arith.constant 0 : index
    %c0_17 = arith.constant 0 : index
    %23 = vector.load %arg4[%c0_16, %c0_17] : memref<1x128xf32, #tpu.memory_space<vmem>>, vector<1x128xf32>
    %24 = vector.shape_cast %23 : vector<1x128xf32> to vector<1x1x128xf32>
    %25 = vector.broadcast %24 : vector<1x1x128xf32> to vector<4x4x128xf32>
    %26 = arith.addf %22, %25 : vector<4x4x128xf32>
    %cst_18 = arith.constant 0.000000e+00 : f32
    %27 = vector.broadcast %cst_18 : f32 to vector<4x4x128xf32>
    %28 = arith.maximumf %26, %27 : vector<4x4x128xf32>
    %29 = arith.truncf %28 : vector<4x4x128xf32> to vector<4x4x128xbf16>
    %c0_19 = arith.constant 0 : index
    %c0_20 = arith.constant 0 : index
    %c0_21 = arith.constant 0 : index
    %c0_22 = arith.constant 0 : index
    %30 = vector.load %arg5[%c0_19, %c0_20, %c0_21, %c0_22] : memref<1x4x4x128xbf16, #tpu.memory_space<vmem>>, vector<1x4x4x128xbf16>
    %31 = vector.shape_cast %30 : vector<1x4x4x128xbf16> to vector<4x4x128xbf16>
    %32 = vector.shape_cast %29 : vector<4x4x128xbf16> to vector<1x4x4x128xbf16>
    tpu.vector_store %arg5[%c0_19, %c0_20, %c0_21, %c0_22], %32 {strides = array<i32>} : memref<1x4x4x128xbf16, #tpu.memory_space<vmem>>, vector<1x4x4x128xbf16>,
    return
  }
  func.func @transform_0(%arg0: i32) -> (i32, i32, i32, i32) {
    %c0_i32 = arith.constant 0 : i32
    %c0_i32_0 = arith.constant 0 : i32
    %c0_i32_1 = arith.constant 0 : i32
    %c0_i32_2 = arith.constant 0 : i32
    return %arg0, %c0_i32, %c0_i32_0, %c0_i32_1 : i32, i32, i32, i32
  }
  func.func @transform_1(%arg0: i32) -> (i32, i32, i32) {
    %c0_i32 = arith.constant 0 : i32
    %c0_i32_0 = arith.constant 0 : i32
    %c0_i32_1 = arith.constant 0 : i32
    %c0_i32_2 = arith.constant 0 : i32
    return %c0_i32, %c0_i32_0, %c0_i32_1 : i32, i32, i32
  }
  func.func @transform_2(%arg0: i32) -> (i32, i32) {
    %c0_i32 = arith.constant 0 : i32
    %c0_i32_0 = arith.constant 0 : i32
    %c0_i32_1 = arith.constant 0 : i32
    return %c0_i32, %c0_i32_0 : i32, i32
  }
  func.func @transform_3(%arg0: i32) -> (i32, i32) {
    %c0_i32 = arith.constant 0 : i32
    %c0_i32_0 = arith.constant 0 : i32
    %c0_i32_1 = arith.constant 0 : i32
    return %c0_i32, %c0_i32_0 : i32, i32
  }
  func.func @transform_4(%arg0: i32) -> (i32, i32, i32, i32) {
    %c0_i32 = arith.constant 0 : i32
    %c0_i32_0 = arith.constant 0 : i32
    %c0_i32_1 = arith.constant 0 : i32
    %c0_i32_2 = arith.constant 0 : i32
    return %arg0, %c0_i32, %c0_i32_0, %c0_i32_1 : i32, i32, i32, i32
  }
}

module attributes {stable_mosaic.version = 11 : i64} {
  func.func @_resnet_trunk_kernel(%arg0: i32, %arg1: i32, %arg2: memref<1x4x4x128xbf16, #tpu.memory_space<vmem>>, %arg3: memref<1x3x384x128xbf16, #tpu.memory_space<vmem>>, %arg4: memref<1x3x384x128xbf16, #tpu.memory_space<vmem>>, %arg5: memref<1x1x128xf32, #tpu.memory_space<vmem>>, %arg6: memref<1x1x128xf32, #tpu.memory_space<vmem>>, %arg7: memref<1x1x128xf32, #tpu.memory_space<vmem>>, %arg8: memref<1x1x128xf32, #tpu.memory_space<vmem>>, %arg9: memref<1x4x4x128xbf16, #tpu.memory_space<vmem>>, %arg10: memref<6x6x128xf32, #tpu.memory_space<vmem>>) attributes {dimension_semantics = [#tpu.dimension_semantics<parallel>, #tpu.dimension_semantics<arbitrary>], iteration_bounds = array<i64: 2, 3>, scalar_prefetch = 0 : i64, scratch_operands = 1 : i64, tpu.core_type = #tpu.core_type<tc>, window_params = [{transform_indices = @transform_0, window_bounds = array<i64: 1, 4, 4, 128>}, {transform_indices = @transform_1, window_bounds = array<i64: 1, 3, 384, 128>}, {transform_indices = @transform_2, window_bounds = array<i64: 1, 3, 384, 128>}, {transform_indices = @transform_3, window_bounds = array<i64: 1, 1, 128>}, {transform_indices = @transform_4, window_bounds = array<i64: 1, 1, 128>}, {transform_indices = @transform_5, window_bounds = array<i64: 1, 1, 128>}, {transform_indices = @transform_6, window_bounds = array<i64: 1, 1, 128>}, {transform_indices = @transform_7, window_bounds = array<i64: 1, 4, 4, 128>}]} {
    %c0_i32 = arith.constant 0 : i32
    %0 = arith.cmpi eq, %arg1, %c0_i32 : i32
    %1 = arith.extui %0 : i1 to i32
    %c0_i32_0 = arith.constant 0 : i32
    %2 = arith.cmpi ne, %1, %c0_i32_0 : i32
    scf.if %2 {
      %c0_108 = arith.constant 0 : index
      %c0_109 = arith.constant 0 : index
      %c0_110 = arith.constant 0 : index
      %c0_111 = arith.constant 0 : index
      %125 = vector.load %arg2[%c0_108, %c0_109, %c0_110, %c0_111] : memref<1x4x4x128xbf16, #tpu.memory_space<vmem>>, vector<1x4x4x128xbf16>
      %c0_112 = arith.constant 0 : index
      %c0_113 = arith.constant 0 : index
      %c0_114 = arith.constant 0 : index
      %c0_115 = arith.constant 0 : index
      %126 = vector.load %arg9[%c0_112, %c0_113, %c0_114, %c0_115] : memref<1x4x4x128xbf16, #tpu.memory_space<vmem>>, vector<1x4x4x128xbf16>
      tpu.vector_store %arg9[%c0_112, %c0_113, %c0_114, %c0_115], %125 {strides = array<i32>} : memref<1x4x4x128xbf16, #tpu.memory_space<vmem>>, vector<1x4x4x128xbf16>,
    } else {
    }
    %c0 = arith.constant 0 : index
    %c0_1 = arith.constant 0 : index
    %c0_2 = arith.constant 0 : index
    %c0_3 = arith.constant 0 : index
    %3 = vector.load %arg9[%c0, %c0_1, %c0_2, %c0_3] : memref<1x4x4x128xbf16, #tpu.memory_space<vmem>>, vector<1x4x4x128xbf16>
    %4 = vector.shape_cast %3 : vector<1x4x4x128xbf16> to vector<4x4x128xbf16>
    %5 = arith.extf %4 : vector<4x4x128xbf16> to vector<4x4x128xf32>
    %c1 = arith.constant 1 : index
    %c1_4 = arith.constant 1 : index
    %c0_5 = arith.constant 0 : index
    %6 = vector.load %arg10[%c1, %c1_4, %c0_5] : memref<6x6x128xf32, #tpu.memory_space<vmem>>, vector<4x4x128xf32>
    tpu.vector_store %arg10[%c1, %c1_4, %c0_5], %5 {strides = array<i32>} : memref<6x6x128xf32, #tpu.memory_space<vmem>>, vector<4x4x128xf32>,
    %7 = vector.extract_strided_slice %5 {offsets = [1, 0, 0], sizes = [1, 4, 128], strides = [1, 1, 1]} : vector<4x4x128xf32> to vector<1x4x128xf32>
    %8 = vector.shape_cast %7 : vector<1x4x128xf32> to vector<4x128xf32>
    %c0_6 = arith.constant 0 : index
    %c1_7 = arith.constant 1 : index
    %c0_8 = arith.constant 0 : index
    %9 = vector.load %arg10[%c0_6, %c1_7, %c0_8] : memref<6x6x128xf32, #tpu.memory_space<vmem>>, vector<1x4x128xf32>
    %10 = vector.shape_cast %9 : vector<1x4x128xf32> to vector<4x128xf32>
    %11 = vector.shape_cast %8 : vector<4x128xf32> to vector<1x4x128xf32>
    tpu.vector_store %arg10[%c0_6, %c1_7, %c0_8], %11 {strides = array<i32>} : memref<6x6x128xf32, #tpu.memory_space<vmem>>, vector<1x4x128xf32>,
    %12 = vector.extract_strided_slice %5 {offsets = [2, 0, 0], sizes = [1, 4, 128], strides = [1, 1, 1]} : vector<4x4x128xf32> to vector<1x4x128xf32>
    %13 = vector.shape_cast %12 : vector<1x4x128xf32> to vector<4x128xf32>
    %c5 = arith.constant 5 : index
    %c1_9 = arith.constant 1 : index
    %c0_10 = arith.constant 0 : index
    %14 = vector.load %arg10[%c5, %c1_9, %c0_10] : memref<6x6x128xf32, #tpu.memory_space<vmem>>, vector<1x4x128xf32>
    %15 = vector.shape_cast %14 : vector<1x4x128xf32> to vector<4x128xf32>
    %16 = vector.shape_cast %13 : vector<4x128xf32> to vector<1x4x128xf32>
    tpu.vector_store %arg10[%c5, %c1_9, %c0_10], %16 {strides = array<i32>} : memref<6x6x128xf32, #tpu.memory_space<vmem>>, vector<1x4x128xf32>,
    %c0_11 = arith.constant 0 : index
    %c2 = arith.constant 2 : index
    %c0_12 = arith.constant 0 : index
    %17 = vector.load %arg10[%c0_11, %c2, %c0_12] : memref<6x6x128xf32, #tpu.memory_space<vmem>>, vector<6x1x128xf32>
    %18 = vector.shape_cast %17 : vector<6x1x128xf32> to vector<6x128xf32>
    %c0_13 = arith.constant 0 : index
    %c0_14 = arith.constant 0 : index
    %c0_15 = arith.constant 0 : index
    %19 = vector.load %arg10[%c0_13, %c0_14, %c0_15] : memref<6x6x128xf32, #tpu.memory_space<vmem>>, vector<6x1x128xf32>
    %20 = vector.shape_cast %19 : vector<6x1x128xf32> to vector<6x128xf32>
    %21 = vector.shape_cast %18 : vector<6x128xf32> to vector<6x1x128xf32>
    tpu.vector_store %arg10[%c0_13, %c0_14, %c0_15], %21 {strides = array<i32>} : memref<6x6x128xf32, #tpu.memory_space<vmem>>, vector<6x1x128xf32>,
    %c0_16 = arith.constant 0 : index
    %c3 = arith.constant 3 : index
    %c0_17 = arith.constant 0 : index
    %22 = vector.load %arg10[%c0_16, %c3, %c0_17] : memref<6x6x128xf32, #tpu.memory_space<vmem>>, vector<6x1x128xf32>
    %23 = vector.shape_cast %22 : vector<6x1x128xf32> to vector<6x128xf32>
    %c0_18 = arith.constant 0 : index
    %c5_19 = arith.constant 5 : index
    %c0_20 = arith.constant 0 : index
    %24 = vector.load %arg10[%c0_18, %c5_19, %c0_20] : memref<6x6x128xf32, #tpu.memory_space<vmem>>, vector<6x1x128xf32>
    %25 = vector.shape_cast %24 : vector<6x1x128xf32> to vector<6x128xf32>
    %26 = vector.shape_cast %23 : vector<6x128xf32> to vector<6x1x128xf32>
    tpu.vector_store %arg10[%c0_18, %c5_19, %c0_20], %26 {strides = array<i32>} : memref<6x6x128xf32, #tpu.memory_space<vmem>>, vector<6x1x128xf32>,
    %c0_21 = arith.constant 0 : index
    %c0_22 = arith.constant 0 : index
    %c0_23 = arith.constant 0 : index
    %27 = vector.load %arg10[%c0_21, %c0_22, %c0_23] : memref<6x6x128xf32, #tpu.memory_space<vmem>>, vector<4x6x128xf32>
    %c1_24 = arith.constant 1 : index
    %c0_25 = arith.constant 0 : index
    %c0_26 = arith.constant 0 : index
    %28 = vector.load %arg10[%c1_24, %c0_25, %c0_26] : memref<6x6x128xf32, #tpu.memory_space<vmem>>, vector<4x6x128xf32>
    %c2_27 = arith.constant 2 : index
    %c0_28 = arith.constant 0 : index
    %c0_29 = arith.constant 0 : index
    %29 = vector.load %arg10[%c2_27, %c0_28, %c0_29] : memref<6x6x128xf32, #tpu.memory_space<vmem>>, vector<4x6x128xf32>
    %30 = tpu.concatenate %27, %28, %29 in 2 : vector<4x6x128xf32>, vector<4x6x128xf32>, vector<4x6x128xf32> -> vector<4x6x384xf32>
    %31 = vector.shape_cast %30 : vector<4x6x384xf32> to vector<24x384xf32>
    %32 = arith.truncf %31 : vector<24x384xf32> to vector<24x384xbf16>
    %cst = arith.constant 0.000000e+00 : f32
    %33 = vector.broadcast %cst : f32 to vector<4x4x128xf32>
    %c0_30 = arith.constant 0 : index
    %c0_31 = arith.constant 0 : index
    %c0_32 = arith.constant 0 : index
    %c0_33 = arith.constant 0 : index
    %34 = vector.load %arg3[%c0_30, %c0_31, %c0_32, %c0_33] : memref<1x3x384x128xbf16, #tpu.memory_space<vmem>>, vector<1x1x384x128xbf16>
    %35 = vector.shape_cast %34 : vector<1x1x384x128xbf16> to vector<384x128xbf16>
    %cst_34 = arith.constant dense<0.000000e+00> : vector<24x128xf32>
    %36 = tpu.matmul %32, %35, %cst_34 {dimension_numbers = #tpu.dot_dimension_numbers<[1], [0], [0], [1], [0, 0, 1, 1], [], []>} : vector<24x384xbf16>, vector<384x128xbf16>, vector<24x128xf32> -> vector<24x128xf32>
    %37 = vector.shape_cast %36 : vector<24x128xf32> to vector<4x6x128xf32>
    %38 = vector.extract_strided_slice %37 {offsets = [0, 0, 0], sizes = [4, 4, 128], strides = [1, 1, 1]} : vector<4x6x128xf32> to vector<4x4x128xf32>
    %39 = arith.addf %33, %38 : vector<4x4x128xf32>
    %c0_35 = arith.constant 0 : index
    %c1_36 = arith.constant 1 : index
    %c0_37 = arith.constant 0 : index
    %c0_38 = arith.constant 0 : index
    %40 = vector.load %arg3[%c0_35, %c1_36, %c0_37, %c0_38] : memref<1x3x384x128xbf16, #tpu.memory_space<vmem>>, vector<1x1x384x128xbf16>
    %41 = vector.shape_cast %40 : vector<1x1x384x128xbf16> to vector<384x128xbf16>
    %cst_39 = arith.constant dense<0.000000e+00> : vector<24x128xf32>
    %42 = tpu.matmul %32, %41, %cst_39 {dimension_numbers = #tpu.dot_dimension_numbers<[1], [0], [0], [1], [0, 0, 1, 1], [], []>} : vector<24x384xbf16>, vector<384x128xbf16>, vector<24x128xf32> -> vector<24x128xf32>
    %43 = vector.shape_cast %42 : vector<24x128xf32> to vector<4x6x128xf32>
    %44 = vector.extract_strided_slice %43 {offsets = [0, 1, 0], sizes = [4, 4, 128], strides = [1, 1, 1]} : vector<4x6x128xf32> to vector<4x4x128xf32>
    %45 = arith.addf %39, %44 : vector<4x4x128xf32>
    %c0_40 = arith.constant 0 : index
    %c2_41 = arith.constant 2 : index
    %c0_42 = arith.constant 0 : index
    %c0_43 = arith.constant 0 : index
    %46 = vector.load %arg3[%c0_40, %c2_41, %c0_42, %c0_43] : memref<1x3x384x128xbf16, #tpu.memory_space<vmem>>, vector<1x1x384x128xbf16>
    %47 = vector.shape_cast %46 : vector<1x1x384x128xbf16> to vector<384x128xbf16>
    %cst_44 = arith.constant dense<0.000000e+00> : vector<24x128xf32>
    %48 = tpu.matmul %32, %47, %cst_44 {dimension_numbers = #tpu.dot_dimension_numbers<[1], [0], [0], [1], [0, 0, 1, 1], [], []>} : vector<24x384xbf16>, vector<384x128xbf16>, vector<24x128xf32> -> vector<24x128xf32>
    %49 = vector.shape_cast %48 : vector<24x128xf32> to vector<4x6x128xf32>
    %50 = vector.extract_strided_slice %49 {offsets = [0, 2, 0], sizes = [4, 4, 128], strides = [1, 1, 1]} : vector<4x6x128xf32> to vector<4x4x128xf32>
    %51 = arith.addf %45, %50 : vector<4x4x128xf32>
    %c0_45 = arith.constant 0 : index
    %c0_46 = arith.constant 0 : index
    %c0_47 = arith.constant 0 : index
    %52 = vector.load %arg5[%c0_45, %c0_46, %c0_47] : memref<1x1x128xf32, #tpu.memory_space<vmem>>, vector<1x1x128xf32>
    %53 = vector.shape_cast %52 : vector<1x1x128xf32> to vector<1x128xf32>
    %54 = vector.shape_cast %53 : vector<1x128xf32> to vector<1x1x128xf32>
    %55 = vector.broadcast %54 : vector<1x1x128xf32> to vector<4x4x128xf32>
    %56 = arith.mulf %51, %55 : vector<4x4x128xf32>
    %c0_48 = arith.constant 0 : index
    %c0_49 = arith.constant 0 : index
    %c0_50 = arith.constant 0 : index
    %57 = vector.load %arg6[%c0_48, %c0_49, %c0_50] : memref<1x1x128xf32, #tpu.memory_space<vmem>>, vector<1x1x128xf32>
    %58 = vector.shape_cast %57 : vector<1x1x128xf32> to vector<1x128xf32>
    %59 = vector.shape_cast %58 : vector<1x128xf32> to vector<1x1x128xf32>
    %60 = vector.broadcast %59 : vector<1x1x128xf32> to vector<4x4x128xf32>
    %61 = arith.addf %56, %60 : vector<4x4x128xf32>
    %cst_51 = arith.constant 0.000000e+00 : f32
    %62 = vector.broadcast %cst_51 : f32 to vector<4x4x128xf32>
    %63 = arith.maximumf %61, %62 : vector<4x4x128xf32>
    %c1_52 = arith.constant 1 : index
    %c1_53 = arith.constant 1 : index
    %c0_54 = arith.constant 0 : index
    %64 = vector.load %arg10[%c1_52, %c1_53, %c0_54] : memref<6x6x128xf32, #tpu.memory_space<vmem>>, vector<4x4x128xf32>
    tpu.vector_store %arg10[%c1_52, %c1_53, %c0_54], %63 {strides = array<i32>} : memref<6x6x128xf32, #tpu.memory_space<vmem>>, vector<4x4x128xf32>,
    %65 = vector.extract_strided_slice %63 {offsets = [1, 0, 0], sizes = [1, 4, 128], strides = [1, 1, 1]} : vector<4x4x128xf32> to vector<1x4x128xf32>
    %66 = vector.shape_cast %65 : vector<1x4x128xf32> to vector<4x128xf32>
    %c0_55 = arith.constant 0 : index
    %c1_56 = arith.constant 1 : index
    %c0_57 = arith.constant 0 : index
    %67 = vector.load %arg10[%c0_55, %c1_56, %c0_57] : memref<6x6x128xf32, #tpu.memory_space<vmem>>, vector<1x4x128xf32>
    %68 = vector.shape_cast %67 : vector<1x4x128xf32> to vector<4x128xf32>
    %69 = vector.shape_cast %66 : vector<4x128xf32> to vector<1x4x128xf32>
    tpu.vector_store %arg10[%c0_55, %c1_56, %c0_57], %69 {strides = array<i32>} : memref<6x6x128xf32, #tpu.memory_space<vmem>>, vector<1x4x128xf32>,
    %70 = vector.extract_strided_slice %63 {offsets = [2, 0, 0], sizes = [1, 4, 128], strides = [1, 1, 1]} : vector<4x4x128xf32> to vector<1x4x128xf32>
    %71 = vector.shape_cast %70 : vector<1x4x128xf32> to vector<4x128xf32>
    %c5_58 = arith.constant 5 : index
    %c1_59 = arith.constant 1 : index
    %c0_60 = arith.constant 0 : index
    %72 = vector.load %arg10[%c5_58, %c1_59, %c0_60] : memref<6x6x128xf32, #tpu.memory_space<vmem>>, vector<1x4x128xf32>
    %73 = vector.shape_cast %72 : vector<1x4x128xf32> to vector<4x128xf32>
    %74 = vector.shape_cast %71 : vector<4x128xf32> to vector<1x4x128xf32>
    tpu.vector_store %arg10[%c5_58, %c1_59, %c0_60], %74 {strides = array<i32>} : memref<6x6x128xf32, #tpu.memory_space<vmem>>, vector<1x4x128xf32>,
    %c0_61 = arith.constant 0 : index
    %c2_62 = arith.constant 2 : index
    %c0_63 = arith.constant 0 : index
    %75 = vector.load %arg10[%c0_61, %c2_62, %c0_63] : memref<6x6x128xf32, #tpu.memory_space<vmem>>, vector<6x1x128xf32>
    %76 = vector.shape_cast %75 : vector<6x1x128xf32> to vector<6x128xf32>
    %c0_64 = arith.constant 0 : index
    %c0_65 = arith.constant 0 : index
    %c0_66 = arith.constant 0 : index
    %77 = vector.load %arg10[%c0_64, %c0_65, %c0_66] : memref<6x6x128xf32, #tpu.memory_space<vmem>>, vector<6x1x128xf32>
    %78 = vector.shape_cast %77 : vector<6x1x128xf32> to vector<6x128xf32>
    %79 = vector.shape_cast %76 : vector<6x128xf32> to vector<6x1x128xf32>
    tpu.vector_store %arg10[%c0_64, %c0_65, %c0_66], %79 {strides = array<i32>} : memref<6x6x128xf32, #tpu.memory_space<vmem>>, vector<6x1x128xf32>,
    %c0_67 = arith.constant 0 : index
    %c3_68 = arith.constant 3 : index
    %c0_69 = arith.constant 0 : index
    %80 = vector.load %arg10[%c0_67, %c3_68, %c0_69] : memref<6x6x128xf32, #tpu.memory_space<vmem>>, vector<6x1x128xf32>
    %81 = vector.shape_cast %80 : vector<6x1x128xf32> to vector<6x128xf32>
    %c0_70 = arith.constant 0 : index
    %c5_71 = arith.constant 5 : index
    %c0_72 = arith.constant 0 : index
    %82 = vector.load %arg10[%c0_70, %c5_71, %c0_72] : memref<6x6x128xf32, #tpu.memory_space<vmem>>, vector<6x1x128xf32>
    %83 = vector.shape_cast %82 : vector<6x1x128xf32> to vector<6x128xf32>
    %84 = vector.shape_cast %81 : vector<6x128xf32> to vector<6x1x128xf32>
    tpu.vector_store %arg10[%c0_70, %c5_71, %c0_72], %84 {strides = array<i32>} : memref<6x6x128xf32, #tpu.memory_space<vmem>>, vector<6x1x128xf32>,
    %c0_73 = arith.constant 0 : index
    %c0_74 = arith.constant 0 : index
    %c0_75 = arith.constant 0 : index
    %85 = vector.load %arg10[%c0_73, %c0_74, %c0_75] : memref<6x6x128xf32, #tpu.memory_space<vmem>>, vector<4x6x128xf32>
    %c1_76 = arith.constant 1 : index
    %c0_77 = arith.constant 0 : index
    %c0_78 = arith.constant 0 : index
    %86 = vector.load %arg10[%c1_76, %c0_77, %c0_78] : memref<6x6x128xf32, #tpu.memory_space<vmem>>, vector<4x6x128xf32>
    %c2_79 = arith.constant 2 : index
    %c0_80 = arith.constant 0 : index
    %c0_81 = arith.constant 0 : index
    %87 = vector.load %arg10[%c2_79, %c0_80, %c0_81] : memref<6x6x128xf32, #tpu.memory_space<vmem>>, vector<4x6x128xf32>
    %88 = tpu.concatenate %85, %86, %87 in 2 : vector<4x6x128xf32>, vector<4x6x128xf32>, vector<4x6x128xf32> -> vector<4x6x384xf32>
    %89 = vector.shape_cast %88 : vector<4x6x384xf32> to vector<24x384xf32>
    %90 = arith.truncf %89 : vector<24x384xf32> to vector<24x384xbf16>
    %cst_82 = arith.constant 0.000000e+00 : f32
    %91 = vector.broadcast %cst_82 : f32 to vector<4x4x128xf32>
    %c0_83 = arith.constant 0 : index
    %c0_84 = arith.constant 0 : index
    %c0_85 = arith.constant 0 : index
    %c0_86 = arith.constant 0 : index
    %92 = vector.load %arg4[%c0_83, %c0_84, %c0_85, %c0_86] : memref<1x3x384x128xbf16, #tpu.memory_space<vmem>>, vector<1x1x384x128xbf16>
    %93 = vector.shape_cast %92 : vector<1x1x384x128xbf16> to vector<384x128xbf16>
    %cst_87 = arith.constant dense<0.000000e+00> : vector<24x128xf32>
    %94 = tpu.matmul %90, %93, %cst_87 {dimension_numbers = #tpu.dot_dimension_numbers<[1], [0], [0], [1], [0, 0, 1, 1], [], []>} : vector<24x384xbf16>, vector<384x128xbf16>, vector<24x128xf32> -> vector<24x128xf32>
    %95 = vector.shape_cast %94 : vector<24x128xf32> to vector<4x6x128xf32>
    %96 = vector.extract_strided_slice %95 {offsets = [0, 0, 0], sizes = [4, 4, 128], strides = [1, 1, 1]} : vector<4x6x128xf32> to vector<4x4x128xf32>
    %97 = arith.addf %91, %96 : vector<4x4x128xf32>
    %c0_88 = arith.constant 0 : index
    %c1_89 = arith.constant 1 : index
    %c0_90 = arith.constant 0 : index
    %c0_91 = arith.constant 0 : index
    %98 = vector.load %arg4[%c0_88, %c1_89, %c0_90, %c0_91] : memref<1x3x384x128xbf16, #tpu.memory_space<vmem>>, vector<1x1x384x128xbf16>
    %99 = vector.shape_cast %98 : vector<1x1x384x128xbf16> to vector<384x128xbf16>
    %cst_92 = arith.constant dense<0.000000e+00> : vector<24x128xf32>
    %100 = tpu.matmul %90, %99, %cst_92 {dimension_numbers = #tpu.dot_dimension_numbers<[1], [0], [0], [1], [0, 0, 1, 1], [], []>} : vector<24x384xbf16>, vector<384x128xbf16>, vector<24x128xf32> -> vector<24x128xf32>
    %101 = vector.shape_cast %100 : vector<24x128xf32> to vector<4x6x128xf32>
    %102 = vector.extract_strided_slice %101 {offsets = [0, 1, 0], sizes = [4, 4, 128], strides = [1, 1, 1]} : vector<4x6x128xf32> to vector<4x4x128xf32>
    %103 = arith.addf %97, %102 : vector<4x4x128xf32>
    %c0_93 = arith.constant 0 : index
    %c2_94 = arith.constant 2 : index
    %c0_95 = arith.constant 0 : index
    %c0_96 = arith.constant 0 : index
    %104 = vector.load %arg4[%c0_93, %c2_94, %c0_95, %c0_96] : memref<1x3x384x128xbf16, #tpu.memory_space<vmem>>, vector<1x1x384x128xbf16>
    %105 = vector.shape_cast %104 : vector<1x1x384x128xbf16> to vector<384x128xbf16>
    %cst_97 = arith.constant dense<0.000000e+00> : vector<24x128xf32>
    %106 = tpu.matmul %90, %105, %cst_97 {dimension_numbers = #tpu.dot_dimension_numbers<[1], [0], [0], [1], [0, 0, 1, 1], [], []>} : vector<24x384xbf16>, vector<384x128xbf16>, vector<24x128xf32> -> vector<24x128xf32>
    %107 = vector.shape_cast %106 : vector<24x128xf32> to vector<4x6x128xf32>
    %108 = vector.extract_strided_slice %107 {offsets = [0, 2, 0], sizes = [4, 4, 128], strides = [1, 1, 1]} : vector<4x6x128xf32> to vector<4x4x128xf32>
    %109 = arith.addf %103, %108 : vector<4x4x128xf32>
    %c0_98 = arith.constant 0 : index
    %c0_99 = arith.constant 0 : index
    %c0_100 = arith.constant 0 : index
    %110 = vector.load %arg7[%c0_98, %c0_99, %c0_100] : memref<1x1x128xf32, #tpu.memory_space<vmem>>, vector<1x1x128xf32>
    %111 = vector.shape_cast %110 : vector<1x1x128xf32> to vector<1x128xf32>
    %112 = vector.shape_cast %111 : vector<1x128xf32> to vector<1x1x128xf32>
    %113 = vector.broadcast %112 : vector<1x1x128xf32> to vector<4x4x128xf32>
    %114 = arith.mulf %109, %113 : vector<4x4x128xf32>
    %c0_101 = arith.constant 0 : index
    %c0_102 = arith.constant 0 : index
    %c0_103 = arith.constant 0 : index
    %115 = vector.load %arg8[%c0_101, %c0_102, %c0_103] : memref<1x1x128xf32, #tpu.memory_space<vmem>>, vector<1x1x128xf32>
    %116 = vector.shape_cast %115 : vector<1x1x128xf32> to vector<1x128xf32>
    %117 = vector.shape_cast %116 : vector<1x128xf32> to vector<1x1x128xf32>
    %118 = vector.broadcast %117 : vector<1x1x128xf32> to vector<4x4x128xf32>
    %119 = arith.addf %114, %118 : vector<4x4x128xf32>
    %120 = arith.addf %5, %119 : vector<4x4x128xf32>
    %121 = arith.truncf %120 : vector<4x4x128xf32> to vector<4x4x128xbf16>
    %c0_104 = arith.constant 0 : index
    %c0_105 = arith.constant 0 : index
    %c0_106 = arith.constant 0 : index
    %c0_107 = arith.constant 0 : index
    %122 = vector.load %arg9[%c0_104, %c0_105, %c0_106, %c0_107] : memref<1x4x4x128xbf16, #tpu.memory_space<vmem>>, vector<1x4x4x128xbf16>
    %123 = vector.shape_cast %122 : vector<1x4x4x128xbf16> to vector<4x4x128xbf16>
    %124 = vector.shape_cast %121 : vector<4x4x128xbf16> to vector<1x4x4x128xbf16>
    tpu.vector_store %arg9[%c0_104, %c0_105, %c0_106, %c0_107], %124 {strides = array<i32>} : memref<1x4x4x128xbf16, #tpu.memory_space<vmem>>, vector<1x4x4x128xbf16>,
    return
  }
  func.func @transform_0(%arg0: i32, %arg1: i32) -> (i32, i32, i32, i32) {
    %c0_i32 = arith.constant 0 : i32
    %c0_i32_0 = arith.constant 0 : i32
    %c0_i32_1 = arith.constant 0 : i32
    %c0_i32_2 = arith.constant 0 : i32
    return %arg0, %c0_i32, %c0_i32_0, %c0_i32_1 : i32, i32, i32, i32
  }
  func.func @transform_1(%arg0: i32, %arg1: i32) -> (i32, i32, i32, i32) {
    %c0_i32 = arith.constant 0 : i32
    %c0_i32_0 = arith.constant 0 : i32
    %c0_i32_1 = arith.constant 0 : i32
    %c0_i32_2 = arith.constant 0 : i32
    return %arg1, %c0_i32, %c0_i32_0, %c0_i32_1 : i32, i32, i32, i32
  }
  func.func @transform_2(%arg0: i32, %arg1: i32) -> (i32, i32, i32, i32) {
    %c0_i32 = arith.constant 0 : i32
    %c0_i32_0 = arith.constant 0 : i32
    %c0_i32_1 = arith.constant 0 : i32
    %c0_i32_2 = arith.constant 0 : i32
    return %arg1, %c0_i32, %c0_i32_0, %c0_i32_1 : i32, i32, i32, i32
  }
  func.func @transform_3(%arg0: i32, %arg1: i32) -> (i32, i32, i32) {
    %c0_i32 = arith.constant 0 : i32
    %c0_i32_0 = arith.constant 0 : i32
    %c0_i32_1 = arith.constant 0 : i32
    return %arg1, %c0_i32, %c0_i32_0 : i32, i32, i32
  }
  func.func @transform_4(%arg0: i32, %arg1: i32) -> (i32, i32, i32) {
    %c0_i32 = arith.constant 0 : i32
    %c0_i32_0 = arith.constant 0 : i32
    %c0_i32_1 = arith.constant 0 : i32
    return %arg1, %c0_i32, %c0_i32_0 : i32, i32, i32
  }
  func.func @transform_5(%arg0: i32, %arg1: i32) -> (i32, i32, i32) {
    %c0_i32 = arith.constant 0 : i32
    %c0_i32_0 = arith.constant 0 : i32
    %c0_i32_1 = arith.constant 0 : i32
    return %arg1, %c0_i32, %c0_i32_0 : i32, i32, i32
  }
  func.func @transform_6(%arg0: i32, %arg1: i32) -> (i32, i32, i32) {
    %c0_i32 = arith.constant 0 : i32
    %c0_i32_0 = arith.constant 0 : i32
    %c0_i32_1 = arith.constant 0 : i32
    return %arg1, %c0_i32, %c0_i32_0 : i32, i32, i32
  }
  func.func @transform_7(%arg0: i32, %arg1: i32) -> (i32, i32, i32, i32) {
    %c0_i32 = arith.constant 0 : i32
    %c0_i32_0 = arith.constant 0 : i32
    %c0_i32_1 = arith.constant 0 : i32
    %c0_i32_2 = arith.constant 0 : i32
    return %arg0, %c0_i32, %c0_i32_0, %c0_i32_1 : i32, i32, i32, i32
  }
}

module attributes {stable_mosaic.version = 11 : i64} {
  func.func @_conv_bn_act_kernel(%arg0: i32, %arg1: memref<1x5x5x128xbf16, #tpu.memory_space<vmem>>, %arg2: memref<2x256x256xbf16, #tpu.memory_space<vmem>>, %arg3: memref<1x256xf32, #tpu.memory_space<vmem>>, %arg4: memref<1x256xf32, #tpu.memory_space<vmem>>, %arg5: memref<1x4x4x256xbf16, #tpu.memory_space<vmem>>) attributes {dimension_semantics = [#tpu.dimension_semantics<parallel>], iteration_bounds = array<i64: 2>, scalar_prefetch = 0 : i64, scratch_operands = 0 : i64, tpu.core_type = #tpu.core_type<tc>, window_params = [{transform_indices = @transform_0, window_bounds = array<i64: 1, 5, 5, 128>}, {pipeline_mode = #tpu.pipeline_mode<synchronous>, transform_indices = @transform_1, window_bounds = array<i64: 2, 256, 256>}, {pipeline_mode = #tpu.pipeline_mode<synchronous>, transform_indices = @transform_2, window_bounds = array<i64: 1, 256>}, {pipeline_mode = #tpu.pipeline_mode<synchronous>, transform_indices = @transform_3, window_bounds = array<i64: 1, 256>}, {transform_indices = @transform_4, window_bounds = array<i64: 1, 4, 4, 256>}]} {
    %c0 = arith.constant 0 : index
    %c0_0 = arith.constant 0 : index
    %c0_1 = arith.constant 0 : index
    %c0_2 = arith.constant 0 : index
    %0 = vector.load %arg1[%c0, %c0_0, %c0_1, %c0_2] : memref<1x5x5x128xbf16, #tpu.memory_space<vmem>>, vector<1x4x5x128xbf16>
    %1 = vector.shape_cast %0 : vector<1x4x5x128xbf16> to vector<4x5x128xbf16>
    %c0_3 = arith.constant 0 : index
    %c1 = arith.constant 1 : index
    %c0_4 = arith.constant 0 : index
    %c0_5 = arith.constant 0 : index
    %2 = vector.load %arg1[%c0_3, %c1, %c0_4, %c0_5] : memref<1x5x5x128xbf16, #tpu.memory_space<vmem>>, vector<1x4x5x128xbf16>
    %3 = vector.shape_cast %2 : vector<1x4x5x128xbf16> to vector<4x5x128xbf16>
    %cst = arith.constant 0.000000e+00 : f32
    %4 = vector.broadcast %cst : f32 to vector<4x4x256xf32>
    %5 = tpu.concatenate %1, %3 in 2 : vector<4x5x128xbf16>, vector<4x5x128xbf16> -> vector<4x5x256xbf16>
    %6 = vector.shape_cast %5 : vector<4x5x256xbf16> to vector<20x256xbf16>
    %c0_6 = arith.constant 0 : index
    %c0_7 = arith.constant 0 : index
    %c0_8 = arith.constant 0 : index
    %7 = vector.load %arg2[%c0_6, %c0_7, %c0_8] : memref<2x256x256xbf16, #tpu.memory_space<vmem>>, vector<1x256x256xbf16>
    %8 = vector.shape_cast %7 : vector<1x256x256xbf16> to vector<256x256xbf16>
    %cst_9 = arith.constant dense<0.000000e+00> : vector<20x256xf32>
    %9 = tpu.matmul %6, %8, %cst_9 {dimension_numbers = #tpu.dot_dimension_numbers<[1], [0], [0], [1], [0, 0, 1, 1], [], []>} : vector<20x256xbf16>, vector<256x256xbf16>, vector<20x256xf32> -> vector<20x256xf32>
    %10 = vector.shape_cast %9 : vector<20x256xf32> to vector<4x5x256xf32>
    %11 = vector.extract_strided_slice %10 {offsets = [0, 0, 0], sizes = [4, 4, 256], strides = [1, 1, 1]} : vector<4x5x256xf32> to vector<4x4x256xf32>
    %12 = arith.addf %4, %11 : vector<4x4x256xf32>
    %c1_10 = arith.constant 1 : index
    %c0_11 = arith.constant 0 : index
    %c0_12 = arith.constant 0 : index
    %13 = vector.load %arg2[%c1_10, %c0_11, %c0_12] : memref<2x256x256xbf16, #tpu.memory_space<vmem>>, vector<1x256x256xbf16>
    %14 = vector.shape_cast %13 : vector<1x256x256xbf16> to vector<256x256xbf16>
    %cst_13 = arith.constant dense<0.000000e+00> : vector<20x256xf32>
    %15 = tpu.matmul %6, %14, %cst_13 {dimension_numbers = #tpu.dot_dimension_numbers<[1], [0], [0], [1], [0, 0, 1, 1], [], []>} : vector<20x256xbf16>, vector<256x256xbf16>, vector<20x256xf32> -> vector<20x256xf32>
    %16 = vector.shape_cast %15 : vector<20x256xf32> to vector<4x5x256xf32>
    %17 = vector.extract_strided_slice %16 {offsets = [0, 1, 0], sizes = [4, 4, 256], strides = [1, 1, 1]} : vector<4x5x256xf32> to vector<4x4x256xf32>
    %18 = arith.addf %12, %17 : vector<4x4x256xf32>
    %c0_14 = arith.constant 0 : index
    %c0_15 = arith.constant 0 : index
    %19 = vector.load %arg3[%c0_14, %c0_15] : memref<1x256xf32, #tpu.memory_space<vmem>>, vector<1x256xf32>
    %20 = vector.shape_cast %19 : vector<1x256xf32> to vector<1x1x256xf32>
    %21 = vector.broadcast %20 : vector<1x1x256xf32> to vector<4x4x256xf32>
    %22 = arith.mulf %18, %21 : vector<4x4x256xf32>
    %c0_16 = arith.constant 0 : index
    %c0_17 = arith.constant 0 : index
    %23 = vector.load %arg4[%c0_16, %c0_17] : memref<1x256xf32, #tpu.memory_space<vmem>>, vector<1x256xf32>
    %24 = vector.shape_cast %23 : vector<1x256xf32> to vector<1x1x256xf32>
    %25 = vector.broadcast %24 : vector<1x1x256xf32> to vector<4x4x256xf32>
    %26 = arith.addf %22, %25 : vector<4x4x256xf32>
    %cst_18 = arith.constant 0.000000e+00 : f32
    %27 = vector.broadcast %cst_18 : f32 to vector<4x4x256xf32>
    %28 = arith.maximumf %26, %27 : vector<4x4x256xf32>
    %29 = arith.truncf %28 : vector<4x4x256xf32> to vector<4x4x256xbf16>
    %c0_19 = arith.constant 0 : index
    %c0_20 = arith.constant 0 : index
    %c0_21 = arith.constant 0 : index
    %c0_22 = arith.constant 0 : index
    %30 = vector.load %arg5[%c0_19, %c0_20, %c0_21, %c0_22] : memref<1x4x4x256xbf16, #tpu.memory_space<vmem>>, vector<1x4x4x256xbf16>
    %31 = vector.shape_cast %30 : vector<1x4x4x256xbf16> to vector<4x4x256xbf16>
    %32 = vector.shape_cast %29 : vector<4x4x256xbf16> to vector<1x4x4x256xbf16>
    tpu.vector_store %arg5[%c0_19, %c0_20, %c0_21, %c0_22], %32 {strides = array<i32>} : memref<1x4x4x256xbf16, #tpu.memory_space<vmem>>, vector<1x4x4x256xbf16>,
    return
  }
  func.func @transform_0(%arg0: i32) -> (i32, i32, i32, i32) {
    %c0_i32 = arith.constant 0 : i32
    %c0_i32_0 = arith.constant 0 : i32
    %c0_i32_1 = arith.constant 0 : i32
    %c0_i32_2 = arith.constant 0 : i32
    return %arg0, %c0_i32, %c0_i32_0, %c0_i32_1 : i32, i32, i32, i32
  }
  func.func @transform_1(%arg0: i32) -> (i32, i32, i32) {
    %c0_i32 = arith.constant 0 : i32
    %c0_i32_0 = arith.constant 0 : i32
    %c0_i32_1 = arith.constant 0 : i32
    %c0_i32_2 = arith.constant 0 : i32
    return %c0_i32, %c0_i32_0, %c0_i32_1 : i32, i32, i32
  }
  func.func @transform_2(%arg0: i32) -> (i32, i32) {
    %c0_i32 = arith.constant 0 : i32
    %c0_i32_0 = arith.constant 0 : i32
    %c0_i32_1 = arith.constant 0 : i32
    return %c0_i32, %c0_i32_0 : i32, i32
  }
  func.func @transform_3(%arg0: i32) -> (i32, i32) {
    %c0_i32 = arith.constant 0 : i32
    %c0_i32_0 = arith.constant 0 : i32
    %c0_i32_1 = arith.constant 0 : i32
    return %c0_i32, %c0_i32_0 : i32, i32
  }
  func.func @transform_4(%arg0: i32) -> (i32, i32, i32, i32) {
    %c0_i32 = arith.constant 0 : i32
    %c0_i32_0 = arith.constant 0 : i32
    %c0_i32_1 = arith.constant 0 : i32
    %c0_i32_2 = arith.constant 0 : i32
    return %arg0, %c0_i32, %c0_i32_0, %c0_i32_1 : i32, i32, i32, i32
  }
}

module attributes {stable_mosaic.version = 11 : i64} {
  func.func @_conv_bn_act_kernel(%arg0: i32, %arg1: memref<1x9x9x64xbf16, #tpu.memory_space<vmem>>, %arg2: memref<4x64x128xbf16, #tpu.memory_space<vmem>>, %arg3: memref<1x128xf32, #tpu.memory_space<vmem>>, %arg4: memref<1x128xf32, #tpu.memory_space<vmem>>, %arg5: memref<1x8x8x128xbf16, #tpu.memory_space<vmem>>) attributes {dimension_semantics = [#tpu.dimension_semantics<parallel>], iteration_bounds = array<i64: 2>, scalar_prefetch = 0 : i64, scratch_operands = 0 : i64, tpu.core_type = #tpu.core_type<tc>, window_params = [{transform_indices = @transform_0, window_bounds = array<i64: 1, 9, 9, 64>}, {pipeline_mode = #tpu.pipeline_mode<synchronous>, transform_indices = @transform_1, window_bounds = array<i64: 4, 64, 128>}, {pipeline_mode = #tpu.pipeline_mode<synchronous>, transform_indices = @transform_2, window_bounds = array<i64: 1, 128>}, {pipeline_mode = #tpu.pipeline_mode<synchronous>, transform_indices = @transform_3, window_bounds = array<i64: 1, 128>}, {transform_indices = @transform_4, window_bounds = array<i64: 1, 8, 8, 128>}]} {
    %c0 = arith.constant 0 : index
    %c0_0 = arith.constant 0 : index
    %c0_1 = arith.constant 0 : index
    %c0_2 = arith.constant 0 : index
    %0 = vector.load %arg1[%c0, %c0_0, %c0_1, %c0_2] : memref<1x9x9x64xbf16, #tpu.memory_space<vmem>>, vector<1x8x9x64xbf16>
    %1 = vector.shape_cast %0 : vector<1x8x9x64xbf16> to vector<8x9x64xbf16>
    %c0_3 = arith.constant 0 : index
    %c1 = arith.constant 1 : index
    %c0_4 = arith.constant 0 : index
    %c0_5 = arith.constant 0 : index
    %2 = vector.load %arg1[%c0_3, %c1, %c0_4, %c0_5] : memref<1x9x9x64xbf16, #tpu.memory_space<vmem>>, vector<1x8x9x64xbf16>
    %3 = vector.shape_cast %2 : vector<1x8x9x64xbf16> to vector<8x9x64xbf16>
    %cst = arith.constant 0.000000e+00 : f32
    %4 = vector.broadcast %cst : f32 to vector<8x8x128xf32>
    %5 = vector.shape_cast %1 : vector<8x9x64xbf16> to vector<72x64xbf16>
    %c0_6 = arith.constant 0 : index
    %c0_7 = arith.constant 0 : index
    %c0_8 = arith.constant 0 : index
    %6 = vector.load %arg2[%c0_6, %c0_7, %c0_8] : memref<4x64x128xbf16, #tpu.memory_space<vmem>>, vector<1x64x128xbf16>
    %7 = vector.shape_cast %6 : vector<1x64x128xbf16> to vector<64x128xbf16>
    %cst_9 = arith.constant dense<0.000000e+00> : vector<72x128xf32>
    %8 = tpu.matmul %5, %7, %cst_9 {dimension_numbers = #tpu.dot_dimension_numbers<[1], [0], [0], [1], [0, 0, 1, 1], [], []>} : vector<72x64xbf16>, vector<64x128xbf16>, vector<72x128xf32> -> vector<72x128xf32>
    %9 = vector.shape_cast %8 : vector<72x128xf32> to vector<8x9x128xf32>
    %10 = vector.extract_strided_slice %9 {offsets = [0, 0, 0], sizes = [8, 8, 128], strides = [1, 1, 1]} : vector<8x9x128xf32> to vector<8x8x128xf32>
    %11 = arith.addf %4, %10 : vector<8x8x128xf32>
    %c1_10 = arith.constant 1 : index
    %c0_11 = arith.constant 0 : index
    %c0_12 = arith.constant 0 : index
    %12 = vector.load %arg2[%c1_10, %c0_11, %c0_12] : memref<4x64x128xbf16, #tpu.memory_space<vmem>>, vector<1x64x128xbf16>
    %13 = vector.shape_cast %12 : vector<1x64x128xbf16> to vector<64x128xbf16>
    %cst_13 = arith.constant dense<0.000000e+00> : vector<72x128xf32>
    %14 = tpu.matmul %5, %13, %cst_13 {dimension_numbers = #tpu.dot_dimension_numbers<[1], [0], [0], [1], [0, 0, 1, 1], [], []>} : vector<72x64xbf16>, vector<64x128xbf16>, vector<72x128xf32> -> vector<72x128xf32>
    %15 = vector.shape_cast %14 : vector<72x128xf32> to vector<8x9x128xf32>
    %16 = vector.extract_strided_slice %15 {offsets = [0, 1, 0], sizes = [8, 8, 128], strides = [1, 1, 1]} : vector<8x9x128xf32> to vector<8x8x128xf32>
    %17 = arith.addf %11, %16 : vector<8x8x128xf32>
    %18 = vector.shape_cast %3 : vector<8x9x64xbf16> to vector<72x64xbf16>
    %c2 = arith.constant 2 : index
    %c0_14 = arith.constant 0 : index
    %c0_15 = arith.constant 0 : index
    %19 = vector.load %arg2[%c2, %c0_14, %c0_15] : memref<4x64x128xbf16, #tpu.memory_space<vmem>>, vector<1x64x128xbf16>
    %20 = vector.shape_cast %19 : vector<1x64x128xbf16> to vector<64x128xbf16>
    %cst_16 = arith.constant dense<0.000000e+00> : vector<72x128xf32>
    %21 = tpu.matmul %18, %20, %cst_16 {dimension_numbers = #tpu.dot_dimension_numbers<[1], [0], [0], [1], [0, 0, 1, 1], [], []>} : vector<72x64xbf16>, vector<64x128xbf16>, vector<72x128xf32> -> vector<72x128xf32>
    %22 = vector.shape_cast %21 : vector<72x128xf32> to vector<8x9x128xf32>
    %23 = vector.extract_strided_slice %22 {offsets = [0, 0, 0], sizes = [8, 8, 128], strides = [1, 1, 1]} : vector<8x9x128xf32> to vector<8x8x128xf32>
    %24 = arith.addf %17, %23 : vector<8x8x128xf32>
    %c3 = arith.constant 3 : index
    %c0_17 = arith.constant 0 : index
    %c0_18 = arith.constant 0 : index
    %25 = vector.load %arg2[%c3, %c0_17, %c0_18] : memref<4x64x128xbf16, #tpu.memory_space<vmem>>, vector<1x64x128xbf16>
    %26 = vector.shape_cast %25 : vector<1x64x128xbf16> to vector<64x128xbf16>
    %cst_19 = arith.constant dense<0.000000e+00> : vector<72x128xf32>
    %27 = tpu.matmul %18, %26, %cst_19 {dimension_numbers = #tpu.dot_dimension_numbers<[1], [0], [0], [1], [0, 0, 1, 1], [], []>} : vector<72x64xbf16>, vector<64x128xbf16>, vector<72x128xf32> -> vector<72x128xf32>
    %28 = vector.shape_cast %27 : vector<72x128xf32> to vector<8x9x128xf32>
    %29 = vector.extract_strided_slice %28 {offsets = [0, 1, 0], sizes = [8, 8, 128], strides = [1, 1, 1]} : vector<8x9x128xf32> to vector<8x8x128xf32>
    %30 = arith.addf %24, %29 : vector<8x8x128xf32>
    %c0_20 = arith.constant 0 : index
    %c0_21 = arith.constant 0 : index
    %31 = vector.load %arg3[%c0_20, %c0_21] : memref<1x128xf32, #tpu.memory_space<vmem>>, vector<1x128xf32>
    %32 = vector.shape_cast %31 : vector<1x128xf32> to vector<1x1x128xf32>
    %33 = vector.broadcast %32 : vector<1x1x128xf32> to vector<8x8x128xf32>
    %34 = arith.mulf %30, %33 : vector<8x8x128xf32>
    %c0_22 = arith.constant 0 : index
    %c0_23 = arith.constant 0 : index
    %35 = vector.load %arg4[%c0_22, %c0_23] : memref<1x128xf32, #tpu.memory_space<vmem>>, vector<1x128xf32>
    %36 = vector.shape_cast %35 : vector<1x128xf32> to vector<1x1x128xf32>
    %37 = vector.broadcast %36 : vector<1x1x128xf32> to vector<8x8x128xf32>
    %38 = arith.addf %34, %37 : vector<8x8x128xf32>
    %cst_24 = arith.constant 0.000000e+00 : f32
    %39 = vector.broadcast %cst_24 : f32 to vector<8x8x128xf32>
    %40 = arith.maximumf %38, %39 : vector<8x8x128xf32>
    %41 = arith.truncf %40 : vector<8x8x128xf32> to vector<8x8x128xbf16>
    %c0_25 = arith.constant 0 : index
    %c0_26 = arith.constant 0 : index
    %c0_27 = arith.constant 0 : index
    %c0_28 = arith.constant 0 : index
    %42 = vector.load %arg5[%c0_25, %c0_26, %c0_27, %c0_28] : memref<1x8x8x128xbf16, #tpu.memory_space<vmem>>, vector<1x8x8x128xbf16>
    %43 = vector.shape_cast %42 : vector<1x8x8x128xbf16> to vector<8x8x128xbf16>
    %44 = vector.shape_cast %41 : vector<8x8x128xbf16> to vector<1x8x8x128xbf16>
    tpu.vector_store %arg5[%c0_25, %c0_26, %c0_27, %c0_28], %44 {strides = array<i32>} : memref<1x8x8x128xbf16, #tpu.memory_space<vmem>>, vector<1x8x8x128xbf16>,
    return
  }
  func.func @transform_0(%arg0: i32) -> (i32, i32, i32, i32) {
    %c0_i32 = arith.constant 0 : i32
    %c0_i32_0 = arith.constant 0 : i32
    %c0_i32_1 = arith.constant 0 : i32
    %c0_i32_2 = arith.constant 0 : i32
    return %arg0, %c0_i32, %c0_i32_0, %c0_i32_1 : i32, i32, i32, i32
  }
  func.func @transform_1(%arg0: i32) -> (i32, i32, i32) {
    %c0_i32 = arith.constant 0 : i32
    %c0_i32_0 = arith.constant 0 : i32
    %c0_i32_1 = arith.constant 0 : i32
    %c0_i32_2 = arith.constant 0 : i32
    return %c0_i32, %c0_i32_0, %c0_i32_1 : i32, i32, i32
  }
  func.func @transform_2(%arg0: i32) -> (i32, i32) {
    %c0_i32 = arith.constant 0 : i32
    %c0_i32_0 = arith.constant 0 : i32
    %c0_i32_1 = arith.constant 0 : i32
    return %c0_i32, %c0_i32_0 : i32, i32
  }
  func.func @transform_3(%arg0: i32) -> (i32, i32) {
    %c0_i32 = arith.constant 0 : i32
    %c0_i32_0 = arith.constant 0 : i32
    %c0_i32_1 = arith.constant 0 : i32
    return %c0_i32, %c0_i32_0 : i32, i32
  }
  func.func @transform_4(%arg0: i32) -> (i32, i32, i32, i32) {
    %c0_i32 = arith.constant 0 : i32
    %c0_i32_0 = arith.constant 0 : i32
    %c0_i32_1 = arith.constant 0 : i32
    %c0_i32_2 = arith.constant 0 : i32
    return %arg0, %c0_i32, %c0_i32_0, %c0_i32_1 : i32, i32, i32, i32
  }
}

module attributes {stable_mosaic.version = 11 : i64} {
  func.func @_tail_kernel(%arg0: i32, %arg1: memref<1x1568x256xbf16, #tpu.memory_space<vmem>>, %arg2: memref<3x1568xbf16, #tpu.memory_space<vmem>>, %arg3: memref<3x1xf32, #tpu.memory_space<vmem>>, %arg4: memref<1x3x256xf32, #tpu.memory_space<vmem>>) attributes {dimension_semantics = [#tpu.dimension_semantics<parallel>], iteration_bounds = array<i64: 2>, scalar_prefetch = 0 : i64, scratch_operands = 0 : i64, tpu.core_type = #tpu.core_type<tc>, window_params = [{transform_indices = @transform_0, window_bounds = array<i64: 1, 1568, 256>}, {pipeline_mode = #tpu.pipeline_mode<synchronous>, transform_indices = @transform_1, window_bounds = array<i64: 3, 1568>}, {pipeline_mode = #tpu.pipeline_mode<synchronous>, transform_indices = @transform_2, window_bounds = array<i64: 3, 1>}, {transform_indices = @transform_3, window_bounds = array<i64: 1, 3, 256>}]} {
    %c0 = arith.constant 0 : index
    %c0_0 = arith.constant 0 : index
    %0 = vector.load %arg2[%c0, %c0_0] : memref<3x1568xbf16, #tpu.memory_space<vmem>>, vector<3x1568xbf16>
    %c0_1 = arith.constant 0 : index
    %c0_2 = arith.constant 0 : index
    %c0_3 = arith.constant 0 : index
    %1 = vector.load %arg1[%c0_1, %c0_2, %c0_3] : memref<1x1568x256xbf16, #tpu.memory_space<vmem>>, vector<1x1568x256xbf16>
    %2 = vector.shape_cast %1 : vector<1x1568x256xbf16> to vector<1568x256xbf16>
    %cst = arith.constant dense<0.000000e+00> : vector<3x256xf32>
    %3 = tpu.matmul %0, %2, %cst {dimension_numbers = #tpu.dot_dimension_numbers<[1], [0], [0], [1], [0, 0, 1, 1], [], []>} : vector<3x1568xbf16>, vector<1568x256xbf16>, vector<3x256xf32> -> vector<3x256xf32>
    %c0_4 = arith.constant 0 : index
    %c0_5 = arith.constant 0 : index
    %4 = vector.load %arg3[%c0_4, %c0_5] : memref<3x1xf32, #tpu.memory_space<vmem>>, vector<3x1xf32>
    %5 = vector.broadcast %4 : vector<3x1xf32> to vector<3x256xf32>
    %6 = arith.addf %3, %5 : vector<3x256xf32>
    %7 = math.tanh %6 : vector<3x256xf32>
    %c0_6 = arith.constant 0 : index
    %c0_7 = arith.constant 0 : index
    %c0_8 = arith.constant 0 : index
    %8 = vector.load %arg4[%c0_6, %c0_7, %c0_8] : memref<1x3x256xf32, #tpu.memory_space<vmem>>, vector<1x3x256xf32>
    %9 = vector.shape_cast %8 : vector<1x3x256xf32> to vector<3x256xf32>
    %10 = vector.shape_cast %7 : vector<3x256xf32> to vector<1x3x256xf32>
    tpu.vector_store %arg4[%c0_6, %c0_7, %c0_8], %10 {strides = array<i32>} : memref<1x3x256xf32, #tpu.memory_space<vmem>>, vector<1x3x256xf32>,
    return
  }
  func.func @transform_0(%arg0: i32) -> (i32, i32, i32) {
    %c0_i32 = arith.constant 0 : i32
    %c0_i32_0 = arith.constant 0 : i32
    %c0_i32_1 = arith.constant 0 : i32
    return %arg0, %c0_i32, %c0_i32_0 : i32, i32, i32
  }
  func.func @transform_1(%arg0: i32) -> (i32, i32) {
    %c0_i32 = arith.constant 0 : i32
    %c0_i32_0 = arith.constant 0 : i32
    %c0_i32_1 = arith.constant 0 : i32
    return %c0_i32, %c0_i32_0 : i32, i32
  }
  func.func @transform_2(%arg0: i32) -> (i32, i32) {
    %c0_i32 = arith.constant 0 : i32
    %c0_i32_0 = arith.constant 0 : i32
    %c0_i32_1 = arith.constant 0 : i32
    return %c0_i32, %c0_i32_0 : i32, i32
  }
  func.func @transform_3(%arg0: i32) -> (i32, i32, i32) {
    %c0_i32 = arith.constant 0 : i32
    %c0_i32_0 = arith.constant 0 : i32
    %c0_i32_1 = arith.constant 0 : i32
    return %arg0, %c0_i32, %c0_i32_0 : i32, i32, i32
  }
}

</mosaic_0001>

<bundles_post_ra>
// kernel: resnet_generator_pallas.7
= control target key start
LH: loop header
LB: loop body
LE: loop exit
PB: predicated region body
PF: predicated region fallthrough
CT: control target
= control target key end

     0   :  { %s1254_s15 = smov 0   ;;  %s1495_s0 = inlined_call_operand.vmem [shape: bf16[2,256,147], index: 0, kind: input, shape index: {}]   ;;  %s1496_s1 = inlined_call_operand.vmem [shape: bf16[147,32], index: 1, kind: input, shape index: {}]   ;;  %s1497_s2 = inlined_call_operand.vmem [shape: f32[1,32], index: 2, kind: input, shape index: {}]   ;;  %s1498_s3 = inlined_call_operand.vmem [shape: f32[1,32], index: 3, kind: input, shape index: {}]   ;;  %s1499_s4 = inlined_call_operand.vmem [shape: bf16[2,256,32], index: 4, kind: output, shape index: {}]  }
   0x1 LB: > { %s994_s16 = sadd.s32 4294967295, %s1225_s15   ;;  %p998_p0 = scmp.ge.s32.totalorder %s1225_s15, 1  ;;  %s1225_s15 = sphi %s1254_s15, %s14_s15  }
   0x2   : > { %p162_p1 = scmp.lt.s32.totalorder %s1225_s15, 3 }
   0x4   : > { %p163_p2 = pnand %p998_p0, %p162_p1 }
   0x5   : > { %v1161_v0 = vld [vmem:[%s1496_s1] sm:$0xff] (!%p163_p2)   ;;  %v1227_v1 = vmov (!%p163_p2), 0   ;;  %v1162_v2 = vld [vmem:[%s1496_s1 + $0x8] sm:$0xff] (!%p163_p2)   ;;  %v1163_v3 = vld [vmem:[%s1496_s1 + $0x10] sm:$0xff] (!%p163_p2)   ;;  %p188_p3 = scmp.lt.s32.totalorder (!%p163_p2), %s994_s16, 1  ;;  %vm451_vm0 = vcmask (!%p163_p2), 154624  }
   0x6   : > { %166 = sbr.rel (%p163_p2) target bundleno = 325 (0x145), region = 36  ;;  %507 = vmatprep.subr.bf16.mxu0 (!%p163_p2), %v1227_v1  ;;  %1131 = vmatprep.subr.bf16.mxu1 (!%p163_p2), %v1227_v1  ;;  %v1164_v4 = vld [vmem:[%s1496_s1 + $0x18] sm:$0xff] (!%p163_p2)   ;;  %v1165_v6 = vld [vmem:[%s1496_s1 + $0x20] sm:$0xff] (!%p163_p2)   ;;  %v1166_v8 = vld [vmem:[%s1496_s1 + $0x28] sm:$0xff] (!%p163_p2)   ;;  %vm500_vm1 = vcmask (!%p163_p2), 1040384   ;;  %vm501_vm2 = vcmask (!%p163_p2), 1041408  }
   0x7   : > { %508 = vmatpush1.bf16.msra.mxu0 (!%p163_p2), %v1161_v0  ;;  %1141 = vmatpush1.bf16.msra.mxu1 (!%p163_p2), %v1161_v0  ;;  %v1167_v9 = vld [vmem:[%s1496_s1 + $0x30] sm:$0xff] (!%p163_p2)   ;;  %v1168_v10 = vld [vmem:[%s1496_s1 + $0x38] sm:$0xff] (!%p163_p2)   ;;  %v1228_v11 = vmov (!%p163_p2), 65535   ;;  %v1169_v13 = vld [vmem:[%s1496_s1 + $0x40] sm:$0xff] (!%p163_p2)   ;;  %vm906_vm3 = vcmask (!%p163_p2), 257024  }
   0x8   : > { %509 = vmatprep.subr.bf16.mxu0 (!%p163_p2), %v1227_v1  ;;  %1132 = vmatprep.subr.bf16.mxu1 (!%p163_p2), %v1227_v1  ;;  %v502_v12 = vsel (!%p163_p2), %vm500_vm1, 4294967295, %v1228_v11  ;;  %v1170_v14 = vld [vmem:[%s1496_s1 + $0x48] ss:$0 sps:$4 sm:$0x33] (!%p163_p2)   ;;  %v1351_v47 = vld [vmem:[%s1497_s2] ss:$0 sm:$0xff] (!%p163_p2) }
   0x9   : > { %v503_v15 = vsel (!%p163_p2), %vm501_vm2, %v502_v12, 0  ;;  %v1356_v49 = vld [vmem:[%s1498_s3] ss:$0 sm:$0xff] (!%p163_p2) }
   0xa   : > { %v505_v16 = vand.u32 (!%p163_p2), %v1170_v14, %v503_v15 }
   0xb   : > { %510 = vmatpush1.bf16.msra.mxu0 (!%p163_p2), %v1162_v2  ;;  %1142 = vmatpush1.bf16.msra.mxu1 (!%p163_p2), %v1162_v2 }
   0xc   : > { %511 = vmatprep.subr.bf16.mxu0 (!%p163_p2), %v1227_v1  ;;  %1133 = vmatprep.subr.bf16.mxu1 (!%p163_p2), %v1227_v1 }
   0xd   : > { %s1501_s16 = smov (!%p188_p3, %s994_s16), 1 }
   0xe   : > { %s1097_s25 = sshll.u32 %s1501_s16, 8  ;;  %s1098_s21 = sshll.u32 %s1501_s16, 7 }
   0xf   : > { %512 = vmatpush1.bf16.msra.mxu0 %v1163_v3  ;;  %1143 = vmatpush1.bf16.msra.mxu1 %v1163_v3  ;;  %s1280_s28 = scalar_lea.vmem %s1495_s0, %s1097_s25  ;;  %s1370_s16 = scalar_lea.vmem %s1499_s4, %s1098_s21 }
  0x10   : > { %513 = vmatprep.subr.bf16.mxu0 %v1227_v1  ;;  %1134 = vmatprep.subr.bf16.mxu1 %v1227_v1  ;;  %v1173_v5 = vld [vmem:[%s1280_s28 + $0x4] ss:$8 sps:$4 sm:$0xff]   ;;  %v1171_v17 = vld [vmem:[%s1280_s28] ss:$8 sps:$4 sm:$0xff]   ;;  %v1177_v19 = vld [vmem:[%s1280_s28 + $0x14] ss:$8 sps:$4 sm:$0xff]  }
  0x11   : > { %v1176_v7 = vld [vmem:[%s1280_s28 + $0x84] ss:$8 sps:$4 sm:$0xff]   ;;  %1045 = vmatprep.mubr.msk.bf16.mxu0 %vm451_vm0, %v1173_v5  ;;  %v1174_v18 = vld [vmem:[%s1280_s28 + $0x80] ss:$8 sps:$4 sm:$0xff]   ;;  %v1179_v20 = vld [vmem:[%s1280_s28 + $0x94] ss:$8 sps:$4 sm:$0xff]  }
  0x12   : > { %1053 = vmatprep.mubr.msk.bf16.mxu1 %vm451_vm0, %v1176_v7  ;;  %v1181_v21 = vld [vmem:[%s1280_s28 + $0x10] ss:$8 sps:$4 sm:$0xff]   ;;  %v1183_v23 = vld [vmem:[%s1280_s28 + $0x24] ss:$8 sps:$4 sm:$0xff]   ;;  %v1187_v25 = vld [vmem:[%s1280_s28 + $0x20] ss:$8 sps:$4 sm:$0xff]  }
  0x13   : > { %514 = vmatpush1.bf16.msra.mxu0 %v1164_v4  ;;  %1144 = vmatpush1.bf16.msra.mxu1 %v1164_v4  ;;  %v1182_v22 = vld [vmem:[%s1280_s28 + $0x90] ss:$8 sps:$4 sm:$0xff]   ;;  %v1185_v24 = vld [vmem:[%s1280_s28 + $0xa4] ss:$8 sps:$4 sm:$0xff]   ;;  %v1188_v26 = vld [vmem:[%s1280_s28 + $0xa0] ss:$8 sps:$4 sm:$0xff]  }
  0x14   : > { %515 = vmatprep.subr.bf16.mxu0 %v1227_v1  ;;  %1135 = vmatprep.subr.bf16.mxu1 %v1227_v1  ;;  %v1189_v27 = vld [vmem:[%s1280_s28 + $0x34] ss:$8 sps:$4 sm:$0xff]   ;;  %v1193_v29 = vld [vmem:[%s1280_s28 + $0x30] ss:$8 sps:$4 sm:$0xff]   ;;  %v1195_v31 = vld [vmem:[%s1280_s28 + $0x44] ss:$8 sps:$4 sm:$0xff]  }
  0x15   : > { %v1191_v28 = vld [vmem:[%s1280_s28 + $0xb4] ss:$8 sps:$4 sm:$0xff]   ;;  %v1194_v30 = vld [vmem:[%s1280_s28 + $0xb0] ss:$8 sps:$4 sm:$0xff]   ;;  %v1197_v32 = vld [vmem:[%s1280_s28 + $0xc4] ss:$8 sps:$4 sm:$0xff]  }
  0x16   : > { %v1199_v33 = vld [vmem:[%s1280_s28 + $0x40] ss:$8 sps:$4 sm:$0xff]   ;;  %v1201_v35 = vld [vmem:[%s1280_s28 + $0x54] ss:$8 sps:$4 sm:$0xff]   ;;  %v1205_v37 = vld [vmem:[%s1280_s28 + $0x50] ss:$8 sps:$4 sm:$0xff]  }
  0x17   : > { %516 = vmatpush1.bf16.msra.mxu0 %v1165_v6  ;;  %1145 = vmatpush1.bf16.msra.mxu1 %v1165_v6  ;;  %v1200_v34 = vld [vmem:[%s1280_s28 + $0xc0] ss:$8 sps:$4 sm:$0xff]   ;;  %v1203_v36 = vld [vmem:[%s1280_s28 + $0xd4] ss:$8 sps:$4 sm:$0xff]   ;;  %v1206_v38 = vld [vmem:[%s1280_s28 + $0xd0] ss:$8 sps:$4 sm:$0xff]  }
  0x18   : > { %517 = vmatprep.subr.bf16.mxu0 %v1227_v1  ;;  %1136 = vmatprep.subr.bf16.mxu1 %v1227_v1  ;;  %v1207_v39 = vld [vmem:[%s1280_s28 + $0x64] ss:$8 sps:$4 sm:$0xff]   ;;  %v1211_v41 = vld [vmem:[%s1280_s28 + $0x60] ss:$8 sps:$4 sm:$0xff]   ;;  %v1213_v43 = vld [vmem:[%s1280_s28 + $0x74] ss:$8 sps:$4 sm:$0xff]  }
  0x19   : > { %v1209_v40 = vld [vmem:[%s1280_s28 + $0xe4] ss:$8 sps:$4 sm:$0xff]   ;;  %v1212_v42 = vld [vmem:[%s1280_s28 + $0xe0] ss:$8 sps:$4 sm:$0xff]   ;;  %v1215_v44 = vld [vmem:[%s1280_s28 + $0xf4] ss:$8 sps:$4 sm:$0xff]  }
  0x1a   : > { %v1217_v45 = vld [vmem:[%s1280_s28 + $0x70] ss:$8 sps:$4 sm:$0xff]  }
  0x1b   : > { %518 = vmatpush1.bf16.msra.mxu0 %v1166_v8  ;;  %1146 = vmatpush1.bf16.msra.mxu1 %v1166_v8  ;;  %v1218_v46 = vld [vmem:[%s1280_s28 + $0xf0] ss:$8 sps:$4 sm:$0xff]  }
  0x1c   : > { %519 = vmatprep.subr.bf16.mxu0 %v1227_v1  ;;  %1137 = vmatprep.subr.bf16.mxu1 %v1227_v1 }
  0x1f   : > { %520 = vmatpush1.bf16.msra.mxu0 %v1167_v9  ;;  %1147 = vmatpush1.bf16.msra.mxu1 %v1167_v9 }
  0x20   : > { %521 = vmatprep.subr.bf16.mxu0 %v1227_v1  ;;  %1138 = vmatprep.subr.bf16.mxu1 %v1227_v1 }
  0x23   : > { %522 = vmatpush1.bf16.msra.mxu0 %v1168_v10  ;;  %1148 = vmatpush1.bf16.msra.mxu1 %v1168_v10 }
  0x24   : > { %523 = vmatprep.subr.bf16.mxu0 %v1227_v1  ;;  %1139 = vmatprep.subr.bf16.mxu1 %v1227_v1 }
  0x27   : > { %524 = vmatpush1.bf16.msra.mxu0 %v1169_v13  ;;  %1149 = vmatpush1.bf16.msra.mxu1 %v1169_v13 }
  0x28   : > { %525 = vmatprep.subr.bf16.mxu0 %v1227_v1  ;;  %1140 = vmatprep.subr.bf16.mxu1 %v1227_v1 }
  0x2b   : > { %526 = vmatpush1.bf16.msra.mxu0 %v505_v16  ;;  %1150 = vmatpush1.bf16.msra.mxu1 %v505_v16 }
  0x2e   : > { %540 = vmatmul.mubr.bf16.vlgmr.msra.gmra.mrb[0].mxu0 %v1171_v17  ;;  %604 = vmatmul.mubr.bf16.vlgmr.msra.gmra.mrb[0].mxu1 %v1174_v18 }
  0x2f   : > { %1046 = vmatprep.mubr.msk.bf16.mxu0 %vm451_vm0, %v1177_v19  ;;  %1054 = vmatprep.mubr.msk.bf16.mxu1 %vm451_vm0, %v1179_v20 }
  0x36   : > { %548 = vmatmul.mubr.bf16.gmra.mrb[4].mxu0 %v1181_v21  ;;  %612 = vmatmul.mubr.bf16.gmra.mrb[4].mxu1 %v1182_v22 }
  0x37   : > { %1047 = vmatprep.mubr.msk.bf16.mxu0 %vm451_vm0, %v1183_v23  ;;  %1055 = vmatprep.mubr.msk.bf16.mxu1 %vm451_vm0, %v1185_v24 }
  0x3e   : > { %556 = vmatmul.mubr.bf16.gmra.mrb[8].mxu0 %v1187_v25  ;;  %620 = vmatmul.mubr.bf16.gmra.mrb[8].mxu1 %v1188_v26 }
  0x3f   : > { %1048 = vmatprep.mubr.msk.bf16.mxu0 %vm451_vm0, %v1189_v27  ;;  %1056 = vmatprep.mubr.msk.bf16.mxu1 %vm451_vm0, %v1191_v28 }
  0x46   : > { %564 = vmatmul.mubr.bf16.gmra.mrb[12].mxu0 %v1193_v29  ;;  %628 = vmatmul.mubr.bf16.gmra.mrb[12].mxu1 %v1194_v30 }
  0x47   : > { %1049 = vmatprep.mubr.msk.bf16.mxu0 %vm451_vm0, %v1195_v31  ;;  %1057 = vmatprep.mubr.msk.bf16.mxu1 %vm451_vm0, %v1197_v32 }
  0x4e   : > { %572 = vmatmul.mubr.bf16.gmra.mrb[16].mxu0 %v1199_v33  ;;  %636 = vmatmul.mubr.bf16.gmra.mrb[16].mxu1 %v1200_v34 }
  0x4f   : > { %1050 = vmatprep.mubr.msk.bf16.mxu0 %vm451_vm0, %v1201_v35  ;;  %1058 = vmatprep.mubr.msk.bf16.mxu1 %vm451_vm0, %v1203_v36 }
  0x56   : > { %580 = vmatmul.mubr.bf16.gmra.mrb[20].mxu0 %v1205_v37  ;;  %644 = vmatmul.mubr.bf16.gmra.mrb[20].mxu1 %v1206_v38 }
  0x57   : > { %1051 = vmatprep.mubr.msk.bf16.mxu0 %vm451_vm0, %v1207_v39  ;;  %1059 = vmatprep.mubr.msk.bf16.mxu1 %vm451_vm0, %v1209_v40 }
  0x5e   : > { %588 = vmatmul.mubr.bf16.gmra.mrb[24].mxu0 %v1211_v41  ;;  %652 = vmatmul.mubr.bf16.gmra.mrb[24].mxu1 %v1212_v42 }
  0x5f   : > { %1052 = vmatprep.mubr.msk.bf16.mxu0 %vm451_vm0, %v1213_v43  ;;  %1060 = vmatprep.mubr.msk.bf16.mxu1 %vm451_vm0, %v1215_v44 }
  0x66   : > { %596 = vmatmul.mubr.bf16.gmra.mrb[28].mxu0 %v1217_v45  ;;  %660 = vmatmul.mubr.bf16.gmra.mrb[28].mxu1 %v1218_v46 }
 0x101   : > { %v541_v48 = vpop.f32.mrb[0].mxu0  ;;  %v605_v50 = vpop.f32.mrb[0].mxu1 }
 0x102   : > { %v675_v51 = vmul.f32 %v1351_v47, %v541_v48  ;;  %v691_v52 = vmul.f32 %v1351_v47, %v605_v50  ;;  %v543_v53 = vpop.f32.mrb[1].mxu0  ;;  %v607_v54 = vpop.f32.mrb[1].mxu1 }
 0x103   : > { %v544_v55 = vpop.f32.mrb[2].mxu0  ;;  %v608_v56 = vpop.f32.mrb[2].mxu1 }
 0x104   : > { %v714_v57 = vadd.f32 %v1356_v49, %v675_v51  ;;  %v730_v58 = vadd.f32 %v1356_v49, %v691_v52  ;;  %v676_v59 = vmul.f32 %v1351_v47, %v544_v55  ;;  %v692_v60 = vmul.f32 %v1351_v47, %v608_v56  ;;  %v546_v61 = vpop.f32.mrb[3].mxu0  ;;  %v610_v62 = vpop.f32.mrb[3].mxu1 }
 0x106   : > { %v746_v63 = vmax.f32 %v714_v57, 0.0  ;;  %v762_v0 = vmax.f32 %v730_v58, 0.0  ;;  %v715_v1 = vadd.f32 %v1356_v49, %v676_v59  ;;  %v731_v2 = vadd.f32 %v1356_v49, %v692_v60 }
 0x108   : > { %v1099_v3 = vpack.c.bf16 %v746_v63, %v746_v63  ;;  %v1115_v4 = vpack.c.bf16 %v762_v0, %v762_v0  ;;  %v747_v5 = vmax.f32 %v715_v1, 0.0  ;;  %v763_v6 = vmax.f32 %v731_v2, 0.0 }
 0x109   : > { %v549_v7 = vpop.f32.mrb[4].mxu0  ;;  %v613_v8 = vpop.f32.mrb[4].mxu1 }
 0x10a   : > { %907 = vst.msk [vmem:[%s1370_s16] sm:$0xf] %vm906_vm3, %v1099_v3  ;;  %923 = vst.msk [vmem:[%s1370_s16 + $0x40] sm:$0xf] %vm906_vm3, %v1115_v4  ;;  %v1100_v9 = vpack.c.bf16 %v747_v5, %v747_v5  ;;  %v1116_v10 = vpack.c.bf16 %v763_v6, %v763_v6  ;;  %v677_v11 = vmul.f32 %v1351_v47, %v549_v7  ;;  %v551_v13 = vpop.f32.mrb[5].mxu0  ;;  %v615_v14 = vpop.f32.mrb[5].mxu1 }
 0x10b   : > { %v693_v12 = vmul.f32 %v1351_v47, %v613_v8  ;;  %v552_v15 = vpop.f32.mrb[6].mxu0  ;;  %v616_v16 = vpop.f32.mrb[6].mxu1 }
 0x10c   : > { %908 = vst.msk [vmem:[%s1370_s16 + $0x4] sm:$0xf] %vm906_vm3, %v1100_v9  ;;  %924 = vst.msk [vmem:[%s1370_s16 + $0x44] sm:$0xf] %vm906_vm3, %v1116_v10  ;;  %v716_v17 = vadd.f32 %v1356_v49, %v677_v11  ;;  %v678_v19 = vmul.f32 %v1351_v47, %v552_v15  ;;  %v694_v20 = vmul.f32 %v1351_v47, %v616_v16  ;;  %v554_v21 = vpop.f32.mrb[7].mxu0  ;;  %v618_v22 = vpop.f32.mrb[7].mxu1 }
 0x10d   : > { %v732_v18 = vadd.f32 %v1356_v49, %v693_v12 }
 0x10e   : > { %v748_v23 = vmax.f32 %v716_v17, 0.0  ;;  %v717_v25 = vadd.f32 %v1356_v49, %v678_v19  ;;  %v733_v26 = vadd.f32 %v1356_v49, %v694_v20 }
 0x10f   : > { %v764_v24 = vmax.f32 %v732_v18, 0.0 }
 0x110   : > { %v1101_v27 = vpack.c.bf16 %v748_v23, %v748_v23  ;;  %v749_v29 = vmax.f32 %v717_v25, 0.0  ;;  %v765_v30 = vmax.f32 %v733_v26, 0.0 }
 0x111   : > { %v1117_v28 = vpack.c.bf16 %v764_v24, %v764_v24  ;;  %v557_v31 = vpop.f32.mrb[8].mxu0  ;;  %v621_v32 = vpop.f32.mrb[8].mxu1 }
 0x112   : > { %909 = vst.msk [vmem:[%s1370_s16 + $0x8] sm:$0xf] %vm906_vm3, %v1101_v27  ;;  %v1102_v33 = vpack.c.bf16 %v749_v29, %v749_v29  ;;  %v1118_v34 = vpack.c.bf16 %v765_v30, %v765_v30  ;;  %v679_v35 = vmul.f32 %v1351_v47, %v557_v31  ;;  %v695_v36 = vmul.f32 %v1351_v47, %v621_v32  ;;  %v559_v37 = vpop.f32.mrb[9].mxu0  ;;  %v623_v38 = vpop.f32.mrb[9].mxu1 }
 0x113   : > { %925 = vst.msk [vmem:[%s1370_s16 + $0x48] sm:$0xf] %vm906_vm3, %v1117_v28  ;;  %v560_v39 = vpop.f32.mrb[10].mxu0  ;;  %v624_v40 = vpop.f32.mrb[10].mxu1 }
 0x114   : > { %910 = vst.msk [vmem:[%s1370_s16 + $0xc] sm:$0xf] %vm906_vm3, %v1102_v33  ;;  %926 = vst.msk [vmem:[%s1370_s16 + $0x4c] sm:$0xf] %vm906_vm3, %v1118_v34  ;;  %v718_v41 = vadd.f32 %v1356_v49, %v679_v35  ;;  %v734_v42 = vadd.f32 %v1356_v49, %v695_v36  ;;  %v680_v43 = vmul.f32 %v1351_v47, %v560_v39  ;;  %v562_v45 = vpop.f32.mrb[11].mxu0  ;;  %v626_v46 = vpop.f32.mrb[11].mxu1 }
 0x115   : > { %v696_v44 = vmul.f32 %v1351_v47, %v624_v40 }
 0x116   : > { %v750_v48 = vmax.f32 %v718_v41, 0.0  ;;  %v766_v50 = vmax.f32 %v734_v42, 0.0  ;;  %v719_v51 = vadd.f32 %v1356_v49, %v680_v43 }
 0x117   : > { %v735_v52 = vadd.f32 %v1356_v49, %v696_v44 }
 0x118   : > { %v1103_v53 = vpack.c.bf16 %v750_v48, %v750_v48  ;;  %v1119_v54 = vpack.c.bf16 %v766_v50, %v766_v50  ;;  %v751_v55 = vmax.f32 %v719_v51, 0.0 }
 0x119   : > { %v767_v56 = vmax.f32 %v735_v52, 0.0  ;;  %v565_v57 = vpop.f32.mrb[12].mxu0  ;;  %v629_v58 = vpop.f32.mrb[12].mxu1 }
 0x11a   : > { %911 = vst.msk [vmem:[%s1370_s16 + $0x10] sm:$0xf] %vm906_vm3, %v1103_v53  ;;  %927 = vst.msk [vmem:[%s1370_s16 + $0x50] sm:$0xf] %vm906_vm3, %v1119_v54  ;;  %v1104_v59 = vpack.c.bf16 %v751_v55, %v751_v55  ;;  %v681_v61 = vmul.f32 %v1351_v47, %v565_v57  ;;  %v697_v62 = vmul.f32 %v1351_v47, %v629_v58  ;;  %v567_v63 = vpop.f32.mrb[13].mxu0  ;;  %v631_v0 = vpop.f32.mrb[13].mxu1 }
 0x11b   : > { %v1120_v60 = vpack.c.bf16 %v767_v56, %v767_v56  ;;  %v568_v1 = vpop.f32.mrb[14].mxu0  ;;  %v632_v2 = vpop.f32.mrb[14].mxu1 }
 0x11c   : > { %912 = vst.msk [vmem:[%s1370_s16 + $0x14] sm:$0xf] %vm906_vm3, %v1104_v59  ;;  %v720_v3 = vadd.f32 %v1356_v49, %v681_v61  ;;  %v736_v4 = vadd.f32 %v1356_v49, %v697_v62  ;;  %v682_v5 = vmul.f32 %v1351_v47, %v568_v1  ;;  %v698_v6 = vmul.f32 %v1351_v47, %v632_v2  ;;  %v570_v7 = vpop.f32.mrb[15].mxu0  ;;  %v634_v8 = vpop.f32.mrb[15].mxu1 }
 0x11d   : > { %928 = vst.msk [vmem:[%s1370_s16 + $0x54] sm:$0xf] %vm906_vm3, %v1120_v60 }
 0x11e   : > { %v752_v9 = vmax.f32 %v720_v3, 0.0  ;;  %v768_v10 = vmax.f32 %v736_v4, 0.0  ;;  %v721_v11 = vadd.f32 %v1356_v49, %v682_v5  ;;  %v737_v12 = vadd.f32 %v1356_v49, %v698_v6 }
 0x120   : > { %v1105_v13 = vpack.c.bf16 %v752_v9, %v752_v9  ;;  %v1121_v14 = vpack.c.bf16 %v768_v10, %v768_v10  ;;  %v753_v15 = vmax.f32 %v721_v11, 0.0  ;;  %v769_v16 = vmax.f32 %v737_v12, 0.0 }
 0x121   : > { %v573_v17 = vpop.f32.mrb[16].mxu0  ;;  %v637_v18 = vpop.f32.mrb[16].mxu1 }
 0x122   : > { %913 = vst.msk [vmem:[%s1370_s16 + $0x18] sm:$0xf] %vm906_vm3, %v1105_v13  ;;  %929 = vst.msk [vmem:[%s1370_s16 + $0x58] sm:$0xf] %vm906_vm3, %v1121_v14  ;;  %v1106_v19 = vpack.c.bf16 %v753_v15, %v753_v15  ;;  %v1122_v20 = vpack.c.bf16 %v769_v16, %v769_v16  ;;  %v683_v21 = vmul.f32 %v1351_v47, %v573_v17  ;;  %v575_v23 = vpop.f32.mrb[17].mxu0  ;;  %v639_v24 = vpop.f32.mrb[17].mxu1 }
 0x123   : > { %v699_v22 = vmul.f32 %v1351_v47, %v637_v18  ;;  %v576_v25 = vpop.f32.mrb[18].mxu0  ;;  %v640_v26 = vpop.f32.mrb[18].mxu1 }
 0x124   : > { %914 = vst.msk [vmem:[%s1370_s16 + $0x1c] sm:$0xf] %vm906_vm3, %v1106_v19  ;;  %930 = vst.msk [vmem:[%s1370_s16 + $0x5c] sm:$0xf] %vm906_vm3, %v1122_v20  ;;  %v722_v27 = vadd.f32 %v1356_v49, %v683_v21  ;;  %v684_v29 = vmul.f32 %v1351_v47, %v576_v25  ;;  %v700_v30 = vmul.f32 %v1351_v47, %v640_v26  ;;  %v578_v31 = vpop.f32.mrb[19].mxu0  ;;  %v642_v32 = vpop.f32.mrb[19].mxu1 }
 0x125   : > { %v738_v28 = vadd.f32 %v1356_v49, %v699_v22 }
 0x126   : > { %v754_v33 = vmax.f32 %v722_v27, 0.0  ;;  %v723_v35 = vadd.f32 %v1356_v49, %v684_v29  ;;  %v739_v36 = vadd.f32 %v1356_v49, %v700_v30 }
 0x127   : > { %v770_v34 = vmax.f32 %v738_v28, 0.0 }
 0x128   : > { %v1107_v37 = vpack.c.bf16 %v754_v33, %v754_v33  ;;  %v755_v39 = vmax.f32 %v723_v35, 0.0  ;;  %v771_v40 = vmax.f32 %v739_v36, 0.0 }
 0x129   : > { %v1123_v38 = vpack.c.bf16 %v770_v34, %v770_v34  ;;  %v581_v41 = vpop.f32.mrb[20].mxu0  ;;  %v645_v42 = vpop.f32.mrb[20].mxu1 }
 0x12a   : > { %915 = vst.msk [vmem:[%s1370_s16 + $0x20] sm:$0xf] %vm906_vm3, %v1107_v37  ;;  %v1108_v43 = vpack.c.bf16 %v755_v39, %v755_v39  ;;  %v1124_v44 = vpack.c.bf16 %v771_v40, %v771_v40  ;;  %v685_v45 = vmul.f32 %v1351_v47, %v581_v41  ;;  %v701_v46 = vmul.f32 %v1351_v47, %v645_v42  ;;  %v583_v48 = vpop.f32.mrb[21].mxu0  ;;  %v647_v50 = vpop.f32.mrb[21].mxu1 }
 0x12b   : > { %931 = vst.msk [vmem:[%s1370_s16 + $0x60] sm:$0xf] %vm906_vm3, %v1123_v38  ;;  %v584_v51 = vpop.f32.mrb[22].mxu0  ;;  %v648_v52 = vpop.f32.mrb[22].mxu1 }
 0x12c   : > { %916 = vst.msk [vmem:[%s1370_s16 + $0x24] sm:$0xf] %vm906_vm3, %v1108_v43  ;;  %932 = vst.msk [vmem:[%s1370_s16 + $0x64] sm:$0xf] %vm906_vm3, %v1124_v44  ;;  %v724_v53 = vadd.f32 %v1356_v49, %v685_v45  ;;  %v740_v54 = vadd.f32 %v1356_v49, %v701_v46  ;;  %v686_v55 = vmul.f32 %v1351_v47, %v584_v51  ;;  %v586_v57 = vpop.f32.mrb[23].mxu0  ;;  %v650_v58 = vpop.f32.mrb[23].mxu1 }
 0x12d   : > { %v702_v56 = vmul.f32 %v1351_v47, %v648_v52 }
 0x12e   : > { %v756_v59 = vmax.f32 %v724_v53, 0.0  ;;  %v772_v60 = vmax.f32 %v740_v54, 0.0  ;;  %v725_v61 = vadd.f32 %v1356_v49, %v686_v55 }
 0x12f   : > { %v741_v62 = vadd.f32 %v1356_v49, %v702_v56 }
 0x130   : > { %v1109_v63 = vpack.c.bf16 %v756_v59, %v756_v59  ;;  %v1125_v0 = vpack.c.bf16 %v772_v60, %v772_v60  ;;  %v757_v1 = vmax.f32 %v725_v61, 0.0 }
 0x131   : > { %v773_v2 = vmax.f32 %v741_v62, 0.0  ;;  %v589_v3 = vpop.f32.mrb[24].mxu0  ;;  %v653_v4 = vpop.f32.mrb[24].mxu1 }
 0x132   : > { %917 = vst.msk [vmem:[%s1370_s16 + $0x28] sm:$0xf] %vm906_vm3, %v1109_v63  ;;  %933 = vst.msk [vmem:[%s1370_s16 + $0x68] sm:$0xf] %vm906_vm3, %v1125_v0  ;;  %v1110_v5 = vpack.c.bf16 %v757_v1, %v757_v1  ;;  %v687_v7 = vmul.f32 %v1351_v47, %v589_v3  ;;  %v703_v8 = vmul.f32 %v1351_v47, %v653_v4  ;;  %v591_v9 = vpop.f32.mrb[25].mxu0  ;;  %v655_v10 = vpop.f32.mrb[25].mxu1 }
 0x133   : > { %v1126_v6 = vpack.c.bf16 %v773_v2, %v773_v2  ;;  %v592_v11 = vpop.f32.mrb[26].mxu0  ;;  %v656_v12 = vpop.f32.mrb[26].mxu1 }
 0x134   : > { %918 = vst.msk [vmem:[%s1370_s16 + $0x2c] sm:$0xf] %vm906_vm3, %v1110_v5  ;;  %v726_v13 = vadd.f32 %v1356_v49, %v687_v7  ;;  %v742_v14 = vadd.f32 %v1356_v49, %v703_v8  ;;  %v688_v15 = vmul.f32 %v1351_v47, %v592_v11  ;;  %v704_v16 = vmul.f32 %v1351_v47, %v656_v12  ;;  %v594_v17 = vpop.f32.mrb[27].mxu0  ;;  %v658_v18 = vpop.f32.mrb[27].mxu1 }
 0x135   : > { %934 = vst.msk [vmem:[%s1370_s16 + $0x6c] sm:$0xf] %vm906_vm3, %v1126_v6 }
 0x136   : > { %v758_v19 = vmax.f32 %v726_v13, 0.0  ;;  %v774_v20 = vmax.f32 %v742_v14, 0.0  ;;  %v727_v21 = vadd.f32 %v1356_v49, %v688_v15  ;;  %v743_v22 = vadd.f32 %v1356_v49, %v704_v16 }
 0x138   : > { %v1111_v23 = vpack.c.bf16 %v758_v19, %v758_v19  ;;  %v1127_v24 = vpack.c.bf16 %v774_v20, %v774_v20  ;;  %v759_v25 = vmax.f32 %v727_v21, 0.0  ;;  %v775_v26 = vmax.f32 %v743_v22, 0.0 }
 0x139   : > { %v597_v27 = vpop.f32.mrb[28].mxu0  ;;  %v661_v28 = vpop.f32.mrb[28].mxu1 }
 0x13a   : > { %919 = vst.msk [vmem:[%s1370_s16 + $0x30] sm:$0xf] %vm906_vm3, %v1111_v23  ;;  %935 = vst.msk [vmem:[%s1370_s16 + $0x70] sm:$0xf] %vm906_vm3, %v1127_v24  ;;  %v1112_v29 = vpack.c.bf16 %v759_v25, %v759_v25  ;;  %v1128_v30 = vpack.c.bf16 %v775_v26, %v775_v26  ;;  %v689_v31 = vmul.f32 %v1351_v47, %v597_v27  ;;  %v599_v33 = vpop.f32.mrb[29].mxu0  ;;  %v663_v34 = vpop.f32.mrb[29].mxu1 }
 0x13b   : > { %v705_v32 = vmul.f32 %v1351_v47, %v661_v28  ;;  %v600_v35 = vpop.f32.mrb[30].mxu0  ;;  %v664_v36 = vpop.f32.mrb[30].mxu1 }
 0x13c   : > { %920 = vst.msk [vmem:[%s1370_s16 + $0x34] sm:$0xf] %vm906_vm3, %v1112_v29  ;;  %936 = vst.msk [vmem:[%s1370_s16 + $0x74] sm:$0xf] %vm906_vm3, %v1128_v30  ;;  %v728_v37 = vadd.f32 %v1356_v49, %v689_v31  ;;  %v690_v39 = vmul.f32 %v1351_v47, %v600_v35  ;;  %v706_v40 = vmul.f32 %v1351_v47, %v664_v36  ;;  %v602_v41 = vpop.f32.mrb[31].mxu0  ;;  %v666_v42 = vpop.f32.mrb[31].mxu1 }
 0x13d   : > { %v744_v38 = vadd.f32 %v1356_v49, %v705_v32 }
 0x13e   : > { %v760_v43 = vmax.f32 %v728_v37, 0.0  ;;  %v729_v45 = vadd.f32 %v1356_v49, %v690_v39  ;;  %v745_v46 = vadd.f32 %v1356_v49, %v706_v40 }
 0x13f   : > { %v776_v44 = vmax.f32 %v744_v38, 0.0 }
 0x140   : > { %v1113_v48 = vpack.c.bf16 %v760_v43, %v760_v43  ;;  %v761_v51 = vmax.f32 %v729_v45, 0.0  ;;  %v777_v52 = vmax.f32 %v745_v46, 0.0 }
 0x141   : > { %v1129_v50 = vpack.c.bf16 %v776_v44, %v776_v44 }
 0x142   : > { %921 = vst.msk [vmem:[%s1370_s16 + $0x38] sm:$0xf] %vm906_vm3, %v1113_v48  ;;  %v1114_v53 = vpack.c.bf16 %v761_v51, %v761_v51  ;;  %v1130_v54 = vpack.c.bf16 %v777_v52, %v777_v52 }
 0x143   : > { %937 = vst.msk [vmem:[%s1370_s16 + $0x78] sm:$0xf] %vm906_vm3, %v1129_v50 }
 0x144   : > { %922 = vst.msk [vmem:[%s1370_s16 + $0x3c] sm:$0xf] %vm906_vm3, %v1114_v53  ;;  %938 = vst.msk [vmem:[%s1370_s16 + $0x7c] sm:$0xf] %vm906_vm3, %v1130_v54 }
 0x145 PF: > { %s14_s15 = sadd.s32 1, %s1225_s15  }
 0x146   : > { %p11_p4 = scmp.ge.s32.totalorder %s14_s15, 4  }
 0x148   :  { %13 = sbr.rel (!%p11_p4) target bundleno = 1 (0x1), region = 66 }

// kernel: resnet_generator_pallas.8
= control target key start
LH: loop header
LB: loop body
LE: loop exit
PB: predicated region body
PF: predicated region fallthrough
CT: control target
= control target key end

     0   :  { %s3780_s15 = smov 0   ;;  %s4591_s0 = inlined_call_operand.vmem [shape: bf16[2,9,9,128], index: 0, kind: input, shape index: {}]   ;;  %s4592_s1 = inlined_call_operand.vmem [shape: bf16[2,256,64], index: 1, kind: input, shape index: {}]   ;;  %s4593_s2 = inlined_call_operand.vmem [shape: f32[1,64], index: 2, kind: input, shape index: {}]   ;;  %s4594_s3 = inlined_call_operand.vmem [shape: f32[1,64], index: 3, kind: input, shape index: {}]   ;;  %s4595_s4 = inlined_call_operand.vmem [shape: bf16[2,8,8,64], index: 4, kind: output, shape index: {}]  }
   0x1 LB: > { %s3449_s16 = sadd.s32 4294967295, %s3752_s15   ;;  %p3453_p0 = scmp.ge.s32.totalorder %s3752_s15, 1  ;;  %s3752_s15 = sphi %s3780_s15, %s14_s15  }
   0x2   : > { %p162_p1 = scmp.lt.s32.totalorder %s3752_s15, 3 }
   0x4   : > { %p163_p2 = pnand %p3453_p0, %p162_p1 }
   0x6   : > { %166 = sbr.rel (%p163_p2) target bundleno = 430 (0x1ae), region = 36 }
   0xd   : > { %v3698_v0 = vld [vmem:[%s4592_s1 + $0x40] sm:$0xff]   ;;  %v3702_v4 = vld [vmem:[%s4592_s1 + $0x48] sm:$0xff]   ;;  %v3706_v8 = vld [vmem:[%s4592_s1 + $0x50] sm:$0xff]   ;;  %p188_p3 = scmp.lt.s32.totalorder %s3449_s16, 1  ;;  %v317_v32 = vlaneseq  ;;  %v3754_v36 = vmov 1966171168  }
   0xe   : > { %v3699_v1 = vld [vmem:[%s4592_s1 + $0xc0] sm:$0xff]   ;;  %3596 = vmatprep.subr.bf16.mxu0 %v3698_v0  ;;  %v3703_v5 = vld [vmem:[%s4592_s1 + $0xc8] sm:$0xff]   ;;  %v3707_v9 = vld [vmem:[%s4592_s1 + $0xd0] sm:$0xff]   ;;  %v315_v37 = vunpack.c.l.s4 %v3754_v36  ;;  %vm3385_vm0 = vcmask 519168  }
   0xf   : > { %v3700_v2 = vld [vmem:[%s4592_s1] sm:$0xff]   ;;  %3642 = vmatprep.subr.bf16.mxu1 %v3699_v1  ;;  %v3704_v6 = vld [vmem:[%s4592_s1 + $0x8] sm:$0xff]   ;;  %v3708_v10 = vld [vmem:[%s4592_s1 + $0x10] sm:$0xff]   ;;  %s4615_s16 = smov (!%p188_p3, %s3449_s16), 1  ;;  %v318_v33 = vshrl.u32 %v317_v32, 7 }
  0x10   : > { %v3701_v3 = vld [vmem:[%s4592_s1 + $0x80] sm:$0xff]   ;;  %3597 = vmatpush3.bf16.msra.mxu0 %v3700_v2  ;;  %v3705_v7 = vld [vmem:[%s4592_s1 + $0x88] sm:$0xff]   ;;  %v3709_v11 = vld [vmem:[%s4592_s1 + $0x90] sm:$0xff]   ;;  %s3688_s25 = smul.u32 72, %s4615_s16  ;;  %v316_v39 = vunpack.c.0.s8 %v315_v37  ;;  %s3595_s17 = sshll.u32 %s4615_s16, 5 }
  0x11   : > { %3643 = vmatpush3.bf16.msra.mxu1 %v3701_v3  ;;  %3598 = vmatprep.subr.bf16.mxu0 %v3702_v4  ;;  %v3710_v12 = vld [vmem:[%s4592_s1 + $0x58] sm:$0xff]   ;;  %v3714_v16 = vld [vmem:[%s4592_s1 + $0x60] sm:$0xff]   ;;  %v3718_v20 = vld [vmem:[%s4592_s1 + $0x68] sm:$0xff]   ;;  %s4249_s19 = scalar_lea.vmem %s4595_s4, %s3595_s17 }
  0x12   : > { %3644 = vmatprep.subr.bf16.mxu1 %v3703_v5  ;;  %v3711_v13 = vld [vmem:[%s4592_s1 + $0xd8] sm:$0xff]   ;;  %v3715_v17 = vld [vmem:[%s4592_s1 + $0xe0] sm:$0xff]   ;;  %v3719_v21 = vld [vmem:[%s4592_s1 + $0xe8] sm:$0xff]   ;;  %s3894_s10 = scalar_lea.vmem %s4591_s0, %s3688_s25  ;;  %v3902_v43 = vsub.s32 %v316_v39, %v318_v33 }
  0x13   : > { %v3712_v14 = vld [vmem:[%s4592_s1 + $0x18] sm:$0xff]   ;;  %v3716_v18 = vld [vmem:[%s4592_s1 + $0x20] sm:$0xff]   ;;  %v3720_v22 = vld [vmem:[%s4592_s1 + $0x28] sm:$0xff]  }
  0x14   : > { %3599 = vmatpush3.bf16.msra.mxu0 %v3704_v6  ;;  %v3713_v15 = vld [vmem:[%s4592_s1 + $0x98] sm:$0xff]   ;;  %v3717_v19 = vld [vmem:[%s4592_s1 + $0xa0] sm:$0xff]   ;;  %v3721_v23 = vld [vmem:[%s4592_s1 + $0xa8] sm:$0xff]  }
  0x15   : > { %3645 = vmatpush3.bf16.msra.mxu1 %v3705_v7  ;;  %3600 = vmatprep.subr.bf16.mxu0 %v3706_v8  ;;  %v3722_v24 = vld [vmem:[%s4592_s1 + $0x70] sm:$0xff]   ;;  %v3726_v28 = vld [vmem:[%s4592_s1 + $0x78] sm:$0xff]   ;;  %v3730_v34 = vld [vmem:[%s3894_s10] ss:$8 sps:$4 sm:$0xff]  }
  0x16   : > { %3646 = vmatprep.subr.bf16.mxu1 %v3707_v9  ;;  %v3723_v25 = vld [vmem:[%s4592_s1 + $0xf0] sm:$0xff]   ;;  %v3727_v29 = vld [vmem:[%s4592_s1 + $0xf8] sm:$0xff]   ;;  %v3731_v35 = vld [vmem:[%s3894_s10 + $0x4] ss:$8 sps:$4 sm:$0x11]   ;;  %v320_v45 = vrot.slane %v3730_v34, %v3902_v43 }
  0x17   : > { %v3724_v26 = vld [vmem:[%s4592_s1 + $0x30] sm:$0xff]   ;;  %v3728_v30 = vld [vmem:[%s4592_s1 + $0x38] sm:$0xff]   ;;  %v327_v46 = vrot.slane %v3731_v35, %v3902_v43  ;;  %v3739_v34 = vld [vmem:[%s3894_s10 + $0x24] ss:$8 sps:$4 sm:$0x11]  }
  0x18   : > { %3601 = vmatpush3.bf16.msra.mxu0 %v3708_v10  ;;  %v3725_v27 = vld [vmem:[%s4592_s1 + $0xb0] sm:$0xff]   ;;  %v3729_v31 = vld [vmem:[%s4592_s1 + $0xb8] sm:$0xff]   ;;  %v328_v52 = vcombine.high %v320_v45, %v320_v45  ;;  %v335_v53 = vrot.slane %v320_v45, %v3902_v43 }
  0x19   : > { %3647 = vmatpush3.bf16.msra.mxu1 %v3709_v11  ;;  %3602 = vmatprep.subr.bf16.mxu0 %v3710_v12  ;;  %v3732_v38 = vld [vmem:[%s3894_s10 + $0x8] ss:$8 sps:$4 sm:$0xff]   ;;  %v3733_v40 = vld [vmem:[%s3894_s10 + $0xc] ss:$8 sps:$4 sm:$0x11]   ;;  %v342_v54 = vrot.slane %v327_v46, %v3902_v43 }
  0x1a   : > { %3648 = vmatprep.subr.bf16.mxu1 %v3711_v13  ;;  %v3734_v41 = vld [vmem:[%s3894_s10 + $0x10] ss:$8 sps:$4 sm:$0xff]   ;;  %v3735_v42 = vld [vmem:[%s3894_s10 + $0x14] ss:$8 sps:$4 sm:$0x11]   ;;  %v360_v47 = vrot.slane %v3732_v38, %v3902_v43  ;;  %v367_v48 = vrot.slane %v3733_v40, %v3902_v43  ;;  %v349_v60 = vrot.slane %v328_v52, %v3902_v43 }
  0x1b   : > { %v3736_v44 = vld [vmem:[%s3894_s10 + $0x18] ss:$8 sps:$4 sm:$0xff]   ;;  %v400_v49 = vrot.slane %v3734_v41, %v3902_v43  ;;  %v407_v50 = vrot.slane %v3735_v42, %v3902_v43  ;;  %v3740_v52 = vld [vmem:[%s3894_s10 + $0x28] ss:$8 sps:$4 sm:$0xff]  }
  0x1c   : > { %3603 = vmatpush3.bf16.msra.mxu0 %v3712_v14  ;;  %v440_v51 = vrot.slane %v3736_v44, %v3902_v43  ;;  %v368_v55 = vcombine.high %v360_v47, %v360_v47  ;;  %v375_v56 = vrot.slane %v360_v47, %v3902_v43  ;;  %v382_v57 = vrot.slane %v367_v48, %v3902_v43 }
  0x1d   : > { %3649 = vmatpush3.bf16.msra.mxu1 %v3713_v15  ;;  %3604 = vmatprep.subr.bf16.mxu0 %v3714_v16  ;;  %v408_v58 = vcombine.high %v400_v49, %v400_v49  ;;  %v415_v59 = vrot.slane %v400_v49, %v3902_v43  ;;  %v422_v62 = vrot.slane %v407_v50, %v3902_v43 }
  0x1e   : > { %3650 = vmatprep.subr.bf16.mxu1 %v3715_v17  ;;  %v389_v61 = vrot.slane %v368_v55, %v3902_v43  ;;  %v448_v63 = vcombine.high %v440_v51, %v440_v51  ;;  %v390_v0 = vcombine.high %v375_v56, %v375_v56  ;;  %v642_v1 = vunpack.i.h.s16 %v375_v56 }
  0x1f   : > { %v3505_v2 = vpack.i.b16 %v375_v56, %v342_v54  ;;  %v429_v3 = vrot.slane %v408_v58, %v3902_v43  ;;  %v772_v6 = vcombine.low %v335_v53, %v349_v60  ;;  %v3525_v7 = vcombine.high %v335_v53, %v349_v60  ;;  %v3742_v58 = vld [vmem:[%s3894_s10 + $0x30] ss:$8 sps:$4 sm:$0xff]  }
  0x20   : > { %3605 = vmatpush3.bf16.msra.mxu0 %v3716_v18  ;;  %v391_v4 = vcombine.high %v389_v61, %v389_v61  ;;  %v644_v5 = vunpack.i.h.s16 %v389_v61  ;;  %v646_v8 = vunpack.i.h.s16 %v390_v0  ;;  %v3506_v9 = vpack.i.b16 %v389_v61, %v642_v1 }
  0x21   : > { %3651 = vmatpush3.bf16.msra.mxu1 %v3717_v19  ;;  %3606 = vmatprep.subr.bf16.mxu0 %v3718_v20  ;;  %v430_v10 = vcombine.high %v415_v59, %v415_v59  ;;  %v431_v11 = vcombine.high %v429_v3, %v429_v3  ;;  %v782_v14 = vrot.slane %v772_v6, %v3902_v43 }
  0x22   : > { %3652 = vmatprep.subr.bf16.mxu1 %v3719_v21  ;;  %v648_v12 = vunpack.i.h.s16 %v391_v4  ;;  %v3507_v13 = vpack.i.b16 %v390_v0, %v644_v5  ;;  %v789_v15 = vrot.slane %v3525_v7, %v3902_v43  ;;  %v3508_v16 = vpack.i.b16 %v391_v4, %v646_v8 }
  0x23   : > { %v774_v17 = vcombine.low %v3505_v2, %v3506_v9  ;;  %v455_v18 = vrot.slane %v440_v51, %v3902_v43  ;;  %v469_v19 = vrot.slane %v448_v63, %v3902_v43  ;;  %v487_v51 = vrot.slane %v3739_v34, %v3902_v43 }
  0x24   : > { %3607 = vmatpush3.bf16.msra.mxu0 %v3720_v22  ;;  %v805_v20 = vcombine.high %v782_v14, %v789_v15  ;;  %v804_v21 = vcombine.low %v782_v14, %v789_v15  ;;  %v3509_v22 = vpack.i.b16 %v382_v57, %v648_v12  ;;  %v3741_v57 = vld [vmem:[%s3894_s10 + $0x2c] ss:$8 sps:$4 sm:$0x11]   ;;  %v520_v6 = vrot.slane %v3740_v52, %v3902_v43 }
  0x25   : > { %3653 = vmatpush3.bf16.msra.mxu1 %v3721_v23  ;;  %3608 = vmatprep.subr.bf16.mxu0 %v3722_v24  ;;  %v839_v23 = vcombine.low %v429_v3, %v430_v10  ;;  %v3737_v24 = vld [vmem:[%s3894_s10 + $0x1c] ss:$8 sps:$4 sm:$0x11]   ;;  %v662_v32 = vunpack.i.h.s16 %v469_v19  ;;  %v3510_v33 = vpack.i.b16 %v455_v18, %v422_v62  ;;  %v471_v42 = vcombine.high %v469_v19, %v469_v19 }
  0x26   : > { %3654 = vmatprep.subr.bf16.mxu1 %v3723_v25  ;;  %v775_v25 = vcombine.low %v3507_v13, %v3508_v16  ;;  %v838_v37 = vcombine.low %v3509_v22, %v415_v59  ;;  %v447_v41 = vrot.slane %v3737_v24, %v3902_v43  ;;  %v502_v62 = vrot.slane %v487_v51, %v3902_v43 }
  0x27   : > { %v855_v38 = vrot.slane %v839_v23, %v3902_v43  ;;  %v840_v40 = vcombine.low %v431_v11, %v3510_v33  ;;  %v666_v8 = vunpack.i.h.s16 %v471_v42  ;;  %v527_v9 = vrot.slane %v3741_v57, %v3902_v43  ;;  %v3744_v23 = vld [vmem:[%s3894_s10 + $0x38] ss:$8 sps:$4 sm:$0xff]  }
  0x28   : > { %3609 = vmatpush3.bf16.msra.mxu0 %v3724_v26  ;;  %v796_v26 = vrot.slane %v774_v17, %v3902_v43  ;;  %v803_v35 = vrot.slane %v775_v25, %v3902_v43  ;;  %v848_v46 = vrot.slane %v838_v37, %v3902_v43  ;;  %v462_v50 = vrot.slane %v447_v41, %v3902_v43 }
  0x29   : > { %3655 = vmatpush3.bf16.msra.mxu1 %v3725_v27  ;;  %3610 = vmatprep.subr.bf16.mxu0 %v3726_v28  ;;  %v470_v27 = vcombine.high %v455_v18, %v455_v18  ;;  %v660_v28 = vunpack.i.h.s16 %v455_v18  ;;  %v862_v49 = vrot.slane %v840_v40, %v3902_v43  ;;  %v560_v10 = vrot.slane %v3742_v58, %v3902_v43  ;;  %v3743_v18 = vld [vmem:[%s3894_s10 + $0x34] ss:$8 sps:$4 sm:$0x11]  }
  0x2a   : > { %3656 = vmatprep.subr.bf16.mxu1 %v3727_v29  ;;  %v3738_v29 = vld [vmem:[%s3894_s10 + $0x20] ss:$8 sps:$4 sm:$0xff]   ;;  %v807_v44 = vcombine.high %v796_v26, %v803_v35  ;;  %v806_v45 = vcombine.low %v796_v26, %v803_v35  ;;  %v871_v55 = vcombine.high %v848_v46, %v855_v38  ;;  %v870_v56 = vcombine.low %v848_v46, %v855_v38 }
  0x2b   : > { %v3511_v36 = vpack.i.b16 %v469_v19, %v660_v28  ;;  %v3512_v39 = vpack.i.b16 %v470_v27, %v662_v32  ;;  %v480_v47 = vrot.slane %v3738_v29, %v3902_v43  ;;  %v664_v7 = vunpack.i.h.s16 %v470_v27 }
  0x2c   : > { %3611 = vmatpush3.bf16.msra.mxu0 %v3728_v30  ;;  %v821_v30 = vrot.slane %v805_v20, %v3902_v43  ;;  %v835_v53 = vrot.slane %v807_v44, %v3902_v43  ;;  %v828_v54 = vrot.slane %v806_v45, %v3902_v43  ;;  %v887_v1 = vrot.slane %v871_v55, %v3902_v43  ;;  %v3745_v45 = vld [vmem:[%s3894_s10 + $0x3c] ss:$8 sps:$4 sm:$0x11]  }
  0x2d   : > { %3657 = vmatpush3.bf16.msra.mxu1 %v3729_v31  ;;  %v814_v31 = vrot.slane %v804_v21, %v3902_v43  ;;  %v841_v48 = vcombine.low %v3511_v36, %v3512_v39  ;;  %v488_v60 = vcombine.high %v480_v47, %v480_v47  ;;  %v495_v61 = vrot.slane %v480_v47, %v3902_v43 }
  0x2e   : > { %v837_v63 = vcombine.low %v821_v30, %v835_v53  ;;  %v880_v2 = vrot.slane %v870_v56, %v3902_v43  ;;  %v528_v13 = vcombine.high %v520_v6, %v520_v6  ;;  %v535_v14 = vrot.slane %v520_v6, %v3902_v43 }
  0x2f   : > { %v869_v59 = vrot.slane %v841_v48, %v3902_v43  ;;  %v836_v0 = vcombine.low %v814_v31, %v828_v54  ;;  %v509_v5 = vrot.slane %v488_v60, %v3902_v43  ;;  %v3513_v15 = vpack.i.b16 %v471_v42, %v664_v7 }
  0x30   : > { %1206 = vmatprep.mubr.bf16.mxu0 %v837_v63  ;;  %1981 = vmatprep.mubr.bf16.mxu1 %v837_v63  ;;  %v3514_v16 = vpack.i.b16 %v462_v50, %v666_v8  ;;  %v549_v21 = vrot.slane %v528_v13, %v3902_v43  ;;  %v678_v24 = vunpack.i.h.s16 %v535_v14  ;;  %v3515_v25 = vpack.i.b16 %v535_v14, %v502_v62 }
  0x31   : > { %v873_v3 = vcombine.high %v862_v49, %v869_v59  ;;  %v872_v4 = vcombine.low %v862_v49, %v869_v59  ;;  %1207 = vmatmul.mubr.bf16.vlgmr.msra.gmra.mrb[0].mxu0 %v836_v0  ;;  %1982 = vmatmul.mubr.bf16.vlgmr.msra.gmra.mrb[0].mxu1 %v836_v0  ;;  %v905_v17 = vcombine.low %v495_v61, %v509_v5 }
  0x32   : > { %v3526_v22 = vcombine.high %v495_v61, %v509_v5  ;;  %v904_v26 = vcombine.low %v3513_v15, %v3514_v16  ;;  %v542_v29 = vrot.slane %v527_v9, %v3902_v43  ;;  %v550_v30 = vcombine.high %v535_v14, %v535_v14 }
  0x33   : > { %v901_v11 = vrot.slane %v873_v3, %v3902_v43  ;;  %v894_v12 = vrot.slane %v872_v4, %v3902_v43  ;;  %v921_v27 = vrot.slane %v905_v17, %v3902_v43  ;;  %v680_v31 = vunpack.i.h.s16 %v549_v21 }
  0x34   : > { %v928_v28 = vrot.slane %v3526_v22, %v3902_v43  ;;  %v3516_v32 = vpack.i.b16 %v549_v21, %v678_v24  ;;  %v914_v33 = vrot.slane %v904_v26, %v3902_v43  ;;  %v551_v34 = vcombine.high %v549_v21, %v549_v21 }
  0x35   : > { %v903_v19 = vcombine.low %v887_v1, %v901_v11  ;;  %v902_v20 = vcombine.low %v880_v2, %v894_v12  ;;  %v567_v35 = vrot.slane %v3743_v18, %v3902_v43  ;;  %v568_v36 = vcombine.high %v560_v10, %v560_v10 }
  0x36   : > { %v575_v37 = vrot.slane %v560_v10, %v3902_v43  ;;  %v600_v38 = vrot.slane %v3744_v23, %v3902_v43  ;;  %v682_v39 = vunpack.i.h.s16 %v550_v30  ;;  %v907_v40 = vcombine.low %v3515_v25, %v3516_v32 }
  0x37   : > { %1214 = vmatprep.mubr.bf16.mxu0 %v903_v19  ;;  %1989 = vmatprep.mubr.bf16.mxu1 %v903_v19  ;;  %v937_v41 = vcombine.high %v914_v33, %v921_v27  ;;  %v936_v42 = vcombine.low %v914_v33, %v921_v27  ;;  %v582_v44 = vrot.slane %v567_v35, %v3902_v43  ;;  %v684_v49 = vunpack.i.h.s16 %v551_v34 }
  0x38   : > { %v589_v46 = vrot.slane %v568_v36, %v3902_v43  ;;  %v590_v47 = vcombine.high %v575_v37, %v575_v37  ;;  %v615_v48 = vrot.slane %v600_v38, %v3902_v43  ;;  %v935_v50 = vrot.slane %v907_v40, %v3902_v43  ;;  %v3591_v40 = vld [vmem:[%s4593_s2] ss:$0 sm:$0xff] }
  0x39   : > { %1215 = vmatmul.mubr.bf16.gmra.mrb[4].mxu0 %v902_v20  ;;  %1990 = vmatmul.mubr.bf16.gmra.mrb[4].mxu1 %v902_v20  ;;  %v953_v51 = vrot.slane %v937_v41, %v3902_v43  ;;  %v946_v52 = vrot.slane %v936_v42, %v3902_v43  ;;  %v3517_v53 = vpack.i.b16 %v550_v30, %v680_v31  ;;  %v3592_v41 = vld [vmem:[%s4594_s3] ss:$0 sm:$0xff] }
  0x3a   : > { %v591_v54 = vcombine.high %v589_v46, %v589_v46  ;;  %v3518_v55 = vpack.i.b16 %v551_v34, %v682_v39  ;;  %v3519_v56 = vpack.i.b16 %v542_v29, %v684_v49  ;;  %v3520_v57 = vpack.i.b16 %v615_v48, %v582_v44 }
  0x3b   : > { %v939_v58 = vcombine.high %v928_v28, %v935_v50  ;;  %v938_v59 = vcombine.low %v928_v28, %v935_v50  ;;  %v972_v60 = vcombine.low %v589_v46, %v590_v47  ;;  %v607_v61 = vrot.slane %v3745_v45, %v3902_v43 }
  0x3c   : > { %v970_v62 = vcombine.low %v3517_v53, %v3518_v55  ;;  %v971_v63 = vcombine.low %v3519_v56, %v575_v37  ;;  %v973_v0 = vcombine.low %v591_v54, %v3520_v57  ;;  %v608_v1 = vcombine.high %v600_v38, %v600_v38 }
  0x3d   : > { %v967_v2 = vrot.slane %v939_v58, %v3902_v43  ;;  %v960_v3 = vrot.slane %v938_v59, %v3902_v43  ;;  %v994_v4 = vrot.slane %v972_v60, %v3902_v43  ;;  %v622_v5 = vrot.slane %v607_v61, %v3902_v43 }
  0x3e   : > { %v980_v6 = vrot.slane %v970_v62, %v3902_v43  ;;  %v987_v7 = vrot.slane %v971_v63, %v3902_v43  ;;  %v1001_v8 = vrot.slane %v973_v0, %v3902_v43  ;;  %v629_v9 = vrot.slane %v608_v1, %v3902_v43 }
  0x3f   : > { %v969_v10 = vcombine.low %v953_v51, %v967_v2  ;;  %v968_v11 = vcombine.low %v946_v52, %v960_v3  ;;  %v630_v12 = vcombine.high %v615_v48, %v615_v48  ;;  %v696_v13 = vunpack.i.h.s16 %v615_v48 }
  0x40   : > { %v1003_v14 = vcombine.high %v980_v6, %v987_v7  ;;  %v1005_v15 = vcombine.high %v994_v4, %v1001_v8  ;;  %v1002_v16 = vcombine.low %v980_v6, %v987_v7  ;;  %v1004_v17 = vcombine.low %v994_v4, %v1001_v8 }
  0x41   : > { %1222 = vmatprep.mubr.bf16.mxu0 %v969_v10  ;;  %1997 = vmatprep.mubr.bf16.mxu1 %v969_v10  ;;  %v631_v18 = vcombine.high %v629_v9, %v629_v9  ;;  %v698_v19 = vunpack.i.h.s16 %v629_v9  ;;  %v700_v20 = vunpack.i.h.s16 %v630_v12  ;;  %v3521_v21 = vpack.i.b16 %v629_v9, %v696_v13 }
  0x42   : > { %1223 = vmatmul.mubr.bf16.gmra.mrb[8].mxu0 %v968_v11  ;;  %1998 = vmatmul.mubr.bf16.gmra.mrb[8].mxu1 %v968_v11  ;;  %v1019_v22 = vrot.slane %v1003_v14, %v3902_v43  ;;  %v1033_v23 = vrot.slane %v1005_v15, %v3902_v43  ;;  %v1012_v24 = vrot.slane %v1002_v16, %v3902_v43 }
  0x43   : > { %v1026_v25 = vrot.slane %v1004_v17, %v3902_v43  ;;  %v702_v26 = vunpack.i.h.s16 %v631_v18  ;;  %v3522_v27 = vpack.i.b16 %v630_v12, %v698_v19  ;;  %v3523_v28 = vpack.i.b16 %v631_v18, %v700_v20 }
  0x44   : > { %v1035_v29 = vcombine.low %v1019_v22, %v1033_v23  ;;  %v2601_v42 = vcombine.high %v3591_v40, %v3591_v40  ;;  %v2728_v44 = vcombine.high %v3592_v41, %v3592_v41  ;;  %v2608_v45 = vrot.slane %v3591_v40, %v3902_v43 }
  0x45   : > { %v3524_v30 = vpack.i.b16 %v622_v5, %v702_v26  ;;  %v1036_v31 = vcombine.low %v3521_v21, %v3522_v27  ;;  %v1034_v32 = vcombine.low %v1012_v24, %v1026_v25  ;;  %v2735_v47 = vrot.slane %v3592_v41, %v3902_v43 }
  0x46   : > { %1230 = vmatprep.mubr.bf16.mxu0 %v1035_v29  ;;  %2005 = vmatprep.mubr.bf16.mxu1 %v1035_v29  ;;  %v2615_v46 = vrot.slane %v2601_v42, %v3902_v43  ;;  %v2742_v48 = vrot.slane %v2728_v44, %v3902_v43  ;;  %v2616_v49 = vcombine.high %v2608_v45, %v2608_v45 }
  0x47   : > { %v1037_v33 = vcombine.low %v3523_v28, %v3524_v30  ;;  %v1044_v34 = vrot.slane %v1036_v31, %v3902_v43  ;;  %v2743_v51 = vcombine.high %v2735_v47, %v2735_v47  ;;  %v4001_v53 = vrot.slane %v2608_v45, %v3902_v43 }
  0x48   : > { %v2617_v50 = vcombine.high %v2615_v46, %v2615_v46  ;;  %v2744_v52 = vcombine.high %v2742_v48, %v2742_v48  ;;  %v4004_v54 = vrot.slane %v2616_v49, %v3902_v43  ;;  %v4007_v55 = vrot.slane %v2615_v46, %v3902_v43 }
  0x49   : > { %v1051_v35 = vrot.slane %v1037_v33, %v3902_v43  ;;  %v4013_v57 = vrot.slane %v2735_v47, %v3902_v43  ;;  %v4016_v58 = vrot.slane %v2743_v51, %v3902_v43  ;;  %v4019_v63 = vrot.slane %v2742_v48, %v3902_v43 }
  0x4a   : > { %1231 = vmatmul.mubr.bf16.gmra.mrb[12].mxu0 %v1034_v32  ;;  %2006 = vmatmul.mubr.bf16.gmra.mrb[12].mxu1 %v1034_v32  ;;  %v4010_v56 = vrot.slane %v2617_v50, %v3902_v43  ;;  %v4022_v0 = vrot.slane %v2744_v52, %v3902_v43  ;;  %v4026_v3 = vcombine.high %v4001_v53, %v4001_v53 }
  0x4b   : > { %v1053_v36 = vcombine.high %v1044_v34, %v1051_v35  ;;  %v1052_v37 = vcombine.low %v1044_v34, %v1051_v35  ;;  %v4030_v4 = vcombine.high %v4004_v54, %v4004_v54  ;;  %v4034_v7 = vcombine.high %v4007_v55, %v4007_v55 }
  0x4c   : > { %v4038_v8 = vcombine.high %v4013_v57, %v4013_v57  ;;  %v4042_v9 = vcombine.high %v4016_v58, %v4016_v58  ;;  %v4046_v12 = vcombine.high %v4010_v56, %v4010_v56  ;;  %v4054_v19 = vcombine.high %v4019_v63, %v4019_v63 }
  0x4d   : > { %v1067_v38 = vrot.slane %v1053_v36, %v3902_v43  ;;  %v1060_v39 = vrot.slane %v1052_v37, %v3902_v43  ;;  %v4058_v20 = vcombine.high %v4022_v0, %v4022_v0 }
  0x4f   : > { %1238 = vmatprep.mubr.bf16.mxu0 %v1067_v38  ;;  %2013 = vmatprep.mubr.bf16.mxu1 %v1067_v38 }
  0x52   : > { %1239 = vmatmul.mubr.bf16.gmra.mrb[16].mxu0 %v1060_v39  ;;  %2014 = vmatmul.mubr.bf16.gmra.mrb[16].mxu1 %v1060_v39 }
 0x104   : > { %v3612_v59 = vpop.f32.mrb[0].mxu0  ;;  %v3658_v60 = vpop.f32.mrb[0].mxu1 }
 0x105   : > { %v3613_v61 = vpop.f32.mrb[1].mxu0  ;;  %v3659_v62 = vpop.f32.mrb[1].mxu1 }
 0x106   : > { %v3614_v1 = vadd.f32 %v3613_v61, %v3612_v59  ;;  %v3660_v2 = vadd.f32 %v3659_v62, %v3658_v60  ;;  %v3615_v5 = vpop.f32.mrb[2].mxu0  ;;  %v3661_v6 = vpop.f32.mrb[2].mxu1 }
 0x107   : > { %v3616_v10 = vpop.f32.mrb[3].mxu0  ;;  %v3662_v11 = vpop.f32.mrb[3].mxu1 }
 0x108   : > { %v1255_v13 = vcombine.high %v3614_v1, %v3614_v1  ;;  %v1262_v14 = vrot.slane %v3614_v1, %v3902_v43  ;;  %v2030_v15 = vcombine.high %v3660_v2, %v3660_v2  ;;  %v2037_v16 = vrot.slane %v3660_v2, %v3902_v43 }
 0x109   : > { %v3617_v17 = vadd.f32 %v3616_v10, %v3615_v5  ;;  %v4050_v18 = vadd.f32 %v3662_v11, %v3661_v6 }
 0x10a   : > { %v1269_v21 = vrot.slane %v1255_v13, %v3902_v43  ;;  %v1270_v22 = vcombine.high %v1262_v14, %v1262_v14  ;;  %v1278_v23 = vrot.slane %v1262_v14, %v3902_v43  ;;  %v2044_v24 = vrot.slane %v2030_v15, %v3902_v43 }
 0x10b   : > { %v2045_v25 = vcombine.high %v2037_v16, %v2037_v16  ;;  %v2053_v26 = vrot.slane %v2037_v16, %v3902_v43  ;;  %v1304_v27 = vcombine.high %v3617_v17, %v3617_v17  ;;  %v1311_v28 = vrot.slane %v3617_v17, %v3902_v43 }
 0x10c   : > { %v1271_v29 = vcombine.high %v1269_v21, %v1269_v21  ;;  %v1285_v30 = vrot.slane %v1269_v21, %v3902_v43  ;;  %v1292_v31 = vrot.slane %v1270_v22, %v3902_v43  ;;  %v1300_v32 = vcombine.high %v1278_v23, %v1278_v23  ;;  %v4067_v33 = vpop.f32.mrb[4].mxu0  ;;  %v4069_v34 = vpop.f32.mrb[4].mxu1 }
 0x10d   : > { %v2046_v35 = vcombine.high %v2044_v24, %v2044_v24  ;;  %v2060_v36 = vrot.slane %v2044_v24, %v3902_v43  ;;  %v2067_v37 = vrot.slane %v2045_v25, %v3902_v43  ;;  %v2075_v38 = vcombine.high %v2053_v26, %v2053_v26  ;;  %v4073_v39 = vpop.f32.mrb[5].mxu0  ;;  %v4075_v40 = vpop.f32.mrb[5].mxu1 }
 0x10e   : > { %v4078_v41 = vrot.slane %v1271_v29, %v3902_v43  ;;  %v1301_v42 = vcombine.high %v1285_v30, %v1285_v30  ;;  %v1302_v44 = vcombine.high %v1292_v31, %v1292_v31  ;;  %v1318_v45 = vrot.slane %v1304_v27, %v3902_v43  ;;  %v4081_v46 = vpop.f32.mrb[6].mxu0  ;;  %v4083_v47 = vpop.f32.mrb[6].mxu1 }
 0x10f   : > { %v2074_v48 = vrot.slane %v2046_v35, %v3902_v43  ;;  %v2076_v49 = vcombine.high %v2060_v36, %v2060_v36  ;;  %v2077_v50 = vcombine.high %v2067_v37, %v2067_v37  ;;  %v2531_v51 = vadd.f32 %v2067_v37, %v1278_v23  ;;  %v4086_v52 = vpop.f32.mrb[7].mxu0  ;;  %v4088_v59 = vpop.f32.mrb[7].mxu1 }
 0x110   : > { %v2532_v60 = vadd.f32 %v2075_v38, %v1292_v31  ;;  %v2534_v61 = vadd.f32 %v2060_v36, %v1302_v44  ;;  %v1319_v62 = vcombine.high %v1311_v28, %v1311_v28  ;;  %v1320_v1 = vcombine.high %v1318_v45, %v1318_v45 }
 0x111   : > { %v2078_v2 = vcombine.high %v2074_v48, %v2074_v48  ;;  %v2533_v5 = vadd.f32 %v2077_v50, %v1300_v32  ;;  %v2535_v6 = vadd.f32 %v2074_v48, %v1285_v30  ;;  %v2536_v10 = vadd.f32 %v2076_v49, %v4078_v41 }
 0x112   : > { %v2658_v11 = vmul.f32 %v4001_v53, %v2531_v51  ;;  %v2659_v13 = vmul.f32 %v4004_v54, %v2532_v60  ;;  %v2661_v14 = vmul.f32 %v4030_v4, %v2534_v61  ;;  %v4095_v15 = vrot.slane %v1311_v28, %v3902_v43 }
 0x113   : > { %v2537_v16 = vadd.f32 %v2078_v2, %v1301_v42  ;;  %v2660_v17 = vmul.f32 %v4026_v3, %v2533_v5  ;;  %v2662_v21 = vmul.f32 %v4007_v55, %v2535_v6  ;;  %v2663_v22 = vmul.f32 %v4010_v56, %v2536_v10 }
 0x114   : > { %v2785_v23 = vadd.f32 %v4013_v57, %v2658_v11  ;;  %v2786_v24 = vadd.f32 %v4016_v58, %v2659_v13  ;;  %v2788_v25 = vadd.f32 %v4042_v9, %v2661_v14  ;;  %v4104_v26 = vrot.slane %v1318_v45, %v3902_v43 }
 0x115   : > { %v2664_v27 = vmul.f32 %v4034_v7, %v2537_v16  ;;  %v2787_v28 = vadd.f32 %v4038_v8, %v2660_v17  ;;  %v2789_v29 = vadd.f32 %v4019_v63, %v2662_v21  ;;  %v2790_v30 = vadd.f32 %v4022_v0, %v2663_v22  ;;  %v4111_v37 = vpop.f32.mrb[8].mxu0  ;;  %v4113_v38 = vpop.f32.mrb[8].mxu1 }
 0x116   : > { %v2849_v31 = vmax.f32 %v2785_v23, 0.0  ;;  %v2850_v32 = vmax.f32 %v2786_v24, 0.0  ;;  %v2852_v35 = vmax.f32 %v2788_v25, 0.0  ;;  %v1341_v36 = vrot.slane %v1319_v62, %v3902_v43  ;;  %v4118_v49 = vpop.f32.mrb[9].mxu0  ;;  %v4120_v50 = vpop.f32.mrb[9].mxu1 }
 0x117   : > { %v2851_v42 = vmax.f32 %v2787_v28, 0.0  ;;  %v2853_v44 = vmax.f32 %v2789_v29, 0.0  ;;  %v2854_v45 = vmax.f32 %v2790_v30, 0.0  ;;  %v4116_v48 = vrot.slane %v1320_v1, %v3902_v43  ;;  %v4126_v2 = vpop.f32.mrb[10].mxu0  ;;  %v4128_v5 = vpop.f32.mrb[10].mxu1 }
 0x118   : > { %v2977_v51 = vcombine.low %v2849_v31, %v2850_v32  ;;  %v1349_v60 = vcombine.high %v4095_v15, %v4095_v15  ;;  %v1350_v61 = vcombine.high %v4104_v26, %v4104_v26  ;;  %v1351_v62 = vcombine.high %v1341_v36, %v1341_v36  ;;  %v4136_v13 = vpop.f32.mrb[11].mxu0  ;;  %v4138_v14 = vpop.f32.mrb[11].mxu1 }
 0x119   : > { %v2978_v6 = vcombine.low %v2851_v42, %v2852_v35  ;;  %v4130_v10 = vcombine.low %v2853_v44, %v2854_v45  ;;  %v1303_v1 = vcombine.high %v4078_v41, %v4078_v41  ;;  %v2079_v11 = vcombine.high %v4050_v18, %v4050_v18 }
 0x11a   : > { %v2987_v15 = vrot.slane %v2977_v51, %v3902_v43  ;;  %v2086_v16 = vrot.slane %v4050_v18, %v3902_v43  ;;  %v2791_v17 = vadd.f32 %v4054_v19, %v2664_v27  ;;  %v3620_v21 = vadd.f32 %v4073_v39, %v4067_v33 }
 0x11b   : > { %v2994_v22 = vrot.slane %v2978_v6, %v3902_v43  ;;  %v2093_v41 = vrot.slane %v2079_v11, %v3902_v43 }
 0x11c   : > { %v2094_v25 = vcombine.high %v2086_v16, %v2086_v16  ;;  %v2102_v28 = vrot.slane %v2086_v16, %v3902_v43  ;;  %v2855_v29 = vmax.f32 %v2791_v17, 0.0  ;;  %v1353_v18 = vcombine.high %v3620_v21, %v3620_v21 }
 0x11d   : > { %v4153_v30 = vcombine.low %v2987_v15, %v2994_v22  ;;  %v2095_v27 = vcombine.high %v2093_v41, %v2093_v41  ;;  %v2109_v33 = vrot.slane %v2093_v41, %v3902_v43  ;;  %v1360_v39 = vrot.slane %v3620_v21, %v3902_v43  ;;  %v4159_v44 = vpop.f32.mrb[12].mxu0  ;;  %v4161_v45 = vpop.f32.mrb[12].mxu1 }
 0x11e   : > { %v2116_v31 = vrot.slane %v2094_v25, %v3902_v43  ;;  %v2124_v32 = vcombine.high %v2102_v28, %v2102_v28  ;;  %v2538_v35 = vadd.f32 %v2102_v28, %v1303_v1  ;;  %v1367_v42 = vrot.slane %v1353_v18, %v3902_v43  ;;  %v4166_v16 = vpop.f32.mrb[13].mxu0  ;;  %v4168_v17 = vpop.f32.mrb[13].mxu1 }
 0x11f   : > { %v2123_v6 = vrot.slane %v2095_v27, %v3902_v43  ;;  %v2125_v11 = vcombine.high %v2109_v33, %v2109_v33  ;;  %v2541_v15 = vadd.f32 %v2109_v33, %v1351_v62  ;;  %v1368_v41 = vcombine.high %v1360_v39, %v1360_v39  ;;  %v4171_v25 = vpop.f32.mrb[14].mxu0  ;;  %v4173_v28 = vpop.f32.mrb[14].mxu1 }
 0x120   : > { %v2126_v21 = vcombine.high %v2116_v31, %v2116_v31  ;;  %v2539_v22 = vadd.f32 %v2124_v32, %v1341_v36  ;;  %v2665_v1 = vmul.f32 %v4046_v12, %v2538_v35  ;;  %4596 = vst [vmem:[#allocation2_spill] sm:$0xff] %v4171_v25  ;;  %4597 = vst [vmem:[#allocation3_spill] sm:$0xff] %v4173_v28  ;;  %v4178_v33 = vpop.f32.mrb[15].mxu0  ;;  %v4180_v51 = vpop.f32.mrb[15].mxu1 }
 0x121   : > { %v2127_v18 = vcombine.high %v2123_v6, %v2123_v6  ;;  %v2542_v24 = vadd.f32 %v2123_v6, %v4104_v26  ;;  %v2543_v27 = vadd.f32 %v2125_v11, %v4116_v48  ;;  %v2668_v62 = vmul.f32 %v4026_v3, %v2541_v15  ;;  %4598 = vst [vmem:[#allocation4_spill] sm:$0xff] %v4180_v51 }
 0x122   : > { %v2540_v31 = vadd.f32 %v2126_v21, %v1349_v60  ;;  %v2666_v36 = vmul.f32 %v4001_v53, %v2539_v22  ;;  %v2792_v32 = vadd.f32 %v4058_v20, %v2665_v1  ;;  %v1369_v35 = vcombine.high %v1367_v42, %v1367_v42 }
 0x123   : > { %v2544_v23 = vadd.f32 %v2127_v18, %v1350_v61  ;;  %v2669_v28 = vmul.f32 %v4030_v4, %v2542_v24  ;;  %v2670_v25 = vmul.f32 %v4007_v55, %v2543_v27  ;;  %v2795_v26 = vadd.f32 %v4038_v8, %v2668_v62 }
 0x124   : > { %v2667_v6 = vmul.f32 %v4004_v54, %v2540_v31  ;;  %v2793_v11 = vadd.f32 %v4013_v57, %v2666_v36  ;;  %v2856_v15 = vmax.f32 %v2792_v32, 0.0  ;;  %v4190_v51 = vrot.slane %v1360_v39, %v3902_v43 }
 0x125   : > { %v2671_v60 = vmul.f32 %v4010_v56, %v2544_v23  ;;  %v2796_v21 = vadd.f32 %v4042_v9, %v2669_v28  ;;  %v2797_v61 = vadd.f32 %v4019_v63, %v2670_v25  ;;  %v2859_v22 = vmax.f32 %v2795_v26, 0.0  ;;  %v4199_v62 = vpop.f32.mrb[16].mxu0  ;;  %v4201_v31 = vpop.f32.mrb[16].mxu1 }
 0x126   : > { %v2794_v24 = vadd.f32 %v4016_v58, %v2667_v6  ;;  %v2857_v1 = vmax.f32 %v2793_v11, 0.0  ;;  %v2980_v18 = vcombine.low %v2855_v29, %v2856_v15  ;;  %v4197_v27 = vrot.slane %v1367_v42, %v3902_v43  ;;  %4599 = vst [vmem:[#allocation5_spill] sm:$0xff] %v4201_v31  ;;  %v4205_v25 = vpop.f32.mrb[17].mxu0  ;;  %v4207_v32 = vpop.f32.mrb[17].mxu1 }
 0x127   : > { %v2798_v39 = vadd.f32 %v4022_v0, %v2671_v60  ;;  %v2860_v36 = vmax.f32 %v2796_v21, 0.0  ;;  %v2861_v23 = vmax.f32 %v2797_v61, 0.0  ;;  %v1390_v28 = vrot.slane %v1368_v41, %v3902_v43  ;;  %4600 = vst [vmem:[#allocation6_spill] sm:$0xff] %v4205_v25  ;;  %4601 = vst [vmem:[#allocation7_spill] sm:$0xff] %v4207_v32  ;;  %v3639_v11 = vpop.f32.mrb[18].mxu0  ;;  %v3685_v15 = vpop.f32.mrb[18].mxu1 }
 0x128   : > { %v2858_v26 = vmax.f32 %v2794_v24, 0.0  ;;  %v3008_v29 = vrot.slane %v2980_v18, %v3902_v43  ;;  %v4211_v42 = vrot.slane %v1369_v35, %v3902_v43  ;;  %v1398_v6 = vcombine.high %v4190_v51, %v4190_v51  ;;  %v3640_v31 = vpop.f32.mrb[19].mxu0  ;;  %v3686_v32 = vpop.f32.mrb[19].mxu1 }
 0x129   : > { %v2862_v60 = vmax.f32 %v2798_v39, 0.0  ;;  %v3027_v21 = vcombine.low %v2859_v22, %v2860_v36  ;;  %v1399_v41 = vcombine.high %v4197_v27, %v4197_v27  ;;  %v1400_v61 = vcombine.high %v1390_v28, %v1390_v28 }
 0x12a   : > { %v4602_v24 = vrot.slane %v4130_v10, %v3902_v43  ;;  %v3026_v35 = vcombine.low %v2857_v1, %v2858_v26  ;;  %v3666_v25 = vadd.f32 %v4075_v40, %v4069_v34  ;;  %v3623_v11 = vadd.f32 %v4086_v52, %v4081_v46 }
 0x12b   : > { %v4224_v15 = vcombine.low %v2861_v23, %v2862_v60  ;;  %v3043_v22 = vrot.slane %v3027_v21, %v3902_v43  ;;  %v1401_v39 = vcombine.high %v4211_v42, %v4211_v42  ;;  %v3669_v31 = vadd.f32 %v4088_v59, %v4083_v47 }
 0x12c   : > { %v3010_v18 = vcombine.low %v4602_v24, %v3008_v29  ;;  %v3036_v1 = vrot.slane %v3026_v35, %v3902_v43  ;;  %v2128_v36 = vcombine.high %v3666_v25, %v3666_v25  ;;  %v2135_v34 = vrot.slane %v3666_v25, %v3902_v43 }
 0x12d   : > { %v1402_v46 = vcombine.high %v3623_v11, %v3623_v11  ;;  %v4238_v52 = vrot.slane %v3623_v11, %v3902_v43  ;;  %v2176_v23 = vcombine.high %v3669_v31, %v3669_v31  ;;  %v4603_v28 = vrot.slane %v4153_v30, %v3902_v43 }
 0x12e   : > { %v3024_v10 = vrot.slane %v3010_v18, %v3902_v43  ;;  %v4243_v59 = vcombine.low %v3036_v1, %v3043_v22  ;;  %v2142_v32 = vrot.slane %v2128_v36, %v3902_v43  ;;  %v2143_v26 = vcombine.high %v2135_v34, %v2135_v34 }
 0x12f   : > { %v2151_v25 = vrot.slane %v2135_v34, %v3902_v43  ;;  %v1416_v29 = vrot.slane %v1402_v46, %v3902_v43  ;;  %v1417_v60 = vcombine.high %v4238_v52, %v4238_v52  ;;  %v4604_v22 = vcombine.high %v4116_v48, %v4116_v48 }
 0x130   : > { %v3025_v47 = vcombine.low %v4603_v28, %v3024_v10  ;;  %v2144_v18 = vcombine.high %v2142_v32, %v2142_v32  ;;  %v2158_v35 = vrot.slane %v2142_v32, %v3902_v43  ;;  %v2165_v11 = vrot.slane %v2143_v26, %v3902_v43 }
 0x131   : > { %v2545_v10 = vadd.f32 %v2151_v25, %v4604_v22  ;;  %v1418_v1 = vcombine.high %v1416_v29, %v1416_v29  ;;  %v4265_v36 = vrot.slane %v1416_v29, %v3902_v43 }
 0x132   : > { %v3377_v24 = vpack.c.bf16 %v3025_v47, %v3025_v47  ;;  %v2172_v34 = vrot.slane %v2144_v18, %v3902_v43  ;;  %v2173_v46 = vcombine.high %v2158_v35, %v2158_v35  ;;  %v2548_v28 = vadd.f32 %v2158_v35, %v1400_v61 }
 0x133   : > { %v1439_v47 = vrot.slane %v1417_v60, %v3902_v43  ;;  %v2174_v21 = vcombine.high %v2165_v11, %v2165_v11  ;;  %v2546_v32 = vadd.f32 %v2165_v11, %v4190_v51  ;;  %v2672_v26 = vmul.f32 %v4034_v7, %v2545_v10 }
 0x134   : > { %3386 = vst.msk [vmem:[%s4249_s19] sm:$0xf] %vm3385_vm0, %v3377_v24  ;;  %v4274_v48 = vrot.slane %v1418_v1, %v3902_v43  ;;  %v2175_v25 = vcombine.high %v2172_v34, %v2172_v34  ;;  %v2549_v29 = vadd.f32 %v2172_v34, %v4197_v27  ;;  %v2550_v22 = vadd.f32 %v2173_v46, %v4211_v42 }
 0x135   : > { %v2675_v24 = vmul.f32 %v4004_v54, %v2548_v28  ;;  %v2547_v18 = vadd.f32 %v2174_v21, %v1398_v6  ;;  %v2673_v61 = vmul.f32 %v4046_v12, %v2546_v32  ;;  %v2799_v60 = vadd.f32 %v4054_v19, %v2672_v26 }
 0x136   : > { %v1447_v51 = vcombine.high %v4265_v36, %v4265_v36  ;;  %v2551_v35 = vadd.f32 %v2175_v25, %v1399_v41  ;;  %v2676_v11 = vmul.f32 %v4026_v3, %v2549_v29  ;;  %v2677_v10 = vmul.f32 %v4030_v4, %v2550_v22 }
 0x137   : > { %v2802_v1 = vadd.f32 %v4016_v58, %v2675_v24  ;;  %v2674_v27 = vmul.f32 %v4001_v53, %v2547_v18  ;;  %v2800_v34 = vadd.f32 %v4058_v20, %v2673_v61  ;;  %v2863_v46 = vmax.f32 %v2799_v60, 0.0 }
 0x138   : > { %v1448_v6 = vcombine.high %v1439_v47, %v1439_v47  ;;  %v2678_v21 = vmul.f32 %v4007_v55, %v2551_v35  ;;  %v2803_v28 = vadd.f32 %v4038_v8, %v2676_v11  ;;  %v2804_v32 = vadd.f32 %v4042_v9, %v2677_v10 }
 0x139   : > { %v2866_v26 = vmax.f32 %v2802_v1, 0.0  ;;  %v2801_v41 = vadd.f32 %v4013_v57, %v2674_v27  ;;  %v2864_v25 = vmax.f32 %v2800_v34, 0.0  ;;  %v2183_v29 = vrot.slane %v3669_v31, %v3902_v43 }
 0x13a   : > { %v2190_v22 = vrot.slane %v2176_v23, %v3902_v43  ;;  %v2867_v24 = vmax.f32 %v2803_v28, 0.0  ;;  %v2868_v18 = vmax.f32 %v2804_v32, 0.0  ;;  %v2805_v61 = vadd.f32 %v4019_v63, %v2678_v21 }
 0x13b   : > { %v3626_v60 = vadd.f32 %v4118_v49, %v4111_v37  ;;  %v2865_v35 = vmax.f32 %v2801_v41, 0.0  ;;  %v3029_v30 = vcombine.low %v2863_v46, %v2864_v25  ;;  %v2191_v11 = vcombine.high %v2183_v29, %v2183_v29 }
 0x13c   : > { %v2192_v40 = vcombine.high %v2190_v22, %v2190_v22  ;;  %v3076_v10 = vcombine.low %v2867_v24, %v2868_v18  ;;  %v2199_v1 = vrot.slane %v2183_v29, %v3902_v43  ;;  %v2206_v27 = vrot.slane %v2190_v22, %v3902_v43 }
 0x13d   : > { %v2869_v34 = vmax.f32 %v2805_v61, 0.0  ;;  %v3057_v31 = vrot.slane %v3029_v30, %v3902_v43  ;;  %v3075_v23 = vcombine.low %v2865_v35, %v2866_v26  ;;  %v2213_v28 = vrot.slane %v2191_v11, %v3902_v43 }
 0x13e   : > { %v2220_v21 = vrot.slane %v2192_v40, %v3902_v43  ;;  %v3092_v32 = vrot.slane %v3076_v10, %v3902_v43  ;;  %v2221_v37 = vcombine.high %v2199_v1, %v2199_v1  ;;  %v2222_v49 = vcombine.high %v2206_v27, %v2206_v27 }
 0x13f   : > { %v2552_v46 = vadd.f32 %v2199_v1, %v1401_v39  ;;  %v4605_v41 = vrot.slane %v4224_v15, %v3902_v43  ;;  %v3085_v29 = vrot.slane %v3075_v23, %v3902_v43  ;;  %v4606_v26 = vrot.slane %v4238_v52, %v3902_v43 }
 0x140   : > { %v2223_v30 = vcombine.high %v2220_v21, %v2220_v21  ;;  %v2554_v40 = vadd.f32 %v2221_v37, %v1439_v47  ;;  %v2555_v24 = vadd.f32 %v2206_v27, %v1448_v6  ;;  %v2556_v18 = vadd.f32 %v2220_v21, %v4265_v36 }
 0x141   : > { %v3059_v25 = vcombine.low %v4605_v41, %v3057_v31  ;;  %v2553_v22 = vadd.f32 %v2213_v28, %v4606_v26  ;;  %v2557_v61 = vadd.f32 %v2222_v49, %v4274_v48  ;;  %v3107_v39 = vcombine.low %v3085_v29, %v3092_v32 }
 0x142   : > { %v2558_v35 = vadd.f32 %v2223_v30, %v1447_v51  ;;  %v2679_v15 = vmul.f32 %v4010_v56, %v2552_v46  ;;  %v2681_v10 = vmul.f32 %v4046_v12, %v2554_v40  ;;  %v2682_v1 = vmul.f32 %v4001_v53, %v2555_v24 }
 0x143   : > { %v3073_v42 = vrot.slane %v3059_v25, %v3902_v43  ;;  %v2680_v11 = vmul.f32 %v4034_v7, %v2553_v22  ;;  %v2683_v52 = vmul.f32 %v4004_v54, %v2556_v18  ;;  %v4607_v47 = vrot.slane %v4243_v59, %v3902_v43 }
 0x144   : > { %v3115_v6 = vrot.slane %v3107_v39, %v3902_v43  ;;  %v2684_v27 = vmul.f32 %v4026_v3, %v2557_v61  ;;  %v2685_v51 = vmul.f32 %v4030_v4, %v2558_v35  ;;  %v2806_v31 = vadd.f32 %v4022_v0, %v2679_v15 }
 0x145   : > { %v3074_v36 = vcombine.low %v4607_v47, %v3073_v42  ;;  %v2807_v23 = vadd.f32 %v4054_v19, %v2680_v11  ;;  %v2808_v28 = vadd.f32 %v4058_v20, %v2681_v10  ;;  %v2809_v21 = vadd.f32 %v4013_v57, %v2682_v1 }
 0x146   : > { %v2810_v37 = vadd.f32 %v4016_v58, %v2683_v52  ;;  %v2811_v59 = vadd.f32 %v4038_v8, %v2684_v27  ;;  %v2812_v49 = vadd.f32 %v4042_v9, %v2685_v51  ;;  %v2870_v46 = vmax.f32 %v2806_v31, 0.0 }
 0x147   : > { %v3378_v32 = vpack.c.bf16 %v3074_v36, %v3074_v36  ;;  %v2871_v41 = vmax.f32 %v2807_v23, 0.0  ;;  %v2872_v25 = vmax.f32 %v2808_v28, 0.0  ;;  %v2873_v29 = vmax.f32 %v2809_v21, 0.0 }
 0x148   : > { %v2874_v30 = vmax.f32 %v2810_v37, 0.0  ;;  %v2875_v26 = vmax.f32 %v2811_v59, 0.0  ;;  %v2876_v22 = vmax.f32 %v2812_v49, 0.0  ;;  %v1450_v40 = vcombine.high %v3626_v60, %v3626_v60 }
 0x149   : > { %3387 = vst.msk [vmem:[%s4249_s19 + $0x4] sm:$0xf] %vm3385_vm0, %v3378_v32  ;;  %v3077_v24 = vcombine.low %v2869_v34, %v2870_v46  ;;  %v3078_v18 = vcombine.low %v2871_v41, %v2872_v25  ;;  %v1457_v61 = vrot.slane %v3626_v60, %v3902_v43  ;;  %v1449_v42 = vcombine.high %v4274_v48, %v4274_v48 }
 0x14a   : > { %v3124_v39 = vcombine.low %v2873_v29, %v2874_v30  ;;  %v3125_v35 = vcombine.low %v2875_v26, %v2876_v22  ;;  %v1464_v15 = vrot.slane %v1450_v40, %v3902_v43  ;;  %v3672_v11 = vadd.f32 %v4120_v50, %v4113_v38 }
 0x14b   : > { %v3099_v10 = vrot.slane %v3077_v24, %v3902_v43  ;;  %v3106_v1 = vrot.slane %v3078_v18, %v3902_v43  ;;  %v1465_v52 = vcombine.high %v1457_v61, %v1457_v61  ;;  %v1473_v34 = vrot.slane %v1457_v61, %v3902_v43 }
 0x14c   : > { %v3134_v47 = vrot.slane %v3124_v39, %v3902_v43  ;;  %v3141_v60 = vrot.slane %v3125_v35, %v3902_v43  ;;  %v1466_v36 = vcombine.high %v1464_v15, %v1464_v15  ;;  %v1480_v48 = vrot.slane %v1464_v15, %v3902_v43 }
 0x14d   : > { %v3108_v27 = vcombine.low %v3099_v10, %v3106_v1  ;;  %v1487_v51 = vrot.slane %v1465_v52, %v3902_v43  ;;  %v1495_v31 = vcombine.high %v1473_v34, %v1473_v34  ;;  %v2224_v23 = vcombine.high %v3672_v11, %v3672_v11 }
 0x14e   : > { %v4349_v38 = vcombine.low %v3134_v47, %v3141_v60  ;;  %v4352_v50 = vrot.slane %v1466_v36, %v3902_v43  ;;  %v1496_v28 = vcombine.high %v1480_v48, %v1480_v48  ;;  %v2231_v21 = vrot.slane %v3672_v11, %v3902_v43 }
 0x14f   : > { %v3122_v32 = vrot.slane %v3108_v27, %v3902_v43  ;;  %v2238_v37 = vrot.slane %v2224_v23, %v3902_v43  ;;  %v3629_v59 = vadd.f32 %v4136_v13, %v4126_v2  ;;  %v4361_v49 = vadd.f32 %v4138_v14, %v4128_v5 }
 0x150   : > { %v3164_v46 = vrot.slane %v4349_v38, %v3902_v43  ;;  %v2239_v41 = vcombine.high %v2231_v21, %v2231_v21  ;;  %v2247_v25 = vrot.slane %v2231_v21, %v3902_v43  ;;  %v1497_v29 = vcombine.high %v4352_v50, %v4352_v50 }
 0x151   : > { %v3123_v30 = vcombine.low %v3115_v6, %v3122_v32  ;;  %v2240_v26 = vcombine.high %v2238_v37, %v2238_v37  ;;  %v2254_v22 = vrot.slane %v2238_v37, %v3902_v43  ;;  %v1498_v40 = vcombine.high %v3629_v59, %v3629_v59 }
 0x152   : > { %v2261_v2 = vrot.slane %v2239_v41, %v3902_v43  ;;  %v2269_v13 = vcombine.high %v2247_v25, %v2247_v25  ;;  %v2559_v5 = vadd.f32 %v2247_v25, %v1449_v42  ;;  %v1505_v14 = vrot.slane %v3629_v59, %v3902_v43 }
 0x153   : > { %v3379_v24 = vpack.c.bf16 %v3123_v30, %v3123_v30  ;;  %v2268_v18 = vrot.slane %v2240_v26, %v3902_v43  ;;  %v2270_v61 = vcombine.high %v2254_v22, %v2254_v22  ;;  %v1512_v39 = vrot.slane %v1498_v40, %v3902_v43 }
 0x154   : > { %v2271_v35 = vcombine.high %v2261_v2, %v2261_v2  ;;  %v2560_v15 = vadd.f32 %v2261_v2, %v1473_v34  ;;  %v2561_v6 = vadd.f32 %v2269_v13, %v1487_v51  ;;  %v2686_v11 = vmul.f32 %v4007_v55, %v2559_v5 }
 0x155   : > { %3388 = vst.msk [vmem:[%s4249_s19 + $0x8] sm:$0xf] %vm3385_vm0, %v3379_v24  ;;  %v2272_v10 = vcombine.high %v2268_v18, %v2268_v18  ;;  %v2563_v1 = vadd.f32 %v2268_v18, %v1480_v48  ;;  %v2564_v52 = vadd.f32 %v2270_v61, %v4352_v50  ;;  %v1513_v42 = vcombine.high %v1505_v14, %v1505_v14 }
 0x156   : > { %v2562_v47 = vadd.f32 %v2271_v35, %v1495_v31  ;;  %v2687_v60 = vmul.f32 %v4010_v56, %v2560_v15  ;;  %v2688_v36 = vmul.f32 %v4034_v7, %v2561_v6  ;;  %v2813_v27 = vadd.f32 %v4019_v63, %v2686_v11 }
 0x157   : > { %v2565_v23 = vadd.f32 %v2272_v10, %v1496_v28  ;;  %v2690_v34 = vmul.f32 %v4001_v53, %v2563_v1  ;;  %v2691_v51 = vmul.f32 %v4004_v54, %v2564_v52  ;;  %v1514_v21 = vcombine.high %v1512_v39, %v1512_v39 }
 0x158   : > { %v2689_v32 = vmul.f32 %v4046_v12, %v2562_v47  ;;  %v2814_v48 = vadd.f32 %v4022_v0, %v2687_v60  ;;  %v2815_v37 = vadd.f32 %v4054_v19, %v2688_v36  ;;  %v2877_v59 = vmax.f32 %v2813_v27, 0.0 }
 0x159   : > { %v2692_v31 = vmul.f32 %v4026_v3, %v2565_v23  ;;  %v2817_v41 = vadd.f32 %v4013_v57, %v2690_v34  ;;  %v2818_v25 = vadd.f32 %v4016_v58, %v2691_v51  ;;  %v1521_v28 = vrot.slane %v1505_v14, %v3902_v43 }
 0x15a   : > { %v2816_v30 = vadd.f32 %v4058_v20, %v2689_v32  ;;  %v2878_v26 = vmax.f32 %v2814_v48, 0.0  ;;  %v2879_v22 = vmax.f32 %v2815_v37, 0.0  ;;  %v1528_v40 = vrot.slane %v1512_v39, %v3902_v43 }
 0x15b   : > { %v2881_v2 = vmax.f32 %v2817_v41, 0.0  ;;  %v2882_v13 = vmax.f32 %v2818_v25, 0.0  ;;  %v1535_v5 = vrot.slane %v1513_v42, %v3902_v43  ;;  %v4393_v24 = vrot.slane %v1514_v21, %v3902_v43 }
 0x15c   : > { %v2880_v18 = vmax.f32 %v2816_v30, 0.0  ;;  %v3126_v61 = vcombine.low %v2877_v59, %v2878_v26  ;;  %v1543_v35 = vcombine.high %v1521_v28, %v1521_v28  ;;  %v1544_v15 = vcombine.high %v1528_v40, %v1528_v40 }
 0x15d   : > { %v4395_v6 = vcombine.low %v2881_v2, %v2882_v13  ;;  %v1545_v14 = vcombine.high %v1535_v5, %v1535_v5  ;;  %v2273_v11 = vcombine.high %v4361_v49, %v4361_v49  ;;  %v2280_v39 = vrot.slane %v4361_v49, %v3902_v43 }
 0x15e   : > { %v3127_v10 = vcombine.low %v2879_v22, %v2880_v18  ;;  %v3148_v1 = vrot.slane %v3126_v61, %v3902_v43  ;;  %v2819_v52 = vadd.f32 %v4038_v8, %v2692_v31  ;;  %v3632_v42 = vadd.f32 %v4166_v16, %v4159_v44 }
 0x15f   : > { %v3183_v47 = vrot.slane %v4395_v6, %v3902_v43  ;;  %v2287_v60 = vrot.slane %v2273_v11, %v3902_v43  ;;  %v2288_v36 = vcombine.high %v2280_v39, %v2280_v39  ;;  %v2296_v27 = vrot.slane %v2280_v39, %v3902_v43 }
 0x160   : > { %v3155_v23 = vrot.slane %v3127_v10, %v3902_v43  ;;  %v2883_v34 = vmax.f32 %v2819_v52, 0.0  ;;  %v1547_v49 = vcombine.high %v3632_v42, %v3632_v42  ;;  %v1554_v51 = vrot.slane %v3632_v42, %v3902_v43 }
 0x161   : > { %v2289_v21 = vcombine.high %v2287_v60, %v2287_v60  ;;  %v2303_v32 = vrot.slane %v2287_v60, %v3902_v43  ;;  %v2310_v48 = vrot.slane %v2288_v36, %v3902_v43  ;;  %v2318_v44 = vcombine.high %v2296_v27, %v2296_v27 }
 0x162   : > { %v3157_v16 = vcombine.low %v3148_v1, %v3155_v23  ;;  %v2566_v37 = vadd.f32 %v2296_v27, %v1497_v29  ;;  %v1561_v59 = vrot.slane %v1547_v49, %v3902_v43  ;;  %v1562_v31 = vcombine.high %v1554_v51, %v1554_v51 }
 0x163   : > { %v2317_v41 = vrot.slane %v2289_v21, %v3902_v43  ;;  %v2319_v25 = vcombine.high %v2303_v32, %v2303_v32  ;;  %v2320_v30 = vcombine.high %v2310_v48, %v2310_v48  ;;  %v2567_v26 = vadd.f32 %v2310_v48, %v1521_v28 }
 0x164   : > { %v3171_v22 = vrot.slane %v3157_v16, %v3902_v43  ;;  %v2568_v40 = vadd.f32 %v2318_v44, %v1535_v5  ;;  %v2570_v2 = vadd.f32 %v2303_v32, %v1545_v14  ;;  %v2693_v13 = vmul.f32 %v4030_v4, %v2566_v37 }
 0x165   : > { %v2321_v18 = vcombine.high %v2317_v41, %v2317_v41  ;;  %v2569_v61 = vadd.f32 %v2320_v30, %v1543_v35  ;;  %v2571_v6 = vadd.f32 %v2319_v25, %v4393_v24  ;;  %v2694_v50 = vmul.f32 %v4007_v55, %v2567_v26 }
 0x166   : > { %v3172_v29 = vcombine.low %v3164_v46, %v3171_v22  ;;  %v2695_v11 = vmul.f32 %v4010_v56, %v2568_v40  ;;  %v2697_v28 = vmul.f32 %v4046_v12, %v2570_v2  ;;  %v2820_v5 = vadd.f32 %v4042_v9, %v2693_v13 }
 0x167   : > { %v2572_v14 = vadd.f32 %v2321_v18, %v1544_v15  ;;  %v2696_v39 = vmul.f32 %v4034_v7, %v2569_v61  ;;  %v2698_v35 = vmul.f32 %v4001_v53, %v2571_v6  ;;  %v2821_v10 = vadd.f32 %v4019_v63, %v2694_v50 }
 0x168   : > { %v3380_v1 = vpack.c.bf16 %v3172_v29, %v3172_v29  ;;  %v2822_v52 = vadd.f32 %v4022_v0, %v2695_v11  ;;  %v2824_v38 = vadd.f32 %v4058_v20, %v2697_v28  ;;  %v2884_v46 = vmax.f32 %v2820_v5, 0.0  ;;  %v4608_v29 = vld [vmem:[#allocation2_spill] sm:$0xff]  ;;  %v4609_v28 = vld [vmem:[#allocation3_spill] sm:$0xff]  ;;  %v4610_v5 = vld [vmem:[#allocation4_spill] sm:$0xff] }
 0x169   : > { %v2699_v42 = vmul.f32 %v4004_v54, %v2572_v14  ;;  %v2823_v60 = vadd.f32 %v4054_v19, %v2696_v39  ;;  %v2825_v36 = vadd.f32 %v4013_v57, %v2698_v35  ;;  %v2885_v27 = vmax.f32 %v2821_v10, 0.0 }
 0x16a   : > { %3389 = vst.msk [vmem:[%s4249_s19 + $0xc] sm:$0xf] %vm3385_vm0, %v3380_v1  ;;  %v2886_v15 = vmax.f32 %v2822_v52, 0.0  ;;  %v2888_v23 = vmax.f32 %v2824_v38, 0.0  ;;  %v3174_v49 = vcombine.low %v2883_v34, %v2884_v46  ;;  %v1563_v21 = vcombine.high %v1561_v59, %v1561_v59 }
 0x16b   : > { %v2826_v32 = vadd.f32 %v4016_v58, %v2699_v42  ;;  %v2887_v48 = vmax.f32 %v2823_v60, 0.0  ;;  %v2889_v44 = vmax.f32 %v2825_v36, 0.0  ;;  %v1570_v16 = vrot.slane %v1554_v51, %v3902_v43 }
 0x16c   : > { %v3175_v37 = vcombine.low %v2885_v27, %v2886_v15  ;;  %v3190_v41 = vrot.slane %v3174_v49, %v3902_v43  ;;  %v1577_v25 = vrot.slane %v1561_v59, %v3902_v43  ;;  %v1584_v30 = vrot.slane %v1562_v31, %v3902_v43 }
 0x16d   : > { %v2890_v26 = vmax.f32 %v2826_v32, 0.0  ;;  %v3176_v22 = vcombine.low %v2887_v48, %v2888_v23  ;;  %v4444_v40 = vrot.slane %v1563_v21, %v3902_v43  ;;  %v1592_v34 = vcombine.high %v1570_v16, %v1570_v16 }
 0x16e   : > { %v3197_v2 = vrot.slane %v3175_v37, %v3902_v43  ;;  %v3205_v13 = vcombine.low %v3183_v47, %v3190_v41  ;;  %v1593_v18 = vcombine.high %v1577_v25, %v1577_v25  ;;  %v1594_v61 = vcombine.high %v1584_v30, %v1584_v30 }
 0x16f   : > { %v3204_v51 = vrot.slane %v3176_v22, %v3902_v43  ;;  %v4448_v6 = vcombine.low %v2889_v44, %v2890_v26  ;;  %v1546_v59 = vcombine.high %v4393_v24, %v4393_v24  ;;  %v3678_v31 = vadd.f32 %v4168_v17, %v4161_v45 }
 0x170   : > { %v3213_v50 = vrot.slane %v3205_v13, %v3902_v43  ;;  %v3635_v11 = vadd.f32 %v4178_v33, %v4608_v29  ;;  %v1595_v47 = vcombine.high %v4444_v40, %v4444_v40  ;;  %v3681_v14 = vadd.f32 %v4610_v5, %v4609_v28 }
 0x171   : > { %v3206_v39 = vcombine.low %v3197_v2, %v3204_v51  ;;  %v2322_v35 = vcombine.high %v3678_v31, %v3678_v31  ;;  %v2329_v10 = vrot.slane %v3678_v31, %v3902_v43  ;;  %v3232_v24 = vrot.slane %v4448_v6, %v3902_v43 }
 0x172   : > { %v1596_v1 = vcombine.high %v3635_v11, %v3635_v11  ;;  %v1603_v45 = vrot.slane %v3635_v11, %v3902_v43  ;;  %v2370_v17 = vcombine.high %v3681_v14, %v3681_v14  ;;  %v2377_v52 = vrot.slane %v3681_v14, %v3902_v43 }
 0x173   : > { %v3220_v33 = vrot.slane %v3206_v39, %v3902_v43  ;;  %v2336_v38 = vrot.slane %v2322_v35, %v3902_v43  ;;  %v2337_v46 = vcombine.high %v2329_v10, %v2329_v10  ;;  %v2345_v42 = vrot.slane %v2329_v10, %v3902_v43 }
 0x174   : > { %v4470_v60 = vrot.slane %v1596_v1, %v3902_v43  ;;  %v1611_v36 = vcombine.high %v1603_v45, %v1603_v45  ;;  %v4473_v27 = vrot.slane %v1603_v45, %v3902_v43  ;;  %v2384_v15 = vrot.slane %v2370_v17, %v3902_v43 }
 0x175   : > { %v3221_v23 = vcombine.low %v3213_v50, %v3220_v33  ;;  %v2338_v49 = vcombine.high %v2336_v38, %v2336_v38  ;;  %v2352_v21 = vrot.slane %v2336_v38, %v3902_v43  ;;  %v2359_v32 = vrot.slane %v2337_v46, %v3902_v43 }
 0x176   : > { %v2367_v48 = vcombine.high %v2345_v42, %v2345_v42  ;;  %v2573_v44 = vadd.f32 %v2345_v42, %v1546_v59  ;;  %v1612_v37 = vcombine.high %v4470_v60, %v4470_v60  ;;  %v1626_v41 = vrot.slane %v4470_v60, %v3902_v43 }
 0x177   : > { %v3381_v26 = vpack.c.bf16 %v3221_v23, %v3221_v23  ;;  %v2366_v22 = vrot.slane %v2338_v49, %v3902_v43  ;;  %v2368_v2 = vcombine.high %v2359_v32, %v2359_v32  ;;  %v2574_v13 = vadd.f32 %v2359_v32, %v1570_v16 }
 0x178   : > { %v2575_v51 = vadd.f32 %v2367_v48, %v1584_v30  ;;  %v2577_v31 = vadd.f32 %v2352_v21, %v1594_v61  ;;  %v2700_v50 = vmul.f32 %v4026_v3, %v2573_v44  ;;  %v1633_v29 = vrot.slane %v1611_v36, %v3902_v43 }
 0x179   : > { %3390 = vst.msk [vmem:[%s4249_s19 + $0x10] sm:$0xf] %vm3385_vm0, %v3381_v26  ;;  %v2369_v59 = vcombine.high %v2366_v22, %v2366_v22  ;;  %v2576_v11 = vadd.f32 %v2368_v2, %v1592_v34  ;;  %v2578_v28 = vadd.f32 %v2366_v22, %v1577_v25  ;;  %v2701_v5 = vmul.f32 %v4030_v4, %v2574_v13 }
 0x17a   : > { %v2702_v14 = vmul.f32 %v4007_v55, %v2575_v51  ;;  %v2704_v39 = vmul.f32 %v4034_v7, %v2577_v31  ;;  %v2827_v35 = vadd.f32 %v4038_v8, %v2700_v50  ;;  %v4492_v16 = vrot.slane %v1612_v37, %v3902_v43 }
 0x17b   : > { %v2579_v30 = vadd.f32 %v2369_v59, %v1593_v18  ;;  %v2703_v61 = vmul.f32 %v4010_v56, %v2576_v11  ;;  %v2705_v10 = vmul.f32 %v4046_v12, %v2578_v28  ;;  %v2828_v1 = vadd.f32 %v4042_v9, %v2701_v5 }
 0x17c   : > { %v2829_v25 = vadd.f32 %v4019_v63, %v2702_v14  ;;  %v2831_v34 = vadd.f32 %v4054_v19, %v2704_v39  ;;  %v2891_v45 = vmax.f32 %v2827_v35, 0.0  ;;  %v1641_v17 = vcombine.high %v4473_v27, %v4473_v27 }
 0x17d   : > { %v2706_v33 = vmul.f32 %v4001_v53, %v2579_v30  ;;  %v2830_v38 = vadd.f32 %v4022_v0, %v2703_v61  ;;  %v2832_v18 = vadd.f32 %v4058_v20, %v2705_v10  ;;  %v2892_v46 = vmax.f32 %v2828_v1, 0.0 }
 0x17e   : > { %v2893_v42 = vmax.f32 %v2829_v25, 0.0  ;;  %v2895_v60 = vmax.f32 %v2831_v34, 0.0  ;;  %v1642_v36 = vcombine.high %v1633_v29, %v1633_v29  ;;  %v2385_v23 = vcombine.high %v2377_v52, %v2377_v52 }
 0x17f   : > { %v2894_v49 = vmax.f32 %v2830_v38, 0.0  ;;  %v2896_v21 = vmax.f32 %v2832_v18, 0.0  ;;  %v3223_v32 = vcombine.low %v2891_v45, %v2892_v46  ;;  %v2386_v48 = vcombine.high %v2384_v15, %v2384_v15 }
 0x180   : > { %v2393_v44 = vrot.slane %v2377_v52, %v3902_v43  ;;  %v2400_v37 = vrot.slane %v2384_v15, %v3902_v43  ;;  %v2407_v26 = vrot.slane %v2385_v23, %v3902_v43  ;;  %v2833_v22 = vadd.f32 %v4013_v57, %v2706_v33 }
 0x181   : > { %v3224_v2 = vcombine.low %v2893_v42, %v2894_v49  ;;  %v3225_v13 = vcombine.low %v2895_v60, %v2896_v21  ;;  %v3239_v51 = vrot.slane %v3223_v32, %v3902_v43  ;;  %v2414_v31 = vrot.slane %v2386_v48, %v3902_v43 }
 0x182   : > { %v2415_v50 = vcombine.high %v2393_v44, %v2393_v44  ;;  %v2416_v59 = vcombine.high %v2400_v37, %v2400_v37  ;;  %v2417_v11 = vcombine.high %v2407_v26, %v2407_v26  ;;  %v2580_v28 = vadd.f32 %v2393_v44, %v1595_v47 }
 0x183   : > { %v3246_v52 = vrot.slane %v3224_v2, %v3902_v43  ;;  %v3253_v15 = vrot.slane %v3225_v13, %v3902_v43  ;;  %v3254_v5 = vcombine.low %v3232_v24, %v3239_v51  ;;  %v2581_v14 = vadd.f32 %v2407_v26, %v4473_v27  ;;  %v4611_v51 = vld [vmem:[#allocation6_spill] sm:$0xff] }
 0x184   : > { %v2582_v39 = vadd.f32 %v2415_v50, %v1633_v29  ;;  %v2583_v35 = vadd.f32 %v2417_v11, %v1641_v17  ;;  %v2584_v30 = vadd.f32 %v2400_v37, %v1642_v36  ;;  %v2585_v61 = vadd.f32 %v2414_v31, %v1626_v41  ;;  %v4612_v11 = vld [vmem:[#allocation5_spill] sm:$0xff] }
 0x185   : > { %v3255_v10 = vcombine.low %v3246_v52, %v3253_v15  ;;  %v3262_v1 = vrot.slane %v3254_v5, %v3902_v43  ;;  %v2586_v40 = vadd.f32 %v2416_v59, %v4492_v16  ;;  %v2707_v47 = vmul.f32 %v4004_v54, %v2580_v28  ;;  %v4613_v28 = vld [vmem:[#allocation7_spill] sm:$0xff] }
 0x186   : > { %v2708_v25 = vmul.f32 %v4026_v3, %v2581_v14  ;;  %v2709_v34 = vmul.f32 %v4030_v4, %v2582_v39  ;;  %v2710_v6 = vmul.f32 %v4007_v55, %v2583_v35  ;;  %v2711_v24 = vmul.f32 %v4010_v56, %v2584_v30 }
 0x187   : > { %v3269_v27 = vrot.slane %v3255_v10, %v3902_v43  ;;  %v2712_v29 = vmul.f32 %v4034_v7, %v2585_v61  ;;  %v2713_v41 = vmul.f32 %v4046_v12, %v2586_v40  ;;  %v2834_v45 = vadd.f32 %v4016_v58, %v2707_v47 }
 0x188   : > { %v2835_v17 = vadd.f32 %v4038_v8, %v2708_v25  ;;  %v2836_v33 = vadd.f32 %v4042_v9, %v2709_v34  ;;  %v2837_v38 = vadd.f32 %v4019_v63, %v2710_v6  ;;  %v2838_v18 = vadd.f32 %v4022_v0, %v2711_v24 }
 0x189   : > { %v3270_v46 = vcombine.low %v3262_v1, %v3269_v27  ;;  %v2839_v42 = vadd.f32 %v4054_v19, %v2712_v29  ;;  %v2840_v60 = vadd.f32 %v4058_v20, %v2713_v41  ;;  %v2897_v36 = vmax.f32 %v2833_v22, 0.0 }
 0x18a   : > { %v2898_v23 = vmax.f32 %v2834_v45, 0.0  ;;  %v2899_v49 = vmax.f32 %v2835_v17, 0.0  ;;  %v2900_v21 = vmax.f32 %v2836_v33, 0.0  ;;  %v2901_v32 = vmax.f32 %v2837_v38, 0.0 }
 0x18b   : > { %v3382_v48 = vpack.c.bf16 %v3270_v46, %v3270_v46  ;;  %v2902_v44 = vmax.f32 %v2838_v18, 0.0  ;;  %v2903_v37 = vmax.f32 %v2839_v42, 0.0  ;;  %v2904_v26 = vmax.f32 %v2840_v60, 0.0 }
 0x18c   : > { %v3271_v2 = vcombine.low %v2897_v36, %v2898_v23  ;;  %v3272_v13 = vcombine.low %v2899_v49, %v2900_v21  ;;  %v3638_v31 = vadd.f32 %v4611_v51, %v4199_v62  ;;  %v1643_v22 = vcombine.high %v4492_v16, %v4492_v16 }
 0x18d   : > { %3391 = vst.msk [vmem:[%s4249_s19 + $0x14] sm:$0xf] %vm3385_vm0, %v3382_v48  ;;  %v3273_v50 = vcombine.low %v2901_v32, %v2902_v44  ;;  %v3274_v59 = vcombine.low %v2903_v37, %v2904_v26  ;;  %v3684_v52 = vadd.f32 %v4613_v28, %v4612_v11 }
 0x18e   : > { %v3281_v15 = vrot.slane %v3271_v2, %v3902_v43  ;;  %v3288_v5 = vrot.slane %v3272_v13, %v3902_v43  ;;  %v1644_v14 = vcombine.high %v3638_v31, %v3638_v31  ;;  %v1651_v39 = vrot.slane %v3638_v31, %v3902_v43 }
 0x18f   : > { %v3295_v35 = vrot.slane %v3273_v50, %v3902_v43  ;;  %v3302_v62 = vrot.slane %v3274_v59, %v3902_v43  ;;  %v2418_v30 = vcombine.high %v3684_v52, %v3684_v52  ;;  %v2425_v61 = vrot.slane %v3684_v52, %v3902_v43 }
 0x190   : > { %v3303_v10 = vcombine.low %v3281_v15, %v3288_v5  ;;  %v1658_v16 = vrot.slane %v1644_v14, %v3902_v43  ;;  %v1659_v1 = vcombine.high %v1651_v39, %v1651_v39  ;;  %v1667_v40 = vrot.slane %v1651_v39, %v3902_v43 }
 0x191   : > { %v3304_v47 = vcombine.low %v3295_v35, %v3302_v62  ;;  %v2432_v25 = vrot.slane %v2418_v30, %v3902_v43  ;;  %v2433_v34 = vcombine.high %v2425_v61, %v2425_v61  ;;  %v2441_v6 = vrot.slane %v2425_v61, %v3902_v43 }
 0x192   : > { %v3311_v24 = vrot.slane %v3303_v10, %v3902_v43  ;;  %v1660_v27 = vcombine.high %v1658_v16, %v1658_v16  ;;  %v1674_v29 = vrot.slane %v1658_v16, %v3902_v43  ;;  %v1681_v41 = vrot.slane %v1659_v1, %v3902_v43 }
 0x193   : > { %v3318_v45 = vrot.slane %v3304_v47, %v3902_v43  ;;  %v1689_v17 = vcombine.high %v1667_v40, %v1667_v40  ;;  %v2434_v33 = vcombine.high %v2432_v25, %v2432_v25  ;;  %v2448_v38 = vrot.slane %v2432_v25, %v3902_v43 }
 0x194   : > { %v1688_v18 = vrot.slane %v1660_v27, %v3902_v43  ;;  %v1690_v46 = vcombine.high %v1674_v29, %v1674_v29  ;;  %v1691_v42 = vcombine.high %v1681_v41, %v1681_v41  ;;  %v2455_v60 = vrot.slane %v2433_v34, %v3902_v43 }
 0x195   : > { %v3319_v36 = vcombine.low %v3311_v24, %v3318_v45  ;;  %v2462_v23 = vrot.slane %v2434_v33, %v3902_v43  ;;  %v2463_v49 = vcombine.high %v2441_v6, %v2441_v6  ;;  %v2464_v21 = vcombine.high %v2448_v38, %v2448_v38 }
 0x196   : > { %v2465_v32 = vcombine.high %v2455_v60, %v2455_v60  ;;  %v2587_v48 = vadd.f32 %v2441_v6, %v1643_v22  ;;  %v2588_v44 = vadd.f32 %v2455_v60, %v1667_v40  ;;  %v2591_v37 = vadd.f32 %v2448_v38, %v1691_v42 }
 0x197   : > { %v3383_v26 = vpack.c.bf16 %v3319_v36, %v3319_v36  ;;  %v2466_v2 = vcombine.high %v2462_v23, %v2462_v23  ;;  %v2589_v13 = vadd.f32 %v2463_v49, %v1681_v41  ;;  %v2592_v51 = vadd.f32 %v2462_v23, %v1674_v29 }
 0x198   : > { %v2590_v31 = vadd.f32 %v2465_v32, %v1689_v17  ;;  %v2593_v50 = vadd.f32 %v2464_v21, %v1688_v18  ;;  %v2714_v59 = vmul.f32 %v4001_v53, %v2587_v48  ;;  %v2715_v11 = vmul.f32 %v4004_v54, %v2588_v44 }
 0x199   : > { %3392 = vst.msk [vmem:[%s4249_s19 + $0x18] sm:$0xf] %vm3385_vm0, %v3383_v26  ;;  %v2594_v28 = vadd.f32 %v2466_v2, %v1690_v46  ;;  %v2716_v52 = vmul.f32 %v4026_v3, %v2589_v13  ;;  %v2718_v15 = vmul.f32 %v4007_v55, %v2591_v37  ;;  %v2719_v22 = vmul.f32 %v4010_v56, %v2592_v51 }
 0x19a   : > { %v2717_v5 = vmul.f32 %v4030_v4, %v2590_v31  ;;  %v2720_v14 = vmul.f32 %v4034_v7, %v2593_v50  ;;  %v2841_v39 = vadd.f32 %v4013_v57, %v2714_v59  ;;  %v2842_v35 = vadd.f32 %v4016_v58, %v2715_v11 }
 0x19b   : > { %v2721_v53 = vmul.f32 %v4046_v12, %v2594_v28  ;;  %v2843_v54 = vadd.f32 %v4038_v8, %v2716_v52  ;;  %v2845_v62 = vadd.f32 %v4019_v63, %v2718_v15  ;;  %v2846_v3 = vadd.f32 %v4022_v0, %v2719_v22 }
 0x19c   : > { %v2844_v55 = vadd.f32 %v4042_v9, %v2717_v5  ;;  %v2847_v56 = vadd.f32 %v4054_v19, %v2720_v14  ;;  %v2905_v30 = vmax.f32 %v2841_v39, 0.0  ;;  %v2906_v4 = vmax.f32 %v2842_v35, 0.0 }
 0x19d   : > { %v2848_v7 = vadd.f32 %v4058_v20, %v2721_v53  ;;  %v2909_v61 = vmax.f32 %v2845_v62, 0.0  ;;  %v2910_v57 = vmax.f32 %v2846_v3, 0.0  ;;  %v2907_v10 = vmax.f32 %v2843_v54, 0.0 }
 0x19e   : > { %v2908_v58 = vmax.f32 %v2844_v55, 0.0  ;;  %v3320_v16 = vcombine.low %v2905_v30, %v2906_v4  ;;  %v2911_v12 = vmax.f32 %v2847_v56, 0.0 }
 0x19f   : > { %v2912_v8 = vmax.f32 %v2848_v7, 0.0  ;;  %v3322_v1 = vcombine.low %v2909_v61, %v2910_v57 }
 0x1a0   : > { %v3321_v63 = vcombine.low %v2907_v10, %v2908_v58  ;;  %v3330_v0 = vrot.slane %v3320_v16, %v3902_v43 }
 0x1a1   : > { %v3323_v40 = vcombine.low %v2911_v12, %v2912_v8  ;;  %v3344_v19 = vrot.slane %v3322_v1, %v3902_v43 }
 0x1a2   : > { %v3337_v9 = vrot.slane %v3321_v63, %v3902_v43 }
 0x1a3   : > { %v3351_v47 = vrot.slane %v3323_v40, %v3902_v43 }
 0x1a4   : > { %v3352_v20 = vcombine.low %v3330_v0, %v3337_v9 }
 0x1a5   : > { %v3353_v25 = vcombine.low %v3344_v19, %v3351_v47 }
 0x1a6   : > { %v3360_v34 = vrot.slane %v3352_v20, %v3902_v43 }
 0x1a7   : > { %v3367_v6 = vrot.slane %v3353_v25, %v3902_v43 }
 0x1a9   : > { %v3368_v24 = vcombine.low %v3360_v34, %v3367_v6 }
 0x1ab   : > { %v3384_v27 = vpack.c.bf16 %v3368_v24, %v3368_v24 }
 0x1ad   : > { %3393 = vst.msk [vmem:[%s4249_s19 + $0x1c] sm:$0xf] %vm3385_vm0, %v3384_v27 }
 0x1ae PF: > { %s14_s15 = sadd.s32 1, %s3752_s15  }
 0x1af   : > { %p11_p4 = scmp.ge.s32.totalorder %s14_s15, 4  }
 0x1b1   :  { %13 = sbr.rel (!%p11_p4) target bundleno = 1 (0x1), region = 68 }

// kernel: resnet_generator_pallas.9
= control target key start
LH: loop header
LB: loop body
LE: loop exit
PB: predicated region body
PF: predicated region fallthrough
CT: control target
= control target key end

     0   :  { %s2216_s15 = smov 0   ;;  %s2637_s0 = inlined_call_operand.vmem [shape: bf16[2,5,5,256], index: 0, kind: input, shape index: {}]   ;;  %s2638_s1 = inlined_call_operand.vmem [shape: bf16[2,512,128], index: 1, kind: input, shape index: {}]   ;;  %s2639_s2 = inlined_call_operand.vmem [shape: f32[1,128], index: 2, kind: input, shape index: {}]   ;;  %s2640_s3 = inlined_call_operand.vmem [shape: f32[1,128], index: 3, kind: input, shape index: {}]   ;;  %s2641_s4 = inlined_call_operand.vmem [shape: bf16[2,4,4,128], index: 4, kind: output, shape index: {}]  }
   0x1 LB: > { %s1821_s16 = sadd.s32 4294967295, %s2188_s15   ;;  %p1825_p0 = scmp.ge.s32.totalorder %s2188_s15, 1  ;;  %s2188_s15 = sphi %s2216_s15, %s14_s15  }
   0x2   : > { %p162_p1 = scmp.lt.s32.totalorder %s2188_s15, 3 }
   0x4   : > { %p163_p2 = pnand %p1825_p0, %p162_p1 }
   0x5   : > { %v2118_v0 = vld [vmem:[%s2638_s1 + $0x40] sm:$0xff] (!%p163_p2)   ;;  %v2122_v4 = vld [vmem:[%s2638_s1 + $0x48] sm:$0xff] (!%p163_p2)   ;;  %v2126_v8 = vld [vmem:[%s2638_s1 + $0x50] sm:$0xff] (!%p163_p2)   ;;  %p188_p3 = scmp.lt.s32.totalorder (!%p163_p2), %s1821_s16, 1  ;;  %v269_v28 = vlaneseq (!%p163_p2)  ;;  %v2190_v36 = vmov (!%p163_p2), 1966171168  }
   0x6   : > { %166 = sbr.rel (%p163_p2) target bundleno = 342 (0x156), region = 36  ;;  %v2119_v1 = vld [vmem:[%s2638_s1 + $0xc0] sm:$0xff] (!%p163_p2)   ;;  %1996 = vmatprep.subr.bf16.mxu0 (!%p163_p2), %v2118_v0  ;;  %v2123_v5 = vld [vmem:[%s2638_s1 + $0xc8] sm:$0xff] (!%p163_p2)   ;;  %v2127_v9 = vld [vmem:[%s2638_s1 + $0xd0] sm:$0xff] (!%p163_p2)   ;;  %v267_v37 = vunpack.c.l.s4 (!%p163_p2), %v2190_v36 }
   0x7   : > { %v2120_v2 = vld [vmem:[%s2638_s1] sm:$0xff] (!%p163_p2)   ;;  %2024 = vmatprep.subr.bf16.mxu1 (!%p163_p2), %v2119_v1  ;;  %v2124_v6 = vld [vmem:[%s2638_s1 + $0x8] sm:$0xff] (!%p163_p2)   ;;  %v2128_v10 = vld [vmem:[%s2638_s1 + $0x10] sm:$0xff] (!%p163_p2)   ;;  %v270_v33 = vshrl.u32 (!%p163_p2), %v269_v28, 7 }
   0x8   : > { %v2121_v3 = vld [vmem:[%s2638_s1 + $0x80] sm:$0xff] (!%p163_p2)   ;;  %1997 = vmatpush3.bf16.msra.mxu0 (!%p163_p2), %v2120_v2  ;;  %v2125_v7 = vld [vmem:[%s2638_s1 + $0x88] sm:$0xff] (!%p163_p2)   ;;  %v2129_v11 = vld [vmem:[%s2638_s1 + $0x90] sm:$0xff] (!%p163_p2)   ;;  %v268_v42 = vunpack.c.0.s8 (!%p163_p2), %v267_v37 }
   0x9   : > { %2025 = vmatpush3.bf16.msra.mxu1 (!%p163_p2), %v2121_v3  ;;  %1998 = vmatprep.subr.bf16.mxu0 (!%p163_p2), %v2122_v4  ;;  %v2130_v12 = vld [vmem:[%s2638_s1 + $0x58] sm:$0xff] (!%p163_p2)   ;;  %v2134_v16 = vld [vmem:[%s2638_s1 + $0x60] sm:$0xff] (!%p163_p2)   ;;  %v2138_v20 = vld [vmem:[%s2638_s1 + $0x68] sm:$0xff] (!%p163_p2)  }
   0xa   : > { %2026 = vmatprep.subr.bf16.mxu1 (!%p163_p2), %v2123_v5  ;;  %v2131_v13 = vld [vmem:[%s2638_s1 + $0xd8] sm:$0xff] (!%p163_p2)   ;;  %v2135_v17 = vld [vmem:[%s2638_s1 + $0xe0] sm:$0xff] (!%p163_p2)   ;;  %v2139_v21 = vld [vmem:[%s2638_s1 + $0xe8] sm:$0xff] (!%p163_p2)   ;;  %v2336_v50 = vsub.s32 (!%p163_p2), %v268_v42, %v270_v33 }
   0xb   : > { %v2132_v14 = vld [vmem:[%s2638_s1 + $0x18] sm:$0xff] (!%p163_p2)   ;;  %v2136_v18 = vld [vmem:[%s2638_s1 + $0x20] sm:$0xff] (!%p163_p2)   ;;  %v2140_v22 = vld [vmem:[%s2638_s1 + $0x28] sm:$0xff] (!%p163_p2)  }
   0xc   : > { %1999 = vmatpush3.bf16.msra.mxu0 (!%p163_p2), %v2124_v6  ;;  %v2133_v15 = vld [vmem:[%s2638_s1 + $0x98] sm:$0xff] (!%p163_p2)   ;;  %v2137_v19 = vld [vmem:[%s2638_s1 + $0xa0] sm:$0xff] (!%p163_p2)   ;;  %v2141_v23 = vld [vmem:[%s2638_s1 + $0xa8] sm:$0xff] (!%p163_p2)  }
   0xd   : > { %2027 = vmatpush3.bf16.msra.mxu1 %v2125_v7  ;;  %2000 = vmatprep.subr.bf16.mxu0 %v2126_v8  ;;  %s2643_s16 = smov (!%p188_p3, %s1821_s16), 1  ;;  %v2142_v24 = vld [vmem:[%s2638_s1 + $0x70] sm:$0xff]   ;;  %v2146_v29 = vld [vmem:[%s2638_s1 + $0x78] sm:$0xff]   ;;  %v2150_v45 = vld [vmem:[%s2638_s1 + $0x140] sm:$0xff]  }
   0xe   : > { %2028 = vmatprep.subr.bf16.mxu1 %v2127_v9  ;;  %v2143_v25 = vld [vmem:[%s2638_s1 + $0xf0] sm:$0xff]   ;;  %s2108_s21 = smul.u32 40, %s2643_s16  ;;  %v2147_v30 = vld [vmem:[%s2638_s1 + $0xf8] sm:$0xff]   ;;  %v2151_v46 = vld [vmem:[%s2638_s1 + $0x1c0] sm:$0xff]   ;;  %s1987_s7 = sshll.u32 %s2643_s16, 3 }
   0xf   : > { %v2144_v26 = vld [vmem:[%s2638_s1 + $0x30] sm:$0xff]   ;;  %v2148_v31 = vld [vmem:[%s2638_s1 + $0x38] sm:$0xff]   ;;  %v2154_v37 = vld [vmem:[%s2638_s1 + $0x148] sm:$0xff]   ;;  %s2603_s10 = scalar_lea.vmem %s2641_s4, %s1987_s7 }
  0x10   : > { %2001 = vmatpush3.bf16.msra.mxu0 %v2128_v10  ;;  %v2145_v27 = vld [vmem:[%s2638_s1 + $0xb0] sm:$0xff]   ;;  %s192_s6 = scalar_lea.vmem %s2637_s0, %s2108_s21  ;;  %v2149_v32 = vld [vmem:[%s2638_s1 + $0xb8] sm:$0xff]  }
  0x11   : > { %2029 = vmatpush3.bf16.msra.mxu1 %v2129_v11  ;;  %2002 = vmatprep.subr.bf16.mxu0 %v2130_v12  ;;  %v1988_v34 = vld.sshfl [vmem:[%s192_s6] sm:$0x5f pattern:$0x75316420] }
  0x12   : > { %2030 = vmatprep.subr.bf16.mxu1 %v2131_v13  ;;  %v1990_v35 = vld.sshfl [vmem:[%s192_s6 + $0x8] sm:$0x5f pattern:$0x75316420] }
  0x13   : > { %v1992_v38 = vld.sshfl [vmem:[%s192_s6 + $0x10] sm:$0x5f pattern:$0x75316420]  ;;  %v264_v39 = vcombine.low %v1988_v34, %v1990_v35  ;;  %v265_v41 = vcombine.high %v1988_v34, %v1990_v35 }
  0x14   : > { %2003 = vmatpush3.bf16.msra.mxu0 %v2132_v14  ;;  %v1994_v40 = vld.sshfl [vmem:[%s192_s6 + $0x18] sm:$0x5f pattern:$0x75316420]  ;;  %v297_v43 = vcombine.low %v1990_v35, %v1992_v38  ;;  %v298_v44 = vcombine.high %v1990_v35, %v1992_v38 }
  0x15   : > { %2031 = vmatpush3.bf16.msra.mxu1 %v2133_v15  ;;  %2004 = vmatprep.subr.bf16.mxu0 %v2134_v16  ;;  %v1995_v47 = vld.sshfl [vmem:[%s192_s6 + $0x20] sm:$0x5f pattern:$0x75316420]  ;;  %v330_v48 = vcombine.low %v1992_v38, %v1994_v40  ;;  %v331_v49 = vcombine.high %v1992_v38, %v1994_v40  ;;  %v272_v53 = vrot.slane %v264_v39, %v2336_v50  ;;  %v2155_v38 = vld [vmem:[%s2638_s1 + $0x1c8] sm:$0xff]  }
  0x16   : > { %2032 = vmatprep.subr.bf16.mxu1 %v2135_v17  ;;  %v363_v51 = vcombine.low %v1994_v40, %v1995_v47  ;;  %v364_v52 = vcombine.high %v1994_v40, %v1995_v47  ;;  %v279_v54 = vrot.slane %v265_v41, %v2336_v50  ;;  %v305_v55 = vrot.slane %v297_v43, %v2336_v50  ;;  %v2156_v39 = vld [vmem:[%s2638_s1 + $0x108] sm:$0xff]   ;;  %v2158_v43 = vld [vmem:[%s2638_s1 + $0x150] sm:$0xff]  }
  0x17   : > { %v312_v56 = vrot.slane %v298_v44, %v2336_v50  ;;  %v338_v57 = vrot.slane %v330_v48, %v2336_v50  ;;  %v345_v58 = vrot.slane %v331_v49, %v2336_v50  ;;  %v280_v61 = vcombine.high %v272_v53, %v272_v53  ;;  %v2157_v41 = vld [vmem:[%s2638_s1 + $0x188] sm:$0xff]   ;;  %v2159_v44 = vld [vmem:[%s2638_s1 + $0x1d0] sm:$0xff]   ;;  %v2162_v48 = vld [vmem:[%s2638_s1 + $0x158] sm:$0xff]  }
  0x18   : > { %2005 = vmatpush3.bf16.msra.mxu0 %v2136_v18  ;;  %v371_v59 = vrot.slane %v363_v51, %v2336_v50  ;;  %v378_v60 = vrot.slane %v364_v52, %v2336_v50  ;;  %v313_v62 = vcombine.high %v305_v55, %v305_v55  ;;  %v386_v63 = vunpack.i.h.s16 %v305_v55  ;;  %v2163_v49 = vld [vmem:[%s2638_s1 + $0x1d8] sm:$0xff]  }
  0x19   : > { %2033 = vmatpush3.bf16.msra.mxu1 %v2137_v19  ;;  %2006 = vmatprep.subr.bf16.mxu0 %v2138_v20  ;;  %v388_v0 = vunpack.i.h.s16 %v312_v56  ;;  %v346_v1 = vcombine.high %v338_v57, %v338_v57  ;;  %v474_v2 = vcombine.low %v272_v53, %v279_v54  ;;  %v1849_v5 = vpack.i.b16 %v305_v55, %v280_v61  ;;  %v2164_v51 = vld [vmem:[%s2638_s1 + $0x118] sm:$0xff]   ;;  %v2166_v53 = vld [vmem:[%s2638_s1 + $0x160] sm:$0xff]   ;;  %v2174_v61 = vld [vmem:[%s2638_s1 + $0x170] sm:$0xff]  }
  0x1a   : > { %2034 = vmatprep.subr.bf16.mxu1 %v2139_v21  ;;  %v379_v3 = vcombine.high %v371_v59, %v371_v59  ;;  %v396_v4 = vunpack.i.h.s16 %v371_v59  ;;  %v1850_v6 = vpack.i.b16 %v312_v56, %v386_v63  ;;  %v398_v8 = vunpack.i.h.s16 %v378_v60  ;;  %v2165_v52 = vld [vmem:[%s2638_s1 + $0x198] sm:$0xff]   ;;  %v2167_v54 = vld [vmem:[%s2638_s1 + $0x1e0] sm:$0xff]   ;;  %v2176_v63 = vld [vmem:[%s2638_s1 + $0x130] sm:$0xff]  }
  0x1b   : > { %v1851_v7 = vpack.i.b16 %v313_v62, %v388_v0  ;;  %v1852_v9 = vpack.i.b16 %v371_v59, %v346_v1  ;;  %v484_v13 = vrot.slane %v474_v2, %v2336_v50  ;;  %v2168_v55 = vld [vmem:[%s2638_s1 + $0x120] sm:$0xff]   ;;  %v2172_v59 = vld [vmem:[%s2638_s1 + $0x128] sm:$0xff]   ;;  %v2175_v62 = vld [vmem:[%s2638_s1 + $0x1f0] sm:$0xff]  }
  0x1c   : > { %2007 = vmatpush3.bf16.msra.mxu0 %v2140_v22  ;;  %v1853_v10 = vpack.i.b16 %v378_v60, %v396_v4  ;;  %v475_v11 = vcombine.low %v1849_v5, %v1850_v6  ;;  %v1854_v14 = vpack.i.b16 %v379_v3, %v398_v8  ;;  %v2169_v56 = vld [vmem:[%s2638_s1 + $0x1a0] sm:$0xff]   ;;  %v2173_v60 = vld [vmem:[%s2638_s1 + $0x1a8] sm:$0xff]   ;;  %v2177_v0 = vld [vmem:[%s2638_s1 + $0x1b0] sm:$0xff]  }
  0x1d   : > { %2035 = vmatpush3.bf16.msra.mxu1 %v2141_v23  ;;  %2008 = vmatprep.subr.bf16.mxu0 %v2142_v24  ;;  %v476_v12 = vcombine.low %v1851_v7, %v338_v57  ;;  %v477_v15 = vcombine.low %v345_v58, %v1852_v9  ;;  %v2170_v57 = vld [vmem:[%s2638_s1 + $0x168] sm:$0xff]   ;;  %v2178_v1 = vld [vmem:[%s2638_s1 + $0x178] sm:$0xff]  }
  0x1e   : > { %2036 = vmatprep.subr.bf16.mxu1 %v2143_v25  ;;  %v491_v16 = vrot.slane %v475_v11, %v2336_v50  ;;  %v542_v18 = vcombine.low %v1853_v10, %v1854_v14  ;;  %v2171_v58 = vld [vmem:[%s2638_s1 + $0x1e8] sm:$0xff]   ;;  %v2179_v2 = vld [vmem:[%s2638_s1 + $0x1f8] sm:$0xff]  }
  0x1f   : > { %v498_v17 = vrot.slane %v476_v12, %v2336_v50  ;;  %v505_v19 = vrot.slane %v477_v15, %v2336_v50  ;;  %v2180_v3 = vld [vmem:[%s2638_s1 + $0x138] sm:$0xff]  }
  0x20   : > { %2009 = vmatpush3.bf16.msra.mxu0 %v2144_v26  ;;  %v507_v20 = vcombine.high %v484_v13, %v491_v16  ;;  %v506_v21 = vcombine.low %v484_v13, %v491_v16  ;;  %v549_v22 = vrot.slane %v542_v18, %v2336_v50  ;;  %v2181_v4 = vld [vmem:[%s2638_s1 + $0x1b8] sm:$0xff]  }
  0x21   : > { %2037 = vmatpush3.bf16.msra.mxu1 %v2145_v27  ;;  %2010 = vmatprep.subr.bf16.mxu0 %v2146_v29  ;;  %v509_v23 = vcombine.high %v498_v17, %v505_v19  ;;  %v508_v24 = vcombine.low %v498_v17, %v505_v19 }
  0x22   : > { %2038 = vmatprep.subr.bf16.mxu1 %v2147_v30  ;;  %v523_v25 = vrot.slane %v507_v20, %v2336_v50  ;;  %v516_v26 = vrot.slane %v506_v21, %v2336_v50  ;;  %v550_v27 = vcombine.high %v549_v22, %v549_v22  ;;  %v2152_v30 = vld [vmem:[%s2638_s1 + $0x100] sm:$0xff]   ;;  %v2387_v42 = vrot.slane %v549_v22, %v2336_v50 }
  0x23   : > { %v537_v28 = vrot.slane %v509_v23, %v2336_v50  ;;  %v530_v29 = vrot.slane %v508_v24, %v2336_v50 }
  0x24   : > { %2011 = vmatpush3.bf16.msra.mxu0 %v2148_v31  ;;  %v2153_v31 = vld [vmem:[%s2638_s1 + $0x180] sm:$0xff]   ;;  %v565_v47 = vcombine.high %v2387_v42, %v2387_v42 }
  0x25   : > { %2039 = vmatpush3.bf16.msra.mxu1 %v2149_v32  ;;  %2052 = vmatprep.subr.bf16.mxu0 %v2150_v45  ;;  %v2362_v32 = vrot.slane %v550_v27, %v2336_v50  ;;  %v540_v33 = vcombine.low %v523_v25, %v537_v28  ;;  %v541_v34 = vcombine.high %v523_v25, %v537_v28  ;;  %v2160_v45 = vld [vmem:[%s2638_s1 + $0x110] sm:$0xff]  }
  0x26   : > { %2080 = vmatprep.subr.bf16.mxu1 %v2151_v46  ;;  %v2364_v35 = vcombine.low %v516_v26, %v530_v29  ;;  %v2366_v36 = vcombine.high %v516_v26, %v530_v29  ;;  %v2161_v46 = vld [vmem:[%s2638_s1 + $0x190] sm:$0xff]  }
  0x27   : > { %799 = vmatprep.mubr.bf16.mxu0 %v540_v33  ;;  %847 = vmatprep.mubr.bf16.mxu1 %v541_v34  ;;  %v2379_v40 = vcombine.high %v2362_v32, %v2362_v32 }
  0x28   : > { %800 = vmatmul.mubr.bf16.vlgmr.msra.gmra.mrb[0].mxu0 %v2364_v35  ;;  %848 = vmatmul.mubr.bf16.vlgmr.msra.gmra.mrb[0].mxu1 %v2366_v36 }
  0x29   : > { %2053 = vmatpush3.bf16.msra.mxu0 %v2152_v30  ;;  %2081 = vmatpush3.bf16.msra.mxu1 %v2153_v31  ;;  %v1983_v30 = vld [vmem:[%s2639_s2] ss:$0 sm:$0xff] }
  0x2a   : > { %2054 = vmatprep.subr.bf16.mxu0 %v2154_v37  ;;  %2082 = vmatprep.subr.bf16.mxu1 %v2155_v38  ;;  %v1984_v31 = vld [vmem:[%s2640_s3] ss:$0 sm:$0xff] }
  0x2b   : > { %807 = vmatprep.mubr.bf16.mxu0 %v2362_v32  ;;  %855 = vmatprep.mubr.bf16.mxu1 %v2379_v40 }
  0x2d   : > { %2055 = vmatpush3.bf16.msra.mxu0 %v2156_v39  ;;  %2083 = vmatpush3.bf16.msra.mxu1 %v2157_v41 }
  0x2e   : > { %2056 = vmatprep.subr.bf16.mxu0 %v2158_v43  ;;  %2084 = vmatprep.subr.bf16.mxu1 %v2159_v44 }
  0x30   : > { %808 = vmatmul.mubr.bf16.gmra.mrb[4].mxu0 %v2387_v42  ;;  %856 = vmatmul.mubr.bf16.gmra.mrb[4].mxu1 %v565_v47 }
  0x31   : > { %2057 = vmatpush3.bf16.msra.mxu0 %v2160_v45  ;;  %2085 = vmatpush3.bf16.msra.mxu1 %v2161_v46 }
  0x32   : > { %2058 = vmatprep.subr.bf16.mxu0 %v2162_v48  ;;  %2086 = vmatprep.subr.bf16.mxu1 %v2163_v49 }
  0x33   : > { %1307 = vmatprep.mubr.bf16.mxu0 %v540_v33  ;;  %1355 = vmatprep.mubr.bf16.mxu1 %v541_v34  ;;  %v1588_v34 = vrot.slane %v1984_v31, %v2336_v50 }
  0x35   : > { %2059 = vmatpush3.bf16.msra.mxu0 %v2164_v51  ;;  %2087 = vmatpush3.bf16.msra.mxu1 %v2165_v52  ;;  %v2491_v46 = vrot.slane %v1588_v34, %v2336_v50 }
  0x36   : > { %2060 = vmatprep.subr.bf16.mxu0 %v2166_v53  ;;  %2088 = vmatprep.subr.bf16.mxu1 %v2167_v54 }
  0x39   : > { %2061 = vmatpush3.bf16.msra.mxu0 %v2168_v55  ;;  %2089 = vmatpush3.bf16.msra.mxu1 %v2169_v56 }
  0x3a   : > { %2062 = vmatprep.subr.bf16.mxu0 %v2170_v57  ;;  %2090 = vmatprep.subr.bf16.mxu1 %v2171_v58 }
  0x3d   : > { %2063 = vmatpush3.bf16.msra.mxu0 %v2172_v59  ;;  %2091 = vmatpush3.bf16.msra.mxu1 %v2173_v60 }
  0x3e   : > { %2064 = vmatprep.subr.bf16.mxu0 %v2174_v61  ;;  %2092 = vmatprep.subr.bf16.mxu1 %v2175_v62 }
  0x41   : > { %2065 = vmatpush3.bf16.msra.mxu0 %v2176_v63  ;;  %2093 = vmatpush3.bf16.msra.mxu1 %v2177_v0 }
  0x42   : > { %2066 = vmatprep.subr.bf16.mxu0 %v2178_v1  ;;  %2094 = vmatprep.subr.bf16.mxu1 %v2179_v2 }
  0x45   : > { %2067 = vmatpush3.bf16.msra.mxu0 %v2180_v3  ;;  %2095 = vmatpush3.bf16.msra.mxu1 %v2181_v4  ;;  %v2517_v3 = vcombine.high %v2491_v46, %v2491_v46 }
  0x48   : > { %1308 = vmatmul.mubr.bf16.vlgmr.msra.gmra.mrb[8].mxu0 %v2364_v35  ;;  %1356 = vmatmul.mubr.bf16.vlgmr.msra.gmra.mrb[8].mxu1 %v2366_v36 }
  0x49   : > { %1315 = vmatprep.mubr.bf16.mxu0 %v2362_v32  ;;  %1363 = vmatprep.mubr.bf16.mxu1 %v2379_v40  ;;  %v1538_v32 = vrot.slane %v1983_v30, %v2336_v50  ;;  %v1589_v40 = vcombine.high %v1588_v34, %v1588_v34 }
  0x4b   : > { %v1539_v36 = vcombine.high %v1538_v32, %v1538_v32  ;;  %v2485_v41 = vrot.slane %v1538_v32, %v2336_v50  ;;  %v2497_v53 = vrot.slane %v1589_v40, %v2336_v50 }
  0x4d   : > { %v2488_v43 = vrot.slane %v1539_v36, %v2336_v50  ;;  %v2502_v57 = vcombine.high %v2485_v41, %v2485_v41 }
  0x4f   : > { %v2513_v63 = vcombine.high %v2488_v43, %v2488_v43 }
  0x50   : > { %1316 = vmatmul.mubr.bf16.gmra.mrb[12].mxu0 %v2387_v42  ;;  %1364 = vmatmul.mubr.bf16.gmra.mrb[12].mxu1 %v565_v47 }
  0xfb   : > { %v2012_v5 = vpop.f32.mrb[0].mxu0  ;;  %v2040_v6 = vpop.f32.mrb[0].mxu1 }
  0xfc   : > { %v2013_v7 = vpop.f32.mrb[1].mxu0  ;;  %v2041_v8 = vpop.f32.mrb[1].mxu1 }
  0xfd   : > { %v2014_v9 = vadd.f32 %v2013_v7, %v2012_v5  ;;  %v2042_v10 = vadd.f32 %v2041_v8, %v2040_v6  ;;  %v2015_v11 = vpop.f32.mrb[2].mxu0  ;;  %v2043_v12 = vpop.f32.mrb[2].mxu1 }
  0xfe   : > { %v2016_v13 = vpop.f32.mrb[3].mxu0  ;;  %v2044_v14 = vpop.f32.mrb[3].mxu1 }
  0xff   : > { %v850_v15 = vadd.f32 %v2042_v10, %v2014_v9  ;;  %v2017_v16 = vadd.f32 %v2016_v13, %v2015_v11  ;;  %v2045_v17 = vadd.f32 %v2044_v14, %v2043_v12  ;;  %v2529_v9 = vcombine.high %v2497_v53, %v2497_v53 }
 0x101   : > { %v853_v18 = vadd.f32 %v2045_v17, %v2017_v16  ;;  %v866_v33 = vcombine.high %v850_v15, %v850_v15  ;;  %v873_v35 = vrot.slane %v850_v15, %v2336_v50 }
 0x103   : > { %v2018_v19 = vpop.f32.mrb[4].mxu0  ;;  %v2046_v20 = vpop.f32.mrb[4].mxu1  ;;  %v880_v37 = vrot.slane %v866_v33, %v2336_v50  ;;  %v915_v38 = vcombine.high %v853_v18, %v853_v18  ;;  %v922_v39 = vrot.slane %v853_v18, %v2336_v50  ;;  %v881_v42 = vcombine.high %v873_v35, %v873_v35 }
 0x104   : > { %v2019_v21 = vpop.f32.mrb[5].mxu0  ;;  %v2047_v22 = vpop.f32.mrb[5].mxu1  ;;  %v889_v54 = vrot.slane %v873_v35, %v2336_v50 }
 0x105   : > { %v2021_v23 = vpop.f32.mrb[6].mxu0  ;;  %v2049_v24 = vpop.f32.mrb[6].mxu1  ;;  %v2020_v25 = vadd.f32 %v2019_v21, %v2018_v19  ;;  %v2048_v28 = vadd.f32 %v2047_v22, %v2046_v20  ;;  %v882_v47 = vcombine.high %v880_v37, %v880_v37  ;;  %v2494_v48 = vrot.slane %v915_v38, %v2336_v50 }
 0x106   : > { %v2022_v26 = vpop.f32.mrb[7].mxu0  ;;  %v2050_v27 = vpop.f32.mrb[7].mxu1  ;;  %v930_v49 = vcombine.high %v922_v39, %v922_v39  ;;  %v2505_v60 = vrot.slane %v880_v37, %v2336_v50  ;;  %v903_v61 = vrot.slane %v881_v42, %v2336_v50  ;;  %v2509_v62 = vrot.slane %v922_v39, %v2336_v50 }
 0x107   : > { %v2471_v29 = vadd.f32 %v2048_v28, %v2020_v25  ;;  %v2520_v6 = vrot.slane %v882_v47, %v2336_v50  ;;  %v931_v7 = vcombine.high %v2494_v48, %v2494_v48  ;;  %v911_v10 = vcombine.high %v889_v54, %v889_v54 }
 0x108   : > { %v2525_v8 = vrot.slane %v930_v49, %v2336_v50  ;;  %v912_v14 = vcombine.high %v2505_v60, %v2505_v60  ;;  %v913_v15 = vcombine.high %v903_v61, %v903_v61  ;;  %v945_v16 = vrot.slane %v2494_v48, %v2336_v50 }
 0x109   : > { %v960_v17 = vcombine.high %v2509_v62, %v2509_v62  ;;  %v2543_v24 = vrot.slane %v931_v7, %v2336_v50  ;;  %v914_v26 = vcombine.high %v2520_v6, %v2520_v6 }
 0x10a   : > { %v961_v25 = vcombine.high %v2525_v8, %v2525_v8 }
 0x11b   : > { %v2068_v44 = vpop.f32.mrb[8].mxu0  ;;  %v2096_v45 = vpop.f32.mrb[8].mxu1 }
 0x11c   : > { %v2069_v51 = vpop.f32.mrb[9].mxu0  ;;  %v2097_v52 = vpop.f32.mrb[9].mxu1 }
 0x11d   : > { %v2070_v55 = vadd.f32 %v2069_v51, %v2068_v44  ;;  %v2098_v56 = vadd.f32 %v2097_v52, %v2096_v45  ;;  %v2071_v58 = vpop.f32.mrb[10].mxu0  ;;  %v2099_v59 = vpop.f32.mrb[10].mxu1 }
 0x11e   : > { %v2072_v0 = vpop.f32.mrb[11].mxu0  ;;  %v2100_v1 = vpop.f32.mrb[11].mxu1 }
 0x11f   : > { %v1358_v2 = vadd.f32 %v2098_v56, %v2070_v55  ;;  %v2073_v4 = vadd.f32 %v2072_v0, %v2071_v58  ;;  %v2101_v5 = vadd.f32 %v2100_v1, %v2099_v59 }
 0x121   : > { %v1374_v11 = vcombine.high %v1358_v2, %v1358_v2  ;;  %v1381_v12 = vrot.slane %v1358_v2, %v2336_v50  ;;  %v1361_v13 = vadd.f32 %v2101_v5, %v2073_v4 }
 0x123   : > { %v1388_v18 = vrot.slane %v1374_v11, %v2336_v50  ;;  %v1389_v19 = vcombine.high %v1381_v12, %v1381_v12  ;;  %v1397_v20 = vrot.slane %v1381_v12, %v2336_v50  ;;  %v1423_v21 = vcombine.high %v1361_v13, %v1361_v13  ;;  %v2074_v22 = vpop.f32.mrb[12].mxu0  ;;  %v2540_v23 = vpop.f32.mrb[12].mxu1 }
 0x124   : > { %v1430_v27 = vrot.slane %v1361_v13, %v2336_v50  ;;  %v2075_v28 = vpop.f32.mrb[13].mxu0  ;;  %v2550_v30 = vpop.f32.mrb[13].mxu1 }
 0x125   : > { %v1390_v31 = vcombine.high %v1388_v18, %v1388_v18  ;;  %v1404_v32 = vrot.slane %v1388_v18, %v2336_v50  ;;  %v1411_v33 = vrot.slane %v1389_v19, %v2336_v50  ;;  %v1419_v34 = vcombine.high %v1397_v20, %v1397_v20  ;;  %v2077_v35 = vpop.f32.mrb[14].mxu0  ;;  %v2105_v36 = vpop.f32.mrb[14].mxu1 }
 0x126   : > { %v1437_v37 = vrot.slane %v1423_v21, %v2336_v50  ;;  %v1438_v38 = vcombine.high %v1430_v27, %v1430_v27  ;;  %v1446_v39 = vrot.slane %v1430_v27, %v2336_v50  ;;  %v2556_v40 = vadd.f32 %v2075_v28, %v2074_v22  ;;  %v2078_v42 = vpop.f32.mrb[15].mxu0  ;;  %v2106_v44 = vpop.f32.mrb[15].mxu1 }
 0x127   : > { %v1418_v45 = vrot.slane %v1390_v31, %v2336_v50  ;;  %v1420_v47 = vcombine.high %v1404_v32, %v1404_v32  ;;  %v1421_v49 = vcombine.high %v1411_v33, %v1411_v33  ;;  %v1510_v51 = vadd.f32 %v1411_v33, %v889_v54 }
 0x128   : > { %v1511_v52 = vadd.f32 %v1419_v34, %v903_v61  ;;  %v1513_v55 = vadd.f32 %v1404_v32, %v913_v15  ;;  %v1439_v56 = vcombine.high %v1437_v37, %v1437_v37  ;;  %v1453_v58 = vrot.slane %v1437_v37, %v2336_v50 }
 0x129   : > { %v1422_v59 = vcombine.high %v1418_v45, %v1418_v45  ;;  %v1512_v60 = vadd.f32 %v1421_v49, %v911_v10  ;;  %v1514_v0 = vadd.f32 %v1420_v47, %v2520_v6  ;;  %v1560_v1 = vmul.f32 %v2485_v41, %v1510_v51 }
 0x12a   : > { %v1561_v2 = vmul.f32 %v2488_v43, %v1511_v52  ;;  %v1563_v4 = vmul.f32 %v2513_v63, %v1513_v55  ;;  %v1460_v5 = vrot.slane %v1438_v38, %v2336_v50  ;;  %v1467_v7 = vrot.slane %v1439_v56, %v2336_v50 }
 0x12b   : > { %v1515_v54 = vadd.f32 %v1422_v59, %v912_v14  ;;  %v1562_v61 = vmul.f32 %v2502_v57, %v1512_v60  ;;  %v1564_v8 = vmul.f32 %v2485_v41, %v1514_v0  ;;  %v1610_v11 = vadd.f32 %v2491_v46, %v1560_v1 }
 0x12c   : > { %v1611_v10 = vadd.f32 %v2497_v53, %v1561_v2  ;;  %v1613_v6 = vadd.f32 %v2529_v9, %v1563_v4  ;;  %v1468_v12 = vcombine.high %v1453_v58, %v1453_v58  ;;  %v1469_v13 = vcombine.high %v1460_v5, %v1460_v5 }
 0x12d   : > { %v1565_v15 = vmul.f32 %v2488_v43, %v1515_v54  ;;  %v1612_v18 = vadd.f32 %v2517_v3, %v1562_v61  ;;  %v1614_v19 = vadd.f32 %v2491_v46, %v1564_v8  ;;  %v1626_v20 = vmax.f32 %v1610_v11, 0.0 }
 0x12e   : > { %v1627_v14 = vmax.f32 %v1611_v10, 0.0  ;;  %v1629_v21 = vmax.f32 %v1613_v6, 0.0  ;;  %v1516_v22 = vadd.f32 %v1446_v39, %v914_v26  ;;  %v1517_v27 = vadd.f32 %v1460_v5, %v2509_v62 }
 0x12f   : > { %v1615_v28 = vadd.f32 %v2497_v53, %v1565_v15  ;;  %v1628_v31 = vmax.f32 %v1612_v18, 0.0  ;;  %v1630_v32 = vmax.f32 %v1614_v19, 0.0  ;;  %v1518_v33 = vadd.f32 %v1469_v13, %v960_v17 }
 0x130   : > { %v1658_v34 = vcombine.low %v1626_v20, %v1627_v14  ;;  %v1519_v35 = vadd.f32 %v1453_v58, %v961_v25  ;;  %v1520_v36 = vadd.f32 %v1467_v7, %v945_v16  ;;  %v1521_v37 = vadd.f32 %v1468_v12, %v2543_v24 }
 0x131   : > { %v1631_v38 = vmax.f32 %v1615_v28, 0.0  ;;  %v1659_v42 = vcombine.low %v1628_v31, %v1629_v21  ;;  %v1566_v26 = vmul.f32 %v2502_v57, %v1516_v22  ;;  %v1567_v62 = vmul.f32 %v2513_v63, %v1517_v27 }
 0x132   : > { %v1666_v39 = vrot.slane %v1658_v34, %v2336_v50  ;;  %v1568_v44 = vmul.f32 %v2485_v41, %v1518_v33  ;;  %v1569_v17 = vmul.f32 %v2488_v43, %v1519_v35  ;;  %v1570_v25 = vmul.f32 %v2502_v57, %v1520_v36 }
 0x133   : > { %v1673_v48 = vrot.slane %v1659_v42, %v2336_v50  ;;  %v1682_v16 = vcombine.low %v1630_v32, %v1631_v38  ;;  %v1571_v45 = vmul.f32 %v2513_v63, %v1521_v37  ;;  %v1616_v47 = vadd.f32 %v2517_v3, %v1566_v26 }
 0x134   : > { %v1617_v49 = vadd.f32 %v2529_v9, %v1567_v62  ;;  %v1618_v51 = vadd.f32 %v2491_v46, %v1568_v44  ;;  %v1619_v52 = vadd.f32 %v2497_v53, %v1569_v17  ;;  %v1620_v55 = vadd.f32 %v2517_v3, %v1570_v25 }
 0x135   : > { %v969_v56 = vrot.slane %v2471_v29, %v2336_v50  ;;  %v1674_v58 = vcombine.low %v1666_v39, %v1673_v48  ;;  %v1621_v59 = vadd.f32 %v2529_v9, %v1571_v45  ;;  %v1632_v60 = vmax.f32 %v1616_v47, 0.0 }
 0x136   : > { %v1633_v0 = vmax.f32 %v1617_v49, 0.0  ;;  %v1634_v1 = vmax.f32 %v1618_v51, 0.0  ;;  %v1635_v2 = vmax.f32 %v1619_v52, 0.0  ;;  %v1636_v4 = vmax.f32 %v1620_v55, 0.0 }
 0x137   : > { %v1681_v5 = vrot.slane %v1674_v58, %v2336_v50  ;;  %v1637_v7 = vmax.f32 %v1621_v59, 0.0  ;;  %v2104_v54 = vadd.f32 %v2550_v30, %v2540_v23  ;;  %v1690_v61 = vrot.slane %v1682_v16, %v2336_v50 }
 0x138   : > { %v1683_v29 = vcombine.low %v1632_v60, %v1633_v0  ;;  %v1706_v8 = vcombine.low %v1634_v1, %v1635_v2  ;;  %v970_v12 = vcombine.high %v969_v56, %v969_v56  ;;  %v977_v18 = vrot.slane %v969_v56, %v2336_v50 }
 0x139   : > { %v1758_v11 = vpack.c.bf16 %v1681_v5, %v1681_v5  ;;  %v1707_v10 = vcombine.low %v1636_v4, %v1637_v7  ;;  %v1366_v6 = vadd.f32 %v2104_v54, %v2556_v40  ;;  %v962_v14 = vcombine.high %v2543_v24, %v2543_v24 }
 0x13a   : > { %v1697_v13 = vrot.slane %v1683_v29, %v2336_v50  ;;  %v1714_v15 = vrot.slane %v1706_v8, %v2336_v50  ;;  %v984_v22 = vrot.slane %v970_v12, %v2336_v50  ;;  %v985_v34 = vcombine.high %v977_v18, %v977_v18 }
 0x13b   : > { %1762 = vst [vmem:[%s2603_s10] sm:$0x3] %v1758_v11  ;;  %v1721_v23 = vrot.slane %v1707_v10, %v2336_v50  ;;  %v1476_v30 = vrot.slane %v1366_v6, %v2336_v50 }
 0x13c   : > { %v1698_v19 = vcombine.low %v1690_v61, %v1697_v13 }
 0x13d   : > { %v1722_v20 = vcombine.low %v1714_v15, %v1721_v23  ;;  %v1477_v21 = vcombine.high %v1476_v30, %v1476_v30  ;;  %v1484_v40 = vrot.slane %v1476_v30, %v2336_v50 }
 0x13e   : > { %v1705_v27 = vrot.slane %v1698_v19, %v2336_v50 }
 0x13f   : > { %v1729_v28 = vrot.slane %v1722_v20, %v2336_v50  ;;  %v1491_v31 = vrot.slane %v1477_v21, %v2336_v50  ;;  %v1492_v32 = vcombine.high %v1484_v40, %v1484_v40  ;;  %v1522_v33 = vadd.f32 %v1484_v40, %v962_v14 }
 0x140   : > { %v1759_v35 = vpack.c.bf16 %v1705_v27, %v1705_v27 }
 0x141   : > { %v1760_v36 = vpack.c.bf16 %v1729_v28, %v1729_v28  ;;  %v1493_v37 = vcombine.high %v1491_v31, %v1491_v31  ;;  %v1523_v38 = vadd.f32 %v1491_v31, %v977_v18  ;;  %v1524_v24 = vadd.f32 %v1492_v32, %v984_v22 }
 0x142   : > { %1763 = vst [vmem:[%s2603_s10 + $0x2] sm:$0x3] %v1759_v35  ;;  %v1572_v42 = vmul.f32 %v2485_v41, %v1522_v33 }
 0x143   : > { %1764 = vst [vmem:[%s2603_s10 + $0x4] sm:$0x3] %v1760_v36  ;;  %v1525_v26 = vadd.f32 %v1493_v37, %v985_v34  ;;  %v1573_v62 = vmul.f32 %v2488_v43, %v1523_v38  ;;  %v1574_v39 = vmul.f32 %v2502_v57, %v1524_v24 }
 0x144   : > { %v1622_v44 = vadd.f32 %v2491_v46, %v1572_v42 }
 0x145   : > { %v1575_v17 = vmul.f32 %v2513_v63, %v1525_v26  ;;  %v1623_v25 = vadd.f32 %v2497_v53, %v1573_v62  ;;  %v1624_v48 = vadd.f32 %v2517_v3, %v1574_v39 }
 0x146   : > { %v1638_v45 = vmax.f32 %v1622_v44, 0.0 }
 0x147   : > { %v1625_v16 = vadd.f32 %v2529_v9, %v1575_v17  ;;  %v1639_v47 = vmax.f32 %v1623_v25, 0.0  ;;  %v1640_v41 = vmax.f32 %v1624_v48, 0.0 }
 0x149   : > { %v1641_v49 = vmax.f32 %v1625_v16, 0.0  ;;  %v1730_v51 = vcombine.low %v1638_v45, %v1639_v47 }
 0x14b   : > { %v1731_v52 = vcombine.low %v1640_v41, %v1641_v49  ;;  %v1738_v43 = vrot.slane %v1730_v51, %v2336_v50 }
 0x14d   : > { %v1745_v57 = vrot.slane %v1731_v52, %v2336_v50 }
 0x14f   : > { %v1746_v46 = vcombine.low %v1738_v43, %v1745_v57 }
 0x151   : > { %v1753_v55 = vrot.slane %v1746_v46, %v2336_v50 }
 0x153   : > { %v1761_v63 = vpack.c.bf16 %v1753_v55, %v1753_v55 }
 0x155   : > { %1765 = vst [vmem:[%s2603_s10 + $0x6] sm:$0x3] %v1761_v63 }
 0x156 PF: > { %s14_s15 = sadd.s32 1, %s2188_s15  }
 0x157   : > { %p11_p4 = scmp.ge.s32.totalorder %s14_s15, 4  }
 0x159   :  { %13 = sbr.rel (!%p11_p4) target bundleno = 1 (0x1), region = 68 }

// kernel: tile.23
= control target key start
LH: loop header
LB: loop body
LE: loop exit
PB: predicated region body
PF: predicated region fallthrough
CT: control target
= control target key end

     0   :  { %s22_s0 = inlined_call_operand.vmem [shape: f32[64], index: 0, kind: input, shape index: {}]   ;;  %s23_s1 = inlined_call_operand.vmem [shape: f32[4,64], index: 1, kind: output, shape index: {}]  }
   0x1   :  { %v4_v0 = vld [vmem:[%s22_s0] ss:$0 sm:$0xff] }
   0x2   :  { %5 = vst [vmem:[%s23_s1] sm:$0xf] %v4_v0 }

// kernel: tile.24
= control target key start
LH: loop header
LB: loop body
LE: loop exit
PB: predicated region body
PF: predicated region fallthrough
CT: control target
= control target key end

     0   :  { %s6_s8 = smov 3  ;;  %vm8_vm0 = vcmask 523264   ;;  %s30_s9 = smov 64   ;;  %vm15_vm1 = vcmask 1048064   ;;  %s50_s0 = inlined_call_operand.vmem [shape: f32[4,64], index: 0, kind: input, shape index: {}]   ;;  %s51_s1 = inlined_call_operand.vmem [shape: f32[1,256], index: 1, kind: output, shape index: {}]  }
   0x1   :  { %v4_v0 = vld [vmem:[%s50_s0] sm:$0xf]  ;;  %s11_s0 = smov 3 }
   0x2   :  { %5 = vst [vmem:[#allocation1] sm:$0xf] %v4_v0 }
   0x9   :  { %v12_v1 = vld [vmem:[#allocation1 + $0x1] ss:$2 sm:%s11_s0]   ;;  %v7_v2 = vld [vmem:[#allocation1] ss:$2 sm:%s6_s8]  }
   0xa   :  { %13 = vrot.lane.b32.xlu0 %v12_v1, %s30_s9  ;;  %9 = vst.msk [vmem:[#allocation0] ss:$8 sm:$0x3] %vm8_vm0, %v7_v2  }
  0x7c   :  { %v14_v3 = vpop.permute.xlu0 %13  }
  0x7d   :  { %16 = vst.msk [vmem:[#allocation0] ss:$8 sm:$0x3] %vm15_vm1, %v14_v3  }
  0x84   :  { %v20_v4 = vld [vmem:[#allocation0] sm:$0x1]  ;;  %v24_v5 = vld [vmem:[#allocation0 + $0x8] sm:$0x1] }
  0x85   :  { %22 = vst [vmem:[%s51_s1] sm:$0x1] %v20_v4  ;;  %28 = vst [vmem:[%s51_s1 + $0x1] sm:$0x1] %v24_v5 }

// kernel: resnet_generator_pallas.10
= control target key start
LH: loop header
LB: loop body
LE: loop exit
PB: predicated region body
PF: predicated region fallthrough
CT: control target
= control target key end

     0   :  { %s4601_s24 = smov 0   ;;  %s4603_s25 = smov 0   ;;  %s5126_s0 = inlined_call_operand.vmem [shape: bf16[2,4,4,128], index: 0, kind: input, shape index: {}]   ;;  %s5127_s1 = inlined_call_operand.vmem [shape: bf16[3,3,384,128], index: 1, kind: input, shape index: {}]   ;;  %s5128_s2 = inlined_call_operand.vmem [shape: bf16[3,3,384,128], index: 2, kind: input, shape index: {}]   ;;  %s5129_s3 = inlined_call_operand.vmem [shape: f32[3,1,128], index: 3, kind: input, shape index: {}]   ;;  %s5130_s4 = inlined_call_operand.vmem [shape: f32[3,1,128], index: 4, kind: input, shape index: {}]   ;;  %s5131_s5 = inlined_call_operand.vmem [shape: f32[3,1,128], index: 5, kind: input, shape index: {}]   ;;  %s5132_s6 = inlined_call_operand.vmem [shape: f32[3,1,128], index: 6, kind: input, shape index: {}]   ;;  %s5133_s7 = inlined_call_operand.vmem [shape: bf16[2,4,4,128], index: 7, kind: output, shape index: {}]  }
   0x1   :  { %5134 = sst [smem:[#allocation4_spill]] %s5126_s0  ;;  %s4605_s26 = smov 0  }
   0x2   :  { %s4607_s27 = smov 0   ;;  %s4609_s28 = smov 0  }
   0x3 LB: > { %s26_s29 = sadd.s32 1, %s4550_s26  ;;  %s29_s30 = sadd.s32 1, %s4554_s27  ;;  %s4558_s28 = sphi %s4609_s28, %s17_s28   ;;  %s4554_s27 = sphi %s4607_s27, %s5147_s27   ;;  %s4550_s26 = sphi %s4605_s26, %s5146_s26   ;;  %s4546_s25 = sphi %s4603_s25, %s5145_s25   ;;  %s4542_s24 = sphi %s4601_s24, %s5144_s24  }
   0x4   : > { %p27_p0 = scmp.ge.s32.totalorder %s26_s29, 3  ;;  %p3572_p1 = scmp.ge.s32.totalorder %s4558_s28, 1 }
   0x5   : > { %p301_p2 = scmp.lt.s32.totalorder %s4558_s28, 7 }
   0x6   : > { %s5149_s29 = smov (%p27_p0, %s26_s29), 0  ;;  %s5151_s30 = smov (!%p27_p0, %s29_s30), %s4554_s27 }
   0x7   : > { %p302_p3 = pnand %p3572_p1, %p301_p2  ;;  %p31_p4 = scmp.ge.s32.totalorder %s5151_s30, 2 }
   0x8   : > { %p355_p5 = scmp.lt.s32.totalorder (!%p302_p3), %s4546_s25, 1  ;;  %p360_p6 = scmp.lt.s32.totalorder (!%p302_p3), %s4542_s24, 2 }
   0x9   : > { %s5153_s30 = smov (%p31_p4, %s5151_s30), 0  ;;  %305 = sbr.rel (%p302_p3) target bundleno = 710 (0x2c6), region = 48 }
   0xa   : > { %5135 = sst [smem:[#allocation3_spill]] %s5153_s30  ;;  %s5136_s0 = sld [smem:[#allocation4_spill]] (!%p302_p3) }
   0xb   : > { %p3579_p7 = scmp.ne.s32.totalorder (!%p302_p3), %s4542_s24, 0 }
  0x10   : > { %s5155_s25 = smov (!%p355_p5, %s4546_s25), 1  ;;  %391 = sbr.rel (%p3579_p7) target bundleno = 24 (0x18), region = 52 }
  0x11   : > { %s4635_s8 = scalar_select %p360_p6, %s4542_s24, 2 }
  0x12   : > { %s3952_s9 = sshll.u32 %s5155_s25, 3 }
  0x13   : > { %s359_s12 = scalar_lea.vmem %s5136_s0, %s3952_s9  ;;  %s4302_s13 = smul.u32 576, %s4635_s8 }
  0x14   : > { %s378_s0 = scalar_lea.vmem %s5131_s5, %s4635_s8  ;;  %s381_s16 = scalar_lea.vmem %s5132_s6, %s4635_s8  ;;  %v392_v0 = vld [vmem:[%s359_s12] sm:$0xff] (!%p3579_p7)  }
  0x15   : > { %s4652_s22 = scalar_lea.vmem %s5127_s1, %s4302_s13  ;;  %s4657_s30 = scalar_lea.vmem %s5128_s2, %s4302_s13 }
  0x16   : > { %s4670_s19 = scalar_lea.vmem %s5133_s7, %s3952_s9 }
  0x17   : > { %396 = vst [vmem:[%s4670_s19] sm:$0xff] %v392_v0  }
  0x18 PF: > { %v4344_v1 = vld [vmem:[%s4652_s22 + $0x40] sm:$0xff]   ;;  %v4347_v4 = vld [vmem:[%s4652_s22 + $0x48] sm:$0xff]   ;;  %v4350_v7 = vld [vmem:[%s4652_s22 + $0x50] sm:$0xff]   ;;  %v4560_v38 = vmov 1983009808   ;;  %v471_v40 = vlaneseq  ;;  %vm1420_vm0 = vcmask 1040384   ;;  %s5141_s12 = scalar_lea.vmem %s5129_s3, %s4635_s8  ;;  %s5142_s21 = scalar_lea.vmem %s5130_s4, %s4635_s8 }
  0x19   : > { %v4345_v2 = vld [vmem:[%s4652_s22] sm:$0xff]   ;;  %3954 = vmatprep.subr.bf16.mxu0 %v4344_v1  ;;  %v4348_v5 = vld [vmem:[%s4652_s22 + $0x8] sm:$0xff]   ;;  %v4351_v8 = vld [vmem:[%s4652_s22 + $0x10] sm:$0xff]   ;;  %v469_v39 = vunpack.c.l.s4 %v4560_v38  ;;  %vm1421_vm1 = vcmask 1042434   ;;  %vm1423_vm3 = vcmask 1044484   ;;  %vm1425_vm4 = vcmask 1046534  }
  0x1a   : > { %v4346_v3 = vld [vmem:[%s4652_s22 + $0x80] sm:$0xff]   ;;  %3955 = vmatpush3.bf16.msra.mxu0 %v4345_v2  ;;  %v4349_v6 = vld [vmem:[%s4652_s22 + $0x88] sm:$0xff]   ;;  %v4352_v9 = vld [vmem:[%s4652_s22 + $0x90] sm:$0xff]   ;;  %v472_v51 = vshrl.u32 %v471_v40, 7 }
  0x1b   : > { %4182 = vmatprep.subr.bf16.mxu1 %v4346_v3  ;;  %3956 = vmatprep.subr.bf16.mxu0 %v4347_v4  ;;  %v4353_v10 = vld [vmem:[%s4652_s22 + $0x58] sm:$0xff]   ;;  %v4356_v13 = vld [vmem:[%s4652_s22 + $0x60] sm:$0xff]   ;;  %v4359_v16 = vld [vmem:[%s4652_s22 + $0x68] sm:$0xff]   ;;  %v470_v50 = vunpack.c.0.s8 %v469_v39 }
  0x1c   : > { %4183 = vmatpush3.bf16.msra.mxu1 %v4346_v3  ;;  %v4354_v11 = vld [vmem:[%s4652_s22 + $0x18] sm:$0xff]   ;;  %v4358_v14 = vld [vmem:[%s4652_s22 + $0xa0] sm:$0xff]   ;;  %v4361_v17 = vld [vmem:[%s4652_s22 + $0xa8] sm:$0xff]  }
  0x1d   : > { %4184 = vmatprep.subr.bf16.mxu1 %v4349_v6  ;;  %v4355_v12 = vld [vmem:[%s4652_s22 + $0x98] sm:$0xff]   ;;  %v4357_v15 = vld [vmem:[%s4652_s22 + $0x20] sm:$0xff]   ;;  %v4360_v18 = vld [vmem:[%s4652_s22 + $0x28] sm:$0xff]   ;;  %v4725_v52 = vsub.s32 %v470_v50, %v472_v51 }
  0x1e   : > { %3957 = vmatpush3.bf16.msra.mxu0 %v4348_v5  ;;  %v4362_v19 = vld [vmem:[%s4652_s22 + $0x70] sm:$0xff]   ;;  %v4365_v22 = vld [vmem:[%s4652_s22 + $0x78] sm:$0xff]   ;;  %v4697_v23 = vld [vmem:[%s4670_s19] sm:$0x3] }
  0x1f   : > { %3958 = vmatprep.subr.bf16.mxu0 %v4350_v7  ;;  %v4363_v20 = vld [vmem:[%s4652_s22 + $0x30] sm:$0xff]   ;;  %v401_v24 = vld [vmem:[%s4670_s19 + $0x2] sm:$0x3]  ;;  %v402_v25 = vld [vmem:[%s4670_s19 + $0x4] sm:$0x3]  ;;  %v404_v26 = vunpack.c.l.bf16 %v4697_v23 }
  0x20   : > { %4185 = vmatpush3.bf16.msra.mxu1 %v4349_v6  ;;  %v4364_v21 = vld [vmem:[%s4652_s22 + $0xb0] sm:$0xff]   ;;  %v4702_v27 = vunpack.c.l.bf16 %v401_v24  ;;  %v4704_v28 = vunpack.c.l.bf16 %v402_v25  ;;  %v4367_v29 = vld [vmem:[%s4652_s22 + $0xb8] sm:$0xff]   ;;  %v4708_v30 = vld [vmem:[%s4670_s19 + $0x6] sm:$0x3] }
  0x21   : > { %4186 = vmatprep.subr.bf16.mxu1 %v4352_v9  ;;  %v4366_v31 = vld [vmem:[%s4652_s22 + $0x38] sm:$0xff]   ;;  %409 = vst [vmem:[#allocation2 + $0x9] sm:$0xf] %v404_v26  ;;  %v407_v32 = vunpack.c.l.bf16 %v4708_v30  ;;  %v4376_v33 = vld [vmem:[%s4652_s22 + $0x100] sm:$0xff]   ;;  %vm4875_vm2 = vmor %vm1420_vm0, %vm1421_vm1 }
  0x22   : > { %3959 = vmatpush3.bf16.msra.mxu0 %v4351_v8  ;;  %410 = vst [vmem:[#allocation2 + $0x11] sm:$0xf] %v4702_v27  ;;  %411 = vst [vmem:[#allocation2 + $0x19] sm:$0xf] %v4704_v28  ;;  %v4722_v34 = vld [vmem:[%s4652_s22 + $0x140] sm:$0xff]  }
  0x23   : > { %3960 = vmatprep.subr.bf16.mxu0 %v4353_v10  ;;  %413 = vst [vmem:[#allocation2 + $0x1] sm:$0xf] %v4702_v27  ;;  %415 = vst [vmem:[#allocation2 + $0x29] sm:$0xf] %v4704_v28  ;;  %v4379_v51 = vld [vmem:[%s4652_s22 + $0xc0] sm:$0xff]  }
  0x24   : > { %4187 = vmatpush3.bf16.msra.mxu1 %v4352_v9  ;;  %412 = vst [vmem:[#allocation2 + $0x21] sm:$0xf] %v407_v32  ;;  %vm1424_vm5 = vmor %vm4875_vm2, %vm1423_vm3 }
  0x25   : > { %4188 = vmatprep.subr.bf16.mxu1 %v4355_v12  ;;  %vm4897_vm6 = vmor %vm1424_vm5, %vm1425_vm4 }
  0x26   : > { %3961 = vmatpush3.bf16.msra.mxu0 %v4354_v11 }
  0x27   : > { %3962 = vmatprep.subr.bf16.mxu0 %v4356_v13 }
  0x28   : > { %4189 = vmatpush3.bf16.msra.mxu1 %v4355_v12  ;;  %v417_v36 = vld [vmem:[#allocation2 + $0xa] sm:$0x1]  ;;  %v429_v43 = vld [vmem:[#allocation2 + $0xb] sm:$0x1] }
  0x29   : > { %4190 = vmatprep.subr.bf16.mxu1 %v4358_v14  ;;  %v418_v37 = vld [vmem:[#allocation2 + $0x12] sm:$0x1]  ;;  %v419_v41 = vld [vmem:[#allocation2 + $0x1a] sm:$0x1]  ;;  %423 = vst [vmem:[#allocation2 + $0x8] sm:$0x1] %v417_v36 }
  0x2a   : > { %3963 = vmatpush3.bf16.msra.mxu0 %v4357_v15  ;;  %v416_v35 = vld [vmem:[#allocation2 + $0x2] sm:$0x1]  ;;  %424 = vst [vmem:[#allocation2 + $0x10] sm:$0x1] %v418_v37  ;;  %v428_v42 = vld [vmem:[#allocation2 + $0x3] sm:$0x1] }
  0x2b   : > { %3964 = vmatprep.subr.bf16.mxu0 %v4359_v16  ;;  %422 = vst [vmem:[#allocation2] sm:$0x1] %v416_v35  ;;  %425 = vst [vmem:[#allocation2 + $0x18] sm:$0x1] %v419_v41  ;;  %v430_v44 = vld [vmem:[#allocation2 + $0x13] sm:$0x1] }
  0x2c   : > { %4191 = vmatpush3.bf16.msra.mxu1 %v4358_v14  ;;  %v431_v45 = vld [vmem:[#allocation2 + $0x1b] sm:$0x1]  ;;  %434 = vst [vmem:[#allocation2 + $0x5] sm:$0x1] %v428_v42  ;;  %435 = vst [vmem:[#allocation2 + $0xd] sm:$0x1] %v429_v43 }
  0x2d   : > { %4192 = vmatprep.subr.bf16.mxu1 %v4361_v17  ;;  %v420_v46 = vld [vmem:[#allocation2 + $0x22] sm:$0x1]  ;;  %436 = vst [vmem:[#allocation2 + $0x15] sm:$0x1] %v430_v44  ;;  %437 = vst [vmem:[#allocation2 + $0x1d] sm:$0x1] %v431_v45 }
  0x2e   : > { %3965 = vmatpush3.bf16.msra.mxu0 %v4360_v18  ;;  %426 = vst [vmem:[#allocation2 + $0x20] sm:$0x1] %v420_v46  ;;  %v432_v47 = vld [vmem:[#allocation2 + $0x23] sm:$0x1]  ;;  %v421_v48 = vld [vmem:[#allocation2 + $0x2a] sm:$0x1] }
  0x2f   : > { %3966 = vmatprep.subr.bf16.mxu0 %v4362_v19  ;;  %v433_v49 = vld [vmem:[#allocation2 + $0x2b] sm:$0x1]  ;;  %438 = vst [vmem:[#allocation2 + $0x25] sm:$0x1] %v432_v47  ;;  %427 = vst [vmem:[#allocation2 + $0x28] sm:$0x1] %v421_v48 }
  0x30   : > { %4193 = vmatpush3.bf16.msra.mxu1 %v4361_v17  ;;  %439 = vst [vmem:[#allocation2 + $0x2d] sm:$0x1] %v433_v49 }
  0x31   : > { %4194 = vmatprep.subr.bf16.mxu1 %v4364_v21  ;;  %v4371_v55 = vld [vmem:[#allocation2 + $0x8] ss:$8 sps:$4 sm:$0xff]  }
  0x32   : > { %3967 = vmatpush3.bf16.msra.mxu0 %v4363_v20  ;;  %v4368_v54 = vld [vmem:[#allocation2] ss:$8 sps:$4 sm:$0xff]   ;;  %v508_v61 = vrot.slane %v4371_v55, %v4725_v52  ;;  %v4374_v62 = vld [vmem:[#allocation2 + $0x10] ss:$8 sps:$4 sm:$0xff]  }
  0x33   : > { %3968 = vmatprep.subr.bf16.mxu0 %v4365_v22  ;;  %v4370_v56 = vld [vmem:[#allocation2 + $0x4] ss:$8 sps:$4 sm:$0x33]   ;;  %v474_v60 = vrot.slane %v4368_v54, %v4725_v52  ;;  %v542_v6 = vrot.slane %v4374_v62, %v4725_v52 }
  0x34   : > { %4195 = vmatpush3.bf16.msra.mxu1 %v4364_v21  ;;  %v450_v53 = vld [vmem:[#allocation2 + $0x18] sm:$0x3f]  ;;  %v4373_v57 = vld [vmem:[#allocation2 + $0xc] ss:$8 sps:$4 sm:$0x33]   ;;  %v481_v0 = vrot.slane %v4370_v56, %v4725_v52 }
  0x35   : > { %4196 = vmatprep.subr.bf16.mxu1 %v4367_v29  ;;  %v522_v58 = vrot.slane %v450_v53, %v4725_v52  ;;  %v501_v59 = vcombine.high %v450_v53, %v450_v53  ;;  %v449_v63 = vld [vmem:[#allocation2 + $0x10] sm:$0x3f]  ;;  %v515_v1 = vrot.slane %v4373_v57, %v4725_v52  ;;  %v611_v7 = vrot.slane %v474_v60, %v4725_v52  ;;  %v4389_v25 = vld [vmem:[#allocation2 + $0x18] ss:$8 sps:$4 sm:$0xff]   ;;  %v4385_v54 = vld [vmem:[%s4652_s22 + $0x108] sm:$0xff]  }
  0x36   : > { %3969 = vmatpush3.bf16.msra.mxu0 %v4366_v31  ;;  %v451_v2 = vld [vmem:[#allocation2 + $0x20] sm:$0x3f]  ;;  %v467_v3 = vcombine.high %v449_v63, %v449_v63  ;;  %v488_v4 = vrot.slane %v449_v63, %v4725_v52  ;;  %v3580_v11 = vcombine.low %v481_v0, %v508_v61  ;;  %v4388_v15 = vld [vmem:[#allocation2 + $0x14] ss:$8 sps:$4 sm:$0x33]   ;;  %v660_v17 = vrot.slane %v542_v6, %v4725_v52  ;;  %v4386_v63 = vld [vmem:[%s4652_s22 + $0xc8] sm:$0xff]  }
  0x37   : > { %3992 = vmatprep.subr.bf16.mxu0 %v4376_v33  ;;  %v531_v5 = vcombine.high %v508_v61, %v522_v58  ;;  %v529_v8 = vrot.slane %v501_v59, %v4725_v52  ;;  %v452_v9 = vld [vmem:[#allocation2 + $0x28] sm:$0x3f]  ;;  %v4382_v10 = vld [vmem:[#allocation2 + $0x1c] ss:$8 sps:$4 sm:$0x33]   ;;  %v556_v13 = vrot.slane %v451_v2, %v4725_v52  ;;  %v535_v19 = vcombine.high %v451_v2, %v451_v2 }
  0x38   : > { %4197 = vmatpush3.bf16.msra.mxu1 %v4367_v29  ;;  %v495_v12 = vrot.slane %v467_v3, %v4725_v52  ;;  %v618_v14 = vrot.slane %v488_v4, %v4725_v52  ;;  %v625_v20 = vrot.slane %v3580_v11, %v4725_v52  ;;  %v569_v24 = vcombine.high %v452_v9, %v452_v9  ;;  %v4387_v6 = vld [vmem:[%s4652_s22 + $0x148] sm:$0xff]   ;;  %v4392_v11 = vld [vmem:[%s4652_s22 + $0x150] sm:$0xff]  }
  0x39   : > { %4202 = vmatprep.subr.bf16.mxu1 %v4722_v34  ;;  %v3582_v16 = vcombine.low %v531_v5, %v515_v1  ;;  %v532_v18 = vcombine.low %v515_v1, %v529_v8  ;;  %v667_v22 = vrot.slane %v556_v13, %v4725_v52  ;;  %v563_v33 = vrot.slane %v535_v19, %v4725_v52  ;;  %v4390_v1 = vld [vmem:[%s4652_s22 + $0x110] sm:$0xff]   ;;  %v4396_v13 = vld [vmem:[%s4652_s22 + $0x120] sm:$0xff]   ;;  %v4401_v19 = vld [vmem:[%s4652_s22 + $0x168] sm:$0xff]  }
  0x3a   : > { %v3581_v21 = vcombine.low %v495_v12, %v522_v58  ;;  %v583_v35 = vrot.slane %v4382_v10, %v4725_v52  ;;  %v634_v36 = vcombine.high %v611_v7, %v625_v20  ;;  %v633_v37 = vcombine.low %v611_v7, %v625_v20  ;;  %v4393_v10 = vld [vmem:[%s4652_s22 + $0x118] sm:$0xff]   ;;  %v4403_v20 = vld [vmem:[%s4652_s22 + $0xf0] sm:$0xff]  }
  0x3b   : > { %v646_v29 = vrot.slane %v3582_v16, %v4725_v52  ;;  %v3583_v31 = vcombine.high %v522_v58, %v532_v18  ;;  %v590_v39 = vrot.slane %v452_v9, %v4725_v52  ;;  %v597_v43 = vrot.slane %v569_v24, %v4725_v52  ;;  %v4391_v9 = vld [vmem:[%s4652_s22 + $0xd0] sm:$0xff]   ;;  %v4394_v12 = vld [vmem:[%s4652_s22 + $0xd8] sm:$0xff]   ;;  %v4398_v16 = vld [vmem:[%s4652_s22 + $0x160] sm:$0xff]  }
  0x3c   : > { %v632_v38 = vrot.slane %v3581_v21, %v4725_v52  ;;  %v549_v46 = vrot.slane %v4388_v15, %v4725_v52  ;;  %v576_v47 = vrot.slane %v4389_v25, %v4725_v52  ;;  %v4399_v15 = vld [vmem:[%s4652_s22 + $0x128] sm:$0xff]   ;;  %v4402_v18 = vld [vmem:[%s4652_s22 + $0x130] sm:$0xff]   ;;  %v4406_v24 = vld [vmem:[%s4652_s22 + $0xf8] sm:$0xff]  }
  0x3d   : > { %v669_v40 = vcombine.high %v646_v29, %v660_v17  ;;  %v668_v41 = vcombine.low %v646_v29, %v660_v17  ;;  %v653_v42 = vrot.slane %v3583_v31, %v4725_v52  ;;  %v3585_v45 = vcombine.low %v563_v33, %v590_v39  ;;  %v4400_v17 = vld [vmem:[%s4652_s22 + $0xe8] sm:$0xff]   ;;  %v4404_v21 = vld [vmem:[%s4652_s22 + $0x170] sm:$0xff]   ;;  %v4408_v25 = vld [vmem:[%s4652_s22 + $0x1c0] sm:$0xff]  }
  0x3e   : > { %v635_v44 = vcombine.low %v618_v14, %v632_v38  ;;  %v600_v53 = vcombine.low %v583_v35, %v597_v43  ;;  %v599_v55 = vcombine.high %v576_v47, %v590_v39  ;;  %v3584_v56 = vcombine.low %v549_v46, %v576_v47  ;;  %v4397_v14 = vld [vmem:[%s4652_s22 + $0xe0] sm:$0xff]   ;;  %v4407_v29 = vld [vmem:[%s4652_s22 + $0x178] sm:$0xff]   ;;  %v4411_v33 = vld [vmem:[%s4652_s22 + $0x1c8] sm:$0xff]  }
  0x3f   : > { %v4751_v48 = vpack.c.bf16 %v669_v40, %v634_v36  ;;  %v4753_v49 = vpack.c.bf16 %v668_v41, %v633_v37  ;;  %v670_v50 = vcombine.low %v653_v42, %v667_v22  ;;  %v688_v59 = vrot.slane %v3585_v45, %v4725_v52  ;;  %v4405_v22 = vld [vmem:[%s4652_s22 + $0x138] sm:$0xff]   ;;  %v4409_v31 = vld [vmem:[%s4652_s22 + $0x180] sm:$0xff]   ;;  %v4412_v36 = vld [vmem:[%s4652_s22 + $0x188] sm:$0xff]  }
  0x40   : > { %v3587_v58 = vcombine.high %v590_v39, %v600_v53  ;;  %v3586_v60 = vcombine.low %v599_v55, %v583_v35  ;;  %v681_v61 = vrot.slane %v3584_v56, %v4725_v52  ;;  %v4410_v35 = vld [vmem:[%s4652_s22 + $0x200] sm:$0xff]   ;;  %v4414_v37 = vld [vmem:[%s4652_s22 + $0x1d0] sm:$0xff]   ;;  %v4413_v38 = vld [vmem:[%s4652_s22 + $0x208] sm:$0xff]  }
  0x41   : > { %945 = vmatprep.mubr.bf16.mxu0 %v4751_v48  ;;  %v4758_v57 = vpack.c.bf16 %v670_v50, %v635_v44  ;;  %v4415_v39 = vld [vmem:[%s4652_s22 + $0x190] sm:$0xff]   ;;  %v4417_v40 = vld [vmem:[%s4652_s22 + $0x1d8] sm:$0xff]   ;;  %v4420_v43 = vld [vmem:[%s4652_s22 + $0x1e0] sm:$0xff]  }
  0x42   : > { %946 = vmatmul.mubr.bf16.vlgmr.msra.gmra.mrb[0].mxu0 %v4753_v49  ;;  %v702_v62 = vrot.slane %v3587_v58, %v4725_v52  ;;  %v695_v0 = vrot.slane %v3586_v60, %v4725_v52  ;;  %v4416_v41 = vld [vmem:[%s4652_s22 + $0x210] sm:$0xff]   ;;  %v4418_v42 = vld [vmem:[%s4652_s22 + $0x198] sm:$0xff]   ;;  %v4421_v45 = vld [vmem:[%s4652_s22 + $0x1a0] sm:$0xff]  }
  0x43   : > { %4198 = vmatprep.mubr.bf16.mxu1 %v4758_v57  ;;  %3993 = vmatpush3.bf16.msra.mxu0 %v4379_v51  ;;  %v4419_v44 = vld [vmem:[%s4652_s22 + $0x218] sm:$0xff]   ;;  %v4423_v46 = vld [vmem:[%s4652_s22 + $0x1e8] sm:$0xff]   ;;  %v4422_v47 = vld [vmem:[%s4652_s22 + $0x220] sm:$0xff]  }
  0x44   : > { %3994 = vmatprep.subr.bf16.mxu0 %v4385_v54  ;;  %v705_v2 = vcombine.low %v688_v59, %v702_v62  ;;  %v704_v3 = vcombine.high %v681_v61, %v695_v0  ;;  %v703_v4 = vcombine.low %v681_v61, %v695_v0  ;;  %v4424_v50 = vld [vmem:[%s4652_s22 + $0x1a8] sm:$0xff]   ;;  %v4426_v51 = vld [vmem:[%s4652_s22 + $0x1f0] sm:$0xff]   ;;  %v4429_v54 = vld [vmem:[%s4652_s22 + $0x1f8] sm:$0xff]  }
  0x45   : > { %v4427_v53 = vld [vmem:[%s4652_s22 + $0x1b0] sm:$0xff]   ;;  %v4430_v56 = vld [vmem:[%s4652_s22 + $0x1b8] sm:$0xff]   ;;  %v4432_v58 = vld [vmem:[%s4657_s30 + $0x40] sm:$0xff]  }
  0x46   : > { %v4768_v5 = vpack.c.bf16 %v705_v2, %v705_v2  ;;  %v4771_v7 = vpack.c.bf16 %v704_v3, %v704_v3  ;;  %v4773_v8 = vpack.c.bf16 %v703_v4, %v703_v4  ;;  %v4428_v55 = vld [vmem:[%s4652_s22 + $0x230] sm:$0xff]   ;;  %v4433_v59 = vld [vmem:[%s4657_s30] sm:$0xff]   ;;  %v4434_v60 = vld [vmem:[%s4657_s30 + $0x48] sm:$0xff]  }
  0x47   : > { %3995 = vmatpush3.bf16.msra.mxu0 %v4386_v63  ;;  %v4435_v61 = vld [vmem:[%s4657_s30 + $0x8] sm:$0xff]   ;;  %v4436_v62 = vld [vmem:[%s4657_s30 + $0x80] sm:$0xff]   ;;  %v4437_v63 = vld [vmem:[%s4657_s30 + $0x50] sm:$0xff]  }
  0x48   : > { %3996 = vmatprep.subr.bf16.mxu0 %v4390_v1  ;;  %4199 = vmatmul.mubr.bf16.vlgmr.msra.gmra.mrb[0].mxu1 %v4768_v5  ;;  %v4438_v0 = vld [vmem:[%s4657_s30 + $0x10] sm:$0xff]   ;;  %v4440_v1 = vld [vmem:[%s4657_s30 + $0x58] sm:$0xff]   ;;  %v4443_v4 = vld [vmem:[%s4657_s30 + $0x60] sm:$0xff]  }
  0x49   : > { %4203 = vmatpush3.bf16.msra.mxu1 %v4722_v34  ;;  %953 = vmatprep.mubr.bf16.mxu0 %v4771_v7  ;;  %v4395_v34 = vld [vmem:[%s4652_s22 + $0x158] sm:$0xff]   ;;  %v4442_v2 = vld [vmem:[%s4657_s30 + $0x90] sm:$0xff]  }
  0x4a   : > { %4204 = vmatprep.subr.bf16.mxu1 %v4387_v6  ;;  %954 = vmatmul.mubr.bf16.gmra.mrb[4].mxu0 %v4773_v8  ;;  %v4441_v3 = vld [vmem:[%s4657_s30 + $0x18] sm:$0xff]  }
  0x4b   : > { %3997 = vmatpush3.bf16.msra.mxu0 %v4391_v9  ;;  %1302 = vmatprep.mubr.bf16.mxu0 %v4751_v48  ;;  %v4447_v9 = vld [vmem:[%s4657_s30 + $0x28] sm:$0xff]  }
  0x4c   : > { %3998 = vmatprep.subr.bf16.mxu0 %v4393_v10  ;;  %4218 = vmatprep.mubr.bf16.mxu1 %v4758_v57  ;;  %v4449_v10 = vld [vmem:[%s4657_s30 + $0x70] sm:$0xff]  }
  0x4d   : > { %4205 = vmatpush3.bf16.msra.mxu1 %v4387_v6  ;;  %v4444_v6 = vld [vmem:[%s4657_s30 + $0x20] sm:$0xff]  }
  0x4e   : > { %4206 = vmatprep.subr.bf16.mxu1 %v4392_v11 }
  0x4f   : > { %3999 = vmatpush3.bf16.msra.mxu0 %v4394_v12  ;;  %v4450_v12 = vld [vmem:[%s4657_s30 + $0x30] sm:$0xff]  }
  0x50   : > { %4000 = vmatprep.subr.bf16.mxu0 %v4396_v13  ;;  %v4452_v13 = vld [vmem:[%s4657_s30 + $0x78] sm:$0xff]  }
  0x51   : > { %4207 = vmatpush3.bf16.msra.mxu1 %v4392_v11  ;;  %v4451_v11 = vld [vmem:[%s4657_s30 + $0xa8] sm:$0xff]  }
  0x52   : > { %4208 = vmatprep.subr.bf16.mxu1 %v4395_v34 }
  0x53   : > { %4001 = vmatpush3.bf16.msra.mxu0 %v4397_v14  ;;  %v4453_v14 = vld [vmem:[%s4657_s30 + $0x38] sm:$0xff]  }
  0x54   : > { %4002 = vmatprep.subr.bf16.mxu0 %v4399_v15  ;;  %v4463_v15 = vld [vmem:[%s4657_s30 + $0x100] sm:$0xff]  }
  0x55   : > { %4209 = vmatpush3.bf16.msra.mxu1 %v4395_v34  ;;  %v4454_v34 = vld [vmem:[%s4657_s30 + $0xb0] sm:$0xff]  }
  0x56   : > { %4210 = vmatprep.subr.bf16.mxu1 %v4398_v16 }
  0x57   : > { %4003 = vmatpush3.bf16.msra.mxu0 %v4400_v17  ;;  %v4858_v17 = vld [vmem:[%s4657_s30 + $0x140] sm:$0xff]  }
  0x58   : > { %4004 = vmatprep.subr.bf16.mxu0 %v4402_v18 }
  0x59   : > { %4211 = vmatpush3.bf16.msra.mxu1 %v4398_v16  ;;  %v4464_v16 = vld [vmem:[%s4657_s30 + $0xb8] sm:$0xff]  }
  0x5a   : > { %4212 = vmatprep.subr.bf16.mxu1 %v4401_v19 }
  0x5b   : > { %4005 = vmatpush3.bf16.msra.mxu0 %v4403_v20 }
  0x5c   : > { %4006 = vmatprep.subr.bf16.mxu0 %v4405_v22 }
  0x5d   : > { %4213 = vmatpush3.bf16.msra.mxu1 %v4401_v19 }
  0x5e   : > { %4214 = vmatprep.subr.bf16.mxu1 %v4404_v21 }
  0x5f   : > { %4007 = vmatpush3.bf16.msra.mxu0 %v4406_v24 }
  0x60   : > { %4030 = vmatprep.subr.bf16.mxu0 %v4408_v25 }
  0x61   : > { %4215 = vmatpush3.bf16.msra.mxu1 %v4404_v21 }
  0x62   : > { %4216 = vmatprep.subr.bf16.mxu1 %v4407_v29  ;;  %1303 = vmatmul.mubr.bf16.vlgmr.msra.gmra.mrb[8].mxu0 %v4753_v49 }
  0x63   : > { %4031 = vmatpush3.bf16.msra.mxu0 %v4409_v31  ;;  %1310 = vmatprep.mubr.bf16.mxu0 %v4771_v7 }
  0x64   : > { %4032 = vmatprep.subr.bf16.mxu0 %v4411_v33 }
  0x65   : > { %4217 = vmatpush3.bf16.msra.mxu1 %v4407_v29 }
  0x66   : > { %4222 = vmatprep.subr.bf16.mxu1 %v4410_v35 }
  0x67   : > { %4033 = vmatpush3.bf16.msra.mxu0 %v4412_v36 }
  0x68   : > { %4219 = vmatmul.mubr.bf16.vlgmr.msra.gmra.mrb[4].mxu1 %v4768_v5  ;;  %4034 = vmatprep.subr.bf16.mxu0 %v4414_v37 }
  0x69   : > { %4223 = vmatpush3.bf16.msra.mxu1 %v4410_v35  ;;  %4238 = vmatprep.mubr.bf16.mxu1 %v4758_v57  ;;  %v4431_v57 = vld [vmem:[%s4652_s22 + $0x238] sm:$0xff]  }
  0x6a   : > { %4224 = vmatprep.subr.bf16.mxu1 %v4413_v38  ;;  %1311 = vmatmul.mubr.bf16.gmra.mrb[12].mxu0 %v4773_v8 }
  0x6b   : > { %4035 = vmatpush3.bf16.msra.mxu0 %v4415_v39  ;;  %1696 = vmatprep.mubr.bf16.mxu0 %v4751_v48  ;;  %v4425_v48 = vld [vmem:[%s4652_s22 + $0x228] sm:$0xff]  }
  0x6c   : > { %4036 = vmatprep.subr.bf16.mxu0 %v4417_v40 }
  0x6d   : > { %4225 = vmatpush3.bf16.msra.mxu1 %v4413_v38 }
  0x6e   : > { %4226 = vmatprep.subr.bf16.mxu1 %v4416_v41 }
  0x6f   : > { %4037 = vmatpush3.bf16.msra.mxu0 %v4418_v42 }
  0x70   : > { %4038 = vmatprep.subr.bf16.mxu0 %v4420_v43 }
  0x71   : > { %4227 = vmatpush3.bf16.msra.mxu1 %v4416_v41 }
  0x72   : > { %4228 = vmatprep.subr.bf16.mxu1 %v4419_v44 }
  0x73   : > { %4039 = vmatpush3.bf16.msra.mxu0 %v4421_v45 }
  0x74   : > { %4040 = vmatprep.subr.bf16.mxu0 %v4423_v46 }
  0x75   : > { %4229 = vmatpush3.bf16.msra.mxu1 %v4419_v44 }
  0x76   : > { %4230 = vmatprep.subr.bf16.mxu1 %v4422_v47 }
  0x77   : > { %4041 = vmatpush3.bf16.msra.mxu0 %v4424_v50 }
  0x78   : > { %4042 = vmatprep.subr.bf16.mxu0 %v4426_v51 }
  0x79   : > { %4231 = vmatpush3.bf16.msra.mxu1 %v4422_v47 }
  0x7a   : > { %4232 = vmatprep.subr.bf16.mxu1 %v4425_v48 }
  0x7b   : > { %4043 = vmatpush3.bf16.msra.mxu0 %v4427_v53 }
  0x7c   : > { %4044 = vmatprep.subr.bf16.mxu0 %v4429_v54 }
  0x7d   : > { %4233 = vmatpush3.bf16.msra.mxu1 %v4425_v48 }
  0x7e   : > { %4234 = vmatprep.subr.bf16.mxu1 %v4428_v55 }
  0x7f   : > { %4045 = vmatpush3.bf16.msra.mxu0 %v4430_v56 }
  0x80   : > { %4068 = vmatprep.subr.bf16.mxu0 %v4432_v58 }
  0x81   : > { %4235 = vmatpush3.bf16.msra.mxu1 %v4428_v55 }
  0x82   : > { %4236 = vmatprep.subr.bf16.mxu1 %v4431_v57  ;;  %1697 = vmatmul.mubr.bf16.vlgmr.msra.gmra.mrb[16].mxu0 %v4753_v49  ;;  %v4439_v49 = vld [vmem:[%s4657_s30 + $0x88] sm:$0xff]  }
  0x83   : > { %1704 = vmatprep.mubr.bf16.mxu0 %v4771_v7  ;;  %4069 = vmatpush3.bf16.msra.mxu0 %v4433_v59  ;;  %v4446_v7 = vld [vmem:[%s4657_s30 + $0x68] sm:$0xff]  }
  0x84   : > { %4070 = vmatprep.subr.bf16.mxu0 %v4434_v60 }
  0x85   : > { %4237 = vmatpush3.bf16.msra.mxu1 %v4431_v57 }
  0x86   : > { %4242 = vmatprep.subr.bf16.mxu1 %v4436_v62 }
  0x87   : > { %4071 = vmatpush3.bf16.msra.mxu0 %v4435_v61 }
  0x88   : > { %4239 = vmatmul.mubr.bf16.vlgmr.msra.gmra.mrb[8].mxu1 %v4768_v5  ;;  %4072 = vmatprep.subr.bf16.mxu0 %v4437_v63  ;;  %v4445_v5 = vld [vmem:[%s4657_s30 + $0x98] sm:$0xff]  }
  0x89   : > { %4243 = vmatpush3.bf16.msra.mxu1 %v4436_v62 }
  0x8a   : > { %1705 = vmatmul.mubr.bf16.gmra.mrb[20].mxu0 %v4773_v8  ;;  %4244 = vmatprep.subr.bf16.mxu1 %v4439_v49  ;;  %v4448_v8 = vld [vmem:[%s4657_s30 + $0xa0] sm:$0xff]  }
  0x8b   : > { %4073 = vmatpush3.bf16.msra.mxu0 %v4438_v0 }
  0x8c   : > { %4074 = vmatprep.subr.bf16.mxu0 %v4440_v1 }
  0x8d   : > { %4245 = vmatpush3.bf16.msra.mxu1 %v4439_v49 }
  0x8e   : > { %4246 = vmatprep.subr.bf16.mxu1 %v4442_v2 }
  0x8f   : > { %4075 = vmatpush3.bf16.msra.mxu0 %v4441_v3 }
  0x90   : > { %4076 = vmatprep.subr.bf16.mxu0 %v4443_v4 }
  0x91   : > { %4247 = vmatpush3.bf16.msra.mxu1 %v4442_v2 }
  0x92   : > { %4248 = vmatprep.subr.bf16.mxu1 %v4445_v5 }
  0x93   : > { %4077 = vmatpush3.bf16.msra.mxu0 %v4444_v6 }
  0x94   : > { %4078 = vmatprep.subr.bf16.mxu0 %v4446_v7 }
  0x95   : > { %4249 = vmatpush3.bf16.msra.mxu1 %v4445_v5 }
  0x96   : > { %4250 = vmatprep.subr.bf16.mxu1 %v4448_v8 }
  0x97   : > { %4079 = vmatpush3.bf16.msra.mxu0 %v4447_v9 }
  0x98   : > { %4080 = vmatprep.subr.bf16.mxu0 %v4449_v10 }
  0x99   : > { %4251 = vmatpush3.bf16.msra.mxu1 %v4448_v8 }
  0x9a   : > { %4252 = vmatprep.subr.bf16.mxu1 %v4451_v11 }
  0x9b   : > { %4081 = vmatpush3.bf16.msra.mxu0 %v4450_v12 }
  0x9c   : > { %4082 = vmatprep.subr.bf16.mxu0 %v4452_v13 }
  0x9d   : > { %4253 = vmatpush3.bf16.msra.mxu1 %v4451_v11 }
  0x9e   : > { %4254 = vmatprep.subr.bf16.mxu1 %v4454_v34 }
  0x9f   : > { %4083 = vmatpush3.bf16.msra.mxu0 %v4453_v14 }
  0xa0   : > { %4106 = vmatprep.subr.bf16.mxu0 %v4463_v15 }
  0xa1   : > { %4255 = vmatpush3.bf16.msra.mxu1 %v4454_v34 }
  0xa2   : > { %4256 = vmatprep.subr.bf16.mxu1 %v4464_v16 }
  0xa5   : > { %4257 = vmatpush3.bf16.msra.mxu1 %v4464_v16 }
  0xa6   : > { %4262 = vmatprep.subr.bf16.mxu1 %v4858_v17 }
 0x115   : > { %v3970_v18 = vpop.f32.mrb[0].mxu0 }
 0x116   : > { %v3971_v19 = vpop.f32.mrb[1].mxu0 }
 0x117   : > { %v3972_v20 = vadd.f32 %v3971_v19, %v3970_v18  ;;  %v3973_v21 = vpop.f32.mrb[2].mxu0 }
 0x118   : > { %v3974_v22 = vpop.f32.mrb[3].mxu0 }
 0x119   : > { %v3975_v24 = vadd.f32 %v3974_v22, %v3973_v21 }
 0x11b   : > { %v4200_v25 = vpop.f32.mrb[0].mxu1 }
 0x11c   : > { %v995_v29 = vpop.f32.mrb[1].mxu1 }
 0x11d   : > { %v996_v31 = vadd.f32 %v3972_v20, %v995_v29  ;;  %v4201_v33 = vpop.f32.mrb[2].mxu1  ;;  %v3976_v35 = vpop.f32.mrb[4].mxu0 }
 0x11e   : > { %v998_v36 = vpop.f32.mrb[3].mxu1  ;;  %v3977_v37 = vpop.f32.mrb[5].mxu0  ;;  %v3949_v33 = vld [vmem:[%s381_s16] ss:$0 sm:$0xff] }
 0x11f   : > { %v4861_v38 = vadd.f32 %v3975_v24, %v998_v36  ;;  %v3978_v39 = vadd.f32 %v3977_v37, %v3976_v35  ;;  %v3979_v40 = vpop.f32.mrb[6].mxu0  ;;  %v1012_v47 = vcombine.high %v996_v31, %v996_v31  ;;  %v1019_v54 = vrot.slane %v996_v31, %v4725_v52 }
 0x120   : > { %v3980_v41 = vpop.f32.mrb[7].mxu0 }
 0x121   : > { %v1004_v42 = vadd.f32 %v4200_v25, %v3978_v39  ;;  %v1029_v50 = vcombine.high %v4861_v38, %v4861_v38  ;;  %v4867_v55 = vrot.slane %v1012_v47, %v4725_v52  ;;  %v1027_v6 = vcombine.high %v1019_v54, %v1019_v54 }
 0x122   : > { %v1036_v8 = vrot.slane %v4861_v38, %v4725_v52 }
 0x123   : > { %v4870_v56 = vrot.slane %v1029_v50, %v4725_v52  ;;  %v1045_v58 = vcombine.high %v1004_v42, %v1004_v42  ;;  %v4873_v62 = vrot.slane %v1004_v42, %v4725_v52  ;;  %v1028_v7 = vcombine.high %v4867_v55, %v4867_v55 }
 0x125   : > { %v1044_v9 = vcombine.high %v4870_v56, %v4870_v56  ;;  %v1059_v11 = vrot.slane %v1045_v58, %v4725_v52  ;;  %v1060_v14 = vcombine.high %v4873_v62, %v4873_v62 }
 0x135   : > { %v4008_v43 = vpop.f32.mrb[8].mxu0 }
 0x136   : > { %v4009_v44 = vpop.f32.mrb[9].mxu0 }
 0x137   : > { %v4010_v45 = vadd.f32 %v4009_v44, %v4008_v43  ;;  %v4011_v46 = vpop.f32.mrb[10].mxu0 }
 0x138   : > { %v4012_v51 = vpop.f32.mrb[11].mxu0 }
 0x139   : > { %v4013_v48 = vadd.f32 %v4012_v51, %v4011_v46 }
 0x13b   : > { %v4220_v53 = vpop.f32.mrb[4].mxu1 }
 0x13c   : > { %v1352_v57 = vpop.f32.mrb[5].mxu1 }
 0x13d   : > { %v1353_v59 = vadd.f32 %v4010_v45, %v1352_v57  ;;  %v4221_v60 = vpop.f32.mrb[6].mxu1  ;;  %v4014_v61 = vpop.f32.mrb[12].mxu0 }
 0x13e   : > { %v1355_v63 = vpop.f32.mrb[7].mxu1  ;;  %v4015_v49 = vpop.f32.mrb[13].mxu0 }
 0x13f   : > { %v1369_v1 = vcombine.high %v1353_v59, %v1353_v59  ;;  %v1376_v2 = vrot.slane %v1353_v59, %v4725_v52  ;;  %v1356_v3 = vadd.f32 %v4013_v48, %v1355_v63  ;;  %v4016_v4 = vadd.f32 %v4015_v49, %v4014_v61  ;;  %v4017_v5 = vpop.f32.mrb[14].mxu0 }
 0x140   : > { %v4018_v10 = vpop.f32.mrb[15].mxu0 }
 0x141   : > { %v1383_v12 = vrot.slane %v1369_v1, %v4725_v52  ;;  %v1384_v13 = vcombine.high %v1376_v2, %v1376_v2  ;;  %v1386_v34 = vcombine.high %v1356_v3, %v1356_v3  ;;  %v3684_v15 = vrot.slane %v1376_v2, 9 }
 0x142   : > { %v1393_v16 = vrot.slane %v1356_v3, %v4725_v52  ;;  %v1361_v18 = vadd.f32 %v4220_v53, %v4016_v4 }
 0x143   : > { %v1385_v19 = vcombine.high %v1383_v12, %v1383_v12  ;;  %v1429_v20 = vrot.slane %v1384_v13, 7  ;;  %v1432_v21 = vrot.slane %v1383_v12, 7  ;;  %v1400_v22 = vrot.slane %v1386_v34, %v4725_v52  ;;  %v3761_v34 = vld [vmem:[%s5142_s21] ss:$0 sm:$0xff] }
 0x144   : > { %v1401_v24 = vcombine.high %v1393_v16, %v1393_v16  ;;  %v1436_v25 = vrot.slane %v1393_v16, 7  ;;  %v1403_v29 = vcombine.high %v1361_v18, %v1361_v18  ;;  %v1410_v31 = vrot.slane %v1361_v18, %v4725_v52 }
 0x145   : > { %v1431_v35 = vrot.slane %v1429_v20, 2  ;;  %v3685_v36 = vrot.slane %v1385_v19, 9  ;;  %v1402_v37 = vcombine.high %v1400_v22, %v1400_v22  ;;  %v3686_v38 = vrot.slane %v1400_v22, 9 }
 0x146   : > { %v1438_v39 = vrot.slane %v1436_v25, 2  ;;  %v1439_v40 = vrot.slane %v1401_v24, 7  ;;  %v1417_v41 = vrot.slane %v1403_v29, %v4725_v52  ;;  %v1418_v42 = vcombine.high %v1410_v31, %v1410_v31 }
 0x147   : > { %v1443_v43 = vrot.slane %v1402_v37, 7  ;;  %v1446_v44 = vrot.slane %v1410_v31, 7  ;;  %v1430_v45 = vsel %vm4897_vm6, %v3684_v15, %v1429_v20  ;;  %v1433_v46 = vsel %vm4897_vm6, %v1431_v35, %v1432_v21 }
 0x148   : > { %v1419_v47 = vcombine.high %v1417_v41, %v1417_v41  ;;  %v3687_v50 = vrot.slane %v1418_v42, 9  ;;  %v1450_v51 = vrot.slane %v1417_v41, 7  ;;  %v1463_v48 = vadd.f32 %v1430_v45, %v1019_v54 }
 0x149   : > { %v1445_v53 = vrot.slane %v1443_v43, 2  ;;  %v1464_v55 = vadd.f32 %v1433_v46, %v1027_v6  ;;  %v1437_v57 = vsel %vm4897_vm6, %v3685_v36, %v1436_v25  ;;  %v1440_v58 = vsel %vm4897_vm6, %v1438_v39, %v1439_v40 }
 0x14a   : > { %v1452_v59 = vrot.slane %v1450_v51, 2  ;;  %v1453_v60 = vrot.slane %v1419_v47, 7  ;;  %v1444_v61 = vsel %vm4897_vm6, %v3686_v38, %v1443_v43  ;;  %v1465_v62 = vadd.f32 %v1437_v57, %v1028_v7 }
 0x14b   : > { %v1466_v63 = vadd.f32 %v1440_v58, %v1036_v8  ;;  %v1467_v49 = vadd.f32 %v1444_v61, %v4870_v56  ;;  %v1447_v54 = vsel %vm4897_vm6, %v1445_v53, %v1446_v44  ;;  %v1451_v0 = vsel %vm4897_vm6, %v3687_v50, %v1450_v51  ;;  %v3760_v56 = vld [vmem:[%s5141_s12] ss:$0 sm:$0xff] }
 0x14c   : > { %v1454_v1 = vsel %vm4897_vm6, %v1452_v59, %v1453_v60  ;;  %v1468_v2 = vadd.f32 %v1447_v54, %v1044_v9  ;;  %v1469_v3 = vadd.f32 %v1451_v0, %v1060_v14  ;;  %v1864_v18 = vrot.slane %v3761_v34, %v4725_v52 }
 0x14d   : > { %v1470_v4 = vadd.f32 %v1454_v1, %v1059_v11  ;;  %v1840_v11 = vrot.slane %v3760_v56, %v4725_v52 }
 0x14e   : > { %v1865_v40 = vcombine.high %v1864_v18, %v1864_v18 }
 0x14f   : > { %v1841_v31 = vcombine.high %v1840_v11, %v1840_v11 }
 0x155   : > { %v4046_v5 = vpop.f32.mrb[16].mxu0 }
 0x156   : > { %v4047_v6 = vpop.f32.mrb[17].mxu0 }
 0x157   : > { %v4048_v10 = vadd.f32 %v4047_v6, %v4046_v5  ;;  %v4049_v7 = vpop.f32.mrb[18].mxu0 }
 0x158   : > { %v4050_v8 = vpop.f32.mrb[19].mxu0 }
 0x159   : > { %v4051_v12 = vadd.f32 %v4050_v8, %v4049_v7 }
 0x15b   : > { %v4240_v13 = vpop.f32.mrb[8].mxu1 }
 0x15c   : > { %v1746_v9 = vpop.f32.mrb[9].mxu1 }
 0x15d   : > { %v1747_v14 = vadd.f32 %v4048_v10, %v1746_v9  ;;  %v4241_v15 = vpop.f32.mrb[10].mxu1  ;;  %v4052_v16 = vpop.f32.mrb[20].mxu0 }
 0x15e   : > { %v1749_v19 = vpop.f32.mrb[11].mxu1  ;;  %v4053_v20 = vpop.f32.mrb[21].mxu0 }
 0x15f   : > { %v1763_v21 = vcombine.high %v1747_v14, %v1747_v14  ;;  %v1770_v22 = vrot.slane %v1747_v14, %v4725_v52  ;;  %v1750_v24 = vadd.f32 %v4051_v12, %v1749_v19  ;;  %v4054_v25 = vadd.f32 %v4053_v20, %v4052_v16  ;;  %v4055_v29 = vpop.f32.mrb[22].mxu0 }
 0x160   : > { %v4056_v35 = vpop.f32.mrb[23].mxu0 }
 0x161   : > { %v1777_v36 = vrot.slane %v1763_v21, %v4725_v52  ;;  %v1778_v37 = vcombine.high %v1770_v22, %v1770_v22  ;;  %v1779_v38 = vcombine.high %v1750_v24, %v1750_v24  ;;  %v1786_v39 = vrot.slane %v1750_v24, %v4725_v52 }
 0x162   : > { %v1755_v41 = vadd.f32 %v4240_v13, %v4054_v25 }
 0x163   : > { %v1820_v42 = vadd.f32 %v1778_v37, %v1463_v48  ;;  %v1821_v43 = vadd.f32 %v1777_v36, %v1464_v55  ;;  %v1793_v44 = vrot.slane %v1779_v38, %v4725_v52  ;;  %v1794_v45 = vcombine.high %v1786_v39, %v1786_v39 }
 0x164   : > { %v1822_v46 = vadd.f32 %v1786_v39, %v1465_v62  ;;  %v1796_v47 = vcombine.high %v1755_v41, %v1755_v41  ;;  %v1803_v50 = vrot.slane %v1755_v41, %v4725_v52 }
 0x165   : > { %v1844_v51 = vmul.f32 %v1840_v11, %v1820_v42  ;;  %v1845_v53 = vmul.f32 %v1841_v31, %v1821_v43  ;;  %v1795_v57 = vcombine.high %v1793_v44, %v1793_v44  ;;  %v1823_v58 = vadd.f32 %v1794_v45, %v1466_v63 }
 0x166   : > { %v1846_v59 = vmul.f32 %v1840_v11, %v1822_v46  ;;  %v1810_v60 = vrot.slane %v1796_v47, %v4725_v52  ;;  %v1825_v61 = vadd.f32 %v1803_v50, %v1468_v2 }
 0x167   : > { %v1868_v54 = vadd.f32 %v1864_v18, %v1844_v51  ;;  %v1869_v0 = vadd.f32 %v1865_v40, %v1845_v53  ;;  %v1824_v1 = vadd.f32 %v1795_v57, %v1467_v49  ;;  %v1847_v48 = vmul.f32 %v1841_v31, %v1823_v58 }
 0x168   : > { %v1870_v55 = vadd.f32 %v1864_v18, %v1846_v59  ;;  %v1811_v5 = vcombine.high %v1810_v60, %v1810_v60  ;;  %v1826_v6 = vadd.f32 %v1810_v60, %v1469_v3  ;;  %v1849_v10 = vmul.f32 %v1841_v31, %v1825_v61 }
 0x169   : > { %v1876_v62 = vmax.f32 %v1868_v54, 0.0  ;;  %v1877_v7 = vmax.f32 %v1869_v0, 0.0  ;;  %v1848_v8 = vmul.f32 %v1840_v11, %v1824_v1  ;;  %v1871_v56 = vadd.f32 %v1865_v40, %v1847_v48 }
 0x16a   : > { %v1827_v12 = vadd.f32 %v1811_v5, %v1470_v4  ;;  %v1850_v13 = vmul.f32 %v1840_v11, %v1826_v6  ;;  %v1873_v34 = vadd.f32 %v1865_v40, %v1849_v10  ;;  %v1878_v14 = vmax.f32 %v1870_v55, 0.0 }
 0x16b   : > { %v1892_v63 = vcombine.low %v1876_v62, %v1877_v7  ;;  %v1872_v9 = vadd.f32 %v1864_v18, %v1848_v8  ;;  %v1879_v15 = vmax.f32 %v1871_v56, 0.0 }
 0x16c   : > { %v1851_v2 = vmul.f32 %v1841_v31, %v1827_v12  ;;  %v1874_v16 = vadd.f32 %v1864_v18, %v1850_v13  ;;  %v1881_v19 = vmax.f32 %v1873_v34, 0.0 }
 0x16d   : > { %3762 = vst.sshfl [vmem:[#allocation2 + $0x9] sm:$0x33 pattern:$0x76325410] %v1892_v63  ;;  %v1880_v49 = vmax.f32 %v1872_v9, 0.0  ;;  %v1900_v20 = vcombine.low %v1878_v14, %v1879_v15 }
 0x16e   : > { %v1875_v21 = vadd.f32 %v1865_v40, %v1851_v2  ;;  %v1882_v22 = vmax.f32 %v1874_v16, 0.0 }
 0x16f   : > { %3763 = vst.sshfl [vmem:[#allocation2 + $0x11] sm:$0x33 pattern:$0x76325410] %v1900_v20  ;;  %v1908_v3 = vcombine.low %v1880_v49, %v1881_v19 }
 0x170   : > { %3766 = vst.sshfl [vmem:[#allocation2 + $0x1] sm:$0x33 pattern:$0x76325410] %v1900_v20  ;;  %v1883_v24 = vmax.f32 %v1875_v21, 0.0 }
 0x171   : > { %3764 = vst.sshfl [vmem:[#allocation2 + $0x19] sm:$0x33 pattern:$0x76325410] %v1908_v3 }
 0x172   : > { %3767 = vst.sshfl [vmem:[#allocation2 + $0x29] sm:$0x33 pattern:$0x76325410] %v1908_v3  ;;  %v1916_v4 = vcombine.low %v1882_v22, %v1883_v24 }
 0x174   : > { %3765 = vst.sshfl [vmem:[#allocation2 + $0x21] sm:$0x33 pattern:$0x76325410] %v1916_v4  ;;  %v1935_v11 = vld [vmem:[#allocation2 + $0xa] sm:$0x1] }
 0x175   : > { %v1947_v25 = vld [vmem:[#allocation2 + $0xb] sm:$0x1]  ;;  %1941 = vst [vmem:[#allocation2 + $0x8] sm:$0x1] %v1935_v11 }
 0x176   : > { %1953 = vst [vmem:[#allocation2 + $0xd] sm:$0x1] %v1947_v25  ;;  %v1936_v18 = vld [vmem:[#allocation2 + $0x12] sm:$0x1]  ;;  %v1948_v35 = vld [vmem:[#allocation2 + $0x13] sm:$0x1] }
 0x177   : > { %v1934_v29 = vld [vmem:[#allocation2 + $0x2] sm:$0x1]  ;;  %v1946_v31 = vld [vmem:[#allocation2 + $0x3] sm:$0x1]  ;;  %1942 = vst [vmem:[#allocation2 + $0x10] sm:$0x1] %v1936_v18 }
 0x178   : > { %1940 = vst [vmem:[#allocation2] sm:$0x1] %v1934_v29  ;;  %1952 = vst [vmem:[#allocation2 + $0x5] sm:$0x1] %v1946_v31  ;;  %v1937_v36 = vld [vmem:[#allocation2 + $0x1a] sm:$0x1] }
 0x179   : > { %v1949_v37 = vld [vmem:[#allocation2 + $0x1b] sm:$0x1]  ;;  %1954 = vst [vmem:[#allocation2 + $0x15] sm:$0x1] %v1948_v35  ;;  %v1939_v38 = vld [vmem:[#allocation2 + $0x2a] sm:$0x1] }
 0x17a   : > { %1943 = vst [vmem:[#allocation2 + $0x18] sm:$0x1] %v1937_v36  ;;  %1955 = vst [vmem:[#allocation2 + $0x1d] sm:$0x1] %v1949_v37  ;;  %v1951_v39 = vld [vmem:[#allocation2 + $0x2b] sm:$0x1] }
 0x17b   : > { %1945 = vst [vmem:[#allocation2 + $0x28] sm:$0x1] %v1939_v38  ;;  %1957 = vst [vmem:[#allocation2 + $0x2d] sm:$0x1] %v1951_v39  ;;  %v1938_v40 = vld [vmem:[#allocation2 + $0x22] sm:$0x1] }
 0x17c   : > { %v1950_v41 = vld [vmem:[#allocation2 + $0x23] sm:$0x1]  ;;  %1944 = vst [vmem:[#allocation2 + $0x20] sm:$0x1] %v1938_v40 }
 0x17d   : > { %1956 = vst [vmem:[#allocation2 + $0x25] sm:$0x1] %v1950_v41  ;;  %v4465_v39 = vld [vmem:[%s4657_s30 + $0xc0] sm:$0xff]  }
 0x17e   : > { %v4458_v43 = vld [vmem:[#allocation2 + $0x8] ss:$8 sps:$4 sm:$0xff]  }
 0x17f   : > { %v4455_v42 = vld [vmem:[#allocation2] ss:$8 sps:$4 sm:$0xff]   ;;  %v4457_v47 = vld [vmem:[#allocation2 + $0x4] ss:$8 sps:$4 sm:$0x33]   ;;  %v2025_v51 = vrot.slane %v4458_v43, %v4725_v52 }
 0x180   : > { %v1991_v45 = vrot.slane %v4455_v42, %v4725_v52  ;;  %v4460_v50 = vld [vmem:[#allocation2 + $0xc] ss:$8 sps:$4 sm:$0x33]   ;;  %v1998_v54 = vrot.slane %v4457_v47, %v4725_v52 }
 0x181   : > { %v1967_v44 = vld [vmem:[#allocation2 + $0x18] sm:$0x3f]  ;;  %v1966_v60 = vld [vmem:[#allocation2 + $0x10] sm:$0x3f]  ;;  %v2032_v0 = vrot.slane %v4460_v50, %v4725_v52 }
 0x182   : > { %v4461_v46 = vld [vmem:[#allocation2 + $0x10] ss:$8 sps:$4 sm:$0xff]   ;;  %v2039_v53 = vrot.slane %v1967_v44, %v4725_v52  ;;  %v2018_v57 = vcombine.high %v1967_v44, %v1967_v44  ;;  %v2128_v59 = vrot.slane %v1991_v45, %v4725_v52  ;;  %v1969_v61 = vld [vmem:[#allocation2 + $0x28] sm:$0x3f]  ;;  %v1984_v55 = vcombine.high %v1966_v60, %v1966_v60 }
 0x183   : > { %v2059_v58 = vrot.slane %v4461_v46, %v4725_v52  ;;  %v4473_v5 = vld [vmem:[#allocation2 + $0x18] ss:$8 sps:$4 sm:$0xff]   ;;  %v2005_v10 = vrot.slane %v1966_v60, %v4725_v52  ;;  %v4472_v8 = vld [vmem:[#allocation2 + $0x14] ss:$8 sps:$4 sm:$0x33]   ;;  %v3768_v12 = vcombine.low %v1998_v54, %v2025_v51  ;;  %v2086_v2 = vcombine.high %v1969_v61, %v1969_v61  ;;  %v4469_v44 = vld [vmem:[%s4657_s30 + $0x108] sm:$0xff]  }
 0x184   : > { %v2048_v1 = vcombine.high %v2025_v51, %v2039_v53  ;;  %v1968_v48 = vld [vmem:[#allocation2 + $0x20] sm:$0x3f]  ;;  %v2046_v62 = vrot.slane %v2018_v57, %v4725_v52  ;;  %v2012_v34 = vrot.slane %v1984_v55, %v4725_v52  ;;  %v2066_v15 = vrot.slane %v4472_v8, %v4725_v52  ;;  %v4477_v54 = vld [vmem:[%s4657_s30 + $0x110] sm:$0xff]  }
 0x185   : > { %v2177_v6 = vrot.slane %v2059_v58, %v4725_v52  ;;  %v2052_v7 = vcombine.high %v1968_v48, %v1968_v48  ;;  %v4475_v56 = vld [vmem:[#allocation2 + $0x1c] ss:$8 sps:$4 sm:$0x33]   ;;  %v2073_v63 = vrot.slane %v1968_v48, %v4725_v52  ;;  %v2135_v14 = vrot.slane %v2005_v10, %v4725_v52  ;;  %v4470_v58 = vld [vmem:[%s4657_s30 + $0xc8] sm:$0xff]   ;;  %v4482_v8 = vld [vmem:[%s4657_s30 + $0x150] sm:$0xff]  }
 0x186   : > { %v3770_v13 = vcombine.low %v2048_v1, %v2032_v0  ;;  %v2049_v9 = vcombine.low %v2032_v0, %v2046_v62  ;;  %v2142_v16 = vrot.slane %v3768_v12, %v4725_v52  ;;  %v3769_v49 = vcombine.low %v2012_v34, %v2039_v53  ;;  %v4479_v10 = vld [vmem:[%s4657_s30 + $0x148] sm:$0xff]   ;;  %v4480_v62 = vld [vmem:[%s4657_s30 + $0x118] sm:$0xff]   ;;  %v4484_v12 = vld [vmem:[%s4657_s30 + $0xe0] sm:$0xff]  }
 0x187   : > { %v2184_v20 = vrot.slane %v2073_v63, %v4725_v52  ;;  %v2093_v3 = vrot.slane %v4473_v5, %v4725_v52  ;;  %v2100_v22 = vrot.slane %v4475_v56, %v4725_v52  ;;  %v2107_v24 = vrot.slane %v1969_v61, %v4725_v52  ;;  %v4483_v56 = vld [vmem:[%s4657_s30 + $0x120] sm:$0xff]   ;;  %v4487_v34 = vld [vmem:[%s4657_s30 + $0xe8] sm:$0xff]  }
 0x188   : > { %v2163_v19 = vrot.slane %v3770_v13, %v4725_v52  ;;  %v3771_v21 = vcombine.high %v2039_v53, %v2049_v9  ;;  %v2150_v4 = vcombine.low %v2128_v59, %v2142_v16  ;;  %v2151_v11 = vcombine.high %v2128_v59, %v2142_v16  ;;  %v4486_v13 = vld [vmem:[%s4657_s30 + $0x128] sm:$0xff]   ;;  %v4488_v63 = vld [vmem:[%s4657_s30 + $0x160] sm:$0xff]   ;;  %v4489_v9 = vld [vmem:[%s4657_s30 + $0x130] sm:$0xff]  }
 0x189   : > { %v2149_v18 = vrot.slane %v3769_v49, %v4725_v52  ;;  %v2114_v35 = vrot.slane %v2086_v2, %v4725_v52  ;;  %v2116_v36 = vcombine.high %v2093_v3, %v2107_v24  ;;  %v3772_v40 = vcombine.low %v2066_v15, %v2093_v3  ;;  %v4491_v15 = vld [vmem:[%s4657_s30 + $0x168] sm:$0xff]   ;;  %v4492_v2 = vld [vmem:[%s4657_s30 + $0x138] sm:$0xff]   ;;  %v4495_v49 = vld [vmem:[%s4657_s30 + $0x1c0] sm:$0xff]  }
 0x18a   : > { %v2185_v25 = vcombine.low %v2163_v19, %v2177_v6  ;;  %v2186_v29 = vcombine.high %v2163_v19, %v2177_v6  ;;  %v2170_v31 = vrot.slane %v3771_v21, %v4725_v52  ;;  %v2080_v41 = vrot.slane %v2052_v7, %v4725_v52  ;;  %v4478_v6 = vld [vmem:[%s4657_s30 + $0xd0] sm:$0xff]   ;;  %v4481_v7 = vld [vmem:[%s4657_s30 + $0xd8] sm:$0xff]   ;;  %v4497_v21 = vld [vmem:[%s4657_s30 + $0x180] sm:$0xff]  }
 0x18b   : > { %v2152_v42 = vcombine.low %v2135_v14, %v2149_v18  ;;  %v2117_v45 = vcombine.low %v2100_v22, %v2114_v35  ;;  %v3774_v46 = vcombine.low %v2116_v36, %v2100_v22  ;;  %v2198_v51 = vrot.slane %v3772_v40, %v4725_v52  ;;  %v4490_v14 = vld [vmem:[%s4657_s30 + $0xf0] sm:$0xff]   ;;  %v4493_v16 = vld [vmem:[%s4657_s30 + $0xf8] sm:$0xff]   ;;  %v4498_v3 = vld [vmem:[%s4657_s30 + $0x1c8] sm:$0xff]  }
 0x18c   : > { %v4960_v37 = vpack.c.bf16 %v2186_v29, %v2151_v11  ;;  %v4962_v38 = vpack.c.bf16 %v2185_v25, %v2150_v4  ;;  %v2187_v43 = vcombine.low %v2170_v31, %v2184_v20  ;;  %v3773_v47 = vcombine.low %v2080_v41, %v2107_v24  ;;  %v4494_v19 = vld [vmem:[%s4657_s30 + $0x170] sm:$0xff]   ;;  %v4496_v20 = vld [vmem:[%s4657_s30 + $0x178] sm:$0xff]   ;;  %v4500_v22 = vld [vmem:[%s4657_s30 + $0x200] sm:$0xff]  }
 0x18d   : > { %v2212_v53 = vrot.slane %v3774_v46, %v4725_v52  ;;  %v3775_v57 = vcombine.high %v2107_v24, %v2117_v45  ;;  %v4499_v24 = vld [vmem:[%s4657_s30 + $0x188] sm:$0xff]   ;;  %v4501_v4 = vld [vmem:[%s4657_s30 + $0x1d0] sm:$0xff]   ;;  %v4504_v29 = vld [vmem:[%s4657_s30 + $0x1d8] sm:$0xff]  }
 0x18e   : > { %2462 = vmatprep.mubr.bf16.mxu0 %v4960_v37  ;;  %v4969_v50 = vpack.c.bf16 %v2187_v43, %v2152_v42  ;;  %v2205_v59 = vrot.slane %v3773_v47, %v4725_v52  ;;  %v4503_v11 = vld [vmem:[%s4657_s30 + $0x208] sm:$0xff]   ;;  %v4502_v25 = vld [vmem:[%s4657_s30 + $0x190] sm:$0xff]   ;;  %v4505_v31 = vld [vmem:[%s4657_s30 + $0x198] sm:$0xff]  }
 0x18f   : > { %2463 = vmatmul.mubr.bf16.vlgmr.msra.gmra.mrb[24].mxu0 %v4962_v38  ;;  %v2221_v60 = vcombine.high %v2198_v51, %v2212_v53  ;;  %v2219_v61 = vrot.slane %v3775_v57, %v4725_v52  ;;  %v2220_v0 = vcombine.low %v2198_v51, %v2212_v53  ;;  %v4506_v18 = vld [vmem:[%s4657_s30 + $0x210] sm:$0xff]   ;;  %v4507_v35 = vld [vmem:[%s4657_s30 + $0x1e0] sm:$0xff]   ;;  %v4509_v36 = vld [vmem:[%s4657_s30 + $0x218] sm:$0xff]  }
 0x190   : > { %4107 = vmatpush3.bf16.msra.mxu0 %v4465_v39  ;;  %4258 = vmatprep.mubr.bf16.mxu1 %v4969_v50  ;;  %v4508_v39 = vld [vmem:[%s4657_s30 + $0x1a0] sm:$0xff]   ;;  %v4510_v40 = vld [vmem:[%s4657_s30 + $0x1e8] sm:$0xff]   ;;  %v4513_v42 = vld [vmem:[%s4657_s30 + $0x1f0] sm:$0xff]  }
 0x191   : > { %4108 = vmatprep.subr.bf16.mxu0 %v4469_v44  ;;  %v4978_v1 = vpack.c.bf16 %v2221_v60, %v2221_v60  ;;  %v2222_v48 = vcombine.low %v2205_v59, %v2219_v61  ;;  %v4983_v5 = vpack.c.bf16 %v2220_v0, %v2220_v0  ;;  %v4512_v41 = vld [vmem:[%s4657_s30 + $0x220] sm:$0xff]   ;;  %v4515_v43 = vld [vmem:[%s4657_s30 + $0x228] sm:$0xff]   ;;  %v4514_v44 = vld [vmem:[%s4657_s30 + $0x1b0] sm:$0xff]  }
 0x192   : > { %v4516_v45 = vld [vmem:[%s4657_s30 + $0x1f8] sm:$0xff]   ;;  %v4518_v46 = vld [vmem:[%s4657_s30 + $0x230] sm:$0xff]  }
 0x193   : > { %2470 = vmatprep.mubr.bf16.mxu0 %v4978_v1  ;;  %v4981_v55 = vpack.c.bf16 %v2222_v48, %v2222_v48  ;;  %v4517_v47 = vld [vmem:[%s4657_s30 + $0x1b8] sm:$0xff]  }
 0x194   : > { %4109 = vmatpush3.bf16.msra.mxu0 %v4470_v58 }
 0x195   : > { %4110 = vmatprep.subr.bf16.mxu0 %v4477_v54  ;;  %4259 = vmatmul.mubr.bf16.vlgmr.msra.gmra.mrb[12].mxu1 %v4981_v55 }
 0x196   : > { %4263 = vmatpush3.bf16.msra.mxu1 %v4858_v17  ;;  %4278 = vmatprep.mubr.bf16.mxu1 %v4969_v50  ;;  %v4485_v17 = vld [vmem:[%s4657_s30 + $0x158] sm:$0xff]  }
 0x197   : > { %2471 = vmatmul.mubr.bf16.gmra.mrb[28].mxu0 %v4983_v5  ;;  %4264 = vmatprep.subr.bf16.mxu1 %v4479_v10 }
 0x198   : > { %4111 = vmatpush3.bf16.msra.mxu0 %v4478_v6  ;;  %2819 = vmatprep.mubr.bf16.mxu0 %v4960_v37 }
 0x199   : > { %4112 = vmatprep.subr.bf16.mxu0 %v4480_v62 }
 0x19a   : > { %4265 = vmatpush3.bf16.msra.mxu1 %v4479_v10 }
 0x19b   : > { %4266 = vmatprep.subr.bf16.mxu1 %v4482_v8 }
 0x19c   : > { %4113 = vmatpush3.bf16.msra.mxu0 %v4481_v7 }
 0x19d   : > { %4114 = vmatprep.subr.bf16.mxu0 %v4483_v56 }
 0x19e   : > { %4267 = vmatpush3.bf16.msra.mxu1 %v4482_v8 }
 0x19f   : > { %4268 = vmatprep.subr.bf16.mxu1 %v4485_v17 }
 0x1a0   : > { %4115 = vmatpush3.bf16.msra.mxu0 %v4484_v12 }
 0x1a1   : > { %4116 = vmatprep.subr.bf16.mxu0 %v4486_v13 }
 0x1a2   : > { %4269 = vmatpush3.bf16.msra.mxu1 %v4485_v17 }
 0x1a3   : > { %4270 = vmatprep.subr.bf16.mxu1 %v4488_v63 }
 0x1a4   : > { %4117 = vmatpush3.bf16.msra.mxu0 %v4487_v34 }
 0x1a5   : > { %4118 = vmatprep.subr.bf16.mxu0 %v4489_v9 }
 0x1a6   : > { %4271 = vmatpush3.bf16.msra.mxu1 %v4488_v63 }
 0x1a7   : > { %4272 = vmatprep.subr.bf16.mxu1 %v4491_v15 }
 0x1a8   : > { %4119 = vmatpush3.bf16.msra.mxu0 %v4490_v14 }
 0x1a9   : > { %4120 = vmatprep.subr.bf16.mxu0 %v4492_v2 }
 0x1aa   : > { %4273 = vmatpush3.bf16.msra.mxu1 %v4491_v15 }
 0x1ab   : > { %4274 = vmatprep.subr.bf16.mxu1 %v4494_v19 }
 0x1ac   : > { %4121 = vmatpush3.bf16.msra.mxu0 %v4493_v16 }
 0x1ad   : > { %4144 = vmatprep.subr.bf16.mxu0 %v4495_v49 }
 0x1ae   : > { %4275 = vmatpush3.bf16.msra.mxu1 %v4494_v19 }
 0x1af   : > { %2820 = vmatmul.mubr.bf16.vlgmr.msra.gmra.mrb[32].mxu0 %v4962_v38  ;;  %4276 = vmatprep.subr.bf16.mxu1 %v4496_v20 }
 0x1b0   : > { %2827 = vmatprep.mubr.bf16.mxu0 %v4978_v1  ;;  %4145 = vmatpush3.bf16.msra.mxu0 %v4497_v21 }
 0x1b1   : > { %4146 = vmatprep.subr.bf16.mxu0 %v4498_v3 }
 0x1b2   : > { %4277 = vmatpush3.bf16.msra.mxu1 %v4496_v20 }
 0x1b3   : > { %4282 = vmatprep.subr.bf16.mxu1 %v4500_v22 }
 0x1b4   : > { %4147 = vmatpush3.bf16.msra.mxu0 %v4499_v24 }
 0x1b5   : > { %4279 = vmatmul.mubr.bf16.vlgmr.msra.gmra.mrb[16].mxu1 %v4981_v55  ;;  %4148 = vmatprep.subr.bf16.mxu0 %v4501_v4 }
 0x1b6   : > { %4283 = vmatpush3.bf16.msra.mxu1 %v4500_v22  ;;  %4298 = vmatprep.mubr.bf16.mxu1 %v4969_v50  ;;  %v4519_v50 = vld [vmem:[%s4657_s30 + $0x238] sm:$0xff]  }
 0x1b7   : > { %2828 = vmatmul.mubr.bf16.gmra.mrb[36].mxu0 %v4983_v5  ;;  %4284 = vmatprep.subr.bf16.mxu1 %v4503_v11 }
 0x1b8   : > { %4149 = vmatpush3.bf16.msra.mxu0 %v4502_v25  ;;  %3206 = vmatprep.mubr.bf16.mxu0 %v4960_v37  ;;  %v4511_v37 = vld [vmem:[%s4657_s30 + $0x1a8] sm:$0xff]  }
 0x1b9   : > { %4150 = vmatprep.subr.bf16.mxu0 %v4504_v29 }
 0x1ba   : > { %4285 = vmatpush3.bf16.msra.mxu1 %v4503_v11 }
 0x1bb   : > { %4286 = vmatprep.subr.bf16.mxu1 %v4506_v18 }
 0x1bc   : > { %4151 = vmatpush3.bf16.msra.mxu0 %v4505_v31 }
 0x1bd   : > { %4152 = vmatprep.subr.bf16.mxu0 %v4507_v35 }
 0x1be   : > { %4287 = vmatpush3.bf16.msra.mxu1 %v4506_v18 }
 0x1bf   : > { %4288 = vmatprep.subr.bf16.mxu1 %v4509_v36 }
 0x1c0   : > { %4153 = vmatpush3.bf16.msra.mxu0 %v4508_v39 }
 0x1c1   : > { %4154 = vmatprep.subr.bf16.mxu0 %v4510_v40 }
 0x1c2   : > { %4289 = vmatpush3.bf16.msra.mxu1 %v4509_v36 }
 0x1c3   : > { %4290 = vmatprep.subr.bf16.mxu1 %v4512_v41 }
 0x1c4   : > { %4155 = vmatpush3.bf16.msra.mxu0 %v4511_v37 }
 0x1c5   : > { %4156 = vmatprep.subr.bf16.mxu0 %v4513_v42 }
 0x1c6   : > { %4291 = vmatpush3.bf16.msra.mxu1 %v4512_v41 }
 0x1c7   : > { %4292 = vmatprep.subr.bf16.mxu1 %v4515_v43 }
 0x1c8   : > { %4157 = vmatpush3.bf16.msra.mxu0 %v4514_v44 }
 0x1c9   : > { %4158 = vmatprep.subr.bf16.mxu0 %v4516_v45 }
 0x1ca   : > { %4293 = vmatpush3.bf16.msra.mxu1 %v4515_v43 }
 0x1cb   : > { %4294 = vmatprep.subr.bf16.mxu1 %v4518_v46 }
 0x1cc   : > { %4159 = vmatpush3.bf16.msra.mxu0 %v4517_v47 }
 0x1ce   : > { %4295 = vmatpush3.bf16.msra.mxu1 %v4518_v46 }
 0x1cf   : > { %3207 = vmatmul.mubr.bf16.vlgmr.msra.gmra.mrb[40].mxu0 %v4962_v38  ;;  %4296 = vmatprep.subr.bf16.mxu1 %v4519_v50 }
 0x1d0   : > { %3214 = vmatprep.mubr.bf16.mxu0 %v4978_v1 }
 0x1d2   : > { %4297 = vmatpush3.bf16.msra.mxu1 %v4519_v50 }
 0x1d5   : > { %4299 = vmatmul.mubr.bf16.vlgmr.msra.gmra.mrb[20].mxu1 %v4981_v55 }
 0x1d7   : > { %3215 = vmatmul.mubr.bf16.gmra.mrb[44].mxu0 %v4983_v5 }
 0x262   : > { %v4084_v51 = vpop.f32.mrb[24].mxu0 }
 0x263   : > { %v4085_v53 = vpop.f32.mrb[25].mxu0 }
 0x264   : > { %v4086_v57 = vadd.f32 %v4085_v53, %v4084_v51  ;;  %v4087_v58 = vpop.f32.mrb[26].mxu0 }
 0x265   : > { %v4088_v59 = vpop.f32.mrb[27].mxu0 }
 0x266   : > { %v4089_v60 = vadd.f32 %v4088_v59, %v4087_v58 }
 0x268   : > { %v4260_v61 = vpop.f32.mrb[12].mxu1 }
 0x269   : > { %v2512_v0 = vpop.f32.mrb[13].mxu1 }
 0x26a   : > { %v4090_v54 = vpop.f32.mrb[28].mxu0  ;;  %v2513_v6 = vadd.f32 %v4086_v57, %v2512_v0  ;;  %v4261_v38 = vpop.f32.mrb[14].mxu1 }
 0x26b   : > { %v4091_v48 = vpop.f32.mrb[29].mxu0  ;;  %v2515_v1 = vpop.f32.mrb[15].mxu1 }
 0x26c   : > { %v4092_v10 = vadd.f32 %v4091_v48, %v4090_v54  ;;  %v4093_v62 = vpop.f32.mrb[30].mxu0  ;;  %v5042_v8 = vadd.f32 %v4089_v60, %v2515_v1  ;;  %v2529_v34 = vcombine.high %v2513_v6, %v2513_v6  ;;  %v2536_v15 = vrot.slane %v2513_v6, %v4725_v52 }
 0x26d   : > { %v4094_v7 = vpop.f32.mrb[31].mxu0 }
 0x26e   : > { %v2521_v55 = vadd.f32 %v4260_v61, %v4092_v10  ;;  %v2546_v9 = vcombine.high %v5042_v8, %v5042_v8  ;;  %v2543_v2 = vrot.slane %v2529_v34, %v4725_v52  ;;  %v2544_v35 = vcombine.high %v2536_v15, %v2536_v15 }
 0x26f   : > { %v2553_v39 = vrot.slane %v5042_v8, %v4725_v52 }
 0x270   : > { %v2562_v16 = vcombine.high %v2521_v55, %v2521_v55  ;;  %v5049_v49 = vrot.slane %v2521_v55, %v4725_v52  ;;  %v2560_v22 = vrot.slane %v2546_v9, %v4725_v52  ;;  %v2545_v36 = vcombine.high %v2543_v2, %v2543_v2 }
 0x272   : > { %v2576_v40 = vrot.slane %v2562_v16, %v4725_v52  ;;  %v2577_v37 = vcombine.high %v5049_v49, %v5049_v49  ;;  %v2561_v45 = vcombine.high %v2560_v22, %v2560_v22 }
 0x282   : > { %v4122_v5 = vpop.f32.mrb[32].mxu0 }
 0x283   : > { %v4123_v56 = vpop.f32.mrb[33].mxu0 }
 0x284   : > { %v4124_v12 = vadd.f32 %v4123_v56, %v4122_v5  ;;  %v4125_v17 = vpop.f32.mrb[34].mxu0 }
 0x285   : > { %v4126_v13 = vpop.f32.mrb[35].mxu0 }
 0x286   : > { %v4127_v63 = vadd.f32 %v4126_v13, %v4125_v17 }
 0x288   : > { %v4280_v14 = vpop.f32.mrb[16].mxu1 }
 0x289   : > { %v2869_v19 = vpop.f32.mrb[17].mxu1 }
 0x28a   : > { %v2870_v20 = vadd.f32 %v4124_v12, %v2869_v19  ;;  %v4281_v21 = vpop.f32.mrb[18].mxu1  ;;  %v4128_v3 = vpop.f32.mrb[36].mxu0 }
 0x28b   : > { %v2872_v24 = vpop.f32.mrb[19].mxu1  ;;  %v4129_v4 = vpop.f32.mrb[37].mxu0 }
 0x28c   : > { %v2886_v11 = vcombine.high %v2870_v20, %v2870_v20  ;;  %v2893_v25 = vrot.slane %v2870_v20, %v4725_v52  ;;  %v2873_v29 = vadd.f32 %v4127_v63, %v2872_v24  ;;  %v4130_v18 = vadd.f32 %v4129_v4, %v4128_v3  ;;  %v4131_v31 = vpop.f32.mrb[38].mxu0 }
 0x28d   : > { %v4132_v41 = vpop.f32.mrb[39].mxu0 }
 0x28e   : > { %v2900_v42 = vrot.slane %v2886_v11, %v4725_v52  ;;  %v2901_v43 = vcombine.high %v2893_v25, %v2893_v25  ;;  %v2903_v44 = vcombine.high %v2873_v29, %v2873_v29  ;;  %v3872_v46 = vrot.slane %v2893_v25, 9 }
 0x28f   : > { %v2910_v47 = vrot.slane %v2873_v29, %v4725_v52  ;;  %v2878_v50 = vadd.f32 %v4280_v14, %v4130_v18 }
 0x290   : > { %v2902_v51 = vcombine.high %v2900_v42, %v2900_v42  ;;  %v2939_v53 = vrot.slane %v2901_v43, 7  ;;  %v2942_v57 = vrot.slane %v2900_v42, 7  ;;  %v2917_v58 = vrot.slane %v2903_v44, %v4725_v52 }
 0x291   : > { %v2918_v59 = vcombine.high %v2910_v47, %v2910_v47  ;;  %v2946_v60 = vrot.slane %v2910_v47, 7  ;;  %v2920_v61 = vcombine.high %v2878_v50, %v2878_v50  ;;  %v2927_v54 = vrot.slane %v2878_v50, %v4725_v52 }
 0x292   : > { %v2941_v0 = vrot.slane %v2939_v53, 2  ;;  %v3873_v48 = vrot.slane %v2902_v51, 9  ;;  %v2919_v6 = vcombine.high %v2917_v58, %v2917_v58  ;;  %v3874_v38 = vrot.slane %v2917_v58, 9 }
 0x293   : > { %v2948_v10 = vrot.slane %v2946_v60, 2  ;;  %v2949_v62 = vrot.slane %v2918_v59, 7  ;;  %v2934_v1 = vrot.slane %v2920_v61, %v4725_v52  ;;  %v2935_v7 = vcombine.high %v2927_v54, %v2927_v54 }
 0x294   : > { %v2953_v8 = vrot.slane %v2919_v6, 7  ;;  %v2956_v55 = vrot.slane %v2927_v54, 7  ;;  %v2940_v5 = vsel %vm4897_vm6, %v3872_v46, %v2939_v53  ;;  %v2943_v56 = vsel %vm4897_vm6, %v2941_v0, %v2942_v57 }
 0x295   : > { %v2936_v12 = vcombine.high %v2934_v1, %v2934_v1  ;;  %v3875_v17 = vrot.slane %v2935_v7, 9  ;;  %v2960_v13 = vrot.slane %v2934_v1, 7  ;;  %v2973_v34 = vadd.f32 %v2940_v5, %v2536_v15 }
 0x296   : > { %v2955_v63 = vrot.slane %v2953_v8, 2  ;;  %v2974_v9 = vadd.f32 %v2943_v56, %v2544_v35  ;;  %v2947_v14 = vsel %vm4897_vm6, %v3873_v48, %v2946_v60  ;;  %v2950_v2 = vsel %vm4897_vm6, %v2948_v10, %v2949_v62 }
 0x297   : > { %v2962_v16 = vrot.slane %v2960_v13, 2  ;;  %v2963_v19 = vrot.slane %v2936_v12, 7  ;;  %v2954_v49 = vsel %vm4897_vm6, %v3874_v38, %v2953_v8  ;;  %v2975_v20 = vadd.f32 %v2947_v14, %v2545_v36 }
 0x298   : > { %v2976_v21 = vadd.f32 %v2950_v2, %v2553_v39  ;;  %v2977_v3 = vadd.f32 %v2954_v49, %v2560_v22  ;;  %v2957_v15 = vsel %vm4897_vm6, %v2955_v63, %v2956_v55  ;;  %v2961_v24 = vsel %vm4897_vm6, %v3875_v17, %v2960_v13  ;;  %v3948_v22 = vld [vmem:[%s378_s0] ss:$0 sm:$0xff] }
 0x299   : > { %v2964_v4 = vsel %vm4897_vm6, %v2962_v16, %v2963_v19  ;;  %v2978_v11 = vadd.f32 %v2957_v15, %v2561_v45  ;;  %v2979_v25 = vadd.f32 %v2961_v24, %v2577_v37  ;;  %v3374_v46 = vrot.slane %v3949_v33, %v4725_v52 }
 0x29a   : > { %v2980_v29 = vadd.f32 %v2964_v4, %v2576_v40  ;;  %v3350_v40 = vrot.slane %v3948_v22, %v4725_v52 }
 0x29b   : > { %v3375_v38 = vcombine.high %v3374_v46, %v3374_v46 }
 0x29c   : > { %v3351_v60 = vcombine.high %v3350_v40, %v3350_v40 }
 0x2a2   : > { %v4160_v18 = vpop.f32.mrb[40].mxu0 }
 0x2a3   : > { %v4161_v31 = vpop.f32.mrb[41].mxu0 }
 0x2a4   : > { %v4162_v35 = vadd.f32 %v4161_v31, %v4160_v18  ;;  %v4163_v41 = vpop.f32.mrb[42].mxu0 }
 0x2a5   : > { %v4164_v36 = vpop.f32.mrb[43].mxu0 }
 0x2a6   : > { %v4165_v39 = vadd.f32 %v4164_v36, %v4163_v41 }
 0x2a8   : > { %v4300_v42 = vpop.f32.mrb[20].mxu1 }
 0x2a9   : > { %v3256_v43 = vpop.f32.mrb[21].mxu1 }
 0x2aa   : > { %v3257_v37 = vadd.f32 %v4162_v35, %v3256_v43  ;;  %v4301_v44 = vpop.f32.mrb[22].mxu1  ;;  %v4166_v45 = vpop.f32.mrb[44].mxu0 }
 0x2ab   : > { %v3259_v47 = vpop.f32.mrb[23].mxu1  ;;  %v4167_v50 = vpop.f32.mrb[45].mxu0 }
 0x2ac   : > { %v3273_v51 = vcombine.high %v3257_v37, %v3257_v37  ;;  %v3280_v53 = vrot.slane %v3257_v37, %v4725_v52  ;;  %v3260_v57 = vadd.f32 %v4165_v39, %v3259_v47  ;;  %v4168_v58 = vadd.f32 %v4167_v50, %v4166_v45  ;;  %v4169_v59 = vpop.f32.mrb[46].mxu0 }
 0x2ad   : > { %v4170_v61 = vpop.f32.mrb[47].mxu0 }
 0x2ae   : > { %v3287_v54 = vrot.slane %v3273_v51, %v4725_v52  ;;  %v3288_v0 = vcombine.high %v3280_v53, %v3280_v53  ;;  %v3289_v48 = vcombine.high %v3260_v57, %v3260_v57  ;;  %v3296_v6 = vrot.slane %v3260_v57, %v4725_v52 }
 0x2af   : > { %v3265_v10 = vadd.f32 %v4300_v42, %v4168_v58 }
 0x2b0   : > { %v3330_v62 = vadd.f32 %v3288_v0, %v2973_v34  ;;  %v3331_v1 = vadd.f32 %v3287_v54, %v2974_v9  ;;  %v3303_v7 = vrot.slane %v3289_v48, %v4725_v52  ;;  %v3304_v8 = vcombine.high %v3296_v6, %v3296_v6 }
 0x2b1   : > { %v3332_v55 = vadd.f32 %v3296_v6, %v2975_v20  ;;  %v3306_v5 = vcombine.high %v3265_v10, %v3265_v10  ;;  %v3313_v56 = vrot.slane %v3265_v10, %v4725_v52 }
 0x2b2   : > { %v3354_v12 = vmul.f32 %v3350_v40, %v3330_v62  ;;  %v3355_v17 = vmul.f32 %v3351_v60, %v3331_v1  ;;  %v3305_v13 = vcombine.high %v3303_v7, %v3303_v7  ;;  %v3333_v63 = vadd.f32 %v3304_v8, %v2976_v21 }
 0x2b3   : > { %v3356_v14 = vmul.f32 %v3350_v40, %v3332_v55  ;;  %v3320_v2 = vrot.slane %v3306_v5, %v4725_v52  ;;  %v3335_v16 = vadd.f32 %v3313_v56, %v2978_v11 }
 0x2b4   : > { %v3378_v19 = vadd.f32 %v3374_v46, %v3354_v12  ;;  %v3379_v49 = vadd.f32 %v3375_v38, %v3355_v17  ;;  %v3334_v15 = vadd.f32 %v3305_v13, %v2977_v3  ;;  %v3357_v34 = vmul.f32 %v3351_v60, %v3333_v63 }
 0x2b5   : > { %v3321_v9 = vcombine.high %v3320_v2, %v3320_v2  ;;  %v3336_v24 = vadd.f32 %v3320_v2, %v2979_v25  ;;  %v3359_v4 = vmul.f32 %v3351_v60, %v3335_v16  ;;  %v3380_v31 = vadd.f32 %v3374_v46, %v3356_v14 }
 0x2b6   : > { %v3394_v18 = vcombine.low %v3378_v19, %v3379_v49  ;;  %v3358_v20 = vmul.f32 %v3350_v40, %v3334_v15  ;;  %v3381_v35 = vadd.f32 %v3375_v38, %v3357_v34 }
 0x2b7   : > { %v3337_v41 = vadd.f32 %v3321_v9, %v2980_v29  ;;  %v3360_v36 = vmul.f32 %v3350_v40, %v3336_v24  ;;  %v3383_v39 = vadd.f32 %v3375_v38, %v3359_v4 }
 0x2b8   : > { %v3401_v21 = vrot.slane %v3394_v18, %v4725_v52  ;;  %v3382_v22 = vadd.f32 %v3374_v46, %v3358_v20  ;;  %v3402_v11 = vcombine.low %v3380_v31, %v3381_v35 }
 0x2b9   : > { %v3361_v42 = vmul.f32 %v3351_v60, %v3337_v41  ;;  %v3384_v43 = vadd.f32 %v3374_v46, %v3360_v36 }
 0x2ba   : > { %v3430_v3 = vadd.f32 %v3401_v21, %v404_v26  ;;  %v3409_v25 = vrot.slane %v3402_v11, %v4725_v52  ;;  %v3410_v33 = vcombine.low %v3382_v22, %v3383_v39 }
 0x2bb   : > { %v3385_v37 = vadd.f32 %v3375_v38, %v3361_v42 }
 0x2bc   : > { %v3434_v29 = vpack.c.bf16 %v3430_v3, %v3430_v3  ;;  %v3431_v40 = vadd.f32 %v3409_v25, %v4702_v27  ;;  %v3417_v44 = vrot.slane %v3410_v33, %v4725_v52 }
 0x2bd   : > { %v3418_v45 = vcombine.low %v3384_v43, %v3385_v37 }
 0x2be   : > { %3438 = vst [vmem:[%s4670_s19] sm:$0x3] %v3434_v29  ;;  %v3435_v47 = vpack.c.bf16 %v3431_v40, %v3431_v40  ;;  %v3432_v50 = vadd.f32 %v3417_v44, %v4704_v28 }
 0x2bf   : > { %v3425_v23 = vrot.slane %v3418_v45, %v4725_v52 }
 0x2c0   : > { %3439 = vst [vmem:[%s4670_s19 + $0x2] sm:$0x3] %v3435_v47  ;;  %v3436_v26 = vpack.c.bf16 %v3432_v50, %v3432_v50 }
 0x2c1   : > { %v3433_v51 = vadd.f32 %v3425_v23, %v407_v32 }
 0x2c2   : > { %3440 = vst [vmem:[%s4670_s19 + $0x4] sm:$0x3] %v3436_v26 }
 0x2c3   : > { %v3437_v46 = vpack.c.bf16 %v3433_v51, %v3433_v51 }
 0x2c5   : > { %3441 = vst [vmem:[%s4670_s19 + $0x6] sm:$0x3] %v3437_v46 }
 0x2c6 PF: > { %s17_s28 = sadd.s32 1, %s4558_s28   ;;  %s5143_s0 = sld [smem:[#allocation3_spill]] }
 0x2c7   : > { %p14_p8 = scmp.ge.s32.totalorder %s17_s28, 8   ;;  %s5144_s24 = smov %s4550_s26 }
 0x2c8   : > { %s5145_s25 = smov %s4554_s27  ;;  %s5146_s26 = smov %s5149_s29 }
 0x2c9   :  { %16 = sbr.rel (!%p14_p8) target bundleno = 3 (0x3), region = 107 }
 0x2cc   : > { %s5147_s27 = smov %s5143_s0 }

// kernel: tile.33
= control target key start
LH: loop header
LB: loop body
LE: loop exit
PB: predicated region body
PF: predicated region fallthrough
CT: control target
= control target key end

     0   :  { %s22_s0 = inlined_call_operand.vmem [shape: f32[32], index: 0, kind: input, shape index: {}]   ;;  %s23_s1 = inlined_call_operand.vmem [shape: f32[4,32], index: 1, kind: output, shape index: {}]  }
   0x1   :  { %v4_v0 = vld [vmem:[%s22_s0] ss:$0 sm:$0xff] }
   0x2   :  { %5 = vst [vmem:[%s23_s1] sm:$0xf] %v4_v0 }

// kernel: tile.34
= control target key start
LH: loop header
LB: loop body
LE: loop exit
PB: predicated region body
PF: predicated region fallthrough
CT: control target
= control target key end

     0   :  { %vm7_vm0 = vcmask 261120   ;;  %s37_s8 = smov 32   ;;  %s38_s9 = smov 64   ;;  %vm13_vm1 = vcmask 1048320   ;;  %vm19_vm2 = vcmask 785920   ;;  %vm25_vm3 = vcmask 523520   ;;  %s55_s0 = inlined_call_operand.vmem [shape: f32[4,32], index: 0, kind: input, shape index: {}]   ;;  %s56_s1 = inlined_call_operand.vmem [shape: f32[1,128], index: 1, kind: output, shape index: {}]  }
   0x1   :  { %v4_v0 = vld [vmem:[%s55_s0] sm:$0xf]  ;;  %s36_s0 = smov 96  }
   0x2   :  { %5 = vst [vmem:[#allocation1] sm:$0xf] %v4_v0 }
   0x9   :  { %v10_v1 = vld [vmem:[#allocation1 + $0x3] sm:$0x1]   ;;  %v22_v2 = vld [vmem:[#allocation1 + $0x1] sm:$0x1]   ;;  %v6_v3 = vld [vmem:[#allocation1] sm:$0x1]  }
   0xa   :  { %11 = vrot.lane.b32.xlu0 %v10_v1, %s36_s0  ;;  %23 = vrot.lane.b32.xlu1 %v22_v2, %s37_s8  ;;  %v16_v4 = vld [vmem:[#allocation1 + $0x2] sm:$0x1]   ;;  %8 = vst.msk [vmem:[#allocation0] sm:$0x1] %vm7_vm0, %v6_v3  }
   0xe   :  { %17 = vrot.lane.b32.xlu0 %v16_v4, %s38_s9 }
  0x7c   :  { %v12_v5 = vpop.permute.xlu0 %11   ;;  %v24_v6 = vpop.permute.xlu1 %23  }
  0x7d   :  { %14 = vst.msk [vmem:[#allocation0] sm:$0x1] %vm13_vm1, %v12_v5  }
  0x80   :  { %v18_v7 = vpop.permute.xlu0 %17  }
  0x81   :  { %20 = vst.msk [vmem:[#allocation0] sm:$0x1] %vm19_vm2, %v18_v7  }
  0x82   :  { %26 = vst.msk [vmem:[#allocation0] sm:$0x1] %vm25_vm3, %v24_v6  }
  0x89   :  { %v30_v8 = vld [vmem:[#allocation0] sm:$0x1] }
  0x8a   :  { %32 = vst [vmem:[%s56_s1] sm:$0x1] %v30_v8 }

// kernel: resnet_generator_pallas.11
= control target key start
LH: loop header
LB: loop body
LE: loop exit
PB: predicated region body
PF: predicated region fallthrough
CT: control target
= control target key end

     0   :  { %s1905_s15 = smov 0   ;;  %s2303_s0 = inlined_call_operand.vmem [shape: bf16[2,5,5,128], index: 0, kind: input, shape index: {}]   ;;  %s2304_s1 = inlined_call_operand.vmem [shape: bf16[2,256,256], index: 1, kind: input, shape index: {}]   ;;  %s2305_s2 = inlined_call_operand.vmem [shape: f32[1,256], index: 2, kind: input, shape index: {}]   ;;  %s2306_s3 = inlined_call_operand.vmem [shape: f32[1,256], index: 3, kind: input, shape index: {}]   ;;  %s2307_s4 = inlined_call_operand.vmem [shape: bf16[2,4,4,256], index: 4, kind: output, shape index: {}]  }
   0x1 LB: > { %s1632_s16 = sadd.s32 4294967295, %s1877_s15   ;;  %p1636_p0 = scmp.ge.s32.totalorder %s1877_s15, 1  ;;  %s1877_s15 = sphi %s1905_s15, %s14_s15  }
   0x2   : > { %p162_p1 = scmp.lt.s32.totalorder %s1877_s15, 3 }
   0x4   : > { %p163_p2 = pnand %p1636_p0, %p162_p1 }
   0x5   : > { %v1767_v0 = vld [vmem:[%s2304_s1 + $0x4] ss:$8 sps:$4 sm:$0xff] (!%p163_p2)   ;;  %v1771_v2 = vld [vmem:[%s2304_s1] ss:$8 sps:$4 sm:$0xff] (!%p163_p2)   ;;  %v1773_v4 = vld [vmem:[%s2304_s1 + $0x14] ss:$8 sps:$4 sm:$0xff] (!%p163_p2)   ;;  %v219_v41 = vlaneseq (!%p163_p2) }
   0x6   : > { %166 = sbr.rel (%p163_p2) target bundleno = 338 (0x152), region = 36  ;;  %v1769_v1 = vld [vmem:[%s2304_s1 + $0x104] ss:$8 sps:$4 sm:$0xff] (!%p163_p2)   ;;  %626 = vmatprep.subr.bf16.mxu0 (!%p163_p2), %v1767_v0  ;;  %v1772_v3 = vld [vmem:[%s2304_s1 + $0x100] ss:$8 sps:$4 sm:$0xff] (!%p163_p2)   ;;  %p188_p3 = scmp.lt.s32.totalorder (!%p163_p2), %s1632_s16, 1 }
   0x7   : > { %1031 = vmatprep.subr.bf16.mxu1 (!%p163_p2), %v1769_v1  ;;  %627 = vmatpush1.bf16.msra.mxu0 (!%p163_p2), %v1771_v2  ;;  %v1775_v5 = vld [vmem:[%s2304_s1 + $0x114] ss:$8 sps:$4 sm:$0xff] (!%p163_p2)   ;;  %v1777_v6 = vld [vmem:[%s2304_s1 + $0x10] ss:$8 sps:$4 sm:$0xff] (!%p163_p2)   ;;  %v1779_v8 = vld [vmem:[%s2304_s1 + $0x24] ss:$8 sps:$4 sm:$0xff] (!%p163_p2)  }
   0x8   : > { %1032 = vmatpush1.bf16.msra.mxu1 (!%p163_p2), %v1772_v3  ;;  %628 = vmatprep.subr.bf16.mxu0 (!%p163_p2), %v1773_v4  ;;  %v1778_v7 = vld [vmem:[%s2304_s1 + $0x110] ss:$8 sps:$4 sm:$0xff] (!%p163_p2)   ;;  %v1781_v9 = vld [vmem:[%s2304_s1 + $0x124] ss:$8 sps:$4 sm:$0xff] (!%p163_p2)   ;;  %v1783_v10 = vld [vmem:[%s2304_s1 + $0x20] ss:$8 sps:$4 sm:$0xff] (!%p163_p2)  }
   0x9   : > { %1033 = vmatprep.subr.bf16.mxu1 (!%p163_p2), %v1775_v5  ;;  %v1784_v11 = vld [vmem:[%s2304_s1 + $0x120] ss:$8 sps:$4 sm:$0xff] (!%p163_p2)   ;;  %v1785_v12 = vld [vmem:[%s2304_s1 + $0x34] ss:$8 sps:$4 sm:$0xff] (!%p163_p2)   ;;  %v1789_v14 = vld [vmem:[%s2304_s1 + $0x30] ss:$8 sps:$4 sm:$0xff] (!%p163_p2)  }
   0xa   : > { %v1787_v13 = vld [vmem:[%s2304_s1 + $0x134] ss:$8 sps:$4 sm:$0xff] (!%p163_p2)   ;;  %v1790_v15 = vld [vmem:[%s2304_s1 + $0x130] ss:$8 sps:$4 sm:$0xff] (!%p163_p2)   ;;  %v1791_v16 = vld [vmem:[%s2304_s1 + $0x44] ss:$8 sps:$4 sm:$0xff] (!%p163_p2)  }
   0xb   : > { %629 = vmatpush1.bf16.msra.mxu0 (!%p163_p2), %v1777_v6  ;;  %v1793_v17 = vld [vmem:[%s2304_s1 + $0x144] ss:$8 sps:$4 sm:$0xff] (!%p163_p2)   ;;  %v1795_v18 = vld [vmem:[%s2304_s1 + $0x40] ss:$8 sps:$4 sm:$0xff] (!%p163_p2)   ;;  %v1797_v20 = vld [vmem:[%s2304_s1 + $0x54] ss:$8 sps:$4 sm:$0xff] (!%p163_p2)  }
   0xc   : > { %1034 = vmatpush1.bf16.msra.mxu1 (!%p163_p2), %v1778_v7  ;;  %630 = vmatprep.subr.bf16.mxu0 (!%p163_p2), %v1779_v8  ;;  %v1796_v19 = vld [vmem:[%s2304_s1 + $0x140] ss:$8 sps:$4 sm:$0xff] (!%p163_p2)   ;;  %v1799_v21 = vld [vmem:[%s2304_s1 + $0x154] ss:$8 sps:$4 sm:$0xff] (!%p163_p2)   ;;  %v1801_v22 = vld [vmem:[%s2304_s1 + $0x50] ss:$8 sps:$4 sm:$0xff] (!%p163_p2)  }
   0xd   : > { %1035 = vmatprep.subr.bf16.mxu1 %v1781_v9  ;;  %v1802_v23 = vld [vmem:[%s2304_s1 + $0x150] ss:$8 sps:$4 sm:$0xff]   ;;  %v1803_v24 = vld [vmem:[%s2304_s1 + $0x64] ss:$8 sps:$4 sm:$0xff]   ;;  %v1807_v26 = vld [vmem:[%s2304_s1 + $0x60] ss:$8 sps:$4 sm:$0xff]  }
   0xe   : > { %v1805_v25 = vld [vmem:[%s2304_s1 + $0x164] ss:$8 sps:$4 sm:$0xff]   ;;  %v1808_v27 = vld [vmem:[%s2304_s1 + $0x160] ss:$8 sps:$4 sm:$0xff]   ;;  %v1809_v28 = vld [vmem:[%s2304_s1 + $0x74] ss:$8 sps:$4 sm:$0xff]  }
   0xf   : > { %631 = vmatpush1.bf16.msra.mxu0 %v1783_v10  ;;  %v1811_v29 = vld [vmem:[%s2304_s1 + $0x174] ss:$8 sps:$4 sm:$0xff]   ;;  %v1813_v30 = vld [vmem:[%s2304_s1 + $0x70] ss:$8 sps:$4 sm:$0xff]   ;;  %v1815_v32 = vld [vmem:[%s2304_s1 + $0x84] ss:$8 sps:$4 sm:$0xff]  }
  0x10   : > { %1036 = vmatpush1.bf16.msra.mxu1 %v1784_v11  ;;  %632 = vmatprep.subr.bf16.mxu0 %v1785_v12  ;;  %v1814_v31 = vld [vmem:[%s2304_s1 + $0x170] ss:$8 sps:$4 sm:$0xff]   ;;  %v1817_v33 = vld [vmem:[%s2304_s1 + $0x184] ss:$8 sps:$4 sm:$0xff]   ;;  %v1819_v34 = vld [vmem:[%s2304_s1 + $0x80] ss:$8 sps:$4 sm:$0xff]  }
  0x11   : > { %1037 = vmatprep.subr.bf16.mxu1 %v1787_v13  ;;  %v1820_v35 = vld [vmem:[%s2304_s1 + $0x180] ss:$8 sps:$4 sm:$0xff]   ;;  %v1821_v36 = vld [vmem:[%s2304_s1 + $0x94] ss:$8 sps:$4 sm:$0xff]   ;;  %s2309_s16 = smov (!%p188_p3, %s1632_s16), 1  ;;  %v2052_v48 = vshrl.u32 %v219_v41, 7 }
  0x12   : > { %v1823_v37 = vld [vmem:[%s2304_s1 + $0x194] ss:$8 sps:$4 sm:$0xff]   ;;  %v1825_v38 = vld [vmem:[%s2304_s1 + $0x90] ss:$8 sps:$4 sm:$0xff]   ;;  %v1879_v39 = vmov 1966171168  }
  0x13   : > { %633 = vmatpush1.bf16.msra.mxu0 %v1789_v14  ;;  %v217_v40 = vunpack.c.l.s4 %v1879_v39  ;;  %v1826_v42 = vld [vmem:[%s2304_s1 + $0x190] ss:$8 sps:$4 sm:$0xff]   ;;  %v1827_v43 = vld [vmem:[%s2304_s1 + $0xa4] ss:$8 sps:$4 sm:$0xff]   ;;  %s1757_s29 = smul.u32 20, %s2309_s16  ;;  %s1756_s7 = sshll.u32 %s2309_s16, 4 }
  0x14   : > { %1038 = vmatpush1.bf16.msra.mxu1 %v1790_v15  ;;  %634 = vmatprep.subr.bf16.mxu0 %v1791_v16  ;;  %v1829_v44 = vld [vmem:[%s2304_s1 + $0x1a4] ss:$8 sps:$4 sm:$0xff]   ;;  %v1831_v45 = vld [vmem:[%s2304_s1 + $0xa0] ss:$8 sps:$4 sm:$0xff]   ;;  %v1833_v49 = vld [vmem:[%s2304_s1 + $0xb4] ss:$8 sps:$4 sm:$0xff]   ;;  %s2261_s9 = scalar_lea.vmem %s2307_s4, %s1756_s7 }
  0x15   : > { %1039 = vmatprep.subr.bf16.mxu1 %v1793_v17  ;;  %v1832_v46 = vld [vmem:[%s2304_s1 + $0x1a0] ss:$8 sps:$4 sm:$0xff]   ;;  %v218_v47 = vunpack.c.0.s8 %v217_v40  ;;  %v1835_v50 = vld [vmem:[%s2304_s1 + $0x1b4] ss:$8 sps:$4 sm:$0xff]   ;;  %s192_s14 = scalar_lea.vmem %s2303_s0, %s1757_s29  ;;  %v1837_v51 = vld [vmem:[%s2304_s1 + $0xb0] ss:$8 sps:$4 sm:$0xff]  }
  0x16   : > { %v1838_v52 = vld [vmem:[%s2304_s1 + $0x1b0] ss:$8 sps:$4 sm:$0xff]   ;;  %v1839_v53 = vld [vmem:[%s2304_s1 + $0xc4] ss:$8 sps:$4 sm:$0xff]   ;;  %v1843_v60 = vld [vmem:[%s2304_s1 + $0xc0] ss:$8 sps:$4 sm:$0xff]  }
  0x17   : > { %635 = vmatpush1.bf16.msra.mxu0 %v1795_v18  ;;  %v1841_v54 = vld [vmem:[%s2304_s1 + $0x1c4] ss:$8 sps:$4 sm:$0xff]   ;;  %v2076_v55 = vsub.s32 %v218_v47, %v2052_v48  ;;  %v1844_v61 = vld [vmem:[%s2304_s1 + $0x1c0] ss:$8 sps:$4 sm:$0xff]   ;;  %v1845_v62 = vld [vmem:[%s2304_s1 + $0xd4] ss:$8 sps:$4 sm:$0xff]  }
  0x18   : > { %1040 = vmatpush1.bf16.msra.mxu1 %v1796_v19  ;;  %636 = vmatprep.subr.bf16.mxu0 %v1797_v20  ;;  %v1867_v56 = vld.sshfl [vmem:[%s192_s14] sm:$0x5f pattern:$0x75316420]  ;;  %v1847_v63 = vld [vmem:[%s2304_s1 + $0x1d4] ss:$8 sps:$4 sm:$0xff]  }
  0x19   : > { %1041 = vmatprep.subr.bf16.mxu1 %v1799_v21  ;;  %v1868_v57 = vld.sshfl [vmem:[%s192_s14 + $0x4] sm:$0x5f pattern:$0x75316420]  ;;  %v223_v0 = vcombine.high %v1867_v56, %v1867_v56  ;;  %v230_v1 = vrot.slane %v1867_v56, %v2076_v55  ;;  %v1849_v11 = vld [vmem:[%s2304_s1 + $0xd0] ss:$8 sps:$4 sm:$0xff]  }
  0x1a   : > { %v1869_v58 = vld.sshfl [vmem:[%s192_s14 + $0x8] sm:$0x5f pattern:$0x75316420]  ;;  %v247_v2 = vcombine.high %v1868_v57, %v1868_v57  ;;  %v254_v3 = vrot.slane %v1868_v57, %v2076_v55  ;;  %v1850_v12 = vld [vmem:[%s2304_s1 + $0x1d0] ss:$8 sps:$4 sm:$0xff]  }
  0x1b   : > { %637 = vmatpush1.bf16.msra.mxu0 %v1801_v22  ;;  %v1870_v59 = vld.sshfl [vmem:[%s192_s14 + $0xc] sm:$0x5f pattern:$0x75316420]  ;;  %v271_v4 = vcombine.high %v1869_v58, %v1869_v58  ;;  %v278_v5 = vrot.slane %v1869_v58, %v2076_v55  ;;  %v237_v7 = vrot.slane %v223_v0, %v2076_v55  ;;  %v238_v8 = vcombine.high %v230_v1, %v230_v1 }
  0x1c   : > { %1042 = vmatpush1.bf16.msra.mxu1 %v1802_v23  ;;  %638 = vmatprep.subr.bf16.mxu0 %v1803_v24  ;;  %v302_v6 = vrot.slane %v1870_v59, %v2076_v55  ;;  %v261_v9 = vrot.slane %v247_v2, %v2076_v55  ;;  %v295_v10 = vcombine.high %v1870_v59, %v1870_v59  ;;  %v317_v16 = vunpack.i.h.s16 %v254_v3  ;;  %v1851_v17 = vld [vmem:[%s2304_s1 + $0xe4] ss:$8 sps:$4 sm:$0xff]   ;;  %v1298_v2 = vld [vmem:[%s2306_s3] sm:$0x3] }
  0x1d   : > { %1043 = vmatprep.subr.bf16.mxu1 %v1805_v25  ;;  %v262_v13 = vcombine.high %v254_v3, %v254_v3  ;;  %v285_v14 = vrot.slane %v271_v4, %v2076_v55  ;;  %v286_v15 = vcombine.high %v278_v5, %v278_v5  ;;  %v1853_v18 = vld [vmem:[%s2304_s1 + $0x1e4] ss:$8 sps:$4 sm:$0xff]   ;;  %v1644_v20 = vpack.i.b16 %v254_v3, %v238_v8 }
  0x1e   : > { %v319_v19 = vunpack.i.h.s16 %v261_v9  ;;  %v373_v21 = vcombine.low %v230_v1, %v237_v7  ;;  %v309_v22 = vrot.slane %v295_v10, %v2076_v55  ;;  %v1645_v23 = vpack.i.b16 %v261_v9, %v317_v16 }
  0x1f   : > { %639 = vmatpush1.bf16.msra.mxu0 %v1807_v26  ;;  %v1647_v24 = vpack.i.b16 %v302_v6, %v286_v15  ;;  %v310_v25 = vcombine.high %v302_v6, %v302_v6  ;;  %v327_v26 = vunpack.i.h.s16 %v302_v6 }
  0x20   : > { %1044 = vmatpush1.bf16.msra.mxu1 %v1808_v27  ;;  %640 = vmatprep.subr.bf16.mxu0 %v1809_v28  ;;  %v1646_v27 = vpack.i.b16 %v262_v13, %v319_v19  ;;  %v383_v28 = vrot.slane %v373_v21, %v2076_v55 }
  0x21   : > { %1045 = vmatprep.subr.bf16.mxu1 %v1811_v29  ;;  %v329_v29 = vunpack.i.h.s16 %v309_v22 }
  0x23   : > { %641 = vmatpush1.bf16.msra.mxu0 %v1813_v30  ;;  %v1855_v30 = vld [vmem:[%s2304_s1 + $0xe0] ss:$8 sps:$4 sm:$0xff]  }
  0x24   : > { %1046 = vmatpush1.bf16.msra.mxu1 %v1814_v31  ;;  %642 = vmatprep.subr.bf16.mxu0 %v1815_v32  ;;  %v1856_v31 = vld [vmem:[%s2304_s1 + $0x1e0] ss:$8 sps:$4 sm:$0xff]   ;;  %v374_v32 = vcombine.low %v1644_v20, %v1645_v23 }
  0x25   : > { %1047 = vmatprep.subr.bf16.mxu1 %v1817_v33  ;;  %v376_v33 = vcombine.low %v285_v14, %v1647_v24 }
  0x26   : > { %v390_v39 = vrot.slane %v374_v32, %v2076_v55 }
  0x27   : > { %643 = vmatpush1.bf16.msra.mxu0 %v1819_v34  ;;  %v1648_v34 = vpack.i.b16 %v309_v22, %v327_v26  ;;  %v404_v40 = vrot.slane %v376_v33, %v2076_v55 }
  0x28   : > { %1048 = vmatpush1.bf16.msra.mxu1 %v1820_v35  ;;  %644 = vmatprep.subr.bf16.mxu0 %v1821_v36  ;;  %v1857_v35 = vld [vmem:[%s2304_s1 + $0xf4] ss:$8 sps:$4 sm:$0xff]  }
  0x29   : > { %1049 = vmatprep.subr.bf16.mxu1 %v1823_v37  ;;  %v1859_v36 = vld [vmem:[%s2304_s1 + $0x1f4] ss:$8 sps:$4 sm:$0xff]   ;;  %v375_v37 = vcombine.low %v1646_v27, %v278_v5 }
  0x2b   : > { %645 = vmatpush1.bf16.msra.mxu0 %v1825_v38  ;;  %v1649_v38 = vpack.i.b16 %v310_v25, %v329_v29  ;;  %v397_v41 = vrot.slane %v375_v37, %v2076_v55 }
  0x2c   : > { %1050 = vmatpush1.bf16.msra.mxu1 %v1826_v42  ;;  %646 = vmatprep.subr.bf16.mxu0 %v1827_v43  ;;  %v1861_v43 = vld [vmem:[%s2304_s1 + $0xf0] ss:$8 sps:$4 sm:$0xff]  }
  0x2d   : > { %1051 = vmatprep.subr.bf16.mxu1 %v1829_v44  ;;  %v439_v42 = vcombine.low %v1648_v34, %v1649_v38  ;;  %v1862_v44 = vld [vmem:[%s2304_s1 + $0x1f0] ss:$8 sps:$4 sm:$0xff]   ;;  %v408_v47 = vcombine.high %v397_v41, %v404_v40 }
  0x2f   : > { %647 = vmatpush1.bf16.msra.mxu0 %v1831_v45  ;;  %v406_v45 = vcombine.high %v383_v28, %v390_v39 }
  0x30   : > { %1052 = vmatpush1.bf16.msra.mxu1 %v1832_v46  ;;  %648 = vmatprep.subr.bf16.mxu0 %v1833_v49  ;;  %v405_v46 = vcombine.low %v383_v28, %v390_v39  ;;  %v407_v49 = vcombine.low %v397_v41, %v404_v40 }
  0x31   : > { %1053 = vmatprep.subr.bf16.mxu1 %v1835_v50  ;;  %v446_v50 = vrot.slane %v439_v42, %v2076_v55 }
  0x33   : > { %649 = vmatpush1.bf16.msra.mxu0 %v1837_v51  ;;  %v422_v51 = vrot.slane %v406_v45, %v2076_v55  ;;  %v447_v56 = vcombine.high %v446_v50, %v446_v50 }
  0x34   : > { %1054 = vmatpush1.bf16.msra.mxu1 %v1838_v52  ;;  %650 = vmatprep.subr.bf16.mxu0 %v1839_v53  ;;  %v415_v52 = vrot.slane %v405_v46, %v2076_v55  ;;  %v436_v53 = vrot.slane %v408_v47, %v2076_v55 }
  0x35   : > { %1055 = vmatprep.subr.bf16.mxu1 %v1841_v54  ;;  %v429_v54 = vrot.slane %v407_v49, %v2076_v55  ;;  %v461_v59 = vrot.slane %v447_v56, %v2076_v55 }
  0x36   : > { %v438_v57 = vcombine.low %v422_v51, %v436_v53 }
  0x37   : > { %651 = vmatpush1.bf16.msra.mxu0 %v1843_v60  ;;  %v437_v58 = vcombine.low %v415_v52, %v429_v54  ;;  %v454_v60 = vrot.slane %v446_v50, %v2076_v55 }
  0x38   : > { %1056 = vmatpush1.bf16.msra.mxu1 %v1844_v61  ;;  %652 = vmatprep.subr.bf16.mxu0 %v1845_v62  ;;  %v1247_v61 = vsub.s32 0, %v2052_v48  ;;  %v1251_v62 = vsub.s32 1, %v2052_v48 }
  0x39   : > { %1057 = vmatprep.subr.bf16.mxu1 %v1847_v63  ;;  %658 = vmatprep.mubr.bf16.mxu0 %v438_v57  ;;  %v1243_v63 = vld [vmem:[%s2305_s2] sm:$0x3] }
  0x3a   : > { %1063 = vmatprep.mubr.bf16.mxu1 %v438_v57  ;;  %v1248_v0 = vrot.slane %v1243_v63, %v1247_v61  ;;  %v1252_v1 = vrot.slane %v1243_v63, %v1251_v62  ;;  %v1303_v4 = vrot.slane %v1298_v2, %v1247_v61  ;;  %v1307_v5 = vrot.slane %v1298_v2, %v1251_v62 }
  0x3b   : > { %653 = vmatpush1.bf16.msra.mxu0 %v1849_v11 }
  0x3c   : > { %1058 = vmatpush1.bf16.msra.mxu1 %v1850_v12  ;;  %654 = vmatprep.subr.bf16.mxu0 %v1851_v17  ;;  %v1253_v3 = vcombine.low %v1248_v0, %v1252_v1  ;;  %v1308_v7 = vcombine.low %v1303_v4, %v1307_v5 }
  0x3d   : > { %1059 = vmatprep.subr.bf16.mxu1 %v1853_v18 }
  0x3e   : > { %v1260_v6 = vrot.slane %v1253_v3, %v2076_v55  ;;  %v1315_v9 = vrot.slane %v1308_v7, %v2076_v55 }
  0x3f   : > { %655 = vmatpush1.bf16.msra.mxu0 %v1855_v30 }
  0x40   : > { %1060 = vmatpush1.bf16.msra.mxu1 %v1856_v31  ;;  %656 = vmatprep.subr.bf16.mxu0 %v1857_v35  ;;  %v1261_v8 = vcombine.high %v1260_v6, %v1260_v6  ;;  %v2150_v48 = vrot.slane %v1260_v6, %v2076_v55  ;;  %v1316_v11 = vcombine.high %v1315_v9, %v1315_v9 }
  0x41   : > { %1061 = vmatprep.subr.bf16.mxu1 %v1859_v36  ;;  %v2156_v12 = vrot.slane %v1315_v9, %v2076_v55 }
  0x42   : > { %v2153_v10 = vrot.slane %v1261_v8, %v2076_v55  ;;  %v2162_v23 = vcombine.high %v2150_v48, %v2150_v48  ;;  %v2169_v25 = vrot.slane %v1316_v11, %v2076_v55 }
  0x43   : > { %657 = vmatpush1.bf16.msra.mxu0 %v1861_v43  ;;  %v2173_v26 = vcombine.high %v2156_v12, %v2156_v12 }
  0x44   : > { %1062 = vmatpush1.bf16.msra.mxu1 %v1862_v44  ;;  %v2166_v24 = vcombine.high %v2153_v10, %v2153_v10 }
  0x46   : > { %659 = vmatmul.mubr.bf16.vlgmr.msra.gmra.mrb[0].mxu0 %v437_v58 }
  0x47   : > { %1064 = vmatmul.mubr.bf16.vlgmr.msra.gmra.mrb[0].mxu1 %v437_v58  ;;  %668 = vmatprep.mubr.bf16.mxu0 %v461_v59 }
  0x48   : > { %1073 = vmatprep.mubr.bf16.mxu1 %v461_v59 }
  0x4e   : > { %669 = vmatmul.mubr.bf16.gmra.mrb[4].mxu0 %v454_v60 }
  0x4f   : > { %1074 = vmatmul.mubr.bf16.gmra.mrb[4].mxu1 %v454_v60  ;;  %v2201_v60 = vcombine.high %v2169_v25, %v2169_v25 }
 0x119   : > { %v660_v13 = vpop.f32.mrb[0].mxu0 }
 0x11a   : > { %v1065_v14 = vpop.f32.mrb[0].mxu1  ;;  %v662_v15 = vpop.f32.mrb[1].mxu0 }
 0x11b   : > { %v1067_v16 = vpop.f32.mrb[1].mxu1  ;;  %v683_v17 = vcombine.low %v660_v13, %v662_v15  ;;  %v684_v18 = vcombine.high %v660_v13, %v662_v15  ;;  %v664_v21 = vpop.f32.mrb[2].mxu0 }
 0x11c   : > { %v1088_v19 = vcombine.low %v1065_v14, %v1067_v16  ;;  %v1089_v20 = vcombine.high %v1065_v14, %v1067_v16  ;;  %v2158_v22 = vpop.f32.mrb[2].mxu1  ;;  %v666_v27 = vpop.f32.mrb[3].mxu0 }
 0x11d   : > { %v2175_v28 = vpop.f32.mrb[3].mxu1  ;;  %v691_v29 = vrot.slane %v683_v17, %v2076_v55  ;;  %v698_v30 = vrot.slane %v684_v18, %v2076_v55  ;;  %v733_v33 = vcombine.low %v664_v21, %v666_v27  ;;  %v734_v34 = vcombine.high %v664_v21, %v666_v27 }
 0x11e   : > { %v1096_v31 = vrot.slane %v1088_v19, %v2076_v55  ;;  %v1103_v32 = vrot.slane %v1089_v20, %v2076_v55  ;;  %v1138_v35 = vcombine.low %v2158_v22, %v2175_v28  ;;  %v1139_v36 = vcombine.high %v2158_v22, %v2175_v28 }
 0x11f   : > { %v699_v37 = vcombine.high %v691_v29, %v691_v29  ;;  %v700_v38 = vcombine.high %v698_v30, %v698_v30  ;;  %v707_v39 = vrot.slane %v691_v29, %v2076_v55  ;;  %v714_v40 = vrot.slane %v698_v30, %v2076_v55 }
 0x120   : > { %v1104_v41 = vcombine.high %v1096_v31, %v1096_v31  ;;  %v1105_v42 = vcombine.high %v1103_v32, %v1103_v32  ;;  %v1112_v43 = vrot.slane %v1096_v31, %v2076_v55  ;;  %v1119_v44 = vrot.slane %v1103_v32, %v2076_v55 }
 0x121   : > { %v721_v45 = vrot.slane %v699_v37, %v2076_v55  ;;  %v2191_v46 = vrot.slane %v700_v38, %v2076_v55  ;;  %v729_v47 = vcombine.high %v707_v39, %v707_v39  ;;  %v730_v49 = vcombine.high %v714_v40, %v714_v40  ;;  %v2193_v50 = vpop.f32.mrb[4].mxu0 }
 0x122   : > { %v2195_v51 = vpop.f32.mrb[4].mxu1  ;;  %v1126_v52 = vrot.slane %v1104_v41, %v2076_v55  ;;  %v1133_v53 = vrot.slane %v1105_v42, %v2076_v55  ;;  %v1134_v54 = vcombine.high %v1112_v43, %v1112_v43  ;;  %v1135_v56 = vcombine.high %v1119_v44, %v1119_v44  ;;  %v672_v57 = vpop.f32.mrb[5].mxu0 }
 0x123   : > { %v1077_v58 = vpop.f32.mrb[5].mxu1  ;;  %v731_v59 = vcombine.high %v721_v45, %v721_v45  ;;  %v741_v61 = vrot.slane %v733_v33, %v2076_v55  ;;  %v2205_v62 = vrot.slane %v734_v34, %v2076_v55  ;;  %v674_v63 = vpop.f32.mrb[6].mxu0  ;;  %v732_v20 = vcombine.high %v2191_v46, %v2191_v46 }
 0x124   : > { %v1079_v0 = vpop.f32.mrb[6].mxu1  ;;  %v1136_v1 = vcombine.high %v1126_v52, %v1126_v52  ;;  %v1137_v2 = vcombine.high %v1133_v53, %v1133_v53  ;;  %v1227_v3 = vadd.f32 %v1126_v52, %v707_v39  ;;  %v1228_v4 = vadd.f32 %v1134_v54, %v721_v45  ;;  %v675_v5 = vpop.f32.mrb[7].mxu0 }
 0x125   : > { %v1080_v6 = vpop.f32.mrb[7].mxu1  ;;  %v1230_v7 = vadd.f32 %v1119_v44, %v731_v59  ;;  %v1231_v8 = vadd.f32 %v1135_v56, %v2191_v46  ;;  %v749_v9 = vcombine.high %v741_v61, %v741_v61  ;;  %v750_v11 = vcombine.high %v2205_v62, %v2205_v62 }
 0x126   : > { %v1229_v13 = vadd.f32 %v1136_v1, %v729_v47  ;;  %v1232_v14 = vadd.f32 %v1137_v2, %v730_v49  ;;  %v1282_v15 = vmul.f32 %v2150_v48, %v1227_v3  ;;  %v1283_v16 = vmul.f32 %v2153_v10, %v1228_v4 }
 0x127   : > { %v1285_v17 = vmul.f32 %v2166_v24, %v1230_v7  ;;  %v1286_v18 = vmul.f32 %v2150_v48, %v1231_v8  ;;  %v757_v19 = vrot.slane %v741_v61, %v2076_v55  ;;  %v771_v33 = vrot.slane %v749_v9, %v2076_v55 }
 0x128   : > { %v1284_v21 = vmul.f32 %v2162_v23, %v1229_v13  ;;  %v1287_v27 = vmul.f32 %v2153_v10, %v1232_v14  ;;  %v1337_v29 = vadd.f32 %v2156_v12, %v1282_v15  ;;  %v1338_v30 = vadd.f32 %v2169_v25, %v1283_v16 }
 0x129   : > { %v1340_v31 = vadd.f32 %v2201_v60, %v1285_v17  ;;  %v1341_v32 = vadd.f32 %v2156_v12, %v1286_v18  ;;  %v2225_v34 = vrot.slane %v750_v11, %v2076_v55  ;;  %v764_v43 = vrot.slane %v2205_v62, %v2076_v55 }
 0x12a   : > { %v1339_v37 = vadd.f32 %v2173_v26, %v1284_v21  ;;  %v1342_v38 = vadd.f32 %v2169_v25, %v1287_v27  ;;  %v1353_v39 = vmax.f32 %v1337_v29, 0.0  ;;  %v1354_v40 = vmax.f32 %v1338_v30, 0.0 }
 0x12b   : > { %v1356_v41 = vmax.f32 %v1340_v31, 0.0  ;;  %v1357_v42 = vmax.f32 %v1341_v32, 0.0  ;;  %v779_v44 = vcombine.high %v757_v19, %v757_v19  ;;  %v1146_v49 = vrot.slane %v1138_v35, %v2076_v55 }
 0x12c   : > { %v1355_v45 = vmax.f32 %v1339_v37, 0.0  ;;  %v1358_v46 = vmax.f32 %v1342_v38, 0.0  ;;  %v1385_v47 = vcombine.low %v1353_v39, %v1354_v40  ;;  %v780_v52 = vcombine.high %v771_v33, %v771_v33 }
 0x12d   : > { %v1153_v53 = vrot.slane %v1139_v36, %v2076_v55  ;;  %v782_v54 = vcombine.low %v2193_v50, %v672_v57  ;;  %v1186_v56 = vcombine.low %v2195_v51, %v1077_v58  ;;  %v1154_v62 = vcombine.high %v1146_v49, %v1146_v49 }
 0x12e   : > { %v1386_v59 = vcombine.low %v1355_v45, %v1356_v41  ;;  %v1417_v61 = vcombine.low %v1357_v42, %v1358_v46  ;;  %v781_v63 = vcombine.high %v2225_v34, %v2225_v34  ;;  %v1393_v0 = vrot.slane %v1385_v47, %v2076_v55 }
 0x12f   : > { %v1155_v35 = vcombine.high %v1153_v53, %v1153_v53  ;;  %v1162_v1 = vrot.slane %v1146_v49, %v2076_v55  ;;  %v1169_v2 = vrot.slane %v1153_v53, %v2076_v55  ;;  %v1176_v28 = vrot.slane %v1154_v62, %v2076_v55 }
 0x130   : > { %v1400_v22 = vrot.slane %v1386_v59, %v2076_v55  ;;  %v789_v36 = vrot.slane %v782_v54, %v2076_v55  ;;  %v1193_v50 = vrot.slane %v1186_v56, %v2076_v55  ;;  %v1425_v46 = vrot.slane %v1417_v61, %v2076_v55 }
 0x131   : > { %v1183_v51 = vrot.slane %v1155_v35, %v2076_v55  ;;  %v1184_v57 = vcombine.high %v1169_v2, %v1169_v2  ;;  %v1233_v58 = vadd.f32 %v1162_v1, %v732_v20  ;;  %v1236_v3 = vadd.f32 %v1169_v2, %v780_v52 }
 0x132   : > { %v1401_v4 = vcombine.low %v1393_v0, %v1400_v22  ;;  %v1402_v5 = vcombine.high %v1393_v0, %v1400_v22  ;;  %v1185_v6 = vcombine.high %v1176_v28, %v1176_v28  ;;  %v1234_v7 = vadd.f32 %v1176_v28, %v757_v19 }
 0x133   : > { %v1237_v8 = vadd.f32 %v1183_v51, %v764_v43  ;;  %v1238_v9 = vadd.f32 %v1184_v57, %v2225_v34  ;;  %v1288_v11 = vmul.f32 %v2162_v23, %v1233_v58  ;;  %v1291_v13 = vmul.f32 %v2153_v10, %v1236_v3 }
 0x134   : > { %v1409_v14 = vrot.slane %v1401_v4, %v2076_v55  ;;  %v1416_v15 = vrot.slane %v1402_v5, %v2076_v55  ;;  %v1235_v16 = vadd.f32 %v1185_v6, %v779_v44  ;;  %v1289_v17 = vmul.f32 %v2166_v24, %v1234_v7 }
 0x135   : > { %v1292_v18 = vmul.f32 %v2162_v23, %v1237_v8  ;;  %v1293_v19 = vmul.f32 %v2166_v24, %v1238_v9  ;;  %v1343_v20 = vadd.f32 %v2173_v26, %v1288_v11  ;;  %v1346_v21 = vadd.f32 %v2169_v25, %v1291_v13 }
 0x136   : > { %v1746_v27 = vpack.c.bf16 %v1416_v15, %v1409_v14  ;;  %v1290_v29 = vmul.f32 %v2150_v48, %v1235_v16  ;;  %v1344_v30 = vadd.f32 %v2201_v60, %v1289_v17  ;;  %v790_v31 = vcombine.high %v789_v36, %v789_v36 }
 0x137   : > { %v1347_v32 = vadd.f32 %v2173_v26, %v1292_v18  ;;  %v1348_v33 = vadd.f32 %v2201_v60, %v1293_v19  ;;  %v1359_v34 = vmax.f32 %v1343_v20, 0.0  ;;  %v1362_v37 = vmax.f32 %v1346_v21, 0.0 }
 0x138   : > { %1750 = vst.sshfl [vmem:[%s2261_s9] sm:$0x33 pattern:$0x76325410] %v1746_v27  ;;  %v1345_v38 = vadd.f32 %v2156_v12, %v1290_v29  ;;  %v1360_v39 = vmax.f32 %v1344_v30, 0.0  ;;  %v797_v40 = vrot.slane %v789_v36, %v2076_v55  ;;  %v804_v41 = vrot.slane %v790_v31, %v2076_v55 }
 0x139   : > { %v1363_v42 = vmax.f32 %v1347_v32, 0.0  ;;  %v1364_v43 = vmax.f32 %v1348_v33, 0.0  ;;  %v1194_v44 = vcombine.high %v1193_v50, %v1193_v50  ;;  %v1201_v45 = vrot.slane %v1193_v50, %v2076_v55 }
 0x13a   : > { %v1361_v47 = vmax.f32 %v1345_v38, 0.0  ;;  %v1418_v49 = vcombine.low %v1359_v34, %v1360_v39  ;;  %v805_v52 = vcombine.high %v797_v40, %v797_v40 }
 0x13b   : > { %v1450_v53 = vcombine.low %v1363_v42, %v1364_v43  ;;  %v1208_v54 = vrot.slane %v1194_v44, %v2076_v55  ;;  %v1209_v56 = vcombine.high %v1201_v45, %v1201_v45  ;;  %v1239_v59 = vadd.f32 %v1201_v45, %v781_v63 }
 0x13c   : > { %v1432_v62 = vrot.slane %v1418_v49, %v2076_v55  ;;  %v1449_v0 = vcombine.low %v1361_v47, %v1362_v37 }
 0x13d   : > { %v1464_v35 = vrot.slane %v1450_v53, %v2076_v55  ;;  %v1210_v1 = vcombine.high %v1208_v54, %v1208_v54  ;;  %v1240_v2 = vadd.f32 %v1208_v54, %v797_v40  ;;  %v1241_v22 = vadd.f32 %v1209_v56, %v804_v41 }
 0x13e   : > { %v1433_v28 = vcombine.low %v1425_v46, %v1432_v62  ;;  %v1434_v36 = vcombine.high %v1425_v46, %v1432_v62  ;;  %v1457_v61 = vrot.slane %v1449_v0, %v2076_v55  ;;  %v1294_v50 = vmul.f32 %v2150_v48, %v1239_v59 }
 0x13f   : > { %v1242_v51 = vadd.f32 %v1210_v1, %v805_v52  ;;  %v1295_v57 = vmul.f32 %v2153_v10, %v1240_v2  ;;  %v1296_v58 = vmul.f32 %v2162_v23, %v1241_v22 }
 0x140   : > { %v1441_v63 = vrot.slane %v1433_v28, %v2076_v55  ;;  %v1448_v3 = vrot.slane %v1434_v36, %v2076_v55  ;;  %v1465_v4 = vcombine.low %v1457_v61, %v1464_v35  ;;  %v1466_v5 = vcombine.high %v1457_v61, %v1464_v35 }
 0x141   : > { %v1297_v6 = vmul.f32 %v2166_v24, %v1242_v51  ;;  %v1349_v7 = vadd.f32 %v2156_v12, %v1294_v50  ;;  %v1350_v8 = vadd.f32 %v2169_v25, %v1295_v57  ;;  %v1351_v48 = vadd.f32 %v2173_v26, %v1296_v58 }
 0x142   : > { %v1473_v10 = vrot.slane %v1465_v4, %v2076_v55  ;;  %v1480_v23 = vrot.slane %v1466_v5, %v2076_v55  ;;  %v1747_v9 = vpack.c.bf16 %v1448_v3, %v1441_v63 }
 0x143   : > { %v1352_v11 = vadd.f32 %v2201_v60, %v1297_v6  ;;  %v1365_v13 = vmax.f32 %v1349_v7, 0.0  ;;  %v1366_v14 = vmax.f32 %v1350_v8, 0.0  ;;  %v1367_v16 = vmax.f32 %v1351_v48, 0.0 }
 0x144   : > { %v1748_v15 = vpack.c.bf16 %v1480_v23, %v1473_v10  ;;  %1751 = vst.sshfl [vmem:[%s2261_s9 + $0x4] sm:$0x33 pattern:$0x76325410] %v1747_v9 }
 0x145   : > { %v1368_v24 = vmax.f32 %v1352_v11, 0.0  ;;  %v1481_v17 = vcombine.low %v1365_v13, %v1366_v14 }
 0x146   : > { %1752 = vst.sshfl [vmem:[%s2261_s9 + $0x8] sm:$0x33 pattern:$0x76325410] %v1748_v15 }
 0x147   : > { %v1482_v12 = vcombine.low %v1367_v16, %v1368_v24  ;;  %v1489_v25 = vrot.slane %v1481_v17, %v2076_v55 }
 0x149   : > { %v1496_v26 = vrot.slane %v1482_v12, %v2076_v55 }
 0x14b   : > { %v1497_v18 = vcombine.low %v1489_v25, %v1496_v26  ;;  %v1498_v19 = vcombine.high %v1489_v25, %v1496_v26 }
 0x14d   : > { %v1505_v20 = vrot.slane %v1497_v18, %v2076_v55  ;;  %v1512_v60 = vrot.slane %v1498_v19, %v2076_v55 }
 0x14f   : > { %v1749_v21 = vpack.c.bf16 %v1512_v60, %v1505_v20 }
 0x151   : > { %1753 = vst.sshfl [vmem:[%s2261_s9 + $0xc] sm:$0x33 pattern:$0x76325410] %v1749_v21 }
 0x152 PF: > { %s14_s15 = sadd.s32 1, %s1877_s15  }
 0x153   : > { %p11_p4 = scmp.ge.s32.totalorder %s14_s15, 4  }
 0x155   :  { %13 = sbr.rel (!%p11_p4) target bundleno = 1 (0x1), region = 68 }

// kernel: resnet_generator_pallas.12
= control target key start
LH: loop header
LB: loop body
LE: loop exit
PB: predicated region body
PF: predicated region fallthrough
CT: control target
= control target key end

     0   :  { %s5527_s15 = smov 0   ;;  %s7068_s0 = inlined_call_operand.vmem [shape: bf16[2,9,9,64], index: 0, kind: input, shape index: {}]   ;;  %s7069_s1 = inlined_call_operand.vmem [shape: bf16[4,64,128], index: 1, kind: input, shape index: {}]   ;;  %s7070_s2 = inlined_call_operand.vmem [shape: f32[1,128], index: 2, kind: input, shape index: {}]   ;;  %s7071_s3 = inlined_call_operand.vmem [shape: f32[1,128], index: 3, kind: input, shape index: {}]   ;;  %s7072_s4 = inlined_call_operand.vmem [shape: bf16[2,8,8,128], index: 4, kind: output, shape index: {}]  }
   0x1 LB: > { %s5127_s16 = sadd.s32 4294967295, %s5497_s15   ;;  %p5131_p0 = scmp.ge.s32.totalorder %s5497_s15, 1  ;;  %s5497_s15 = sphi %s5527_s15, %s14_s15  }
   0x2   : > { %p162_p1 = scmp.lt.s32.totalorder %s5497_s15, 3 }
   0x4   : > { %p163_p2 = pnand %p5131_p0, %p162_p1 }
   0x6   : > { %166 = sbr.rel (%p163_p2) target bundleno = 512 (0x200), region = 36 }
   0xd   : > { %v5475_v0 = vld [vmem:[%s7069_s1] sm:$0xff]   ;;  %v5499_v1 = vmov 0.0   ;;  %v5477_v3 = vld [vmem:[%s7069_s1 + $0x8] sm:$0xff]   ;;  %vm5500_vm0 = vmmov 0   ;;  %p188_p3 = scmp.lt.s32.totalorder %s5127_s16, 1  ;;  %v259_v5 = vlaneseq  ;;  %v5479_v6 = vld [vmem:[%s7069_s1 + $0x10] sm:$0xff]  }
   0xe   : > { %5351 = vmatprep.subr.bf16.mxu0 %v5499_v1  ;;  %5379 = vmatprep.subr.bf16.mxu1 %v5499_v1  ;;  %v5476_v2 = vld [vmem:[%s7069_s1 + $0x20] sm:$0xff]   ;;  %v5478_v4 = vld [vmem:[%s7069_s1 + $0x28] sm:$0xff]   ;;  %v5480_v7 = vld [vmem:[%s7069_s1 + $0x30] sm:$0xff]   ;;  %v5501_v12 = vmov 1966171168   ;;  %vm912_vm1 = vcmask 523264  }
   0xf   : > { %5352 = vmatpush3.bf16.msra.mxu0 %v5475_v0  ;;  %5359 = vmatprep.mubr.msk.bf16.mxu0 %vm5500_vm0, %v5499_v1  ;;  %s7266_s16 = smov (!%p188_p3, %s5127_s16), 1  ;;  %v260_v8 = vshrl.u32 %v259_v5, 7  ;;  %v5481_v9 = vld [vmem:[%s7069_s1 + $0x18] sm:$0xff]   ;;  %v257_v13 = vunpack.c.l.s4 %v5501_v12 }
  0x10   : > { %5380 = vmatpush3.bf16.msra.mxu1 %v5476_v2  ;;  %5353 = vmatprep.subr.bf16.mxu0 %v5499_v1  ;;  %s5463_s27 = smul.u32 72, %s7266_s16  ;;  %v5482_v10 = vld [vmem:[%s7069_s1 + $0x38] sm:$0xff]   ;;  %s5291_s7 = sshll.u32 %s7266_s16, 5 }
  0x11   : > { %5381 = vmatprep.subr.bf16.mxu1 %v5499_v1  ;;  %5387 = vmatprep.mubr.msk.bf16.mxu1 %vm5500_vm0, %v5499_v1  ;;  %v258_v17 = vunpack.c.0.s8 %v257_v13  ;;  %s6697_s9 = scalar_lea.vmem %s7072_s4, %s5291_s7 }
  0x12   : > { %s5569_s6 = scalar_lea.vmem %s7068_s0, %s5463_s27 }
  0x13   : > { %5354 = vmatpush3.bf16.msra.mxu0 %v5477_v3  ;;  %v5151_v11 = vld.sshfl [vmem:[%s5569_s6] sm:$0x33 pattern:$0x75316420]  ;;  %v5583_v20 = vsub.s32 %v258_v17, %v260_v8 }
  0x14   : > { %5382 = vmatpush3.bf16.msra.mxu1 %v5478_v4  ;;  %5355 = vmatprep.subr.bf16.mxu0 %v5499_v1  ;;  %v5152_v14 = vld.sshfl [vmem:[%s5569_s6 + $0x4] sm:$0x1 pattern:$0x75316420]  ;;  %v255_v16 = vcombine.high %v5151_v11, %v5151_v11 }
  0x15   : > { %5383 = vmatprep.subr.bf16.mxu1 %v5499_v1  ;;  %v5153_v15 = vld.sshfl [vmem:[%s5569_s6 + $0x8] sm:$0x33 pattern:$0x75316420]  ;;  %v262_v24 = vrot.slane %v5151_v11, %v5583_v20  ;;  %v285_v26 = vrot.slane %v5152_v14, %v5583_v20 }
  0x16   : > { %v293_v18 = vcombine.high %v5153_v15, %v5153_v15  ;;  %v5154_v19 = vld.sshfl [vmem:[%s5569_s6 + $0xc] sm:$0x1 pattern:$0x75316420]  ;;  %v269_v25 = vrot.slane %v255_v16, %v5583_v20  ;;  %v5593_v27 = vrot.slane %v5153_v15, %v5583_v20 }
  0x17   : > { %5356 = vmatpush3.bf16.msra.mxu0 %v5479_v6  ;;  %v5155_v21 = vld.sshfl [vmem:[%s5569_s6 + $0x10] sm:$0x33 pattern:$0x75316420]  ;;  %v5599_v29 = vrot.slane %v5154_v19, %v5583_v20 }
  0x18   : > { %5384 = vmatpush3.bf16.msra.mxu1 %v5480_v7  ;;  %5357 = vmatprep.subr.bf16.mxu0 %v5499_v1  ;;  %v5156_v22 = vld.sshfl [vmem:[%s5569_s6 + $0x14] sm:$0x1 pattern:$0x75316420]  ;;  %v331_v23 = vcombine.high %v5155_v21, %v5155_v21  ;;  %v5596_v28 = vrot.slane %v293_v18, %v5583_v20  ;;  %v5602_v30 = vrot.slane %v5155_v21, %v5583_v20  ;;  %v562_v37 = vunpack.i.h.s16 %v5593_v27 }
  0x19   : > { %5385 = vmatprep.subr.bf16.mxu1 %v5499_v1  ;;  %v668_v31 = vcombine.low %v262_v24, %v269_v25  ;;  %v5187_v32 = vcombine.high %v262_v24, %v269_v25  ;;  %v5608_v34 = vrot.slane %v5156_v22, %v5583_v20  ;;  %v308_v35 = vcombine.high %v5593_v27, %v5593_v27  ;;  %v5157_v39 = vld.sshfl [vmem:[%s5569_s6 + $0x18] sm:$0x33 pattern:$0x75316420] }
  0x1a   : > { %v5605_v33 = vrot.slane %v331_v23, %v5583_v20  ;;  %v309_v36 = vcombine.high %v5596_v28, %v5596_v28  ;;  %v564_v38 = vunpack.i.h.s16 %v5596_v28  ;;  %v5167_v40 = vpack.i.b16 %v5593_v27, %v285_v26  ;;  %v5158_v44 = vld.sshfl [vmem:[%s5569_s6 + $0x1c] sm:$0x1 pattern:$0x75316420] }
  0x1b   : > { %5358 = vmatpush3.bf16.msra.mxu0 %v5481_v9  ;;  %v678_v41 = vrot.slane %v668_v31, %v5583_v20  ;;  %v685_v42 = vrot.slane %v5187_v32, %v5583_v20  ;;  %v5622_v43 = vcombine.high %v5602_v30, %v5602_v30  ;;  %v566_v45 = vunpack.i.h.s16 %v308_v35  ;;  %v5159_v56 = vld.sshfl [vmem:[%s5569_s6 + $0x20] sm:$0x33 pattern:$0x75316420] }
  0x1c   : > { %5386 = vmatpush3.bf16.msra.mxu1 %v5482_v10  ;;  %5407 = vmatprep.subr.bf16.mxu0 %v5499_v1  ;;  %v5168_v46 = vpack.i.b16 %v5596_v28, %v562_v37  ;;  %v5169_v47 = vpack.i.b16 %v308_v35, %v564_v38  ;;  %v5628_v48 = vcombine.high %v5605_v33, %v5605_v33  ;;  %v568_v52 = vunpack.i.h.s16 %v309_v36  ;;  %v5160_v62 = vld.sshfl [vmem:[%s5569_s6 + $0x24] sm:$0x1 pattern:$0x75316420] }
  0x1d   : > { %5435 = vmatprep.subr.bf16.mxu1 %v5499_v1  ;;  %v700_v49 = vcombine.low %v678_v41, %v685_v42  ;;  %v369_v50 = vcombine.high %v5157_v39, %v5157_v39  ;;  %v5631_v51 = vrot.slane %v5157_v39, %v5583_v20  ;;  %v5170_v53 = vpack.i.b16 %v309_v36, %v566_v45  ;;  %v5161_v4 = vld.sshfl [vmem:[%s5569_s6 + $0x28] sm:$0x33 pattern:$0x75316420]  ;;  %v5483_v36 = vld [vmem:[%s7069_s1 + $0x40] sm:$0xff]  }
  0x1e   : > { %v670_v54 = vcombine.low %v5167_v40, %v5168_v46  ;;  %v718_v55 = vcombine.low %v5605_v33, %v5622_v43  ;;  %v5637_v57 = vrot.slane %v5158_v44, %v5583_v20  ;;  %v5171_v2 = vpack.i.b16 %v5599_v29, %v568_v52  ;;  %v5484_v37 = vld [vmem:[%s7069_s1 + $0x60] sm:$0xff]  }
  0x1f   : > { %v708_v58 = vrot.slane %v700_v49, %v5583_v20  ;;  %v5641_v59 = vrot.slane %v369_v50, %v5583_v20  ;;  %v5645_v60 = vcombine.high %v5631_v51, %v5631_v51  ;;  %v580_v61 = vunpack.i.h.s16 %v5631_v51 }
  0x20   : > { %v671_v63 = vcombine.low %v5169_v47, %v5170_v53  ;;  %v692_v0 = vrot.slane %v670_v54, %v5583_v20  ;;  %v5172_v3 = vpack.i.b16 %v5631_v51, %v5608_v34  ;;  %v734_v7 = vrot.slane %v718_v55, %v5583_v20  ;;  %v5162_v47 = vld.sshfl [vmem:[%s5569_s6 + $0x2c] sm:$0x1 pattern:$0x75316420] }
  0x21   : > { %v582_v5 = vunpack.i.h.s16 %v5641_v59  ;;  %v5173_v6 = vpack.i.b16 %v5641_v59, %v580_v61  ;;  %v5659_v8 = vcombine.high %v5641_v59, %v5641_v59  ;;  %v717_v10 = vcombine.low %v5171_v2, %v5602_v30  ;;  %v5163_v53 = vld.sshfl [vmem:[%s5569_s6 + $0x30] sm:$0x33 pattern:$0x75316420]  ;;  %v5486_v2 = vld [vmem:[%s7069_s1 + $0x68] sm:$0xff]  }
  0x22   : > { %v699_v9 = vrot.slane %v671_v63, %v5583_v20  ;;  %v719_v11 = vcombine.low %v5628_v48, %v5172_v3  ;;  %v407_v12 = vcombine.high %v5159_v56, %v5159_v56  ;;  %v5666_v14 = vrot.slane %v5159_v56, %v5583_v20 }
  0x23   : > { %v5174_v13 = vpack.i.b16 %v5645_v60, %v582_v5  ;;  %v5669_v15 = vrot.slane %v5160_v62, %v5583_v20  ;;  %v445_v16 = vcombine.high %v5161_v4, %v5161_v4  ;;  %v727_v18 = vrot.slane %v717_v10, %v5583_v20 }
  0x24   : > { %v701_v17 = vcombine.low %v692_v0, %v699_v9  ;;  %v741_v19 = vrot.slane %v719_v11, %v5583_v20  ;;  %v5674_v21 = vrot.slane %v407_v12, %v5583_v20  ;;  %v5677_v23 = vrot.slane %v5161_v4, %v5583_v20  ;;  %v5485_v0 = vld [vmem:[%s7069_s1 + $0x48] sm:$0xff]   ;;  %v5165_v4 = vld.sshfl [vmem:[%s5569_s6 + $0x38] sm:$0x33 pattern:$0x75316420] }
  0x25   : > { %v720_v22 = vcombine.low %v5173_v6, %v5174_v13  ;;  %v5680_v24 = vrot.slane %v445_v16, %v5583_v20  ;;  %v584_v25 = vunpack.i.h.s16 %v5645_v60  ;;  %v749_v31 = vcombine.low %v727_v18, %v734_v7 }
  0x26   : > { %v715_v26 = vrot.slane %v701_v17, %v5583_v20  ;;  %v586_v32 = vunpack.i.h.s16 %v5659_v8  ;;  %v767_v35 = vcombine.low %v5666_v14, %v5674_v21  ;;  %v598_v39 = vunpack.i.h.s16 %v5677_v23 }
  0x27   : > { %v748_v38 = vrot.slane %v720_v22, %v5583_v20  ;;  %v5175_v40 = vpack.i.b16 %v5659_v8, %v584_v25  ;;  %v5177_v41 = vpack.i.b16 %v5677_v23, %v5669_v15  ;;  %v757_v44 = vrot.slane %v749_v31, %v5583_v20 }
  0x28   : > { %v716_v42 = vcombine.low %v708_v58, %v715_v26  ;;  %v5176_v45 = vpack.i.b16 %v5637_v57, %v586_v32  ;;  %v5188_v46 = vcombine.high %v5666_v14, %v5674_v21  ;;  %v5178_v50 = vpack.i.b16 %v5680_v24, %v598_v39  ;;  %v5164_v58 = vld.sshfl [vmem:[%s5569_s6 + $0x34] sm:$0x1 pattern:$0x75316420] }
  0x29   : > { %v750_v49 = vcombine.low %v741_v19, %v748_v38  ;;  %v783_v52 = vrot.slane %v767_v35, %v5583_v20  ;;  %v460_v54 = vcombine.high %v5677_v23, %v5677_v23  ;;  %v461_v61 = vcombine.high %v5680_v24, %v5680_v24  ;;  %v5487_v35 = vld [vmem:[%s7069_s1 + $0x50] sm:$0xff]  }
  0x2a   : > { %5360 = vmatmul.mubr.msk.bf16.vlgmr.msra.gmra.mrb[0].mxu0 %vm912_vm1, %v716_v42  ;;  %5388 = vmatmul.mubr.msk.bf16.vlgmr.msra.gmra.mrb[0].mxu1 %vm912_vm1, %v716_v42  ;;  %v766_v55 = vcombine.low %v5175_v40, %v5176_v45  ;;  %v790_v56 = vrot.slane %v5188_v46, %v5583_v20  ;;  %v600_v62 = vunpack.i.h.s16 %v5680_v24  ;;  %v769_v3 = vcombine.low %v5177_v41, %v5178_v50  ;;  %v5166_v46 = vld.sshfl [vmem:[%s5569_s6 + $0x3c] sm:$0x1 pattern:$0x75316420] }
  0x2b   : > { %5408 = vmatpush3.bf16.msra.mxu0 %v5483_v36  ;;  %5436 = vmatpush3.bf16.msra.mxu1 %v5484_v37  ;;  %v764_v63 = vrot.slane %v750_v49, %v5583_v20  ;;  %v5724_v5 = vrot.slane %v5162_v47, %v5583_v20  ;;  %v602_v6 = vunpack.i.h.s16 %v460_v54  ;;  %v483_v9 = vcombine.high %v5163_v53, %v5163_v53  ;;  %v5488_v36 = vld [vmem:[%s7069_s1 + $0x70] sm:$0xff]  }
  0x2c   : > { %5363 = vmatprep.mubr.msk.bf16.mxu0 %vm5500_vm0, %v5499_v1  ;;  %5391 = vmatprep.mubr.msk.bf16.mxu1 %vm5500_vm0, %v5499_v1  ;;  %v776_v7 = vrot.slane %v766_v55, %v5583_v20  ;;  %v5732_v10 = vrot.slane %v5163_v53, %v5583_v20  ;;  %v604_v11 = vunpack.i.h.s16 %v461_v61  ;;  %v797_v13 = vrot.slane %v769_v3, %v5583_v20 }
  0x2d   : > { %v765_v12 = vcombine.low %v757_v44, %v764_v63  ;;  %5409 = vmatprep.subr.bf16.mxu0 %v5499_v1  ;;  %5437 = vmatprep.subr.bf16.mxu1 %v5499_v1  ;;  %v5738_v16 = vrot.slane %v5164_v58, %v5583_v20  ;;  %v5741_v18 = vrot.slane %v483_v9, %v5583_v20  ;;  %v2583_v39 = vunpack.i.h.s16 %v5602_v30 }
  0x2e   : > { %v798_v17 = vcombine.low %v776_v7, %v783_v52  ;;  %v5745_v19 = vcombine.high %v5732_v10, %v5732_v10  ;;  %v5748_v22 = vrot.slane %v5165_v4, %v5583_v20  ;;  %v799_v25 = vcombine.low %v790_v56, %v797_v13 }
  0x2f   : > { %5410 = vmatpush3.bf16.msra.mxu0 %v5485_v0  ;;  %5438 = vmatpush3.bf16.msra.mxu1 %v5486_v2  ;;  %v5179_v26 = vpack.i.b16 %v460_v54, %v600_v62  ;;  %v5180_v31 = vpack.i.b16 %v461_v61, %v602_v6  ;;  %v5761_v37 = vcombine.high %v5741_v18, %v5741_v18  ;;  %v2585_v54 = vunpack.i.h.s16 %v5605_v33  ;;  %v5489_v61 = vld [vmem:[%s7069_s1 + $0x58] sm:$0xff]  }
  0x30   : > { %v806_v32 = vrot.slane %v798_v17, %v5583_v20  ;;  %5411 = vmatprep.subr.bf16.mxu0 %v5499_v1  ;;  %5439 = vmatprep.subr.bf16.mxu1 %v5499_v1  ;;  %v5181_v38 = vpack.i.b16 %v5724_v5, %v604_v11  ;;  %v813_v40 = vrot.slane %v799_v25, %v5583_v20  ;;  %v616_v50 = vunpack.i.h.s16 %v5748_v22  ;;  %v5490_v62 = vld [vmem:[%s7069_s1 + $0x78] sm:$0xff]  }
  0x31   : > { %v5182_v41 = vpack.i.b16 %v5748_v22, %v5738_v16  ;;  %v815_v42 = vcombine.low %v5179_v26, %v5180_v31  ;;  %v817_v44 = vcombine.low %v5741_v18, %v5745_v19  ;;  %v521_v47 = vcombine.high %v5165_v4, %v5165_v4 }
  0x32   : > { %5364 = vmatmul.mubr.msk.bf16.gmra.mrb[4].mxu0 %vm912_vm1, %v765_v12  ;;  %5392 = vmatmul.mubr.msk.bf16.gmra.mrb[4].mxu1 %vm912_vm1, %v765_v12  ;;  %v816_v45 = vcombine.low %v5181_v38, %v5732_v10  ;;  %v5776_v49 = vcombine.high %v5748_v22, %v5748_v22  ;;  %v2587_v55 = vunpack.i.h.s16 %v5622_v43  ;;  %v814_v2 = vcombine.low %v806_v32, %v813_v40 }
  0x33   : > { %5367 = vmatprep.mubr.msk.bf16.mxu0 %vm5500_vm0, %v5499_v1  ;;  %5395 = vmatprep.mubr.msk.bf16.mxu1 %vm5500_vm0, %v5499_v1  ;;  %v818_v52 = vcombine.low %v5761_v37, %v5182_v41  ;;  %v825_v53 = vrot.slane %v815_v42, %v5583_v20  ;;  %v839_v58 = vrot.slane %v817_v44, %v5583_v20  ;;  %v2589_v42 = vunpack.i.h.s16 %v5628_v48 }
  0x34   : > { %5412 = vmatpush3.bf16.msra.mxu0 %v5487_v35  ;;  %5440 = vmatpush3.bf16.msra.mxu1 %v5488_v36  ;;  %v832_v56 = vrot.slane %v816_v45, %v5583_v20  ;;  %v5796_v63 = vrot.slane %v521_v47, %v5583_v20  ;;  %v620_v0 = vunpack.i.h.s16 %v5776_v49  ;;  %v5803_v4 = vrot.slane %v5166_v46, %v5583_v20 }
  0x35   : > { %v846_v3 = vrot.slane %v818_v52, %v5583_v20  ;;  %5413 = vmatprep.subr.bf16.mxu0 %v5499_v1  ;;  %5441 = vmatprep.subr.bf16.mxu1 %v5499_v1  ;;  %v5239_v13 = vpack.i.b16 %v5602_v30, %v5599_v29  ;;  %v5240_v17 = vpack.i.b16 %v5605_v33, %v2583_v39  ;;  %v2601_v44 = vunpack.i.h.s16 %v5666_v14 }
  0x36   : > { %v847_v6 = vcombine.low %v825_v53, %v832_v56  ;;  %v5807_v7 = vcombine.high %v5796_v63, %v5796_v63  ;;  %v618_v9 = vunpack.i.h.s16 %v5796_v63  ;;  %v5183_v11 = vpack.i.b16 %v5796_v63, %v616_v50 }
  0x37   : > { %v848_v12 = vcombine.low %v839_v58, %v846_v3  ;;  %v5241_v25 = vpack.i.b16 %v5622_v43, %v2585_v54  ;;  %v5242_v35 = vpack.i.b16 %v5628_v48, %v2587_v55  ;;  %v2690_v43 = vcombine.low %v5593_v27, %v5596_v28 }
  0x38   : > { %5414 = vmatpush3.bf16.msra.mxu0 %v5489_v61  ;;  %5442 = vmatpush3.bf16.msra.mxu1 %v5490_v62  ;;  %v622_v26 = vunpack.i.h.s16 %v5807_v7  ;;  %v5184_v31 = vpack.i.b16 %v5776_v49, %v618_v9  ;;  %v5185_v32 = vpack.i.b16 %v5807_v7, %v620_v0  ;;  %v855_v36 = vrot.slane %v847_v6, %v5583_v20 }
  0x39   : > { %v862_v29 = vrot.slane %v848_v12, %v5583_v20  ;;  %v5259_v39 = vcombine.high %v5593_v27, %v5596_v28  ;;  %v2692_v40 = vcombine.low %v5239_v13, %v5240_v17  ;;  %v2693_v41 = vcombine.low %v5241_v25, %v5242_v35 }
  0x3a   : > { %5368 = vmatmul.mubr.msk.bf16.gmra.mrb[8].mxu0 %vm912_vm1, %v814_v2  ;;  %5396 = vmatmul.mubr.msk.bf16.gmra.mrb[8].mxu1 %vm912_vm1, %v814_v2  ;;  %v5186_v30 = vpack.i.b16 %v5803_v4, %v622_v26  ;;  %v864_v33 = vcombine.low %v5183_v11, %v5184_v31  ;;  %v2603_v45 = vunpack.i.h.s16 %v5674_v21  ;;  %v2405_v52 = vcombine.high %v5666_v14, %v5666_v14 }
  0x3b   : > { %5371 = vmatprep.mubr.msk.bf16.mxu0 %vm5500_vm0, %v5499_v1  ;;  %5399 = vmatprep.mubr.msk.bf16.mxu1 %vm5500_vm0, %v5499_v1  ;;  %v863_v46 = vcombine.low %v855_v36, %v862_v29  ;;  %v2700_v53 = vrot.slane %v2690_v43, %v5583_v20  ;;  %v2707_v27 = vrot.slane %v5259_v39, %v5583_v20  ;;  %v2619_v3 = vunpack.i.h.s16 %v5732_v10 }
  0x3c   : > { %v865_v38 = vcombine.low %v5185_v32, %v5186_v30  ;;  %v872_v47 = vrot.slane %v864_v33, %v5583_v20  ;;  %v2714_v28 = vrot.slane %v2692_v40, %v5583_v20  ;;  %v2721_v48 = vrot.slane %v2693_v41, %v5583_v20  ;;  %v5229_v32 = vld.sshfl [vmem:[%s5569_s6 + $0x40] sm:$0x33 pattern:$0x75316420] }
  0x3d   : > { %v5243_v54 = vpack.i.b16 %v5608_v34, %v2589_v42  ;;  %v5244_v55 = vpack.i.b16 %v5666_v14, %v5637_v57  ;;  %v2406_v56 = vcombine.high %v5674_v21, %v5674_v21  ;;  %v5245_v61 = vpack.i.b16 %v5674_v21, %v2601_v44 }
  0x3e   : > { %v879_v50 = vrot.slane %v865_v38, %v5583_v20  ;;  %v5246_v62 = vpack.i.b16 %v2405_v52, %v2603_v45  ;;  %v2722_v34 = vcombine.low %v2700_v53, %v2707_v27  ;;  %v2723_v0 = vcombine.low %v2714_v28, %v2721_v48 }
  0x3f   : > { %v2740_v57 = vcombine.low %v5641_v59, %v5645_v60  ;;  %v2605_v14 = vunpack.i.h.s16 %v2405_v52  ;;  %v2607_v2 = vunpack.i.h.s16 %v2406_v56  ;;  %v2739_v21 = vcombine.low %v5243_v54, %v5631_v51 }
  0x40   : > { %v880_v58 = vcombine.low %v872_v47, %v879_v50  ;;  %v2741_v9 = vcombine.low %v5659_v8, %v5244_v55  ;;  %v2742_v11 = vcombine.low %v5245_v61, %v5246_v62  ;;  %v2730_v12 = vrot.slane %v2722_v34, %v5583_v20  ;;  %v5230_v55 = vld.sshfl [vmem:[%s5569_s6 + $0x44] sm:$0x1 pattern:$0x75316420] }
  0x41   : > { %v2737_v13 = vrot.slane %v2723_v0, %v5583_v20  ;;  %v2756_v17 = vrot.slane %v2740_v57, %v5583_v20  ;;  %v5247_v25 = vpack.i.b16 %v2406_v56, %v2605_v14  ;;  %v5248_v59 = vpack.i.b16 %v5669_v15, %v2607_v2 }
  0x42   : > { %5372 = vmatmul.mubr.msk.bf16.gmra.mrb[12].mxu0 %vm912_vm1, %v863_v46  ;;  %5400 = vmatmul.mubr.msk.bf16.gmra.mrb[12].mxu1 %vm912_vm1, %v863_v46  ;;  %v887_v6 = vrot.slane %v880_v58, %v5583_v20  ;;  %v5249_v60 = vpack.i.b16 %v5732_v10, %v5724_v5  ;;  %v5250_v26 = vpack.i.b16 %v5741_v18, %v2619_v3  ;;  %v2621_v10 = vunpack.i.h.s16 %v5741_v18 }
  0x43   : > { %5375 = vmatprep.mubr.msk.bf16.mxu0 %vm5500_vm0, %v5499_v1  ;;  %5403 = vmatprep.mubr.msk.bf16.mxu1 %vm5500_vm0, %v5499_v1  ;;  %v2749_v51 = vrot.slane %v2739_v21, %v5583_v20  ;;  %v2763_v8 = vrot.slane %v2741_v9, %v5583_v20  ;;  %v2770_v31 = vrot.slane %v2742_v11, %v5583_v20  ;;  %v2623_v35 = vunpack.i.h.s16 %v5745_v19 }
  0x44   : > { %v2789_v15 = vcombine.low %v5677_v23, %v5680_v24  ;;  %v5260_v5 = vcombine.high %v5677_v23, %v5680_v24  ;;  %v2788_v36 = vcombine.low %v5247_v25, %v5248_v59  ;;  %v2791_v29 = vcombine.low %v5249_v60, %v5250_v26 }
  0x45   : > { %v2549_v30 = vrot.slane %v5229_v32, %v5583_v20  ;;  %v2625_v33 = vunpack.i.h.s16 %v5761_v37  ;;  %v2738_v43 = vcombine.low %v2730_v12, %v2737_v13  ;;  %v2771_v38 = vcombine.low %v2749_v51, %v2756_v17 }
  0x46   : > { %v2772_v39 = vcombine.low %v2763_v8, %v2770_v31  ;;  %v2542_v40 = vcombine.high %v5229_v32, %v5229_v32  ;;  %v2805_v41 = vrot.slane %v2789_v15, %v5583_v20  ;;  %v2812_v42 = vrot.slane %v5260_v5, %v5583_v20  ;;  %v5287_v31 = vld [vmem:[%s7070_s2] ss:$0 sm:$0xff] }
  0x47   : > { %v5251_v23 = vpack.i.b16 %v5745_v19, %v2621_v10  ;;  %v5252_v24 = vpack.i.b16 %v5761_v37, %v2623_v35  ;;  %v2798_v18 = vrot.slane %v2788_v36, %v5583_v20  ;;  %v2819_v44 = vrot.slane %v2791_v29, %v5583_v20  ;;  %v5288_v32 = vld [vmem:[%s7071_s3] ss:$0 sm:$0xff] }
  0x48   : > { %v5253_v45 = vpack.i.b16 %v5738_v16, %v2625_v33  ;;  %v5254_v46 = vpack.i.b16 %v2549_v30, %v5803_v4  ;;  %v2779_v47 = vrot.slane %v2771_v38, %v5583_v20  ;;  %v2786_v50 = vrot.slane %v2772_v39, %v5583_v20 }
  0x49   : > { %v2556_v19 = vrot.slane %v2542_v40, %v5583_v20  ;;  %v2837_v16 = vcombine.low %v5251_v23, %v5252_v24  ;;  %v2839_v37 = vcombine.low %v5796_v63, %v5776_v49  ;;  %v2820_v4 = vcombine.low %v2798_v18, %v2805_v41 }
  0x4a   : > { %5376 = vmatmul.mubr.msk.bf16.gmra.mrb[16].mxu0 %vm912_vm1, %v887_v6  ;;  %5404 = vmatmul.mubr.msk.bf16.gmra.mrb[16].mxu1 %vm912_vm1, %v887_v6  ;;  %v2821_v52 = vcombine.low %v2812_v42, %v2819_v44  ;;  %v2838_v53 = vcombine.low %v5253_v45, %v5748_v22  ;;  %v2840_v27 = vcombine.low %v5807_v7, %v5254_v46  ;;  %v2637_v61 = vunpack.i.h.s16 %v2549_v30 }
  0x4b   : > { %5415 = vmatprep.mubr.msk.bf16.mxu0 %vm5500_vm0, %v5499_v1  ;;  %5443 = vmatprep.mubr.msk.bf16.mxu1 %vm5500_vm0, %v5499_v1  ;;  %v2787_v28 = vcombine.low %v2779_v47, %v2786_v50  ;;  %v2557_v48 = vcombine.high %v2549_v30, %v2549_v30  ;;  %v2558_v54 = vcombine.high %v2556_v19, %v2556_v19  ;;  %v2639_v7 = vunpack.i.h.s16 %v2556_v19 }
  0x4c   : > { %v2847_v56 = vrot.slane %v2837_v16, %v5583_v20  ;;  %v2861_v58 = vrot.slane %v2839_v37, %v5583_v20  ;;  %v2828_v62 = vrot.slane %v2820_v4, %v5583_v20  ;;  %v2835_v34 = vrot.slane %v2821_v52, %v5583_v20 }
  0x4d   : > { %v2854_v49 = vrot.slane %v2838_v53, %v5583_v20  ;;  %v2868_v63 = vrot.slane %v2840_v27, %v5583_v20  ;;  %v2572_v22 = vrot.slane %v5230_v55, %v5583_v20  ;;  %v2641_v0 = vunpack.i.h.s16 %v2557_v48 }
  0x4e   : > { %v2643_v57 = vunpack.i.h.s16 %v2558_v54  ;;  %v2836_v14 = vcombine.low %v2828_v62, %v2835_v34  ;;  %v5255_v6 = vpack.i.b16 %v2556_v19, %v2637_v61  ;;  %v5256_v21 = vpack.i.b16 %v2557_v48, %v2639_v7 }
  0x4f   : > { %v2869_v2 = vcombine.low %v2847_v56, %v2854_v49  ;;  %v2870_v3 = vcombine.low %v2861_v58, %v2868_v63  ;;  %v5257_v9 = vpack.i.b16 %v2558_v54, %v2641_v0  ;;  %v4280_v15 = vcombine.high %v5287_v31, %v5287_v31 }
  0x50   : > { %v5258_v11 = vpack.i.b16 %v2572_v22, %v2643_v57  ;;  %v2886_v17 = vcombine.low %v5255_v6, %v5256_v21  ;;  %v4407_v5 = vcombine.high %v5288_v32, %v5288_v32  ;;  %v4287_v10 = vrot.slane %v5287_v31, %v5583_v20 }
  0x51   : > { %v2884_v12 = vrot.slane %v2870_v3, %v5583_v20  ;;  %v2877_v13 = vrot.slane %v2869_v2, %v5583_v20  ;;  %v4414_v35 = vrot.slane %v5288_v32, %v5583_v20 }
  0x52   : > { %5416 = vmatmul.mubr.msk.bf16.vlgmr.msra.gmra.mrb[20].mxu0 %vm912_vm1, %v2738_v43  ;;  %5444 = vmatmul.mubr.msk.bf16.vlgmr.msra.gmra.mrb[20].mxu1 %vm912_vm1, %v2738_v43  ;;  %v2887_v25 = vcombine.low %v5257_v9, %v5258_v11  ;;  %v2894_v60 = vrot.slane %v2886_v17, %v5583_v20  ;;  %v4421_v36 = vrot.slane %v4407_v5, %v5583_v20 }
  0x53   : > { %5419 = vmatprep.mubr.msk.bf16.mxu0 %vm5500_vm0, %v5499_v1  ;;  %5447 = vmatprep.mubr.msk.bf16.mxu1 %vm5500_vm0, %v5499_v1  ;;  %v2885_v59 = vcombine.low %v2877_v13, %v2884_v12  ;;  %v4295_v29 = vcombine.high %v4287_v10, %v4287_v10  ;;  %v4422_v33 = vcombine.high %v4414_v35, %v4414_v35 }
  0x54   : > { %v2901_v26 = vrot.slane %v2887_v25, %v5583_v20  ;;  %v4423_v43 = vcombine.high %v4421_v36, %v4421_v36  ;;  %v5951_v38 = vrot.slane %v4287_v10, %v5583_v20  ;;  %v5960_v41 = vrot.slane %v4414_v35, %v5583_v20 }
  0x55   : > { %v5957_v40 = vrot.slane %v4295_v29, %v5583_v20  ;;  %v5966_v23 = vrot.slane %v4421_v36, %v5583_v20  ;;  %v5969_v24 = vrot.slane %v4422_v33, %v5583_v20 }
  0x56   : > { %v2902_v51 = vcombine.low %v2894_v60, %v2901_v26  ;;  %v5972_v18 = vrot.slane %v4423_v43, %v5583_v20  ;;  %v5976_v46 = vcombine.high %v5951_v38, %v5951_v38  ;;  %v5988_v19 = vcombine.high %v5960_v41, %v5960_v41 }
  0x57   : > { %v5984_v50 = vcombine.high %v5957_v40, %v5957_v40  ;;  %v5994_v54 = vcombine.high %v5969_v24, %v5969_v24  ;;  %v6002_v56 = vcombine.high %v5966_v23, %v5966_v23 }
  0x58   : > { %v2909_v8 = vrot.slane %v2902_v51, %v5583_v20  ;;  %v6006_v58 = vcombine.high %v5972_v18, %v5972_v18 }
  0x5a   : > { %5420 = vmatmul.mubr.msk.bf16.gmra.mrb[24].mxu0 %vm912_vm1, %v2787_v28  ;;  %5448 = vmatmul.mubr.msk.bf16.gmra.mrb[24].mxu1 %vm912_vm1, %v2787_v28  ;;  %7121 = vst [vmem:[#allocation3_spill] sm:$0xff] %v6006_v58 }
  0x5b   : > { %5423 = vmatprep.mubr.msk.bf16.mxu0 %vm5500_vm0, %v5499_v1  ;;  %5451 = vmatprep.mubr.msk.bf16.mxu1 %vm5500_vm0, %v5499_v1 }
  0x62   : > { %5424 = vmatmul.mubr.msk.bf16.gmra.mrb[28].mxu0 %vm912_vm1, %v2836_v14  ;;  %5452 = vmatmul.mubr.msk.bf16.gmra.mrb[28].mxu1 %vm912_vm1, %v2836_v14 }
  0x63   : > { %5427 = vmatprep.mubr.msk.bf16.mxu0 %vm5500_vm0, %v5499_v1  ;;  %5455 = vmatprep.mubr.msk.bf16.mxu1 %vm5500_vm0, %v5499_v1 }
  0x6a   : > { %5428 = vmatmul.mubr.msk.bf16.gmra.mrb[32].mxu0 %vm912_vm1, %v2885_v59  ;;  %5456 = vmatmul.mubr.msk.bf16.gmra.mrb[32].mxu1 %vm912_vm1, %v2885_v59 }
  0x6b   : > { %5431 = vmatprep.mubr.msk.bf16.mxu0 %vm5500_vm0, %v5499_v1  ;;  %5459 = vmatprep.mubr.msk.bf16.mxu1 %vm5500_vm0, %v5499_v1  ;;  %v4294_v1 = vrot.slane %v4280_v15, %v5583_v20 }
  0x6d   : > { %v4296_v30 = vcombine.high %v4294_v1, %v4294_v1  ;;  %v5954_v39 = vrot.slane %v4294_v1, %v5583_v20 }
  0x6f   : > { %v5963_v42 = vrot.slane %v4296_v30, %v5583_v20  ;;  %v5980_v47 = vcombine.high %v5954_v39, %v5954_v39 }
  0x71   : > { %v5998_v55 = vcombine.high %v5963_v42, %v5963_v42 }
  0x72   : > { %5432 = vmatmul.mubr.msk.bf16.gmra.mrb[36].mxu0 %vm912_vm1, %v2909_v8  ;;  %5460 = vmatmul.mubr.msk.bf16.gmra.mrb[36].mxu1 %vm912_vm1, %v2909_v8 }
  0x73   : > { %7120 = vst [vmem:[#allocation2_spill] sm:$0xff] %v5998_v55 }
  0xfd   : > { %v962_v44 = vpop.f32.mrb[0].mxu0  ;;  %v1641_v45 = vpop.f32.mrb[0].mxu1 }
  0xfe   : > { %v1009_v16 = vcombine.high %v962_v44, %v962_v44  ;;  %v1016_v37 = vrot.slane %v962_v44, %v5583_v20  ;;  %v1688_v4 = vcombine.high %v1641_v45, %v1641_v45  ;;  %v1695_v52 = vrot.slane %v1641_v45, %v5583_v20  ;;  %v5361_v53 = vpop.f32.mrb[1].mxu0  ;;  %v5389_v27 = vpop.f32.mrb[1].mxu1 }
  0xff   : > { %v965_v28 = vpop.f32.mrb[2].mxu0  ;;  %v1644_v48 = vpop.f32.mrb[2].mxu1 }
 0x100   : > { %v1023_v61 = vrot.slane %v1009_v16, %v5583_v20  ;;  %v1024_v62 = vcombine.high %v1016_v37, %v1016_v37  ;;  %v6010_v34 = vrot.slane %v1016_v37, %v5583_v20  ;;  %v1702_v49 = vrot.slane %v1688_v4, %v5583_v20  ;;  %v5362_v63 = vpop.f32.mrb[3].mxu0  ;;  %v5390_v22 = vpop.f32.mrb[3].mxu1 }
 0x101   : > { %v1703_v7 = vcombine.high %v1695_v52, %v1695_v52  ;;  %v1711_v0 = vrot.slane %v1695_v52, %v5583_v20  ;;  %v1058_v57 = vcombine.high %v965_v28, %v965_v28  ;;  %v1065_v14 = vrot.slane %v965_v28, %v5583_v20 }
 0x102   : > { %v1025_v2 = vcombine.high %v1023_v61, %v1023_v61  ;;  %v6016_v3 = vrot.slane %v1023_v61, %v5583_v20  ;;  %v1046_v6 = vrot.slane %v1024_v62, %v5583_v20  ;;  %v1704_v9 = vcombine.high %v1702_v49, %v1702_v49 }
 0x103   : > { %v1718_v11 = vrot.slane %v1702_v49, %v5583_v20  ;;  %v6023_v12 = vrot.slane %v1703_v7, %v5583_v20  ;;  %v1733_v13 = vcombine.high %v1711_v0, %v1711_v0  ;;  %v1072_v60 = vrot.slane %v1058_v57, %v5583_v20 }
 0x104   : > { %v1053_v17 = vrot.slane %v1025_v2, %v5583_v20  ;;  %v1056_v59 = vcombine.high %v1046_v6, %v1046_v6  ;;  %v6030_v26 = vrot.slane %v1704_v9, %v5583_v20  ;;  %v1073_v10 = vcombine.high %v1065_v14, %v1065_v14 }
 0x105   : > { %v1734_v51 = vcombine.high %v1718_v11, %v1718_v11  ;;  %v6034_v31 = vadd.f32 %v1733_v13, %v1046_v6  ;;  %v970_v32 = vpop.f32.mrb[4].mxu0  ;;  %v1649_v15 = vpop.f32.mrb[4].mxu1  ;;  %v1074_v1 = vcombine.high %v1072_v60, %v1072_v60  ;;  %v6039_v35 = vrot.slane %v1065_v14, %v5583_v20 }
 0x106   : > { %v6036_v5 = vadd.f32 %v1718_v11, %v1056_v59  ;;  %v5365_v36 = vpop.f32.mrb[5].mxu0  ;;  %v5393_v29 = vpop.f32.mrb[5].mxu1  ;;  %v6046_v43 = vrot.slane %v1072_v60, %v5583_v20  ;;  %v1057_v44 = vcombine.high %v1053_v17, %v1053_v17  ;;  %v1095_v37 = vrot.slane %v1073_v10, %v5583_v20 }
 0x107   : > { %v6043_v33 = vadd.f32 %v1734_v51, %v1053_v17  ;;  %v973_v45 = vpop.f32.mrb[6].mxu0  ;;  %v6048_v16 = vpop.f32.mrb[6].mxu1  ;;  %v1102_v4 = vrot.slane %v1074_v1, %v5583_v20  ;;  %v1737_v53 = vcombine.high %v1644_v48, %v1644_v48  ;;  %v1744_v62 = vrot.slane %v1644_v48, %v5583_v20 }
 0x108   : > { %v5366_v27 = vpop.f32.mrb[7].mxu0  ;;  %v5394_v28 = vpop.f32.mrb[7].mxu1  ;;  %v1107_v49 = vcombine.high %v970_v32, %v970_v32  ;;  %v1114_v63 = vrot.slane %v970_v32, %v5583_v20  ;;  %v1105_v22 = vcombine.high %v1095_v37, %v1095_v37  ;;  %v1786_v57 = vcombine.high %v1649_v15, %v1649_v15 }
 0x109   : > { %v1751_v7 = vrot.slane %v1737_v53, %v5583_v20  ;;  %v1106_v0 = vcombine.high %v1102_v4, %v1102_v4  ;;  %v1752_v14 = vcombine.high %v1744_v62, %v1744_v62  ;;  %v1760_v2 = vrot.slane %v1744_v62, %v5583_v20 }
 0x10a   : > { %v1121_v6 = vrot.slane %v1107_v49, %v5583_v20  ;;  %v1122_v9 = vcombine.high %v1114_v63, %v1114_v63  ;;  %v6063_v17 = vrot.slane %v1114_v63, %v5583_v20  ;;  %v1793_v48 = vrot.slane %v1649_v15, %v5583_v20 }
 0x10b   : > { %v1753_v11 = vcombine.high %v1751_v7, %v1751_v7  ;;  %v1767_v13 = vrot.slane %v1751_v7, %v5583_v20  ;;  %v6067_v59 = vrot.slane %v1752_v14, %v5583_v20  ;;  %v1782_v60 = vcombine.high %v1760_v2, %v1760_v2 }
 0x10c   : > { %v6069_v51 = vadd.f32 %v1760_v2, %v1057_v44  ;;  %v1123_v32 = vcombine.high %v1121_v6, %v1121_v6  ;;  %v6081_v27 = vrot.slane %v1121_v6, %v5583_v20  ;;  %v1144_v49 = vrot.slane %v1122_v9, %v5583_v20 }
 0x10d   : > { %v6071_v10 = vpop.f32.mrb[8].mxu0  ;;  %v6073_v1 = vpop.f32.mrb[8].mxu1  ;;  %v6076_v36 = vrot.slane %v1753_v11, %v5583_v20  ;;  %v1783_v29 = vcombine.high %v1767_v13, %v1767_v13  ;;  %v6078_v53 = vadd.f32 %v1767_v13, %v1105_v22  ;;  %v6085_v62 = vadd.f32 %v1782_v60, %v1095_v37 }
 0x10e   : > { %7122 = vst [vmem:[#allocation4_spill] sm:$0xff] %v6069_v51  ;;  %7123 = vst [vmem:[#allocation5_spill] sm:$0xff] %v6081_v27  ;;  %v5369_v15 = vpop.f32.mrb[9].mxu0  ;;  %v5397_v28 = vpop.f32.mrb[9].mxu1  ;;  %v1151_v63 = vrot.slane %v1123_v32, %v5583_v20  ;;  %v1154_v9 = vcombine.high %v1144_v49, %v1144_v49  ;;  %v1800_v60 = vrot.slane %v1786_v57, %v5583_v20 }
 0x10f   : > { %v6089_v7 = vpop.f32.mrb[10].mxu0  ;;  %v6091_v14 = vpop.f32.mrb[10].mxu1  ;;  %v6095_v2 = vadd.f32 %v1783_v29, %v1102_v4  ;;  %v1801_v32 = vcombine.high %v1793_v48, %v1793_v48  ;;  %v1809_v15 = vrot.slane %v1793_v48, %v5583_v20  ;;  %v1156_v28 = vcombine.high %v973_v45, %v973_v45 }
 0x110   : > { %v5370_v11 = vpop.f32.mrb[11].mxu0  ;;  %v5398_v13 = vpop.f32.mrb[11].mxu1  ;;  %v6104_v61 = vrot.slane %v973_v45, %v5583_v20  ;;  %v1155_v4 = vcombine.high %v1151_v63, %v1151_v63  ;;  %v1834_v29 = vcombine.high %v6048_v16, %v6048_v16  ;;  %v1802_v6 = vcombine.high %v1800_v60, %v1800_v60 }
 0x111   : > { %v1816_v22 = vrot.slane %v1800_v60, %v5583_v20  ;;  %v6110_v11 = vrot.slane %v1801_v32, %v5583_v20  ;;  %v6112_v49 = vadd.f32 %v1809_v15, %v1106_v0  ;;  %v1170_v57 = vrot.slane %v1156_v28, %v5583_v20 }
 0x112   : > { %7124 = vst [vmem:[#allocation6_spill] sm:$0xff] %v6104_v61  ;;  %v1171_v48 = vcombine.high %v6104_v61, %v6104_v61  ;;  %v1841_v13 = vrot.slane %v6048_v16, %v5583_v20  ;;  %v6122_v37 = vrot.slane %v1802_v6, %v5583_v20  ;;  %v1848_v16 = vrot.slane %v1834_v29, %v5583_v20 }
 0x113   : > { %7125 = vst [vmem:[#allocation7_spill] sm:$0xff] %v6112_v49  ;;  %v1831_v60 = vcombine.high %v1816_v22, %v1816_v22  ;;  %v6126_v0 = vadd.f32 %v1816_v22, %v1154_v9  ;;  %v1172_v44 = vcombine.high %v1170_v57, %v1170_v57  ;;  %v6133_v52 = vrot.slane %v1170_v57, %v5583_v20 }
 0x114   : > { %7126 = vst [vmem:[#allocation8_spill] sm:$0xff] %v6122_v37  ;;  %v1193_v45 = vrot.slane %v1171_v48, %v5583_v20  ;;  %v1849_v22 = vcombine.high %v1841_v13, %v1841_v13  ;;  %v1857_v9 = vrot.slane %v1841_v13, %v5583_v20  ;;  %v1864_v25 = vrot.slane %v1848_v16, %v5583_v20 }
 0x115   : > { %7127 = vst [vmem:[#allocation9_spill] sm:$0xff] %v6126_v0  ;;  %v6128_v15 = vpop.f32.mrb[12].mxu0  ;;  %v6130_v28 = vpop.f32.mrb[12].mxu1  ;;  %7128 = vst [vmem:[#allocation10_spill] sm:$0xff] %v6133_v52  ;;  %v6139_v32 = vadd.f32 %v1831_v60, %v1151_v63  ;;  %v1200_v57 = vrot.slane %v1172_v44, %v5583_v20  ;;  %v1204_v44 = vcombine.high %v6071_v10, %v6071_v10 }
 0x116   : > { %v5373_v6 = vpop.f32.mrb[13].mxu0  ;;  %v5401_v30 = vpop.f32.mrb[13].mxu1  ;;  %v1202_v29 = vcombine.high %v1193_v45, %v1193_v45  ;;  %v6151_v63 = vrot.slane %v1849_v22, %v5583_v20  ;;  %v1879_v60 = vcombine.high %v1857_v9, %v1857_v9  ;;  %v6153_v13 = vadd.f32 %v1857_v9, %v1155_v4 }
 0x117   : > { %7129 = vst [vmem:[#allocation11_spill] sm:$0xff] %v6139_v32  ;;  %v6142_v8 = vpop.f32.mrb[14].mxu0  ;;  %v6144_v21 = vpop.f32.mrb[14].mxu1  ;;  %v1850_v6 = vcombine.high %v1848_v16, %v1848_v16  ;;  %v1211_v48 = vrot.slane %v6071_v10, %v5583_v20  ;;  %v1203_v52 = vcombine.high %v1200_v57, %v1200_v57  ;;  %v1882_v22 = vcombine.high %v6073_v1, %v6073_v1 }
 0x118   : > { %v5374_v30 = vpop.f32.mrb[15].mxu0  ;;  %v5402_v49 = vpop.f32.mrb[15].mxu1  ;;  %7130 = vst [vmem:[#allocation12_spill] sm:$0xff] %v6151_v63  ;;  %7131 = vst [vmem:[#allocation13_spill] sm:$0xff] %v6153_v13  ;;  %v6164_v16 = vadd.f32 %v1864_v25, %v1202_v29  ;;  %v1218_v9 = vrot.slane %v1204_v44, %v5583_v20  ;;  %v1889_v10 = vrot.slane %v6073_v1, %v5583_v20 }
 0x119   : > { %v6156_v61 = vrot.slane %v1850_v6, %v5583_v20  ;;  %v1880_v30 = vcombine.high %v1864_v25, %v1864_v25  ;;  %v6162_v49 = vadd.f32 %v1879_v60, %v1193_v45  ;;  %v1219_v6 = vcombine.high %v1211_v48, %v1211_v48 }
 0x11a   : > { %7134 = vst [vmem:[#allocation16_spill] sm:$0xff] %v6164_v16  ;;  %v6172_v13 = vrot.slane %v1211_v48, %v5583_v20  ;;  %v1896_v25 = vrot.slane %v1882_v22, %v5583_v20  ;;  %v1252_v45 = vcombine.high %v6089_v7, %v6089_v7  ;;  %v1220_v4 = vcombine.high %v1218_v9, %v1218_v9 }
 0x11b   : > { %7132 = vst [vmem:[#allocation14_spill] sm:$0xff] %v6156_v61  ;;  %7133 = vst [vmem:[#allocation15_spill] sm:$0xff] %v6162_v49  ;;  %v6174_v63 = vadd.f32 %v1880_v30, %v1200_v57  ;;  %v6186_v44 = vrot.slane %v1218_v9, %v5583_v20  ;;  %v1241_v48 = vrot.slane %v1219_v6, %v5583_v20 }
 0x11c   : > { %7135 = vst [vmem:[#allocation17_spill] sm:$0xff] %v6172_v13  ;;  %v1897_v16 = vcombine.high %v1889_v10, %v1889_v10  ;;  %v1898_v22 = vcombine.high %v1896_v25, %v1896_v25  ;;  %v1912_v49 = vrot.slane %v1896_v25, %v5583_v20  ;;  %v1248_v0 = vrot.slane %v1220_v4, %v5583_v20 }
 0x11d   : > { %7136 = vst [vmem:[#allocation18_spill] sm:$0xff] %v6174_v63  ;;  %v6181_v29 = vpop.f32.mrb[16].mxu0  ;;  %v6183_v60 = vpop.f32.mrb[16].mxu1  ;;  %7137 = vst [vmem:[#allocation19_spill] sm:$0xff] %v6186_v44  ;;  %v1905_v63 = vrot.slane %v1889_v10, %v5583_v20  ;;  %v1259_v6 = vrot.slane %v6089_v7, %v5583_v20  ;;  %v1266_v57 = vrot.slane %v1252_v45, %v5583_v20 }
 0x11e   : > { %v5377_v30 = vpop.f32.mrb[17].mxu0  ;;  %v5405_v1 = vpop.f32.mrb[17].mxu1  ;;  %v6200_v13 = vrot.slane %v1897_v16, %v5583_v20  ;;  %v6203_v10 = vrot.slane %v1898_v22, %v5583_v20 }
 0x11f   : > { %v997_v61 = vpop.f32.mrb[18].mxu0  ;;  %v1676_v32 = vpop.f32.mrb[18].mxu1  ;;  %v6205_v25 = vadd.f32 %v1905_v63, %v1203_v52  ;;  %v1267_v4 = vcombine.high %v1259_v6, %v1259_v6  ;;  %v1268_v58 = vcombine.high %v1266_v57, %v1266_v57  ;;  %v6208_v9 = vrot.slane %v1259_v6, %v5583_v20 }
 0x120   : > { %v5378_v30 = vpop.f32.mrb[19].mxu0  ;;  %v5406_v1 = vpop.f32.mrb[19].mxu1  ;;  %7138 = vst [vmem:[#allocation20_spill] sm:$0xff] %v6200_v13  ;;  %7139 = vst [vmem:[#allocation21_spill] sm:$0xff] %v6203_v10  ;;  %v1927_v61 = vcombine.high %v1905_v63, %v1905_v63  ;;  %v1928_v32 = vcombine.high %v1912_v49, %v1912_v49  ;;  %v6219_v22 = vrot.slane %v1266_v57, %v5583_v20 }
 0x121   : > { %7140 = vst [vmem:[#allocation22_spill] sm:$0xff] %v6205_v25  ;;  %7141 = vst [vmem:[#allocation23_spill] sm:$0xff] %v6208_v9  ;;  %v1289_v52 = vrot.slane %v1267_v4, %v5583_v20  ;;  %v6223_v63 = vrot.slane %v1268_v58, %v5583_v20  ;;  %v1251_v6 = vcombine.high %v1248_v0, %v1248_v0 }
 0x122   : > { %v6214_v16 = vadd.f32 %v1927_v61, %v1241_v48  ;;  %v6216_v30 = vadd.f32 %v1928_v32, %v1248_v0  ;;  %7144 = vst [vmem:[#allocation26_spill] sm:$0xff] %v6219_v22  ;;  %v1931_v1 = vcombine.high %v6091_v14, %v6091_v14  ;;  %v1938_v48 = vrot.slane %v6091_v14, %v5583_v20 }
 0x123   : > { %v1301_v61 = vcombine.high %v6128_v15, %v6128_v15  ;;  %v1299_v4 = vcombine.high %v1289_v52, %v1289_v52  ;;  %v1308_v0 = vrot.slane %v6128_v15, %v5583_v20  ;;  %v1300_v49 = vcombine.high %v6223_v63, %v6223_v63 }
 0x124   : > { %7142 = vst [vmem:[#allocation24_spill] sm:$0xff] %v6214_v16  ;;  %7143 = vst [vmem:[#allocation25_spill] sm:$0xff] %v6216_v30  ;;  %v1945_v14 = vrot.slane %v1931_v1, %v5583_v20  ;;  %v1946_v9 = vcombine.high %v1938_v48, %v1938_v48  ;;  %v1954_v25 = vrot.slane %v1938_v48, %v5583_v20 }
 0x125   : > { %v6233_v57 = vpop.f32.mrb[20].mxu0  ;;  %v6235_v32 = vpop.f32.mrb[20].mxu1  ;;  %v1315_v30 = vrot.slane %v1301_v61, %v5583_v20  ;;  %v1316_v58 = vcombine.high %v1308_v0, %v1308_v0  ;;  %v6251_v22 = vrot.slane %v1308_v0, %v5583_v20  ;;  %v1980_v15 = vcombine.high %v6130_v28, %v6130_v28 }
 0x126   : > { %v5417_v45 = vpop.f32.mrb[21].mxu0  ;;  %v5445_v7 = vpop.f32.mrb[21].mxu1  ;;  %v1947_v44 = vcombine.high %v1945_v14, %v1945_v14  ;;  %v1961_v48 = vrot.slane %v1945_v14, %v5583_v20  ;;  %v6259_v61 = vrot.slane %v1946_v9, %v5583_v20  ;;  %v1976_v13 = vcombine.high %v1954_v25, %v1954_v25 }
 0x127   : > { %v6246_v16 = vpop.f32.mrb[22].mxu0  ;;  %v6248_v10 = vpop.f32.mrb[22].mxu1  ;;  %7145 = vst [vmem:[#allocation27_spill] sm:$0xff] %v6251_v22  ;;  %v1987_v7 = vrot.slane %v6130_v28, %v5583_v20  ;;  %v6261_v55 = vadd.f32 %v1954_v25, %v1251_v6  ;;  %v1317_v37 = vcombine.high %v1315_v30, %v1315_v30  ;;  %v6264_v0 = vrot.slane %v1315_v30, %v5583_v20 }
 0x128   : > { %v5418_v45 = vpop.f32.mrb[23].mxu0  ;;  %v5446_v1 = vpop.f32.mrb[23].mxu1  ;;  %7146 = vst [vmem:[#allocation28_spill] sm:$0xff] %v6259_v61  ;;  %v1338_v27 = vrot.slane %v1316_v58, %v5583_v20  ;;  %v6268_v51 = vrot.slane %v1947_v44, %v5583_v20  ;;  %v1977_v28 = vcombine.high %v1961_v48, %v1961_v48  ;;  %v6272_v14 = vadd.f32 %v1976_v13, %v1289_v52 }
 0x129   : > { %7147 = vst [vmem:[#allocation29_spill] sm:$0xff] %v6261_v55  ;;  %7148 = vst [vmem:[#allocation30_spill] sm:$0xff] %v6264_v0  ;;  %v6274_v9 = vadd.f32 %v1961_v48, %v1299_v4  ;;  %v1345_v25 = vrot.slane %v1317_v37, %v5583_v20  ;;  %v1994_v13 = vrot.slane %v1980_v15, %v5583_v20 }
 0x12a   : > { %7149 = vst [vmem:[#allocation31_spill] sm:$0xff] %v6268_v51  ;;  %7150 = vst [vmem:[#allocation32_spill] sm:$0xff] %v6272_v14  ;;  %v6284_v58 = vadd.f32 %v1977_v28, %v6223_v63  ;;  %v1348_v1 = vcombine.high %v1338_v27, %v1338_v27  ;;  %v1995_v37 = vcombine.high %v1987_v7, %v1987_v7 }
 0x12b   : > { %7151 = vst [vmem:[#allocation33_spill] sm:$0xff] %v6274_v9  ;;  %v2003_v48 = vrot.slane %v1987_v7, %v5583_v20  ;;  %v1350_v6 = vcombine.high %v6142_v8, %v6142_v8  ;;  %v1357_v30 = vrot.slane %v6142_v8, %v5583_v20  ;;  %v1996_v63 = vcombine.high %v1994_v13, %v1994_v13 }
 0x12c   : > { %7152 = vst [vmem:[#allocation34_spill] sm:$0xff] %v6284_v58  ;;  %v2010_v28 = vrot.slane %v1994_v13, %v5583_v20  ;;  %v1349_v0 = vcombine.high %v1345_v25, %v1345_v25  ;;  %v2028_v15 = vcombine.high %v6144_v21, %v6144_v21  ;;  %v6304_v7 = vrot.slane %v1995_v37, %v5583_v20 }
 0x12d   : > { %v6287_v52 = vpop.f32.mrb[24].mxu0  ;;  %v6289_v4 = vpop.f32.mrb[24].mxu1  ;;  %v2025_v55 = vcombine.high %v2003_v48, %v2003_v48  ;;  %v6306_v58 = vadd.f32 %v2003_v48, %v1300_v49  ;;  %v6309_v8 = vrot.slane %v1350_v6, %v5583_v20  ;;  %v6312_v25 = vrot.slane %v1996_v63, %v5583_v20 }
 0x12e   : > { %v5421_v44 = vpop.f32.mrb[25].mxu0  ;;  %v5449_v45 = vpop.f32.mrb[25].mxu1  ;;  %7153 = vst [vmem:[#allocation35_spill] sm:$0xff] %v6304_v7  ;;  %v6314_v13 = vadd.f32 %v2010_v28, %v1348_v1  ;;  %v1365_v14 = vcombine.high %v1357_v30, %v1357_v30  ;;  %v6317_v51 = vrot.slane %v1357_v30, %v5583_v20  ;;  %v2035_v63 = vrot.slane %v6144_v21, %v5583_v20 }
 0x12f   : > { %v6299_v22 = vpop.f32.mrb[26].mxu0  ;;  %v6301_v9 = vpop.f32.mrb[26].mxu1  ;;  %7154 = vst [vmem:[#allocation36_spill] sm:$0xff] %v6306_v58  ;;  %7155 = vst [vmem:[#allocation37_spill] sm:$0xff] %v6309_v8  ;;  %v6321_v61 = vadd.f32 %v2025_v55, %v1338_v27  ;;  %v1366_v49 = vcombine.high %v6309_v8, %v6309_v8  ;;  %v2042_v27 = vrot.slane %v2028_v15, %v5583_v20 }
 0x130   : > { %v5422_v45 = vpop.f32.mrb[27].mxu0  ;;  %v5450_v44 = vpop.f32.mrb[27].mxu1  ;;  %7156 = vst [vmem:[#allocation38_spill] sm:$0xff] %v6312_v25  ;;  %7157 = vst [vmem:[#allocation39_spill] sm:$0xff] %v6314_v13  ;;  %v1387_v1 = vrot.slane %v1365_v14, %v5583_v20  ;;  %v1398_v28 = vcombine.high %v6181_v29, %v6181_v29  ;;  %v2043_v6 = vcombine.high %v2035_v63, %v2035_v63 }
 0x131   : > { %7158 = vst [vmem:[#allocation40_spill] sm:$0xff] %v6317_v51  ;;  %7159 = vst [vmem:[#allocation41_spill] sm:$0xff] %v6321_v61  ;;  %v1394_v55 = vrot.slane %v1366_v49, %v5583_v20  ;;  %v1405_v45 = vrot.slane %v6181_v29, %v5583_v20  ;;  %v2051_v14 = vrot.slane %v2035_v63, %v5583_v20 }
 0x132   : > { %v1396_v44 = vcombine.high %v1387_v1, %v1387_v1  ;;  %v2076_v30 = vcombine.high %v6183_v60, %v6183_v60  ;;  %v2044_v49 = vcombine.high %v2042_v27, %v2042_v27  ;;  %v2058_v15 = vrot.slane %v2042_v27, %v5583_v20 }
 0x133   : > { %v1412_v37 = vrot.slane %v1398_v28, %v5583_v20  ;;  %v1413_v8 = vcombine.high %v1405_v45, %v1405_v45  ;;  %v6350_v29 = vrot.slane %v2043_v6, %v5583_v20  ;;  %v2073_v13 = vcombine.high %v2051_v14, %v2051_v14 }
 0x134   : > { %v6352_v63 = vadd.f32 %v2051_v14, %v1349_v0  ;;  %v6355_v61 = vrot.slane %v1405_v45, %v5583_v20  ;;  %v6362_v27 = vrot.slane %v2044_v49, %v5583_v20  ;;  %v2074_v28 = vcombine.high %v2058_v15, %v2058_v15 }
 0x135   : > { %v6343_v48 = vpop.f32.mrb[28].mxu0  ;;  %v6345_v21 = vpop.f32.mrb[28].mxu1  ;;  %7161 = vst [vmem:[#allocation43_spill] sm:$0xff] %v6350_v29  ;;  %v6368_v14 = vadd.f32 %v2073_v13, %v1387_v1  ;;  %v6371_v45 = vrot.slane %v1412_v37, %v5583_v20  ;;  %v2083_v13 = vrot.slane %v6183_v60, %v5583_v20  ;;  %v7170_v1 = vcombine.high %v6010_v34, %v6010_v34 }
 0x136   : > { %7160 = vst [vmem:[#allocation42_spill] sm:$0xff] %v6345_v21  ;;  %v5425_v51 = vpop.f32.mrb[29].mxu0  ;;  %v5453_v58 = vpop.f32.mrb[29].mxu1  ;;  %7162 = vst [vmem:[#allocation44_spill] sm:$0xff] %v6352_v63  ;;  %v6364_v21 = vadd.f32 %v2058_v15, %v1396_v44  ;;  %v1435_v63 = vrot.slane %v1413_v8, %v5583_v20  ;;  %v1397_v15 = vcombine.high %v1394_v55, %v1394_v55 }
 0x137   : > { %7163 = vst [vmem:[#allocation45_spill] sm:$0xff] %v6355_v61  ;;  %v6357_v25 = vpop.f32.mrb[30].mxu0  ;;  %v6359_v7 = vpop.f32.mrb[30].mxu1  ;;  %7165 = vst [vmem:[#allocation47_spill] sm:$0xff] %v6362_v27  ;;  %v1414_v51 = vcombine.high %v1412_v37, %v1412_v37  ;;  %v2090_v37 = vrot.slane %v2076_v30, %v5583_v20  ;;  %v2189_v8 = vadd.f32 %v6023_v12, %v6010_v34 }
 0x138   : > { %7164 = vst [vmem:[#allocation46_spill] sm:$0xff] %v6359_v7  ;;  %7166 = vst [vmem:[#allocation48_spill] sm:$0xff] %v6364_v21  ;;  %v5426_v58 = vpop.f32.mrb[31].mxu0  ;;  %v5454_v6 = vpop.f32.mrb[31].mxu1  ;;  %v6374_v7 = vadd.f32 %v2074_v28, %v1394_v55  ;;  %v7171_v28 = vcombine.high %v6023_v12, %v6023_v12  ;;  %v2193_v55 = vadd.f32 %v6030_v26, %v6016_v3 }
 0x139   : > { %7167 = vst [vmem:[#allocation49_spill] sm:$0xff] %v6368_v14  ;;  %7168 = vst [vmem:[#allocation50_spill] sm:$0xff] %v6371_v45  ;;  %v1442_v49 = vrot.slane %v1414_v51, %v5583_v20  ;;  %v1445_v6 = vcombine.high %v1435_v63, %v1435_v63  ;;  %v7172_v58 = vcombine.high %v6016_v3, %v6016_v3 }
 0x13a   : > { %7169 = vst [vmem:[#allocation51_spill] sm:$0xff] %v6374_v7  ;;  %v2191_v51 = vadd.f32 %v7171_v28, %v7170_v1  ;;  %v7173_v60 = vcombine.high %v6030_v26, %v6030_v26  ;;  %v2091_v44 = vcombine.high %v2083_v13, %v2083_v13  ;;  %v2092_v0 = vcombine.high %v2090_v37, %v2090_v37 }
 0x13b   : > { %v2099_v45 = vrot.slane %v2083_v13, %v5583_v20  ;;  %v2106_v34 = vrot.slane %v2090_v37, %v5583_v20  ;;  %v3030_v1 = vcombine.high %v6233_v57, %v6233_v57  ;;  %v3037_v3 = vrot.slane %v6233_v57, %v5583_v20 }
 0x13c   : > { %v2195_v30 = vadd.f32 %v7173_v60, %v7172_v58  ;;  %v3709_v26 = vcombine.high %v6235_v32, %v6235_v32  ;;  %v3716_v58 = vrot.slane %v6235_v32, %v5583_v20  ;;  %v6415_v37 = vrot.slane %v2091_v44, %v5583_v20 }
 0x13d   : > { %v6402_v61 = vpop.f32.mrb[32].mxu0  ;;  %v6404_v12 = vpop.f32.mrb[32].mxu1  ;;  %v6418_v60 = vrot.slane %v2092_v0, %v5583_v20  ;;  %v2121_v21 = vcombine.high %v2099_v45, %v2099_v45  ;;  %v2122_v7 = vcombine.high %v2106_v34, %v2106_v34  ;;  %v6420_v14 = vadd.f32 %v2099_v45, %v1397_v15 }
 0x13e   : > { %7174 = vst [vmem:[#allocation52_spill] sm:$0xff] %v6404_v12  ;;  %v5429_v28 = vpop.f32.mrb[33].mxu0  ;;  %v5457_v13 = vpop.f32.mrb[33].mxu1  ;;  %v6422_v27 = vadd.f32 %v2106_v34, %v1445_v6  ;;  %v3044_v57 = vrot.slane %v3030_v1, %v5583_v20  ;;  %v3045_v29 = vcombine.high %v3037_v3, %v3037_v3  ;;  %v3053_v12 = vrot.slane %v3037_v3, %v5583_v20 }
 0x13f   : > { %7175 = vst [vmem:[#allocation53_spill] sm:$0xff] %v6420_v14  ;;  %v6429_v44 = vadd.f32 %v2121_v21, %v1435_v63  ;;  %v6431_v13 = vadd.f32 %v2122_v7, %v1442_v49  ;;  %v3723_v6 = vrot.slane %v3709_v26, %v5583_v20  ;;  %v3724_v34 = vcombine.high %v3716_v58, %v3716_v58 }
 0x140   : > { %7176 = vst [vmem:[#allocation54_spill] sm:$0xff] %v6422_v27  ;;  %v3046_v0 = vcombine.high %v3044_v57, %v3044_v57  ;;  %v3060_v45 = vrot.slane %v3044_v57, %v5583_v20  ;;  %v3067_v15 = vrot.slane %v3045_v29, %v5583_v20  ;;  %v3732_v1 = vrot.slane %v3716_v58, %v5583_v20 }
 0x141   : > { %7177 = vst [vmem:[#allocation55_spill] sm:$0xff] %v6429_v44  ;;  %7178 = vst [vmem:[#allocation56_spill] sm:$0xff] %v6431_v13  ;;  %v7179_v32 = vcombine.high %v6039_v35, %v6039_v35  ;;  %v7180_v21 = vcombine.high %v6067_v59, %v6067_v59  ;;  %v3075_v49 = vcombine.high %v3053_v12, %v3053_v12 }
 0x142   : > { %v6447_v63 = vrot.slane %v3046_v0, %v5583_v20  ;;  %v3076_v3 = vcombine.high %v3060_v45, %v3060_v45  ;;  %v3077_v57 = vcombine.high %v3067_v15, %v3067_v15  ;;  %v3531_v29 = vadd.f32 %v3053_v12, %v2189_v8 }
 0x143   : > { %v6444_v7 = vadd.f32 %v7180_v21, %v7179_v32  ;;  %v3532_v26 = vadd.f32 %v3067_v15, %v6034_v31  ;;  %v3535_v28 = vadd.f32 %v3060_v45, %v2193_v55  ;;  %v3725_v14 = vcombine.high %v3723_v6, %v3723_v6 }
 0x144   : > { %v3533_v58 = vadd.f32 %v3075_v49, %v2191_v51  ;;  %v3536_v35 = vadd.f32 %v6447_v63, %v6043_v33  ;;  %v3537_v27 = vadd.f32 %v3076_v3, %v2195_v30  ;;  %v3534_v59 = vadd.f32 %v3077_v57, %v6036_v5 }
 0x145   : > { %v3739_v32 = vrot.slane %v3723_v6, %v5583_v20  ;;  %v3746_v0 = vrot.slane %v3724_v34, %v5583_v20  ;;  %v3753_v21 = vrot.slane %v3725_v14, %v5583_v20  ;;  %v3754_v13 = vcombine.high %v3732_v1, %v3732_v1 }
 0x146   : > { %v2200_v8 = vadd.f32 %v6076_v36, %v6046_v43  ;;  %v7181_v31 = vcombine.high %v6046_v43, %v6046_v43  ;;  %v7182_v51 = vcombine.high %v6076_v36, %v6076_v36  ;;  %v3079_v5 = vcombine.high %v6246_v16, %v6246_v16 }
 0x147   : > { %v3086_v55 = vrot.slane %v6246_v16, %v5583_v20  ;;  %v3755_v30 = vcombine.high %v3739_v32, %v3739_v32  ;;  %v3756_v12 = vcombine.high %v3746_v0, %v3746_v0  ;;  %v3757_v14 = vcombine.high %v3753_v21, %v3753_v21 }
 0x148   : > { %v2202_v33 = vadd.f32 %v7182_v51, %v7181_v31  ;;  %v4210_v45 = vadd.f32 %v3746_v0, %v3531_v29  ;;  %v4211_v15 = vadd.f32 %v3754_v13, %v3532_v26  ;;  %v4213_v6 = vadd.f32 %v3739_v32, %v3534_v59 }
 0x149   : > { %v4214_v34 = vadd.f32 %v3753_v21, %v3535_v28  ;;  %v3093_v1 = vrot.slane %v3079_v5, %v5583_v20  ;;  %v4212_v43 = vadd.f32 %v3756_v12, %v3533_v58  ;;  %v4215_v49 = vadd.f32 %v3755_v30, %v3536_v35 }
 0x14a   : > { %v4216_v3 = vadd.f32 %v3757_v14, %v3537_v27  ;;  %v4337_v36 = vmul.f32 %v5951_v38, %v4210_v45  ;;  %v4338_v57 = vmul.f32 %v5957_v40, %v4211_v15  ;;  %v4340_v31 = vmul.f32 %v5984_v50, %v4213_v6 }
 0x14b   : > { %v4341_v16 = vmul.f32 %v5954_v39, %v4214_v34  ;;  %v3094_v51 = vcombine.high %v3086_v55, %v3086_v55  ;;  %v4339_v44 = vmul.f32 %v5976_v46, %v4212_v43  ;;  %v4342_v13 = vmul.f32 %v5963_v42, %v4215_v49  ;;  %v6488_v43 = vpop.f32.mrb[34].mxu0 }
 0x14c   : > { %v4343_v28 = vmul.f32 %v5980_v47, %v4216_v3  ;;  %v4464_v29 = vadd.f32 %v5960_v41, %v4337_v36  ;;  %v4465_v26 = vadd.f32 %v5969_v24, %v4338_v57  ;;  %v4467_v27 = vadd.f32 %v5994_v54, %v4340_v31  ;;  %v5430_v57 = vpop.f32.mrb[35].mxu0 }
 0x14d   : > { %v4468_v58 = vadd.f32 %v5966_v23, %v4341_v16  ;;  %v3095_v35 = vcombine.high %v3093_v1, %v3093_v1  ;;  %v4466_v59 = vadd.f32 %v5988_v19, %v4339_v44  ;;  %v4469_v32 = vadd.f32 %v5972_v18, %v4342_v13  ;;  %v6490_v44 = vpop.f32.mrb[34].mxu1 }
 0x14e   : > { %v4528_v0 = vmax.f32 %v4464_v29, 0.0  ;;  %v3102_v21 = vrot.slane %v3086_v55, %v5583_v20  ;;  %v4529_v5 = vmax.f32 %v4465_v26, 0.0  ;;  %v4531_v30 = vmax.f32 %v4467_v27, 0.0  ;;  %v5458_v31 = vpop.f32.mrb[35].mxu1 }
 0x14f   : > { %v4532_v12 = vmax.f32 %v4468_v58, 0.0  ;;  %v3109_v14 = vrot.slane %v3093_v1, %v5583_v20  ;;  %v4530_v45 = vmax.f32 %v4466_v59, 0.0  ;;  %v4533_v15 = vmax.f32 %v4469_v32, 0.0 }
 0x150   : > { %v3116_v6 = vrot.slane %v3094_v51, %v5583_v20  ;;  %v6486_v34 = vrot.slane %v3095_v35, %v5583_v20  ;;  %v4656_v49 = vcombine.low %v4528_v0, %v4529_v5  ;;  %v3124_v3 = vcombine.high %v3102_v21, %v3102_v21 }
 0x151   : > { %v3125_v36 = vcombine.high %v3109_v14, %v3109_v14  ;;  %v3542_v55 = vadd.f32 %v3109_v14, %v2200_v8  ;;  %v4657_v16 = vcombine.low %v4530_v45, %v4531_v30  ;;  %v6492_v13 = vcombine.low %v4532_v12, %v4533_v15  ;;  %v7186_v45 = vld [vmem:[#allocation5_spill] sm:$0xff]  ;;  %v7187_v15 = vld [vmem:[#allocation8_spill] sm:$0xff] }
 0x152   : > { %v3126_v1 = vcombine.high %v3116_v6, %v3116_v6  ;;  %v3539_v29 = vadd.f32 %v3116_v6, %v6085_v62  ;;  %v4666_v51 = vrot.slane %v4656_v49, %v5583_v20  ;;  %v3540_v26 = vadd.f32 %v3124_v3, %v6444_v7 }
 0x153   : > { %v3543_v27 = vadd.f32 %v6486_v34, %v6095_v2  ;;  %v3544_v58 = vadd.f32 %v3125_v36, %v2202_v33  ;;  %v4673_v35 = vrot.slane %v4657_v16, %v5583_v20  ;;  %v3078_v8 = vcombine.high %v6447_v63, %v6447_v63  ;;  %v7183_v63 = vld [vmem:[#allocation4_spill] sm:$0xff] }
 0x154   : > { %v3541_v59 = vadd.f32 %v3126_v1, %v6078_v53  ;;  %v3758_v32 = vcombine.high %v6248_v10, %v6248_v10  ;;  %v3765_v62 = vrot.slane %v6248_v10, %v5583_v20  ;;  %v4470_v0 = vadd.f32 %v6002_v56, %v4343_v28 }
 0x155   : > { %v4680_v7 = vrot.slane %v6492_v13, %v5583_v20  ;;  %v6512_v2 = vadd.f32 %v6110_v11, %v6063_v17  ;;  %v6514_v33 = vcombine.low %v4666_v51, %v4673_v35  ;;  %v3538_v21 = vadd.f32 %v3078_v8, %v7183_v63  ;;  %v7193_v13 = vld [vmem:[#allocation11_spill] sm:$0xff] }
 0x156   : > { %v3772_v53 = vrot.slane %v3758_v32, %v5583_v20  ;;  %v7184_v5 = vcombine.high %v6063_v17, %v6063_v17  ;;  %v7185_v10 = vcombine.high %v6110_v11, %v6110_v11  ;;  %v3773_v30 = vcombine.high %v3765_v62, %v3765_v62 }
 0x157   : > { %v3781_v12 = vrot.slane %v3765_v62, %v5583_v20  ;;  %v4534_v14 = vmax.f32 %v4470_v0, 0.0  ;;  %v6529_v6 = vadd.f32 %v7187_v15, %v7186_v45  ;;  %v4696_v49 = vrot.slane %v6514_v33, %v5583_v20 }
 0x158   : > { %v6524_v28 = vadd.f32 %v7185_v10, %v7184_v5  ;;  %v3774_v3 = vcombine.high %v3772_v53, %v3772_v53  ;;  %v3788_v36 = vrot.slane %v3772_v53, %v5583_v20  ;;  %v7188_v17 = vcombine.high %v7186_v45, %v7186_v45  ;;  %v7190_v53 = vld [vmem:[#allocation2_spill] sm:$0xff] }
 0x159   : > { %v7189_v11 = vcombine.high %v7187_v15, %v7187_v15  ;;  %v3795_v31 = vrot.slane %v3773_v30, %v5583_v20  ;;  %v3803_v16 = vcombine.high %v3781_v12, %v3781_v12  ;;  %v4217_v1 = vadd.f32 %v3781_v12, %v3538_v21 }
 0x15a   : > { %v3128_v51 = vcombine.high %v6287_v52, %v6287_v52  ;;  %v3802_v35 = vrot.slane %v3774_v3, %v5583_v20  ;;  %v3804_v8 = vcombine.high %v3788_v36, %v3788_v36  ;;  %v4220_v32 = vadd.f32 %v3788_v36, %v3541_v59  ;;  %v7191_v3 = vld [vmem:[#allocation3_spill] sm:$0xff]  ;;  %v6553_v36 = vpop.f32.mrb[36].mxu0 }
 0x15b   : > { %v6540_v57 = vadd.f32 %v7189_v11, %v7188_v17  ;;  %v3135_v62 = vrot.slane %v6287_v52, %v5583_v20  ;;  %v3805_v0 = vcombine.high %v3795_v31, %v3795_v31  ;;  %v4218_v63 = vadd.f32 %v3803_v16, %v3539_v29  ;;  %v6555_v52 = vpop.f32.mrb[36].mxu1 }
 0x15c   : > { %v4344_v5 = vmul.f32 %v7190_v53, %v4217_v1  ;;  %v3142_v10 = vrot.slane %v3128_v51, %v5583_v20  ;;  %v3806_v45 = vcombine.high %v3802_v35, %v3802_v35  ;;  %v4221_v30 = vadd.f32 %v3802_v35, %v3542_v55  ;;  %v5461_v1 = vpop.f32.mrb[37].mxu1 }
 0x15d   : > { %v4222_v15 = vadd.f32 %v3804_v8, %v3543_v27  ;;  %v4347_v21 = vmul.f32 %v5976_v46, %v4220_v32  ;;  %v4219_v12 = vadd.f32 %v3805_v0, %v3540_v26  ;;  %v4345_v17 = vmul.f32 %v5951_v38, %v4218_v63  ;;  %v5433_v27 = vpop.f32.mrb[37].mxu0  ;;  %v3697_v0 = vpop.f32.mrb[38].mxu1 }
 0x15e   : > { %v4471_v11 = vadd.f32 %v7191_v3, %v4344_v5  ;;  %v3143_v59 = vcombine.high %v3135_v62, %v3135_v62  ;;  %v4223_v29 = vadd.f32 %v3806_v45, %v3544_v58  ;;  %v4348_v31 = vmul.f32 %v5984_v50, %v4221_v30  ;;  %v3018_v32 = vpop.f32.mrb[38].mxu0 }
 0x15f   : > { %v4349_v16 = vmul.f32 %v5954_v39, %v4222_v15  ;;  %v4474_v55 = vadd.f32 %v5988_v19, %v4347_v21  ;;  %v4346_v26 = vmul.f32 %v5957_v40, %v4219_v12  ;;  %v4472_v51 = vadd.f32 %v5960_v41, %v4345_v17  ;;  %v5434_v30 = vpop.f32.mrb[39].mxu0  ;;  %v5462_v15 = vpop.f32.mrb[39].mxu1 }
 0x160   : > { %v4535_v35 = vmax.f32 %v4471_v11, 0.0  ;;  %v3144_v8 = vcombine.high %v3142_v10, %v3142_v10  ;;  %v4350_v63 = vmul.f32 %v5963_v42, %v4223_v29  ;;  %v4475_v58 = vadd.f32 %v5994_v54, %v4348_v31 }
 0x161   : > { %v4476_v5 = vadd.f32 %v5966_v23, %v4349_v16  ;;  %v4538_v45 = vmax.f32 %v4474_v55, 0.0  ;;  %v4473_v21 = vadd.f32 %v5969_v24, %v4346_v26  ;;  %v4536_v27 = vmax.f32 %v4472_v51, 0.0 }
 0x162   : > { %v4659_v1 = vcombine.low %v4534_v14, %v4535_v35  ;;  %v3151_v12 = vrot.slane %v3135_v62, %v5583_v20  ;;  %v4477_v17 = vadd.f32 %v5972_v18, %v4350_v63  ;;  %v4539_v11 = vmax.f32 %v4475_v58, 0.0 }
 0x163   : > { %v4540_v32 = vmax.f32 %v4476_v5, 0.0  ;;  %v3158_v0 = vrot.slane %v3142_v10, %v5583_v20  ;;  %v4537_v29 = vmax.f32 %v4473_v21, 0.0  ;;  %v3165_v16 = vrot.slane %v3143_v59, %v5583_v20  ;;  %v7192_v21 = vld [vmem:[#allocation9_spill] sm:$0xff] }
 0x164   : > { %v4687_v31 = vrot.slane %v4659_v1, %v5583_v20  ;;  %v6572_v55 = vrot.slane %v3144_v8, %v5583_v20  ;;  %v4541_v30 = vmax.f32 %v4477_v17, 0.0  ;;  %v4706_v26 = vcombine.low %v4538_v45, %v4539_v11 }
 0x165   : > { %v3173_v51 = vcombine.high %v3151_v12, %v3151_v12  ;;  %v3174_v14 = vcombine.high %v3158_v0, %v3158_v0  ;;  %v4705_v35 = vcombine.low %v4536_v27, %v4537_v29  ;;  %v3175_v63 = vcombine.high %v3165_v16, %v3165_v16  ;;  %v7197_v29 = vld [vmem:[#allocation7_spill] sm:$0xff] }
 0x166   : > { %v4689_v62 = vcombine.low %v4680_v7, %v4687_v31  ;;  %v3546_v10 = vadd.f32 %v3151_v12, %v6512_v2  ;;  %v6578_v58 = vcombine.low %v4540_v32, %v4541_v30  ;;  %v4722_v5 = vrot.slane %v4706_v26, %v5583_v20  ;;  %v7199_v26 = vld [vmem:[#allocation14_spill] sm:$0xff] }
 0x167   : > { %v3547_v59 = vadd.f32 %v3173_v51, %v6524_v28  ;;  %v3549_v8 = vadd.f32 %v3158_v0, %v6529_v6  ;;  %v4715_v15 = vrot.slane %v4705_v35, %v5583_v20  ;;  %v3548_v1 = vadd.f32 %v3175_v63, %v7192_v21 }
 0x168   : > { %v4703_v45 = vrot.slane %v4689_v62, %v5583_v20  ;;  %v3550_v7 = vadd.f32 %v6572_v55, %v7193_v13  ;;  %v3551_v27 = vadd.f32 %v3174_v14, %v6540_v57  ;;  %v3127_v2 = vcombine.high %v6486_v34, %v6486_v34  ;;  %v7194_v57 = vld [vmem:[#allocation6_spill] sm:$0xff]  ;;  %v7196_v34 = vld [vmem:[#allocation12_spill] sm:$0xff] }
 0x169   : > { %v3807_v12 = vcombine.high %v6289_v4, %v6289_v4  ;;  %v3814_v28 = vrot.slane %v6289_v4, %v5583_v20  ;;  %v6600_v17 = vcombine.low %v4715_v15, %v4722_v5  ;;  %v4729_v11 = vrot.slane %v6578_v58, %v5583_v20 }
 0x16a   : > { %v6598_v6 = vcombine.low %v4696_v49, %v4703_v45  ;;  %v7195_v32 = vrot.slane %v7194_v57, %v5583_v20  ;;  %v3545_v31 = vadd.f32 %v3127_v2, %v7197_v29  ;;  %v7198_v49 = vld [vmem:[#allocation10_spill] sm:$0xff]  ;;  %v7201_v62 = vcombine.high %v7199_v26, %v7199_v26 }
 0x16b   : > { %v3821_v16 = vrot.slane %v3807_v12, %v5583_v20  ;;  %v3822_v4 = vcombine.high %v3814_v28, %v3814_v28  ;;  %v3830_v30 = vrot.slane %v3814_v28, %v5583_v20  ;;  %v2214_v51 = vadd.f32 %v7199_v26, %v7198_v49 }
 0x16c   : > { %v2211_v0 = vadd.f32 %v7196_v34, %v7195_v32  ;;  %v7200_v14 = vcombine.high %v7198_v49, %v7198_v49  ;;  %v3177_v63 = vcombine.high %v6299_v22, %v6299_v22  ;;  %v3184_v13 = vrot.slane %v6299_v22, %v5583_v20 }
 0x16d   : > { %v3823_v5 = vcombine.high %v3821_v16, %v3821_v16  ;;  %v3837_v45 = vrot.slane %v3821_v16, %v5583_v20  ;;  %v3844_v15 = vrot.slane %v3822_v4, %v5583_v20  ;;  %v4224_v21 = vadd.f32 %v3830_v30, %v3545_v31 }
 0x16e   : > { %v2216_v35 = vadd.f32 %v7201_v62, %v7200_v14  ;;  %v3191_v2 = vrot.slane %v3177_v63, %v5583_v20  ;;  %v3176_v12 = vcombine.high %v6572_v55, %v6572_v55  ;;  %v3855_v28 = vcombine.high %v6301_v9, %v6301_v9 }
 0x16f   : > { %v3851_v57 = vrot.slane %v3823_v5, %v5583_v20  ;;  %v3852_v32 = vcombine.high %v3837_v45, %v3837_v45  ;;  %v3853_v34 = vcombine.high %v3844_v15, %v3844_v15  ;;  %v4225_v29 = vadd.f32 %v3844_v15, %v3546_v10 }
 0x170   : > { %v4227_v16 = vadd.f32 %v3837_v45, %v3548_v1  ;;  %v4351_v4 = vmul.f32 %v5980_v47, %v4224_v21  ;;  %v3192_v31 = vcombine.high %v3184_v13, %v3184_v13  ;;  %v3193_v30 = vcombine.high %v3191_v2, %v3191_v2 }
 0x171   : > { %v3854_v49 = vcombine.high %v3851_v57, %v3851_v57  ;;  %v4226_v22 = vadd.f32 %v3853_v34, %v3547_v59  ;;  %v4228_v26 = vadd.f32 %v3851_v57, %v3549_v8  ;;  %v4229_v14 = vadd.f32 %v3852_v32, %v3550_v7 }
 0x172   : > { %v4352_v62 = vmul.f32 %v7190_v53, %v4225_v29  ;;  %v4354_v55 = vmul.f32 %v5957_v40, %v4227_v16  ;;  %v4478_v63 = vadd.f32 %v6002_v56, %v4351_v4  ;;  %v3200_v5 = vrot.slane %v3184_v13, %v5583_v20 }
 0x173   : > { %v4230_v33 = vadd.f32 %v3854_v49, %v3551_v27  ;;  %v4353_v10 = vmul.f32 %v5951_v38, %v4226_v22  ;;  %v4355_v1 = vmul.f32 %v5976_v46, %v4228_v26  ;;  %v4356_v45 = vmul.f32 %v5984_v50, %v4229_v14 }
 0x174   : > { %v4479_v15 = vadd.f32 %v7191_v3, %v4352_v62  ;;  %v4481_v59 = vadd.f32 %v5969_v24, %v4354_v55  ;;  %v4542_v8 = vmax.f32 %v4478_v63, 0.0  ;;  %v3207_v7 = vrot.slane %v3191_v2, %v5583_v20  ;;  %v7202_v62 = vld [vmem:[#allocation15_spill] sm:$0xff] }
 0x175   : > { %v4357_v21 = vmul.f32 %v5954_v39, %v4230_v33  ;;  %v4480_v57 = vadd.f32 %v5960_v41, %v4353_v10  ;;  %v4482_v13 = vadd.f32 %v5988_v19, %v4355_v1  ;;  %v4483_v27 = vadd.f32 %v5994_v54, %v4356_v45  ;;  %v7203_v45 = vld [vmem:[#allocation18_spill] sm:$0xff] }
 0x176   : > { %v4543_v32 = vmax.f32 %v4479_v15, 0.0  ;;  %v4545_v34 = vmax.f32 %v4481_v59, 0.0  ;;  %v3214_v29 = vrot.slane %v3192_v31, %v5583_v20  ;;  %v6650_v16 = vrot.slane %v3193_v30, %v5583_v20  ;;  %v7204_v59 = vld [vmem:[#allocation13_spill] sm:$0xff] }
 0x177   : > { %v4544_v4 = vmax.f32 %v4480_v57, 0.0  ;;  %v4546_v49 = vmax.f32 %v4482_v13, 0.0  ;;  %v4547_v22 = vmax.f32 %v4483_v27, 0.0  ;;  %v3222_v26 = vcombine.high %v3207_v7, %v3207_v7  ;;  %v7205_v13 = vld [vmem:[#allocation16_spill] sm:$0xff] }
 0x178   : > { %v4708_v2 = vcombine.low %v4542_v8, %v4543_v32  ;;  %v3223_v14 = vcombine.high %v3214_v29, %v3214_v29  ;;  %v3553_v33 = vadd.f32 %v3200_v5, %v2211_v0  ;;  %v3554_v55 = vadd.f32 %v3214_v29, %v7202_v62 }
 0x179   : > { %v4754_v63 = vcombine.low %v4544_v4, %v4545_v34  ;;  %v4755_v10 = vcombine.low %v4546_v49, %v4547_v22  ;;  %v3556_v1 = vadd.f32 %v3207_v7, %v2214_v51  ;;  %v3557_v15 = vadd.f32 %v6650_v16, %v7203_v45  ;;  %v7207_v34 = vld [vmem:[#allocation20_spill] sm:$0xff] }
 0x17a   : > { %v4736_v31 = vrot.slane %v4708_v2, %v5583_v20  ;;  %v3558_v30 = vadd.f32 %v3222_v26, %v2216_v35  ;;  %v3552_v57 = vadd.f32 %v3176_v12, %v7204_v59  ;;  %v3555_v27 = vadd.f32 %v3223_v14, %v7205_v13  ;;  %v7206_v35 = vld [vmem:[#allocation17_spill] sm:$0xff]  ;;  %v7210_v2 = vld [vmem:[#allocation19_spill] sm:$0xff] }
 0x17b   : > { %v4764_v8 = vrot.slane %v4754_v63, %v5583_v20  ;;  %v4771_v0 = vrot.slane %v4755_v10, %v5583_v20  ;;  %v3862_v5 = vrot.slane %v6301_v9, %v5583_v20  ;;  %v3869_v51 = vrot.slane %v3855_v28, %v5583_v20  ;;  %v7211_v14 = vld [vmem:[#allocation21_spill] sm:$0xff] }
 0x17c   : > { %v4738_v7 = vcombine.low %v4729_v11, %v4736_v31  ;;  %v4484_v32 = vadd.f32 %v5966_v23, %v4357_v21  ;;  %v6669_v12 = vadd.f32 %v7207_v34, %v7206_v35  ;;  %v7208_v29 = vcombine.high %v7206_v35, %v7206_v35 }
 0x17d   : > { %v7209_v4 = vcombine.high %v7207_v34, %v7207_v34  ;;  %v6679_v9 = vcombine.low %v4764_v8, %v4771_v0  ;;  %v3870_v28 = vcombine.high %v3862_v5, %v3862_v5  ;;  %v3871_v22 = vcombine.high %v3869_v51, %v3869_v51 }
 0x17e   : > { %v3878_v58 = vrot.slane %v3862_v5, %v5583_v20  ;;  %v4752_v11 = vrot.slane %v4738_v7, %v5583_v20  ;;  %v3885_v21 = vrot.slane %v3869_v51, %v5583_v20  ;;  %v4548_v26 = vmax.f32 %v4484_v32, 0.0 }
 0x17f   : > { %v6677_v49 = vadd.f32 %v7209_v4, %v7208_v29  ;;  %v2221_v62 = vadd.f32 %v7211_v14, %v7210_v2  ;;  %v4794_v63 = vrot.slane %v6679_v9, %v5583_v20  ;;  %v3892_v10 = vrot.slane %v3870_v28, %v5583_v20 }
 0x180   : > { %v3899_v45 = vrot.slane %v3871_v22, %v5583_v20  ;;  %v3900_v31 = vcombine.high %v3878_v58, %v3878_v58  ;;  %v7212_v59 = vrot.slane %v6600_v17, %v5583_v20  ;;  %v3901_v8 = vcombine.high %v3885_v21, %v3885_v21 }
 0x181   : > { %v4231_v0 = vadd.f32 %v3878_v58, %v3552_v57  ;;  %v4234_v5 = vadd.f32 %v3885_v21, %v3555_v27  ;;  %v4232_v7 = vadd.f32 %v3892_v10, %v3553_v33 }
 0x182   : > { %v4753_v13 = vcombine.low %v7212_v59, %v4752_v11  ;;  %v3902_v51 = vcombine.high %v3899_v45, %v3899_v45  ;;  %v4233_v32 = vadd.f32 %v3900_v31, %v3554_v55  ;;  %v4235_v35 = vadd.f32 %v3899_v45, %v3556_v1 }
 0x183   : > { %v4236_v29 = vadd.f32 %v3901_v8, %v3557_v15  ;;  %v4358_v4 = vmul.f32 %v5963_v42, %v4231_v0  ;;  %v4361_v17 = vmul.f32 %v5951_v38, %v4234_v5  ;;  %v4359_v57 = vmul.f32 %v5980_v47, %v4232_v7 }
 0x184   : > { %v5295_v34 = vpack.c.bf16 %v4753_v13, %v6598_v6  ;;  %v4237_v28 = vadd.f32 %v3902_v51, %v3558_v30  ;;  %v4360_v27 = vmul.f32 %v7190_v53, %v4233_v32  ;;  %v4362_v22 = vmul.f32 %v5957_v40, %v4235_v35 }
 0x185   : > { %v4363_v58 = vmul.f32 %v5976_v46, %v4236_v29  ;;  %v4485_v33 = vadd.f32 %v5972_v18, %v4358_v4  ;;  %v4488_v55 = vadd.f32 %v5960_v41, %v4361_v17  ;;  %v7213_v6 = vcombine.high %v7210_v2, %v7210_v2 }
 0x186   : > { %5296 = vst [vmem:[%s6697_s9] sm:$0xff] %v5295_v34   ;;  %v7214_v1 = vcombine.high %v7211_v14, %v7211_v14  ;;  %v4364_v30 = vmul.f32 %v5984_v50, %v4237_v28  ;;  %v4486_v11 = vadd.f32 %v6002_v56, %v4359_v57  ;;  %v4487_v21 = vadd.f32 %v7191_v3, %v4360_v27 }
 0x187   : > { %v4489_v10 = vadd.f32 %v5969_v24, %v4362_v22  ;;  %v4490_v45 = vadd.f32 %v5988_v19, %v4363_v58  ;;  %v4549_v31 = vmax.f32 %v4485_v33, 0.0  ;;  %v4552_v59 = vmax.f32 %v4488_v55, 0.0 }
 0x188   : > { %v2223_v15 = vadd.f32 %v7214_v1, %v7213_v6  ;;  %v3225_v13 = vcombine.high %v6343_v48, %v6343_v48  ;;  %v4491_v2 = vadd.f32 %v5994_v54, %v4364_v30  ;;  %v4550_v8 = vmax.f32 %v4486_v11, 0.0 }
 0x189   : > { %v4551_v14 = vmax.f32 %v4487_v21, 0.0  ;;  %v4553_v0 = vmax.f32 %v4489_v10, 0.0  ;;  %v4554_v5 = vmax.f32 %v4490_v45, 0.0  ;;  %v4756_v51 = vcombine.low %v4548_v26, %v4549_v31  ;;  %v7215_v10 = vld [vmem:[#allocation24_spill] sm:$0xff] }
 0x18a   : > { %v3232_v7 = vrot.slane %v6343_v48, %v5583_v20  ;;  %v3239_v32 = vrot.slane %v3225_v13, %v5583_v20  ;;  %v4555_v35 = vmax.f32 %v4491_v2, 0.0  ;;  %v3224_v4 = vcombine.high %v6650_v16, %v6650_v16  ;;  %v7217_v2 = vld [vmem:[#allocation22_spill] sm:$0xff] }
 0x18b   : > { %v4757_v34 = vcombine.low %v4550_v8, %v4551_v14  ;;  %v4803_v29 = vcombine.low %v4552_v59, %v4553_v0  ;;  %v4778_v17 = vrot.slane %v4756_v51, %v5583_v20  ;;  %v7216_v59 = vld [vmem:[#allocation25_spill] sm:$0xff] }
 0x18c   : > { %v3240_v28 = vcombine.high %v3232_v7, %v3232_v7  ;;  %v3241_v57 = vcombine.high %v3239_v32, %v3239_v32  ;;  %v3248_v27 = vrot.slane %v3232_v7, %v5583_v20  ;;  %v4804_v26 = vcombine.low %v4554_v5, %v4555_v35  ;;  %v7219_v7 = vld [vmem:[#allocation23_spill] sm:$0xff] }
 0x18d   : > { %v4785_v22 = vrot.slane %v4757_v34, %v5583_v20  ;;  %v4813_v58 = vrot.slane %v4803_v29, %v5583_v20  ;;  %v3255_v48 = vrot.slane %v3239_v32, %v5583_v20  ;;  %v3559_v8 = vadd.f32 %v3224_v4, %v7217_v2  ;;  %v7220_v32 = vld [vmem:[#allocation28_spill] sm:$0xff]  ;;  %v7223_v4 = vld [vmem:[#allocation26_spill] sm:$0xff] }
 0x18e   : > { %v3262_v33 = vrot.slane %v3240_v28, %v5583_v20  ;;  %v6735_v55 = vrot.slane %v3241_v57, %v5583_v20  ;;  %v3270_v6 = vcombine.high %v3248_v27, %v3248_v27  ;;  %v3560_v16 = vadd.f32 %v3248_v27, %v6669_v12  ;;  %v7218_v12 = vld [vmem:[#allocation42_spill] sm:$0xff] }
 0x18f   : > { %v4787_v1 = vcombine.low %v4778_v17, %v4785_v22  ;;  %v4820_v30 = vrot.slane %v4804_v26, %v5583_v20  ;;  %v3271_v11 = vcombine.high %v3255_v48, %v3255_v48  ;;  %v3563_v21 = vadd.f32 %v3255_v48, %v2221_v62 }
 0x190   : > { %v3561_v45 = vadd.f32 %v3262_v33, %v7215_v10  ;;  %v3562_v31 = vadd.f32 %v3270_v6, %v6677_v49  ;;  %v3564_v13 = vadd.f32 %v6735_v55, %v7216_v59  ;;  %v3903_v51 = vcombine.high %v7218_v12, %v7218_v12 }
 0x191   : > { %v4801_v14 = vrot.slane %v4787_v1, %v5583_v20  ;;  %v6745_v0 = vcombine.low %v4813_v58, %v4820_v30  ;;  %v3565_v5 = vadd.f32 %v3271_v11, %v2223_v15  ;;  %v3910_v62 = vrot.slane %v7218_v12, %v5583_v20  ;;  %v7225_v15 = vld [vmem:[#allocation31_spill] sm:$0xff]  ;;  %v7227_v11 = vld [vmem:[#allocation46_spill] sm:$0xff] }
 0x192   : > { %v2225_v35 = vadd.f32 %v7220_v32, %v7219_v7  ;;  %v7221_v49 = vcombine.high %v7219_v7, %v7219_v7  ;;  %v7222_v34 = vcombine.high %v7220_v32, %v7220_v32  ;;  %v7224_v17 = vcombine.high %v7223_v4, %v7223_v4 }
 0x193   : > { %v7226_v28 = vcombine.high %v7225_v15, %v7225_v15  ;;  %v6768_v27 = vcombine.low %v4794_v63, %v4801_v14  ;;  %v4843_v22 = vrot.slane %v6745_v0, %v5583_v20  ;;  %v3917_v26 = vrot.slane %v3903_v51, %v5583_v20 }
 0x194   : > { %v2227_v29 = vadd.f32 %v7222_v34, %v7221_v49  ;;  %v3273_v58 = vcombine.high %v6357_v25, %v6357_v25  ;;  %v3918_v48 = vcombine.high %v3910_v62, %v3910_v62  ;;  %v3926_v33 = vrot.slane %v3910_v62, %v5583_v20 }
 0x195   : > { %v2230_v57 = vadd.f32 %v7226_v28, %v7224_v17  ;;  %v3280_v6 = vrot.slane %v6357_v25, %v5583_v20  ;;  %v3272_v1 = vcombine.high %v6735_v55, %v6735_v55  ;;  %v3919_v9 = vcombine.high %v3917_v26, %v3917_v26 }
 0x196   : > { %v3933_v63 = vrot.slane %v3917_v26, %v5583_v20  ;;  %v3287_v30 = vrot.slane %v3273_v58, %v5583_v20  ;;  %v3952_v10 = vcombine.high %v7227_v11, %v7227_v11  ;;  %v3940_v59 = vrot.slane %v3918_v48, %v5583_v20 }
 0x197   : > { %v3948_v2 = vcombine.high %v3926_v33, %v3926_v33  ;;  %v4238_v14 = vadd.f32 %v3926_v33, %v3559_v8  ;;  %v3288_v12 = vcombine.high %v3280_v6, %v3280_v6  ;;  %v3947_v51 = vrot.slane %v3919_v9, %v5583_v20 }
 0x198   : > { %v3949_v62 = vcombine.high %v3933_v63, %v3933_v63  ;;  %v3289_v25 = vcombine.high %v3287_v30, %v3287_v30  ;;  %v3296_v7 = vrot.slane %v3280_v6, %v5583_v20  ;;  %v3950_v55 = vcombine.high %v3940_v59, %v3940_v59 }
 0x199   : > { %v4239_v32 = vadd.f32 %v3940_v59, %v3560_v16  ;;  %v4240_v49 = vadd.f32 %v3948_v2, %v3561_v45  ;;  %v4365_v34 = vmul.f32 %v5954_v39, %v4238_v14  ;;  %v3951_v4 = vcombine.high %v3947_v51, %v3947_v51 }
 0x19a   : > { %v4242_v17 = vadd.f32 %v3947_v51, %v3563_v21  ;;  %v4243_v15 = vadd.f32 %v3949_v62, %v3564_v13  ;;  %v3303_v28 = vrot.slane %v3287_v30, %v5583_v20  ;;  %v4241_v26 = vadd.f32 %v3950_v55, %v3562_v31 }
 0x19b   : > { %v4366_v8 = vmul.f32 %v5963_v42, %v4239_v32  ;;  %v4367_v58 = vmul.f32 %v5980_v47, %v4240_v49  ;;  %v4492_v48 = vadd.f32 %v5966_v23, %v4365_v34  ;;  %v4244_v33 = vadd.f32 %v3951_v4, %v3565_v5 }
 0x19c   : > { %v4369_v6 = vmul.f32 %v5951_v38, %v4242_v17  ;;  %v4370_v16 = vmul.f32 %v5957_v40, %v4243_v15  ;;  %v3310_v45 = vrot.slane %v3288_v12, %v5583_v20  ;;  %v4368_v9 = vmul.f32 %v7190_v53, %v4241_v26  ;;  %v7228_v15 = vld [vmem:[#allocation32_spill] sm:$0xff] }
 0x19d   : > { %v4493_v21 = vadd.f32 %v5972_v18, %v4366_v8  ;;  %v4494_v13 = vadd.f32 %v6002_v56, %v4367_v58  ;;  %v4556_v31 = vmax.f32 %v4492_v48, 0.0  ;;  %v4371_v63 = vmul.f32 %v5976_v46, %v4244_v33  ;;  %v7229_v48 = vld [vmem:[#allocation34_spill] sm:$0xff] }
 0x19e   : > { %v4496_v30 = vadd.f32 %v5960_v41, %v4369_v6  ;;  %v4497_v59 = vadd.f32 %v5969_v24, %v4370_v16  ;;  %v6802_v5 = vrot.slane %v3289_v25, %v5583_v20  ;;  %v4495_v2 = vadd.f32 %v7191_v3, %v4368_v9  ;;  %v7230_v9 = vld [vmem:[#allocation29_spill] sm:$0xff] }
 0x19f   : > { %v4557_v14 = vmax.f32 %v4493_v21, 0.0  ;;  %v4558_v12 = vmax.f32 %v4494_v13, 0.0  ;;  %v3318_v51 = vcombine.high %v3296_v7, %v3296_v7  ;;  %v3319_v32 = vcombine.high %v3303_v28, %v3303_v28  ;;  %v7231_v13 = vld [vmem:[#allocation33_spill] sm:$0xff] }
 0x1a0   : > { %v4560_v62 = vmax.f32 %v4496_v30, 0.0  ;;  %v4561_v55 = vmax.f32 %v4497_v59, 0.0  ;;  %v3320_v49 = vcombine.high %v3310_v45, %v3310_v45  ;;  %v4559_v34 = vmax.f32 %v4495_v2, 0.0  ;;  %v7233_v30 = vld [vmem:[#allocation35_spill] sm:$0xff] }
 0x1a1   : > { %v4805_v4 = vcombine.low %v4556_v31, %v4557_v14  ;;  %v3567_v17 = vadd.f32 %v3296_v7, %v2225_v35  ;;  %v3568_v26 = vadd.f32 %v3310_v45, %v7228_v15  ;;  %v3569_v58 = vadd.f32 %v3318_v51, %v2227_v29 }
 0x1a2   : > { %v6806_v8 = vcombine.low %v4560_v62, %v4561_v55  ;;  %v3571_v25 = vadd.f32 %v6802_v5, %v7229_v48  ;;  %v3572_v33 = vadd.f32 %v3319_v32, %v2230_v57  ;;  %v4806_v6 = vcombine.low %v4558_v12, %v4559_v34  ;;  %v7232_v57 = vld [vmem:[#allocation27_spill] sm:$0xff]  ;;  %v7236_v12 = vld [vmem:[#allocation30_spill] sm:$0xff] }
 0x1a3   : > { %v4827_v16 = vrot.slane %v4805_v4, %v5583_v20  ;;  %v3566_v21 = vadd.f32 %v3272_v1, %v7230_v9  ;;  %v3570_v28 = vadd.f32 %v3320_v49, %v7231_v13  ;;  %v3959_v35 = vrot.slane %v7227_v11, %v5583_v20  ;;  %v7237_v11 = vld [vmem:[#allocation38_spill] sm:$0xff] }
 0x1a4   : > { %v4862_v31 = vrot.slane %v6806_v8, %v5583_v20  ;;  %v3966_v7 = vrot.slane %v3952_v10, %v5583_v20  ;;  %v4498_v29 = vadd.f32 %v5988_v19, %v4371_v63  ;;  %v4834_v45 = vrot.slane %v4806_v6, %v5583_v20 }
 0x1a5   : > { %v6822_v59 = vadd.f32 %v7233_v30, %v7232_v57  ;;  %v7234_v1 = vcombine.high %v7232_v57, %v7232_v57  ;;  %v7235_v2 = vcombine.high %v7233_v30, %v7233_v30  ;;  %v6834_v51 = vadd.f32 %v7237_v11, %v7236_v12 }
 0x1a6   : > { %v3967_v10 = vcombine.high %v3959_v35, %v3959_v35  ;;  %v3968_v63 = vcombine.high %v3966_v7, %v3966_v7  ;;  %v3975_v62 = vrot.slane %v3959_v35, %v5583_v20  ;;  %v3982_v55 = vrot.slane %v3966_v7, %v5583_v20 }
 0x1a7   : > { %v6830_v14 = vadd.f32 %v7235_v2, %v7234_v1  ;;  %v4836_v32 = vcombine.low %v4827_v16, %v4834_v45  ;;  %v4562_v49 = vmax.f32 %v4498_v29, 0.0  ;;  %v7238_v34 = vcombine.high %v7236_v12, %v7236_v12 }
 0x1a8   : > { %v7239_v4 = vcombine.high %v7237_v11, %v7237_v11  ;;  %v3322_v48 = vcombine.high %v6402_v61, %v6402_v61  ;;  %v3989_v6 = vrot.slane %v3967_v10, %v5583_v20  ;;  %v3996_v9 = vrot.slane %v3968_v63, %v5583_v20 }
 0x1a9   : > { %v3997_v13 = vcombine.high %v3975_v62, %v3975_v62  ;;  %v3998_v35 = vcombine.high %v3982_v55, %v3982_v55  ;;  %v4850_v16 = vrot.slane %v4836_v32, %v5583_v20  ;;  %v4245_v7 = vadd.f32 %v3975_v62, %v3566_v21 }
 0x1aa   : > { %v6844_v15 = vadd.f32 %v7239_v4, %v7238_v34  ;;  %v4249_v29 = vadd.f32 %v3982_v55, %v3570_v28  ;;  %v3329_v45 = vrot.slane %v6402_v61, %v5583_v20  ;;  %v3999_v57 = vcombine.high %v3989_v6, %v3989_v6 }
 0x1ab   : > { %v4000_v30 = vcombine.high %v3996_v9, %v3996_v9  ;;  %v4246_v1 = vadd.f32 %v3989_v6, %v3567_v17  ;;  %v4247_v2 = vadd.f32 %v3997_v13, %v3568_v26  ;;  %v4851_v12 = vcombine.low %v4843_v22, %v4850_v16 }
 0x1ac   : > { %v4250_v11 = vadd.f32 %v3998_v35, %v3571_v25  ;;  %v4372_v10 = vmul.f32 %v5984_v50, %v4245_v7  ;;  %v4376_v63 = vmul.f32 %v7190_v53, %v4249_v29  ;;  %v4248_v32 = vadd.f32 %v3999_v57, %v3569_v58 }
 0x1ad   : > { %v4251_v21 = vadd.f32 %v4000_v30, %v3572_v33  ;;  %v4373_v28 = vmul.f32 %v5954_v39, %v4246_v1  ;;  %v4374_v61 = vmul.f32 %v5963_v42, %v4247_v2  ;;  %v5300_v62 = vpack.c.bf16 %v4851_v12, %v6768_v27 }
 0x1ae   : > { %v4377_v17 = vmul.f32 %v5951_v38, %v4250_v11  ;;  %v4499_v26 = vadd.f32 %v5994_v54, %v4372_v10  ;;  %v4503_v0 = vadd.f32 %v7191_v3, %v4376_v63  ;;  %v4375_v22 = vmul.f32 %v5980_v47, %v4248_v32 }
 0x1af   : > { %v4378_v25 = vmul.f32 %v5957_v40, %v4251_v21  ;;  %v4500_v55 = vadd.f32 %v5966_v23, %v4373_v28  ;;  %v4501_v58 = vadd.f32 %v5972_v18, %v4374_v61  ;;  %5312 = vst [vmem:[%s6697_s9 + $0x8] sm:$0xff] %v5300_v62   ;;  %v3336_v27 = vrot.slane %v3322_v48, %v5583_v20 }
 0x1b0   : > { %v4504_v33 = vadd.f32 %v5960_v41, %v4377_v17  ;;  %v4563_v34 = vmax.f32 %v4499_v26, 0.0  ;;  %v4567_v4 = vmax.f32 %v4503_v0, 0.0  ;;  %v4502_v6 = vadd.f32 %v6002_v56, %v4375_v22  ;;  %v7240_v22 = vld [vmem:[#allocation41_spill] sm:$0xff] }
 0x1b1   : > { %v4505_v9 = vadd.f32 %v5969_v24, %v4378_v25  ;;  %v4564_v13 = vmax.f32 %v4500_v55, 0.0  ;;  %v4565_v35 = vmax.f32 %v4501_v58, 0.0  ;;  %v3337_v29 = vcombine.high %v3329_v45, %v3329_v45 }
 0x1b2   : > { %v4568_v16 = vmax.f32 %v4504_v33, 0.0  ;;  %v4853_v7 = vcombine.low %v4562_v49, %v4563_v34  ;;  %v3338_v57 = vcombine.high %v3336_v27, %v3336_v27  ;;  %v4566_v30 = vmax.f32 %v4502_v6, 0.0  ;;  %v7242_v6 = vld [vmem:[#allocation52_spill] sm:$0xff] }
 0x1b3   : > { %v4569_v1 = vmax.f32 %v4505_v9, 0.0  ;;  %v4854_v2 = vcombine.low %v4564_v13, %v4565_v35  ;;  %v3345_v12 = vrot.slane %v3329_v45, %v5583_v20  ;;  %v3352_v10 = vrot.slane %v3336_v27, %v5583_v20  ;;  %v7243_v13 = vld [vmem:[#allocation36_spill] sm:$0xff] }
 0x1b4   : > { %v4869_v11 = vrot.slane %v4853_v7, %v5583_v20  ;;  %v3359_v48 = vrot.slane %v3337_v29, %v5583_v20  ;;  %v3366_v63 = vrot.slane %v3338_v57, %v5583_v20  ;;  %v4855_v32 = vcombine.low %v4566_v30, %v4567_v4  ;;  %v7241_v4 = vld [vmem:[#allocation39_spill] sm:$0xff] }
 0x1b5   : > { %v4876_v21 = vrot.slane %v4854_v2, %v5583_v20  ;;  %v6879_v28 = vcombine.low %v4568_v16, %v4569_v1  ;;  %v3367_v49 = vcombine.high %v3345_v12, %v3345_v12  ;;  %v3368_v62 = vcombine.high %v3352_v10, %v3352_v10  ;;  %v7245_v16 = vld [vmem:[#allocation43_spill] sm:$0xff] }
 0x1b6   : > { %v4884_v61 = vcombine.low %v4862_v31, %v4869_v11  ;;  %v3369_v45 = vcombine.high %v3359_v48, %v3359_v48  ;;  %v3370_v17 = vcombine.high %v3366_v63, %v3366_v63  ;;  %v4883_v26 = vrot.slane %v4855_v32, %v5583_v20 }
 0x1b7   : > { %v3574_v0 = vadd.f32 %v3345_v12, %v6822_v59  ;;  %v3575_v25 = vadd.f32 %v3359_v48, %v7240_v22  ;;  %v3576_v55 = vadd.f32 %v3367_v49, %v6830_v14  ;;  %v3578_v33 = vadd.f32 %v3352_v10, %v6834_v51  ;;  %v7244_v51 = vld [vmem:[#allocation40_spill] sm:$0xff]  ;;  %v7248_v12 = vld [vmem:[#allocation37_spill] sm:$0xff]  ;;  %v7250_v10 = vld [vmem:[#allocation47_spill] sm:$0xff] }
 0x1b8   : > { %v4892_v58 = vrot.slane %v4884_v61, %v5583_v20  ;;  %v3579_v34 = vadd.f32 %v3368_v62, %v6844_v15  ;;  %v3321_v8 = vcombine.high %v6802_v5, %v6802_v5  ;;  %v4885_v31 = vcombine.low %v4876_v21, %v4883_v26  ;;  %v7251_v21 = vld [vmem:[#allocation44_spill] sm:$0xff] }
 0x1b9   : > { %v3577_v27 = vadd.f32 %v3369_v45, %v7241_v4  ;;  %v4001_v9 = vcombine.high %v7242_v6, %v7242_v6  ;;  %v4008_v59 = vrot.slane %v7242_v6, %v5583_v20  ;;  %v4911_v35 = vrot.slane %v6879_v28, %v5583_v20 }
 0x1ba   : > { %v3573_v14 = vadd.f32 %v3321_v8, %v7243_v13  ;;  %v2239_v15 = vadd.f32 %v7245_v16, %v7244_v51  ;;  %v7246_v5 = vcombine.high %v7244_v51, %v7244_v51  ;;  %v7247_v7 = vcombine.high %v7245_v16, %v7245_v16 }
 0x1bb   : > { %v4899_v57 = vrot.slane %v4885_v31, %v5583_v20  ;;  %v4015_v30 = vrot.slane %v4001_v9, %v5583_v20  ;;  %v4016_v1 = vcombine.high %v4008_v59, %v4008_v59  ;;  %v4024_v2 = vrot.slane %v4008_v59, %v5583_v20 }
 0x1bc   : > { %v2241_v29 = vadd.f32 %v7247_v7, %v7246_v5  ;;  %v7249_v11 = vrot.slane %v7248_v12, %v5583_v20  ;;  %v3371_v63 = vcombine.high %v6488_v43, %v6488_v43  ;;  %v3378_v32 = vrot.slane %v6488_v43, %v5583_v20 }
 0x1bd   : > { %v6921_v49 = vadd.f32 %v3370_v17, %v7251_v21  ;;  %v6923_v61 = vcombine.low %v4892_v58, %v4899_v57  ;;  %v4017_v62 = vcombine.high %v4015_v30, %v4015_v30  ;;  %v4031_v45 = vrot.slane %v4015_v30, %v5583_v20 }
 0x1be   : > { %v2243_v48 = vadd.f32 %v7250_v10, %v7249_v11  ;;  %v4038_v26 = vrot.slane %v4016_v1, %v5583_v20  ;;  %v4046_v22 = vcombine.high %v4024_v2, %v4024_v2  ;;  %v4252_v8 = vadd.f32 %v4024_v2, %v3573_v14 }
 0x1bf   : > { %v3385_v31 = vrot.slane %v3371_v63, %v5583_v20  ;;  %v3386_v4 = vcombine.high %v3378_v32, %v3378_v32  ;;  %v4045_v6 = vrot.slane %v4017_v62, %v5583_v20  ;;  %v4256_v43 = vadd.f32 %v4031_v45, %v3577_v27 }
 0x1c0   : > { %v4047_v9 = vcombine.high %v4038_v26, %v4038_v26  ;;  %v4253_v59 = vadd.f32 %v4038_v26, %v3574_v0  ;;  %v4254_v13 = vadd.f32 %v4046_v22, %v3575_v25  ;;  %v4379_v17 = vmul.f32 %v5976_v46, %v4252_v8 }
 0x1c1   : > { %v3387_v58 = vcombine.high %v3385_v31, %v3385_v31  ;;  %v3394_v51 = vrot.slane %v3378_v32, %v5583_v20  ;;  %v4048_v16 = vcombine.high %v4045_v6, %v4045_v6  ;;  %v4257_v7 = vadd.f32 %v4045_v6, %v3578_v33 }
 0x1c2   : > { %v4255_v5 = vadd.f32 %v4047_v9, %v3576_v55  ;;  %v4380_v57 = vmul.f32 %v5984_v50, %v4253_v59  ;;  %v4381_v14 = vmul.f32 %v5954_v39, %v4254_v13  ;;  %v4383_v30 = vmul.f32 %v5980_v47, %v4256_v43  ;;  %v7252_v43 = vld [vmem:[#allocation49_spill] sm:$0xff] }
 0x1c3   : > { %v4506_v1 = vadd.f32 %v5988_v19, %v4379_v17  ;;  %v3401_v0 = vrot.slane %v3385_v31, %v5583_v20  ;;  %v4258_v27 = vadd.f32 %v4048_v16, %v3579_v34  ;;  %v4384_v2 = vmul.f32 %v7190_v53, %v4257_v7 }
 0x1c4   : > { %v4382_v25 = vmul.f32 %v5963_v42, %v4255_v5  ;;  %v4507_v12 = vadd.f32 %v5994_v54, %v4380_v57  ;;  %v4508_v55 = vadd.f32 %v5966_v23, %v4381_v14  ;;  %v4510_v33 = vadd.f32 %v6002_v56, %v4383_v30  ;;  %v7253_v57 = vld [vmem:[#allocation51_spill] sm:$0xff]  ;;  %v7254_v30 = vld [vmem:[#allocation48_spill] sm:$0xff] }
 0x1c5   : > { %v4570_v11 = vmax.f32 %v4506_v1, 0.0  ;;  %v3408_v10 = vrot.slane %v3386_v4, %v5583_v20  ;;  %v4385_v63 = vmul.f32 %v5951_v38, %v4258_v27  ;;  %v4511_v21 = vadd.f32 %v7191_v3, %v4384_v2 }
 0x1c6   : > { %v4509_v32 = vadd.f32 %v5972_v18, %v4382_v25  ;;  %v4571_v34 = vmax.f32 %v4507_v12, 0.0  ;;  %v4572_v62 = vmax.f32 %v4508_v55, 0.0  ;;  %v4574_v45 = vmax.f32 %v4510_v33, 0.0 }
 0x1c7   : > { %v6946_v26 = vrot.slane %v3387_v58, %v5583_v20  ;;  %v3416_v22 = vcombine.high %v3394_v51, %v3394_v51  ;;  %v4575_v31 = vmax.f32 %v4511_v21, 0.0  ;;  %v3417_v9 = vcombine.high %v3408_v10, %v3408_v10 }
 0x1c8   : > { %v4573_v8 = vmax.f32 %v4509_v32, 0.0  ;;  %v4902_v6 = vcombine.low %v4570_v11, %v4571_v34  ;;  %v3581_v59 = vadd.f32 %v3394_v51, %v2239_v15  ;;  %v3582_v4 = vadd.f32 %v3408_v10, %v7252_v43 }
 0x1c9   : > { %v3583_v13 = vadd.f32 %v3416_v22, %v2241_v29  ;;  %v3585_v17 = vadd.f32 %v3401_v0, %v2243_v48  ;;  %v4904_v5 = vcombine.low %v4574_v45, %v4575_v31  ;;  %v3586_v14 = vadd.f32 %v6946_v26, %v7253_v57  ;;  %v7255_v0 = vld [vmem:[#allocation45_spill] sm:$0xff] }
 0x1ca   : > { %v4903_v16 = vcombine.low %v4572_v62, %v4573_v8  ;;  %v4918_v7 = vrot.slane %v4902_v6, %v5583_v20  ;;  %v3584_v58 = vadd.f32 %v3417_v9, %v7254_v30  ;;  %v4049_v1 = vcombine.high %v6490_v44, %v6490_v44 }
 0x1cb   : > { %v4056_v27 = vrot.slane %v6490_v44, %v5583_v20  ;;  %v4512_v15 = vadd.f32 %v5960_v41, %v4385_v63  ;;  %v4932_v48 = vrot.slane %v4904_v5, %v5583_v20  ;;  %v6965_v25 = vadd.f32 %v6415_v37, %v7255_v0  ;;  %v7258_v63 = vld [vmem:[#allocation50_spill] sm:$0xff] }
 0x1cc   : > { %v4925_v29 = vrot.slane %v4903_v16, %v5583_v20  ;;  %v4933_v51 = vcombine.low %v4911_v35, %v4918_v7  ;;  %v4063_v2 = vrot.slane %v4049_v1, %v5583_v20  ;;  %v7256_v10 = vcombine.high %v7255_v0, %v7255_v0 }
 0x1cd   : > { %v4064_v12 = vcombine.high %v4056_v27, %v4056_v27  ;;  %v4072_v55 = vrot.slane %v4056_v27, %v5583_v20  ;;  %v4576_v44 = vmax.f32 %v4512_v15, 0.0  ;;  %v7257_v28 = vcombine.high %v6415_v37, %v6415_v37 }
 0x1ce   : > { %v4934_v33 = vcombine.low %v4925_v29, %v4932_v48  ;;  %v4941_v11 = vrot.slane %v4933_v51, %v5583_v20  ;;  %v6980_v32 = vadd.f32 %v6418_v60, %v7258_v63  ;;  %v4065_v21 = vcombine.high %v4063_v2, %v4063_v2 }
 0x1cf   : > { %v6976_v35 = vadd.f32 %v7257_v28, %v7256_v10  ;;  %v4079_v34 = vrot.slane %v4063_v2, %v5583_v20  ;;  %v4086_v62 = vrot.slane %v4064_v12, %v5583_v20  ;;  %v4094_v45 = vcombine.high %v4072_v55, %v4072_v55 }
 0x1d0   : > { %v4948_v22 = vrot.slane %v4934_v33, %v5583_v20  ;;  %v4259_v8 = vadd.f32 %v4072_v55, %v6921_v49  ;;  %v7259_v31 = vcombine.high %v7258_v63, %v7258_v63  ;;  %v7260_v37 = vcombine.high %v6418_v60, %v6418_v60 }
 0x1d1   : > { %v3419_v9 = vcombine.high %v6553_v36, %v6553_v36  ;;  %v4093_v43 = vrot.slane %v4065_v21, %v5583_v20  ;;  %v4095_v16 = vcombine.high %v4079_v34, %v4079_v34  ;;  %v4096_v5 = vcombine.high %v4086_v62, %v4086_v62 }
 0x1d2   : > { %v2252_v6 = vadd.f32 %v7260_v37, %v7259_v31  ;;  %v4260_v7 = vadd.f32 %v4086_v62, %v3581_v59  ;;  %v4949_v57 = vcombine.low %v4941_v11, %v4948_v22  ;;  %v4261_v30 = vadd.f32 %v4094_v45, %v3582_v4 }
 0x1d3   : > { %v4263_v1 = vadd.f32 %v4079_v34, %v3584_v58  ;;  %v4386_v49 = vmul.f32 %v5957_v40, %v4259_v8  ;;  %v4262_v27 = vadd.f32 %v4096_v5, %v3583_v13  ;;  %v4264_v15 = vadd.f32 %v4093_v43, %v3585_v17 }
 0x1d4   : > { %v4265_v29 = vadd.f32 %v4095_v16, %v3586_v14  ;;  %v4387_v60 = vmul.f32 %v5976_v46, %v4260_v7  ;;  %v5305_v48 = vpack.c.bf16 %v4949_v57, %v6923_v61  ;;  %v4388_v51 = vmul.f32 %v5984_v50, %v4261_v30 }
 0x1d5   : > { %v4390_v0 = vmul.f32 %v5963_v42, %v4263_v1  ;;  %v4513_v2 = vadd.f32 %v5969_v24, %v4386_v49  ;;  %v4389_v59 = vmul.f32 %v5954_v39, %v4262_v27  ;;  %v4391_v4 = vmul.f32 %v5980_v47, %v4264_v15 }
 0x1d6   : > { %v4392_v58 = vmul.f32 %v7190_v53, %v4265_v29  ;;  %v4514_v13 = vadd.f32 %v5988_v19, %v4387_v60  ;;  %5313 = vst [vmem:[%s6697_s9 + $0x10] sm:$0xff] %v5305_v48   ;;  %v4515_v17 = vadd.f32 %v5994_v54, %v4388_v51  ;;  %v3426_v12 = vrot.slane %v6553_v36, %v5583_v20  ;;  %v7261_v48 = vld [vmem:[#allocation55_spill] sm:$0xff] }
 0x1d7   : > { %v4517_v14 = vadd.f32 %v5972_v18, %v4390_v0  ;;  %v4577_v61 = vmax.f32 %v4513_v2, 0.0  ;;  %v4516_v55 = vadd.f32 %v5966_v23, %v4389_v59  ;;  %v4518_v33 = vadd.f32 %v6002_v56, %v4391_v4  ;;  %v7262_v4 = vld [vmem:[#allocation56_spill] sm:$0xff] }
 0x1d8   : > { %v4519_v11 = vadd.f32 %v7191_v3, %v4392_v58  ;;  %v4578_v10 = vmax.f32 %v4514_v13, 0.0  ;;  %v4579_v28 = vmax.f32 %v4515_v17, 0.0  ;;  %v3433_v34 = vrot.slane %v3419_v9, %v5583_v20 }
 0x1d9   : > { %v4581_v63 = vmax.f32 %v4517_v14, 0.0  ;;  %v4950_v21 = vcombine.low %v4576_v44, %v4577_v61  ;;  %v4580_v62 = vmax.f32 %v4516_v55, 0.0  ;;  %v4582_v45 = vmax.f32 %v4518_v33, 0.0  ;;  %v7263_v14 = vld [vmem:[#allocation54_spill] sm:$0xff] }
 0x1da   : > { %v4583_v22 = vmax.f32 %v4519_v11, 0.0  ;;  %v3434_v8 = vcombine.high %v3426_v12, %v3426_v12  ;;  %v4951_v31 = vcombine.low %v4578_v10, %v4579_v28  ;;  %v3435_v36 = vcombine.high %v3433_v34, %v3433_v34 }
 0x1db   : > { %v4960_v37 = vrot.slane %v4950_v21, %v5583_v20  ;;  %v3442_v43 = vrot.slane %v3426_v12, %v5583_v20  ;;  %v4952_v16 = vcombine.low %v4580_v62, %v4581_v63  ;;  %v3449_v7 = vrot.slane %v3433_v34, %v5583_v20 }
 0x1dc   : > { %v4953_v5 = vcombine.low %v4582_v45, %v4583_v22  ;;  %v3456_v57 = vrot.slane %v3434_v8, %v5583_v20  ;;  %v4967_v44 = vrot.slane %v4951_v31, %v5583_v20  ;;  %v3463_v9 = vrot.slane %v3435_v36, %v5583_v20 }
 0x1dd   : > { %v3464_v30 = vcombine.high %v3442_v43, %v3442_v43  ;;  %v3588_v1 = vadd.f32 %v3442_v43, %v6965_v25  ;;  %v4974_v49 = vrot.slane %v4952_v16, %v5583_v20  ;;  %v3465_v15 = vcombine.high %v3449_v7, %v3449_v7 }
 0x1de   : > { %v4981_v27 = vrot.slane %v4953_v5, %v5583_v20  ;;  %v3466_v29 = vcombine.high %v3456_v57, %v3456_v57  ;;  %v4982_v60 = vcombine.low %v4960_v37, %v4967_v44  ;;  %v3589_v51 = vadd.f32 %v3456_v57, %v7261_v48 }
 0x1df   : > { %v3590_v0 = vadd.f32 %v3464_v30, %v6976_v35  ;;  %v3592_v2 = vadd.f32 %v3449_v7, %v6980_v32  ;;  %v3593_v58 = vadd.f32 %v3463_v9, %v7262_v4  ;;  %v3594_v13 = vadd.f32 %v3465_v15, %v2252_v6  ;;  %v7264_v32 = vld [vmem:[#allocation53_spill] sm:$0xff] }
 0x1e0   : > { %v4983_v59 = vcombine.low %v4974_v49, %v4981_v27  ;;  %v3418_v25 = vcombine.high %v6946_v26, %v6946_v26  ;;  %v4990_v17 = vrot.slane %v4982_v60, %v5583_v20  ;;  %v3591_v61 = vadd.f32 %v3466_v29, %v7263_v14 }
 0x1e1   : > { %v4097_v12 = vcombine.high %v6555_v52, %v6555_v52  ;;  %v4104_v55 = vrot.slane %v6555_v52, %v5583_v20 }
 0x1e2   : > { %v4997_v35 = vrot.slane %v4983_v59, %v5583_v20  ;;  %v3587_v33 = vadd.f32 %v3418_v25, %v7264_v32 }
 0x1e3   : > { %v4111_v11 = vrot.slane %v4097_v12, %v5583_v20  ;;  %v4112_v6 = vcombine.high %v4104_v55, %v4104_v55  ;;  %v4120_v10 = vrot.slane %v4104_v55, %v5583_v20 }
 0x1e4   : > { %v4998_v26 = vcombine.low %v4990_v17, %v4997_v35 }
 0x1e5   : > { %v4113_v28 = vcombine.high %v4111_v11, %v4111_v11  ;;  %v4127_v63 = vrot.slane %v4111_v11, %v5583_v20  ;;  %v4134_v21 = vrot.slane %v4112_v6, %v5583_v20  ;;  %v4142_v34 = vcombine.high %v4120_v10, %v4120_v10 }
 0x1e6   : > { %v4266_v62 = vadd.f32 %v4120_v10, %v3587_v33 }
 0x1e7   : > { %v4141_v45 = vrot.slane %v4113_v28, %v5583_v20  ;;  %v4143_v52 = vcombine.high %v4127_v63, %v4127_v63  ;;  %v4144_v22 = vcombine.high %v4134_v21, %v4134_v21  ;;  %v4267_v8 = vadd.f32 %v4134_v21, %v3588_v1 }
 0x1e8   : > { %v4268_v31 = vadd.f32 %v4142_v34, %v3589_v51  ;;  %v4270_v37 = vadd.f32 %v4127_v63, %v3591_v61  ;;  %v4393_v36 = vmul.f32 %v5951_v38, %v4266_v62 }
 0x1e9   : > { %v4145_v43 = vcombine.high %v4141_v45, %v4141_v45  ;;  %v4269_v16 = vadd.f32 %v4144_v22, %v3590_v0  ;;  %v4271_v5 = vadd.f32 %v4141_v45, %v3592_v2  ;;  %v4272_v7 = vadd.f32 %v4143_v52, %v3593_v58 }
 0x1ea   : > { %v4394_v57 = vmul.f32 %v5957_v40, %v4267_v8  ;;  %v4395_v44 = vmul.f32 %v5976_v46, %v4268_v31  ;;  %v4397_v9 = vmul.f32 %v5954_v39, %v4270_v37  ;;  %v4520_v30 = vadd.f32 %v5960_v41, %v4393_v36 }
 0x1eb   : > { %v4273_v49 = vadd.f32 %v4145_v43, %v3594_v13  ;;  %v4396_v27 = vmul.f32 %v5984_v50, %v4269_v16  ;;  %v4398_v1 = vmul.f32 %v5963_v42, %v4271_v5  ;;  %v4399_v15 = vmul.f32 %v5980_v47, %v4272_v7 }
 0x1ec   : > { %v4521_v38 = vadd.f32 %v5969_v24, %v4394_v57  ;;  %v4522_v29 = vadd.f32 %v5988_v19, %v4395_v44  ;;  %v4524_v60 = vadd.f32 %v5966_v23, %v4397_v9  ;;  %v4584_v40 = vmax.f32 %v4520_v30, 0.0 }
 0x1ed   : > { %v4400_v46 = vmul.f32 %v7190_v53, %v4273_v49  ;;  %v4523_v39 = vadd.f32 %v5994_v54, %v4396_v27  ;;  %v4525_v41 = vadd.f32 %v5972_v18, %v4398_v1  ;;  %v4526_v48 = vadd.f32 %v6002_v56, %v4399_v15 }
 0x1ee   : > { %v4585_v50 = vmax.f32 %v4521_v38, 0.0  ;;  %v4586_v51 = vmax.f32 %v4522_v29, 0.0  ;;  %v4588_v42 = vmax.f32 %v4524_v60, 0.0 }
 0x1ef   : > { %v4527_v47 = vadd.f32 %v7191_v3, %v4400_v46  ;;  %v4587_v0 = vmax.f32 %v4523_v39, 0.0  ;;  %v4589_v24 = vmax.f32 %v4525_v41, 0.0  ;;  %v4590_v2 = vmax.f32 %v4526_v48, 0.0 }
 0x1f0   : > { %v4999_v19 = vcombine.low %v4584_v40, %v4585_v50 }
 0x1f1   : > { %v4591_v23 = vmax.f32 %v4527_v47, 0.0  ;;  %v5000_v59 = vcombine.low %v4586_v51, %v4587_v0  ;;  %v5001_v4 = vcombine.low %v4588_v42, %v4589_v24 }
 0x1f2   : > { %v5009_v54 = vrot.slane %v4999_v19, %v5583_v20 }
 0x1f3   : > { %v5002_v53 = vcombine.low %v4590_v2, %v4591_v23  ;;  %v5016_v18 = vrot.slane %v5000_v59, %v5583_v20  ;;  %v5023_v56 = vrot.slane %v5001_v4, %v5583_v20 }
 0x1f5   : > { %v5030_v58 = vrot.slane %v5002_v53, %v5583_v20  ;;  %v5031_v13 = vcombine.low %v5009_v54, %v5016_v18 }
 0x1f7   : > { %v5032_v25 = vcombine.low %v5023_v56, %v5030_v58  ;;  %v5039_v3 = vrot.slane %v5031_v13, %v5583_v20 }
 0x1f9   : > { %v5046_v17 = vrot.slane %v5032_v25, %v5583_v20 }
 0x1fb   : > { %v5047_v14 = vcombine.low %v5039_v3, %v5046_v17 }
 0x1fd   : > { %v5310_v61 = vpack.c.bf16 %v5047_v14, %v4998_v26 }
 0x1ff   : > { %5314 = vst [vmem:[%s6697_s9 + $0x18] sm:$0xff] %v5310_v61  }
 0x200 PF: > { %s14_s15 = sadd.s32 1, %s5497_s15  }
 0x201   : > { %p11_p4 = scmp.ge.s32.totalorder %s14_s15, 4  }
 0x203   :  { %13 = sbr.rel (!%p11_p4) target bundleno = 1 (0x1), region = 70 }

// kernel: resnet_generator_pallas.13
= control target key start
LH: loop header
LB: loop body
LE: loop exit
PB: predicated region body
PF: predicated region fallthrough
CT: control target
= control target key end

     0   :  { %s2361_s12 = smov 0   ;;  %s2650_s0 = inlined_call_operand.vmem [shape: bf16[2,1568,256], index: 0, kind: input, shape index: {}]   ;;  %s2651_s1 = inlined_call_operand.vmem [shape: bf16[3,1568], index: 1, kind: input, shape index: {}]   ;;  %s2652_s2 = inlined_call_operand.vmem [shape: f32[3,1], index: 2, kind: input, shape index: {}]   ;;  %s2653_s3 = inlined_call_operand.vmem [shape: f32[2,3,256], index: 3, kind: output, shape index: {}]  }
   0x1 LB: > { %s1785_s13 = sadd.s32 4294967295, %s2337_s12   ;;  %p1789_p0 = scmp.ge.s32.totalorder %s2337_s12, 1  ;;  %s2337_s12 = sphi %s2361_s12, %s13_s12  }
   0x2   : > { %p137_p1 = scmp.lt.s32.totalorder %s2337_s12, 3 }
   0x4   : > { %p138_p2 = pnand %p1789_p0, %p137_p1 }
   0x5   : > { %p161_p3 = scmp.lt.s32.totalorder (!%p138_p2), %s1785_s13, 1  ;;  %v386_v0 = vlaneseq (!%p138_p2)  ;;  %v2372_v1 = vld [vmem:[%s2651_s1 + $0x8] sm:$0xff] (!%p138_p2)  ;;  %v2339_v2 = vmov (!%p138_p2), 1983009808   ;;  %v2382_v7 = vld [vmem:[%s2651_s1] sm:$0xff] (!%p138_p2)  ;;  %vm1432_vm0 = vcmask (!%p138_p2), 261120  }
   0x6   : > { %141 = sbr.rel (%p138_p2) target bundleno = 452 (0x1c4), region = 32  ;;  %v384_v3 = vunpack.c.l.s4 (!%p138_p2), %v2339_v2  ;;  %v399_v6 = vcombine.high (!%p138_p2), %v2372_v1, %v2372_v1 }
   0x7   : > { %v387_v4 = vshrl.u32 (!%p138_p2), %v386_v0, 7 }
   0x8   : > { %v385_v5 = vunpack.c.0.s8 (!%p138_p2), %v384_v3 }
   0xa   : > { %v2384_v8 = vsub.s32 (!%p138_p2), %v385_v5, %v387_v4 }
   0xc   : > { %v2394_v10 = vrot.slane (!%p138_p2), %v2382_v7, %v2384_v8  ;;  %v2397_v11 = vrot.slane (!%p138_p2), %v399_v6, %v2384_v8 }
   0xd   : > { %s2655_s13 = smov (!%p161_p3, %s1785_s13), 1 }
   0xe   : > { %s2018_s16 = smul.u32 1568, %s2655_s13  ;;  %v397_v15 = vcombine.high %v2394_v10, %v2394_v10  ;;  %v415_v16 = vcombine.high %v2397_v11, %v2397_v11  ;;  %s1993_s28 = sshll.u32 %s2655_s13, 3 }
   0xf   : > { %s170_s4 = scalar_lea.vmem %s2653_s3, %s1993_s28 }
  0x10   : > { %s2389_s21 = scalar_lea.vmem %s2650_s0, %s2018_s16  ;;  %1468 = vmatprep.mubr.bf16.mxu1 %v397_v15  ;;  %1591 = vmatprep.mubr.bf16.mxu0 %v415_v16  ;;  %v382_v16 = vcombine.high %v2382_v7, %v2382_v7 }
  0x11   : > { %v2030_v9 = vld [vmem:[%s2389_s21 + $0x4] ss:$8 sps:$4 sm:$0xff]   ;;  %v2034_v13 = vld [vmem:[%s2389_s21] ss:$8 sps:$4 sm:$0xff]   ;;  %v2036_v17 = vld [vmem:[%s2389_s21 + $0x14] ss:$8 sps:$4 sm:$0xff]  }
  0x12   : > { %v2032_v12 = vld [vmem:[%s2389_s21 + $0x304] ss:$8 sps:$4 sm:$0xff]   ;;  %1436 = vmatprep.subr.bf16.mxu1 %v2030_v9  ;;  %v2035_v14 = vld [vmem:[%s2389_s21 + $0x300] ss:$8 sps:$4 sm:$0xff]   ;;  %v2038_v18 = vld [vmem:[%s2389_s21 + $0x314] ss:$8 sps:$4 sm:$0xff]  }
  0x13   : > { %1559 = vmatprep.subr.bf16.mxu0 %v2032_v12  ;;  %1437 = vmatpush1.bf16.msra.mxu1 %v2034_v13  ;;  %v2040_v19 = vld [vmem:[%s2389_s21 + $0x10] ss:$8 sps:$4 sm:$0xff]   ;;  %v2042_v21 = vld [vmem:[%s2389_s21 + $0x24] ss:$8 sps:$4 sm:$0xff]   ;;  %v2046_v23 = vld [vmem:[%s2389_s21 + $0x20] ss:$8 sps:$4 sm:$0xff]  }
  0x14   : > { %1560 = vmatpush1.bf16.msra.mxu0 %v2035_v14  ;;  %1438 = vmatprep.subr.bf16.mxu1 %v2036_v17  ;;  %v2041_v20 = vld [vmem:[%s2389_s21 + $0x310] ss:$8 sps:$4 sm:$0xff]   ;;  %v2044_v22 = vld [vmem:[%s2389_s21 + $0x324] ss:$8 sps:$4 sm:$0xff]   ;;  %v2047_v24 = vld [vmem:[%s2389_s21 + $0x320] ss:$8 sps:$4 sm:$0xff]  }
  0x15   : > { %1561 = vmatprep.subr.bf16.mxu0 %v2038_v18  ;;  %v2048_v25 = vld [vmem:[%s2389_s21 + $0x34] ss:$8 sps:$4 sm:$0xff]   ;;  %v2052_v27 = vld [vmem:[%s2389_s21 + $0x30] ss:$8 sps:$4 sm:$0xff]   ;;  %v2054_v29 = vld [vmem:[%s2389_s21 + $0x44] ss:$8 sps:$4 sm:$0xff]  }
  0x16   : > { %v2050_v26 = vld [vmem:[%s2389_s21 + $0x334] ss:$8 sps:$4 sm:$0xff]   ;;  %v2053_v28 = vld [vmem:[%s2389_s21 + $0x330] ss:$8 sps:$4 sm:$0xff]   ;;  %v2056_v30 = vld [vmem:[%s2389_s21 + $0x344] ss:$8 sps:$4 sm:$0xff]  }
  0x17   : > { %1439 = vmatpush1.bf16.msra.mxu1 %v2040_v19  ;;  %v2058_v31 = vld [vmem:[%s2389_s21 + $0x40] ss:$8 sps:$4 sm:$0xff]   ;;  %v2060_v33 = vld [vmem:[%s2389_s21 + $0x54] ss:$8 sps:$4 sm:$0xff]   ;;  %v2064_v35 = vld [vmem:[%s2389_s21 + $0x50] ss:$8 sps:$4 sm:$0xff]  }
  0x18   : > { %1562 = vmatpush1.bf16.msra.mxu0 %v2041_v20  ;;  %1440 = vmatprep.subr.bf16.mxu1 %v2042_v21  ;;  %v2059_v32 = vld [vmem:[%s2389_s21 + $0x340] ss:$8 sps:$4 sm:$0xff]   ;;  %v2062_v34 = vld [vmem:[%s2389_s21 + $0x354] ss:$8 sps:$4 sm:$0xff]   ;;  %v2065_v36 = vld [vmem:[%s2389_s21 + $0x350] ss:$8 sps:$4 sm:$0xff]  }
  0x19   : > { %1563 = vmatprep.subr.bf16.mxu0 %v2044_v22  ;;  %v2066_v37 = vld [vmem:[%s2389_s21 + $0x64] ss:$8 sps:$4 sm:$0xff]   ;;  %v2070_v39 = vld [vmem:[%s2389_s21 + $0x60] ss:$8 sps:$4 sm:$0xff]   ;;  %v2072_v41 = vld [vmem:[%s2389_s21 + $0x74] ss:$8 sps:$4 sm:$0xff]   ;;  %v2476_v22 = vrot.slane %v382_v16, %v2384_v8 }
  0x1a   : > { %v2068_v38 = vld [vmem:[%s2389_s21 + $0x364] ss:$8 sps:$4 sm:$0xff]   ;;  %v2071_v40 = vld [vmem:[%s2389_s21 + $0x360] ss:$8 sps:$4 sm:$0xff]   ;;  %v2074_v42 = vld [vmem:[%s2389_s21 + $0x374] ss:$8 sps:$4 sm:$0xff]  }
  0x1b   : > { %1441 = vmatpush1.bf16.msra.mxu1 %v2046_v23  ;;  %v2076_v43 = vld [vmem:[%s2389_s21 + $0x70] ss:$8 sps:$4 sm:$0xff]   ;;  %v2078_v45 = vld [vmem:[%s2389_s21 + $0x84] ss:$8 sps:$4 sm:$0xff]   ;;  %v2082_v47 = vld [vmem:[%s2389_s21 + $0x80] ss:$8 sps:$4 sm:$0xff]  }
  0x1c   : > { %1564 = vmatpush1.bf16.msra.mxu0 %v2047_v24  ;;  %1442 = vmatprep.subr.bf16.mxu1 %v2048_v25  ;;  %v2077_v44 = vld [vmem:[%s2389_s21 + $0x370] ss:$8 sps:$4 sm:$0xff]   ;;  %v2080_v46 = vld [vmem:[%s2389_s21 + $0x384] ss:$8 sps:$4 sm:$0xff]   ;;  %v2083_v48 = vld [vmem:[%s2389_s21 + $0x380] ss:$8 sps:$4 sm:$0xff]  }
  0x1d   : > { %1565 = vmatprep.subr.bf16.mxu0 %v2050_v26  ;;  %v2084_v49 = vld [vmem:[%s2389_s21 + $0x94] ss:$8 sps:$4 sm:$0xff]   ;;  %v2088_v51 = vld [vmem:[%s2389_s21 + $0x90] ss:$8 sps:$4 sm:$0xff]   ;;  %v2090_v53 = vld [vmem:[%s2389_s21 + $0xa4] ss:$8 sps:$4 sm:$0xff]  }
  0x1e   : > { %v2086_v50 = vld [vmem:[%s2389_s21 + $0x394] ss:$8 sps:$4 sm:$0xff]   ;;  %v2089_v52 = vld [vmem:[%s2389_s21 + $0x390] ss:$8 sps:$4 sm:$0xff]   ;;  %v2092_v54 = vld [vmem:[%s2389_s21 + $0x3a4] ss:$8 sps:$4 sm:$0xff]  }
  0x1f   : > { %1443 = vmatpush1.bf16.msra.mxu1 %v2052_v27  ;;  %v2094_v55 = vld [vmem:[%s2389_s21 + $0xa0] ss:$8 sps:$4 sm:$0xff]   ;;  %v2096_v57 = vld [vmem:[%s2389_s21 + $0xb4] ss:$8 sps:$4 sm:$0xff]   ;;  %v2100_v59 = vld [vmem:[%s2389_s21 + $0xb0] ss:$8 sps:$4 sm:$0xff]   ;;  %v398_v27 = vcombine.high %v2476_v22, %v2476_v22 }
  0x20   : > { %1566 = vmatpush1.bf16.msra.mxu0 %v2053_v28  ;;  %1444 = vmatprep.subr.bf16.mxu1 %v2054_v29  ;;  %v2095_v56 = vld [vmem:[%s2389_s21 + $0x3a0] ss:$8 sps:$4 sm:$0xff]   ;;  %v2098_v58 = vld [vmem:[%s2389_s21 + $0x3b4] ss:$8 sps:$4 sm:$0xff]   ;;  %v2101_v60 = vld [vmem:[%s2389_s21 + $0x3b0] ss:$8 sps:$4 sm:$0xff]  }
  0x21   : > { %1567 = vmatprep.subr.bf16.mxu0 %v2056_v30  ;;  %v2102_v61 = vld [vmem:[%s2389_s21 + $0xc4] ss:$8 sps:$4 sm:$0xff]   ;;  %v2106_v63 = vld [vmem:[%s2389_s21 + $0xc0] ss:$8 sps:$4 sm:$0xff]   ;;  %v2108_v2 = vld [vmem:[%s2389_s21 + $0xd4] ss:$8 sps:$4 sm:$0xff]  }
  0x22   : > { %v2104_v62 = vld [vmem:[%s2389_s21 + $0x3c4] ss:$8 sps:$4 sm:$0xff]   ;;  %v2107_v0 = vld [vmem:[%s2389_s21 + $0x3c0] ss:$8 sps:$4 sm:$0xff]   ;;  %v2110_v3 = vld [vmem:[%s2389_s21 + $0x3d4] ss:$8 sps:$4 sm:$0xff]  }
  0x23   : > { %1445 = vmatpush1.bf16.msra.mxu1 %v2058_v31  ;;  %v2112_v4 = vld [vmem:[%s2389_s21 + $0xd0] ss:$8 sps:$4 sm:$0xff]   ;;  %v2114_v6 = vld [vmem:[%s2389_s21 + $0xe4] ss:$8 sps:$4 sm:$0xff]   ;;  %v2118_v12 = vld [vmem:[%s2389_s21 + $0xe0] ss:$8 sps:$4 sm:$0xff]  }
  0x24   : > { %1568 = vmatpush1.bf16.msra.mxu0 %v2059_v32  ;;  %1446 = vmatprep.subr.bf16.mxu1 %v2060_v33  ;;  %v2113_v5 = vld [vmem:[%s2389_s21 + $0x3d0] ss:$8 sps:$4 sm:$0xff]   ;;  %v2116_v9 = vld [vmem:[%s2389_s21 + $0x3e4] ss:$8 sps:$4 sm:$0xff]   ;;  %v2119_v13 = vld [vmem:[%s2389_s21 + $0x3e0] ss:$8 sps:$4 sm:$0xff]  }
  0x25   : > { %1569 = vmatprep.subr.bf16.mxu0 %v2062_v34  ;;  %v2120_v14 = vld [vmem:[%s2389_s21 + $0xf4] ss:$8 sps:$4 sm:$0xff]   ;;  %v2124_v18 = vld [vmem:[%s2389_s21 + $0xf0] ss:$8 sps:$4 sm:$0xff]   ;;  %v2129_v20 = vld [vmem:[%s2389_s21 + $0x104] ss:$8 sps:$4 sm:$0xff]  }
  0x26   : > { %v2122_v15 = vld [vmem:[%s2389_s21 + $0x3f4] ss:$8 sps:$4 sm:$0xff]   ;;  %v2125_v19 = vld [vmem:[%s2389_s21 + $0x3f0] ss:$8 sps:$4 sm:$0xff]   ;;  %v2133_v21 = vld [vmem:[%s2389_s21 + $0x404] ss:$8 sps:$4 sm:$0xff]  }
  0x27   : > { %1447 = vmatpush1.bf16.msra.mxu1 %v2064_v35  ;;  %v2469_v17 = vld [vmem:[%s2651_s1 + $0x10] sm:$0xff]  ;;  %v2127_v23 = vld [vmem:[%s2389_s21 + $0x100] ss:$8 sps:$4 sm:$0xff]   ;;  %v2142_v31 = vld [vmem:[%s2389_s21 + $0x124] ss:$8 sps:$4 sm:$0xff]   ;;  %v2340_v35 = vmov 0  }
  0x28   : > { %1570 = vmatpush1.bf16.msra.mxu0 %v2065_v36  ;;  %1448 = vmatprep.subr.bf16.mxu1 %v2066_v37  ;;  %v2480_v7 = vrot.slane %v2469_v17, %v2384_v8  ;;  %v2131_v24 = vld [vmem:[%s2389_s21 + $0x400] ss:$8 sps:$4 sm:$0xff]   ;;  %v2136_v25 = vld [vmem:[%s2389_s21 + $0x114] ss:$8 sps:$4 sm:$0xff]   ;;  %v2134_v29 = vld [vmem:[%s2389_s21 + $0x110] ss:$8 sps:$4 sm:$0xff]  }
  0x29   : > { %1571 = vmatprep.subr.bf16.mxu0 %v2068_v38  ;;  %v2139_v26 = vld [vmem:[%s2389_s21 + $0x414] ss:$8 sps:$4 sm:$0xff]   ;;  %v2137_v30 = vld [vmem:[%s2389_s21 + $0x410] ss:$8 sps:$4 sm:$0xff]   ;;  %v2145_v32 = vld [vmem:[%s2389_s21 + $0x424] ss:$8 sps:$4 sm:$0xff]   ;;  %2029 = vset.pattern.permute.xlu0 %v2340_v35 }
  0x2a   : > { %v431_v28 = vcombine.high %v2480_v7, %v2480_v7  ;;  %v2140_v33 = vld [vmem:[%s2389_s21 + $0x120] ss:$8 sps:$4 sm:$0xff]   ;;  %v2146_v36 = vld [vmem:[%s2389_s21 + $0x130] ss:$8 sps:$4 sm:$0xff]   ;;  %v2154_v38 = vld [vmem:[%s2389_s21 + $0x144] ss:$8 sps:$4 sm:$0xff]  }
  0x2b   : > { %1449 = vmatpush1.bf16.msra.mxu1 %v2070_v39  ;;  %v2143_v34 = vld [vmem:[%s2389_s21 + $0x420] ss:$8 sps:$4 sm:$0xff]   ;;  %v2149_v37 = vld [vmem:[%s2389_s21 + $0x430] ss:$8 sps:$4 sm:$0xff]   ;;  %v2157_v39 = vld [vmem:[%s2389_s21 + $0x444] ss:$8 sps:$4 sm:$0xff]  }
  0x2c   : > { %1572 = vmatpush1.bf16.msra.mxu0 %v2071_v40  ;;  %1450 = vmatprep.subr.bf16.mxu1 %v2072_v41  ;;  %v2152_v40 = vld [vmem:[%s2389_s21 + $0x140] ss:$8 sps:$4 sm:$0xff]   ;;  %v2211_v16 = vld [vmem:[%s2389_s21 + $0x4d4] ss:$8 sps:$4 sm:$0xff]  }
  0x2d   : > { %1573 = vmatprep.subr.bf16.mxu0 %v2074_v42  ;;  %v2155_v41 = vld [vmem:[%s2389_s21 + $0x440] ss:$8 sps:$4 sm:$0xff]   ;;  %v2160_v42 = vld [vmem:[%s2389_s21 + $0x154] ss:$8 sps:$4 sm:$0xff]  }
  0x2f   : > { %1451 = vmatpush1.bf16.msra.mxu1 %v2076_v43  ;;  %v2163_v43 = vld [vmem:[%s2389_s21 + $0x454] ss:$8 sps:$4 sm:$0xff]  }
  0x30   : > { %1574 = vmatpush1.bf16.msra.mxu0 %v2077_v44  ;;  %1452 = vmatprep.subr.bf16.mxu1 %v2078_v45  ;;  %v2158_v44 = vld [vmem:[%s2389_s21 + $0x150] ss:$8 sps:$4 sm:$0xff]  }
  0x31   : > { %1575 = vmatprep.subr.bf16.mxu0 %v2080_v46  ;;  %v2161_v45 = vld [vmem:[%s2389_s21 + $0x450] ss:$8 sps:$4 sm:$0xff]   ;;  %v2166_v46 = vld [vmem:[%s2389_s21 + $0x164] ss:$8 sps:$4 sm:$0xff]  }
  0x33   : > { %1453 = vmatpush1.bf16.msra.mxu1 %v2082_v47  ;;  %v2169_v47 = vld [vmem:[%s2389_s21 + $0x464] ss:$8 sps:$4 sm:$0xff]  }
  0x34   : > { %1576 = vmatpush1.bf16.msra.mxu0 %v2083_v48  ;;  %1454 = vmatprep.subr.bf16.mxu1 %v2084_v49  ;;  %v2164_v48 = vld [vmem:[%s2389_s21 + $0x160] ss:$8 sps:$4 sm:$0xff]  }
  0x35   : > { %1577 = vmatprep.subr.bf16.mxu0 %v2086_v50  ;;  %v2167_v49 = vld [vmem:[%s2389_s21 + $0x460] ss:$8 sps:$4 sm:$0xff]   ;;  %v2172_v50 = vld [vmem:[%s2389_s21 + $0x174] ss:$8 sps:$4 sm:$0xff]  }
  0x37   : > { %1455 = vmatpush1.bf16.msra.mxu1 %v2088_v51  ;;  %v2175_v51 = vld [vmem:[%s2389_s21 + $0x474] ss:$8 sps:$4 sm:$0xff]  }
  0x38   : > { %1578 = vmatpush1.bf16.msra.mxu0 %v2089_v52  ;;  %1456 = vmatprep.subr.bf16.mxu1 %v2090_v53  ;;  %v2170_v52 = vld [vmem:[%s2389_s21 + $0x170] ss:$8 sps:$4 sm:$0xff]  }
  0x39   : > { %1579 = vmatprep.subr.bf16.mxu0 %v2092_v54  ;;  %v2173_v53 = vld [vmem:[%s2389_s21 + $0x470] ss:$8 sps:$4 sm:$0xff]   ;;  %v2178_v54 = vld [vmem:[%s2389_s21 + $0x184] ss:$8 sps:$4 sm:$0xff]  }
  0x3b   : > { %1457 = vmatpush1.bf16.msra.mxu1 %v2094_v55  ;;  %v2181_v55 = vld [vmem:[%s2389_s21 + $0x484] ss:$8 sps:$4 sm:$0xff]  }
  0x3c   : > { %1580 = vmatpush1.bf16.msra.mxu0 %v2095_v56  ;;  %1458 = vmatprep.subr.bf16.mxu1 %v2096_v57  ;;  %v2176_v56 = vld [vmem:[%s2389_s21 + $0x180] ss:$8 sps:$4 sm:$0xff]  }
  0x3d   : > { %1581 = vmatprep.subr.bf16.mxu0 %v2098_v58  ;;  %v2179_v57 = vld [vmem:[%s2389_s21 + $0x480] ss:$8 sps:$4 sm:$0xff]   ;;  %v2184_v58 = vld [vmem:[%s2389_s21 + $0x194] ss:$8 sps:$4 sm:$0xff]  }
  0x3f   : > { %1459 = vmatpush1.bf16.msra.mxu1 %v2100_v59  ;;  %v2187_v59 = vld [vmem:[%s2389_s21 + $0x494] ss:$8 sps:$4 sm:$0xff]  }
  0x40   : > { %1582 = vmatpush1.bf16.msra.mxu0 %v2101_v60  ;;  %1460 = vmatprep.subr.bf16.mxu1 %v2102_v61  ;;  %v2182_v60 = vld [vmem:[%s2389_s21 + $0x190] ss:$8 sps:$4 sm:$0xff]  }
  0x41   : > { %1583 = vmatprep.subr.bf16.mxu0 %v2104_v62  ;;  %v2185_v61 = vld [vmem:[%s2389_s21 + $0x490] ss:$8 sps:$4 sm:$0xff]   ;;  %v2190_v62 = vld [vmem:[%s2389_s21 + $0x1a4] ss:$8 sps:$4 sm:$0xff]  }
  0x43   : > { %1461 = vmatpush1.bf16.msra.mxu1 %v2106_v63  ;;  %v2193_v63 = vld [vmem:[%s2389_s21 + $0x4a4] ss:$8 sps:$4 sm:$0xff]  }
  0x44   : > { %1584 = vmatpush1.bf16.msra.mxu0 %v2107_v0  ;;  %1462 = vmatprep.subr.bf16.mxu1 %v2108_v2  ;;  %v2188_v0 = vld [vmem:[%s2389_s21 + $0x1a0] ss:$8 sps:$4 sm:$0xff]  }
  0x45   : > { %1585 = vmatprep.subr.bf16.mxu0 %v2110_v3  ;;  %v2191_v2 = vld [vmem:[%s2389_s21 + $0x4a0] ss:$8 sps:$4 sm:$0xff]   ;;  %v2196_v3 = vld [vmem:[%s2389_s21 + $0x1b4] ss:$8 sps:$4 sm:$0xff]  }
  0x47   : > { %1463 = vmatpush1.bf16.msra.mxu1 %v2112_v4  ;;  %v2199_v4 = vld [vmem:[%s2389_s21 + $0x4b4] ss:$8 sps:$4 sm:$0xff]  }
  0x48   : > { %1586 = vmatpush1.bf16.msra.mxu0 %v2113_v5  ;;  %1464 = vmatprep.subr.bf16.mxu1 %v2114_v6  ;;  %v2194_v5 = vld [vmem:[%s2389_s21 + $0x1b0] ss:$8 sps:$4 sm:$0xff]  }
  0x49   : > { %1587 = vmatprep.subr.bf16.mxu0 %v2116_v9  ;;  %v2197_v6 = vld [vmem:[%s2389_s21 + $0x4b0] ss:$8 sps:$4 sm:$0xff]   ;;  %v2202_v9 = vld [vmem:[%s2389_s21 + $0x1c4] ss:$8 sps:$4 sm:$0xff]  }
  0x4b   : > { %1465 = vmatpush1.bf16.msra.mxu1 %v2118_v12  ;;  %v2205_v12 = vld [vmem:[%s2389_s21 + $0x4c4] ss:$8 sps:$4 sm:$0xff]  }
  0x4c   : > { %1588 = vmatpush1.bf16.msra.mxu0 %v2119_v13  ;;  %1466 = vmatprep.subr.bf16.mxu1 %v2120_v14  ;;  %v2200_v13 = vld [vmem:[%s2389_s21 + $0x1c0] ss:$8 sps:$4 sm:$0xff]  }
  0x4d   : > { %1589 = vmatprep.subr.bf16.mxu0 %v2122_v15  ;;  %v2203_v14 = vld [vmem:[%s2389_s21 + $0x4c0] ss:$8 sps:$4 sm:$0xff]   ;;  %v2208_v15 = vld [vmem:[%s2389_s21 + $0x1d4] ss:$8 sps:$4 sm:$0xff]  }
  0x4f   : > { %1467 = vmatpush1.bf16.msra.mxu1 %v2124_v18  ;;  %v2206_v18 = vld [vmem:[%s2389_s21 + $0x1d0] ss:$8 sps:$4 sm:$0xff]  }
  0x50   : > { %1590 = vmatpush1.bf16.msra.mxu0 %v2125_v19  ;;  %1477 = vmatprep.subr.bf16.mxu1 %v2129_v20  ;;  %v2209_v19 = vld [vmem:[%s2389_s21 + $0x4d0] ss:$8 sps:$4 sm:$0xff]   ;;  %v2214_v20 = vld [vmem:[%s2389_s21 + $0x1e4] ss:$8 sps:$4 sm:$0xff]  }
  0x51   : > { %1600 = vmatprep.subr.bf16.mxu0 %v2133_v21  ;;  %v2217_v21 = vld [vmem:[%s2389_s21 + $0x4e4] ss:$8 sps:$4 sm:$0xff]  }
  0x52   : > { %1469 = vmatmul.mubr.bf16.vlgmr.msra.gmra.mrb[0].mxu1 %v2394_v10  ;;  %v2148_v10 = vld [vmem:[%s2389_s21 + $0x134] ss:$8 sps:$4 sm:$0xff]  }
  0x53   : > { %1592 = vmatmul.mubr.bf16.vlgmr.msra.gmra.mrb[0].mxu0 %v2397_v11  ;;  %1478 = vmatpush1.bf16.msra.mxu1 %v2127_v23  ;;  %v2151_v11 = vld [vmem:[%s2389_s21 + $0x434] ss:$8 sps:$4 sm:$0xff]   ;;  %v2212_v23 = vld [vmem:[%s2389_s21 + $0x1e0] ss:$8 sps:$4 sm:$0xff]  }
  0x54   : > { %1601 = vmatpush1.bf16.msra.mxu0 %v2131_v24  ;;  %1479 = vmatprep.subr.bf16.mxu1 %v2136_v25  ;;  %v2215_v24 = vld [vmem:[%s2389_s21 + $0x4e0] ss:$8 sps:$4 sm:$0xff]   ;;  %v2220_v25 = vld [vmem:[%s2389_s21 + $0x1f4] ss:$8 sps:$4 sm:$0xff]  }
  0x55   : > { %1602 = vmatprep.subr.bf16.mxu0 %v2139_v26  ;;  %1509 = vmatprep.mubr.bf16.mxu1 %v398_v27  ;;  %v2223_v26 = vld [vmem:[%s2389_s21 + $0x4f4] ss:$8 sps:$4 sm:$0xff]   ;;  %v416_v27 = vcombine.high %v2469_v17, %v2469_v17  ;;  %v2227_v17 = vld [vmem:[%s2389_s21 + $0x500] ss:$8 sps:$4 sm:$0xff]  }
  0x56   : > { %1632 = vmatprep.mubr.bf16.mxu0 %v431_v28  ;;  %v2218_v28 = vld [vmem:[%s2389_s21 + $0x1f0] ss:$8 sps:$4 sm:$0xff]  }
  0x57   : > { %1480 = vmatpush1.bf16.msra.mxu1 %v2134_v29  ;;  %v2221_v29 = vld [vmem:[%s2389_s21 + $0x4f0] ss:$8 sps:$4 sm:$0xff]  }
  0x58   : > { %1603 = vmatpush1.bf16.msra.mxu0 %v2137_v30  ;;  %1481 = vmatprep.subr.bf16.mxu1 %v2142_v31  ;;  %v2226_v30 = vld [vmem:[%s2389_s21 + $0x204] ss:$8 sps:$4 sm:$0xff]  }
  0x59   : > { %1604 = vmatprep.subr.bf16.mxu0 %v2145_v32  ;;  %v2229_v31 = vld [vmem:[%s2389_s21 + $0x504] ss:$8 sps:$4 sm:$0xff]   ;;  %v2557_v32 = vrot.slane %v2372_v1, %v2384_v8 }
  0x5b   : > { %1482 = vmatpush1.bf16.msra.mxu1 %v2140_v33  ;;  %v2560_v33 = vrot.slane %v416_v27, %v2384_v8  ;;  %v2230_v8 = vld [vmem:[%s2389_s21 + $0x210] ss:$8 sps:$4 sm:$0xff]  }
  0x5c   : > { %1605 = vmatpush1.bf16.msra.mxu0 %v2143_v34  ;;  %1483 = vmatprep.subr.bf16.mxu1 %v2148_v10  ;;  %v2224_v34 = vld [vmem:[%s2389_s21 + $0x200] ss:$8 sps:$4 sm:$0xff]   ;;  %v2232_v10 = vld [vmem:[%s2389_s21 + $0x214] ss:$8 sps:$4 sm:$0xff]   ;;  %v2305_v27 = vld [vmem:[%s2389_s21 + $0x5d0] ss:$8 sps:$4 sm:$0xff]  }
  0x5d   : > { %1606 = vmatprep.subr.bf16.mxu0 %v2151_v11  ;;  %v2235_v11 = vld [vmem:[%s2389_s21 + $0x514] ss:$8 sps:$4 sm:$0xff]   ;;  %v432_v1 = vcombine.high %v2560_v33, %v2560_v33 }
  0x5f   : > { %1484 = vmatpush1.bf16.msra.mxu1 %v2146_v36  ;;  %v414_v36 = vcombine.high %v2557_v32, %v2557_v32 }
  0x60   : > { %1607 = vmatpush1.bf16.msra.mxu0 %v2149_v37  ;;  %1485 = vmatprep.subr.bf16.mxu1 %v2154_v38  ;;  %v2233_v37 = vld [vmem:[%s2389_s21 + $0x510] ss:$8 sps:$4 sm:$0xff]   ;;  %v372_v38 = vld [vmem:[%s2652_s2] sm:$0x7] }
  0x61   : > { %1608 = vmatprep.subr.bf16.mxu0 %v2157_v39  ;;  %v2238_v39 = vld [vmem:[%s2389_s21 + $0x224] ss:$8 sps:$4 sm:$0xff]   ;;  %375 = vperm.xlu0 %2029, %v372_v38   ;;  %v1793_v38 = vld.sshfl [vmem:[%s2651_s1 + $0x18] sm:$0x3 pattern:$0x76325410] }
  0x63   : > { %1486 = vmatpush1.bf16.msra.mxu1 %v2152_v40  ;;  %v2239_v40 = vld [vmem:[%s2389_s21 + $0x520] ss:$8 sps:$4 sm:$0xff]  }
  0x64   : > { %1609 = vmatpush1.bf16.msra.mxu0 %v2155_v41  ;;  %1487 = vmatprep.subr.bf16.mxu1 %v2160_v42  ;;  %v2244_v41 = vld [vmem:[%s2389_s21 + $0x234] ss:$8 sps:$4 sm:$0xff]  }
  0x65   : > { %1610 = vmatprep.subr.bf16.mxu0 %v2163_v43  ;;  %v2247_v42 = vld [vmem:[%s2389_s21 + $0x534] ss:$8 sps:$4 sm:$0xff]   ;;  %v2242_v43 = vld [vmem:[%s2389_s21 + $0x230] ss:$8 sps:$4 sm:$0xff]  }
  0x67   : > { %1488 = vmatpush1.bf16.msra.mxu1 %v2158_v44  ;;  %v2245_v44 = vld [vmem:[%s2389_s21 + $0x530] ss:$8 sps:$4 sm:$0xff]  }
  0x68   : > { %1611 = vmatpush1.bf16.msra.mxu0 %v2161_v45  ;;  %1489 = vmatprep.subr.bf16.mxu1 %v2166_v46  ;;  %v2250_v45 = vld [vmem:[%s2389_s21 + $0x244] ss:$8 sps:$4 sm:$0xff]  }
  0x69   : > { %1612 = vmatprep.subr.bf16.mxu0 %v2169_v47  ;;  %v2253_v46 = vld [vmem:[%s2389_s21 + $0x544] ss:$8 sps:$4 sm:$0xff]   ;;  %v2248_v47 = vld [vmem:[%s2389_s21 + $0x240] ss:$8 sps:$4 sm:$0xff]  }
  0x6b   : > { %1490 = vmatpush1.bf16.msra.mxu1 %v2164_v48  ;;  %v2251_v48 = vld [vmem:[%s2389_s21 + $0x540] ss:$8 sps:$4 sm:$0xff]  }
  0x6c   : > { %1613 = vmatpush1.bf16.msra.mxu0 %v2167_v49  ;;  %1491 = vmatprep.subr.bf16.mxu1 %v2172_v50  ;;  %v2256_v49 = vld [vmem:[%s2389_s21 + $0x254] ss:$8 sps:$4 sm:$0xff]  }
  0x6d   : > { %1614 = vmatprep.subr.bf16.mxu0 %v2175_v51  ;;  %v2259_v50 = vld [vmem:[%s2389_s21 + $0x554] ss:$8 sps:$4 sm:$0xff]   ;;  %v2254_v51 = vld [vmem:[%s2389_s21 + $0x250] ss:$8 sps:$4 sm:$0xff]  }
  0x6f   : > { %1492 = vmatpush1.bf16.msra.mxu1 %v2170_v52  ;;  %v2257_v52 = vld [vmem:[%s2389_s21 + $0x550] ss:$8 sps:$4 sm:$0xff]  }
  0x70   : > { %1615 = vmatpush1.bf16.msra.mxu0 %v2173_v53  ;;  %1493 = vmatprep.subr.bf16.mxu1 %v2178_v54  ;;  %v2262_v53 = vld [vmem:[%s2389_s21 + $0x264] ss:$8 sps:$4 sm:$0xff]  }
  0x71   : > { %1616 = vmatprep.subr.bf16.mxu0 %v2181_v55  ;;  %v2265_v54 = vld [vmem:[%s2389_s21 + $0x564] ss:$8 sps:$4 sm:$0xff]   ;;  %v2260_v55 = vld [vmem:[%s2389_s21 + $0x260] ss:$8 sps:$4 sm:$0xff]  }
  0x73   : > { %1494 = vmatpush1.bf16.msra.mxu1 %v2176_v56  ;;  %v2263_v56 = vld [vmem:[%s2389_s21 + $0x560] ss:$8 sps:$4 sm:$0xff]  }
  0x74   : > { %1617 = vmatpush1.bf16.msra.mxu0 %v2179_v57  ;;  %1495 = vmatprep.subr.bf16.mxu1 %v2184_v58  ;;  %v2268_v57 = vld [vmem:[%s2389_s21 + $0x274] ss:$8 sps:$4 sm:$0xff]  }
  0x75   : > { %1618 = vmatprep.subr.bf16.mxu0 %v2187_v59  ;;  %v2271_v58 = vld [vmem:[%s2389_s21 + $0x574] ss:$8 sps:$4 sm:$0xff]   ;;  %v2266_v59 = vld [vmem:[%s2389_s21 + $0x270] ss:$8 sps:$4 sm:$0xff]  }
  0x77   : > { %1496 = vmatpush1.bf16.msra.mxu1 %v2182_v60  ;;  %v2269_v60 = vld [vmem:[%s2389_s21 + $0x570] ss:$8 sps:$4 sm:$0xff]  }
  0x78   : > { %1619 = vmatpush1.bf16.msra.mxu0 %v2185_v61  ;;  %1497 = vmatprep.subr.bf16.mxu1 %v2190_v62  ;;  %v2274_v61 = vld [vmem:[%s2389_s21 + $0x284] ss:$8 sps:$4 sm:$0xff]  }
  0x79   : > { %1620 = vmatprep.subr.bf16.mxu0 %v2193_v63  ;;  %v2277_v62 = vld [vmem:[%s2389_s21 + $0x584] ss:$8 sps:$4 sm:$0xff]   ;;  %v2272_v63 = vld [vmem:[%s2389_s21 + $0x280] ss:$8 sps:$4 sm:$0xff]  }
  0x7b   : > { %1498 = vmatpush1.bf16.msra.mxu1 %v2188_v0  ;;  %v2275_v0 = vld [vmem:[%s2389_s21 + $0x580] ss:$8 sps:$4 sm:$0xff]  }
  0x7c   : > { %1621 = vmatpush1.bf16.msra.mxu0 %v2191_v2  ;;  %1499 = vmatprep.subr.bf16.mxu1 %v2196_v3  ;;  %v2280_v2 = vld [vmem:[%s2389_s21 + $0x294] ss:$8 sps:$4 sm:$0xff]  }
  0x7d   : > { %1622 = vmatprep.subr.bf16.mxu0 %v2199_v4  ;;  %v2283_v3 = vld [vmem:[%s2389_s21 + $0x594] ss:$8 sps:$4 sm:$0xff]   ;;  %v2278_v4 = vld [vmem:[%s2389_s21 + $0x290] ss:$8 sps:$4 sm:$0xff]  }
  0x7f   : > { %1500 = vmatpush1.bf16.msra.mxu1 %v2194_v5  ;;  %v2281_v5 = vld [vmem:[%s2389_s21 + $0x590] ss:$8 sps:$4 sm:$0xff]  }
  0x80   : > { %1623 = vmatpush1.bf16.msra.mxu0 %v2197_v6  ;;  %1501 = vmatprep.subr.bf16.mxu1 %v2202_v9  ;;  %v2286_v6 = vld [vmem:[%s2389_s21 + $0x2a4] ss:$8 sps:$4 sm:$0xff]  }
  0x81   : > { %1624 = vmatprep.subr.bf16.mxu0 %v2205_v12  ;;  %v2289_v9 = vld [vmem:[%s2389_s21 + $0x5a4] ss:$8 sps:$4 sm:$0xff]   ;;  %v2284_v12 = vld [vmem:[%s2389_s21 + $0x2a0] ss:$8 sps:$4 sm:$0xff]  }
  0x83   : > { %1502 = vmatpush1.bf16.msra.mxu1 %v2200_v13  ;;  %v2287_v13 = vld [vmem:[%s2389_s21 + $0x5a0] ss:$8 sps:$4 sm:$0xff]  }
  0x84   : > { %1625 = vmatpush1.bf16.msra.mxu0 %v2203_v14  ;;  %1503 = vmatprep.subr.bf16.mxu1 %v2208_v15  ;;  %v2292_v14 = vld [vmem:[%s2389_s21 + $0x2b4] ss:$8 sps:$4 sm:$0xff]  }
  0x85   : > { %1626 = vmatprep.subr.bf16.mxu0 %v2211_v16  ;;  %v2295_v15 = vld [vmem:[%s2389_s21 + $0x5b4] ss:$8 sps:$4 sm:$0xff]   ;;  %v2290_v16 = vld [vmem:[%s2389_s21 + $0x2b0] ss:$8 sps:$4 sm:$0xff]  }
  0x87   : > { %1504 = vmatpush1.bf16.msra.mxu1 %v2206_v18  ;;  %v2293_v18 = vld [vmem:[%s2389_s21 + $0x5b0] ss:$8 sps:$4 sm:$0xff]  }
  0x88   : > { %1627 = vmatpush1.bf16.msra.mxu0 %v2209_v19  ;;  %1505 = vmatprep.subr.bf16.mxu1 %v2214_v20  ;;  %v2298_v19 = vld [vmem:[%s2389_s21 + $0x2c4] ss:$8 sps:$4 sm:$0xff]  }
  0x89   : > { %1628 = vmatprep.subr.bf16.mxu0 %v2217_v21  ;;  %v2301_v20 = vld [vmem:[%s2389_s21 + $0x5c4] ss:$8 sps:$4 sm:$0xff]   ;;  %v2296_v21 = vld [vmem:[%s2389_s21 + $0x2c0] ss:$8 sps:$4 sm:$0xff]  }
  0x8b   : > { %1506 = vmatpush1.bf16.msra.mxu1 %v2212_v23  ;;  %v2299_v23 = vld [vmem:[%s2389_s21 + $0x5c0] ss:$8 sps:$4 sm:$0xff]  }
  0x8c   : > { %1629 = vmatpush1.bf16.msra.mxu0 %v2215_v24  ;;  %1507 = vmatprep.subr.bf16.mxu1 %v2220_v25  ;;  %v2304_v24 = vld [vmem:[%s2389_s21 + $0x2d4] ss:$8 sps:$4 sm:$0xff]  }
  0x8d   : > { %1630 = vmatprep.subr.bf16.mxu0 %v2223_v26  ;;  %v2307_v25 = vld [vmem:[%s2389_s21 + $0x5d4] ss:$8 sps:$4 sm:$0xff]   ;;  %v2302_v26 = vld [vmem:[%s2389_s21 + $0x2d0] ss:$8 sps:$4 sm:$0xff]  }
  0x8f   : > { %1508 = vmatpush1.bf16.msra.mxu1 %v2218_v28  ;;  %v2310_v28 = vld [vmem:[%s2389_s21 + $0x2e4] ss:$8 sps:$4 sm:$0xff]  }
  0x90   : > { %1631 = vmatpush1.bf16.msra.mxu0 %v2221_v29  ;;  %1518 = vmatprep.subr.bf16.mxu1 %v2226_v30  ;;  %v2313_v29 = vld [vmem:[%s2389_s21 + $0x5e4] ss:$8 sps:$4 sm:$0xff]   ;;  %v2308_v30 = vld [vmem:[%s2389_s21 + $0x2e0] ss:$8 sps:$4 sm:$0xff]  }
  0x91   : > { %1641 = vmatprep.subr.bf16.mxu0 %v2229_v31  ;;  %v2311_v31 = vld [vmem:[%s2389_s21 + $0x5e0] ss:$8 sps:$4 sm:$0xff]  }
  0x92   : > { %1510 = vmatmul.mubr.bf16.vlgmr.msra.gmra.mrb[0].mxu1 %v2476_v22  ;;  %v2241_v22 = vld [vmem:[%s2389_s21 + $0x524] ss:$8 sps:$4 sm:$0xff]  }
  0x93   : > { %1633 = vmatmul.mubr.bf16.vlgmr.msra.gmra.mrb[0].mxu0 %v2480_v7  ;;  %1519 = vmatpush1.bf16.msra.mxu1 %v2224_v34  ;;  %v2236_v7 = vld [vmem:[%s2389_s21 + $0x220] ss:$8 sps:$4 sm:$0xff]   ;;  %v2316_v34 = vld [vmem:[%s2389_s21 + $0x2f4] ss:$8 sps:$4 sm:$0xff]  }
  0x94   : > { %1642 = vmatpush1.bf16.msra.mxu0 %v2227_v17  ;;  %1520 = vmatprep.subr.bf16.mxu1 %v2232_v10  ;;  %v2319_v17 = vld [vmem:[%s2389_s21 + $0x5f4] ss:$8 sps:$4 sm:$0xff]   ;;  %v2314_v10 = vld [vmem:[%s2389_s21 + $0x2f0] ss:$8 sps:$4 sm:$0xff]  }
  0x95   : > { %1643 = vmatprep.subr.bf16.mxu0 %v2235_v11  ;;  %1550 = vmatprep.mubr.bf16.mxu1 %v414_v36  ;;  %v2317_v11 = vld [vmem:[%s2389_s21 + $0x5f0] ss:$8 sps:$4 sm:$0xff]   ;;  %v2323_v36 = vld [vmem:[%s2389_s21 + $0x604] ss:$8 sps:$4 sm:$0xff]  }
  0x96   : > { %1673 = vmatprep.mubr.bf16.mxu0 %v432_v1  ;;  %v2321_v1 = vld [vmem:[%s2389_s21 + $0x600] ss:$8 sps:$4 sm:$0xff]  }
  0x97   : > { %1521 = vmatpush1.bf16.msra.mxu1 %v2230_v8  ;;  %v2326_v8 = vld [vmem:[%s2389_s21 + $0x614] ss:$8 sps:$4 sm:$0xff]  }
  0x98   : > { %1644 = vmatpush1.bf16.msra.mxu0 %v2233_v37  ;;  %1522 = vmatprep.subr.bf16.mxu1 %v2238_v39  ;;  %v2324_v37 = vld [vmem:[%s2389_s21 + $0x610] ss:$8 sps:$4 sm:$0xff]  }
  0x99   : > { %1645 = vmatprep.subr.bf16.mxu0 %v2241_v22 }
  0x9b   : > { %1523 = vmatpush1.bf16.msra.mxu1 %v2236_v7 }
  0x9c   : > { %1646 = vmatpush1.bf16.msra.mxu0 %v2239_v40  ;;  %1524 = vmatprep.subr.bf16.mxu1 %v2244_v41 }
  0x9d   : > { %1647 = vmatprep.subr.bf16.mxu0 %v2247_v42 }
  0x9f   : > { %1525 = vmatpush1.bf16.msra.mxu1 %v2242_v43 }
  0xa0   : > { %1648 = vmatpush1.bf16.msra.mxu0 %v2245_v44  ;;  %1526 = vmatprep.subr.bf16.mxu1 %v2250_v45 }
  0xa1   : > { %1649 = vmatprep.subr.bf16.mxu0 %v2253_v46 }
  0xa3   : > { %1527 = vmatpush1.bf16.msra.mxu1 %v2248_v47 }
  0xa4   : > { %1650 = vmatpush1.bf16.msra.mxu0 %v2251_v48  ;;  %1528 = vmatprep.subr.bf16.mxu1 %v2256_v49 }
  0xa5   : > { %1651 = vmatprep.subr.bf16.mxu0 %v2259_v50 }
  0xa7   : > { %1529 = vmatpush1.bf16.msra.mxu1 %v2254_v51 }
  0xa8   : > { %1652 = vmatpush1.bf16.msra.mxu0 %v2257_v52  ;;  %1530 = vmatprep.subr.bf16.mxu1 %v2262_v53 }
  0xa9   : > { %1653 = vmatprep.subr.bf16.mxu0 %v2265_v54 }
  0xab   : > { %1531 = vmatpush1.bf16.msra.mxu1 %v2260_v55 }
  0xac   : > { %1654 = vmatpush1.bf16.msra.mxu0 %v2263_v56  ;;  %1532 = vmatprep.subr.bf16.mxu1 %v2268_v57 }
  0xad   : > { %1655 = vmatprep.subr.bf16.mxu0 %v2271_v58 }
  0xaf   : > { %1533 = vmatpush1.bf16.msra.mxu1 %v2266_v59 }
  0xb0   : > { %1656 = vmatpush1.bf16.msra.mxu0 %v2269_v60  ;;  %1534 = vmatprep.subr.bf16.mxu1 %v2274_v61 }
  0xb1   : > { %1657 = vmatprep.subr.bf16.mxu0 %v2277_v62 }
  0xb3   : > { %1535 = vmatpush1.bf16.msra.mxu1 %v2272_v63 }
  0xb4   : > { %1658 = vmatpush1.bf16.msra.mxu0 %v2275_v0  ;;  %1536 = vmatprep.subr.bf16.mxu1 %v2280_v2 }
  0xb5   : > { %1659 = vmatprep.subr.bf16.mxu0 %v2283_v3 }
  0xb7   : > { %1537 = vmatpush1.bf16.msra.mxu1 %v2278_v4 }
  0xb8   : > { %1660 = vmatpush1.bf16.msra.mxu0 %v2281_v5  ;;  %1538 = vmatprep.subr.bf16.mxu1 %v2286_v6 }
  0xb9   : > { %1661 = vmatprep.subr.bf16.mxu0 %v2289_v9 }
  0xbb   : > { %1539 = vmatpush1.bf16.msra.mxu1 %v2284_v12 }
  0xbc   : > { %1662 = vmatpush1.bf16.msra.mxu0 %v2287_v13  ;;  %1540 = vmatprep.subr.bf16.mxu1 %v2292_v14 }
  0xbd   : > { %1663 = vmatprep.subr.bf16.mxu0 %v2295_v15 }
  0xbf   : > { %1541 = vmatpush1.bf16.msra.mxu1 %v2290_v16 }
  0xc0   : > { %1664 = vmatpush1.bf16.msra.mxu0 %v2293_v18  ;;  %1542 = vmatprep.subr.bf16.mxu1 %v2298_v19 }
  0xc1   : > { %1665 = vmatprep.subr.bf16.mxu0 %v2301_v20 }
  0xc3   : > { %1543 = vmatpush1.bf16.msra.mxu1 %v2296_v21 }
  0xc4   : > { %1666 = vmatpush1.bf16.msra.mxu0 %v2299_v23  ;;  %1544 = vmatprep.subr.bf16.mxu1 %v2304_v24 }
  0xc5   : > { %1667 = vmatprep.subr.bf16.mxu0 %v2307_v25 }
  0xc7   : > { %1545 = vmatpush1.bf16.msra.mxu1 %v2302_v26 }
  0xc8   : > { %1668 = vmatpush1.bf16.msra.mxu0 %v2305_v27  ;;  %1546 = vmatprep.subr.bf16.mxu1 %v2310_v28 }
  0xc9   : > { %1669 = vmatprep.subr.bf16.mxu0 %v2313_v29 }
  0xcb   : > { %1547 = vmatpush1.bf16.msra.mxu1 %v2308_v30 }
  0xcc   : > { %1670 = vmatpush1.bf16.msra.mxu0 %v2311_v31  ;;  %1548 = vmatprep.subr.bf16.mxu1 %v2316_v34 }
  0xcd   : > { %1671 = vmatprep.subr.bf16.mxu0 %v2319_v17 }
  0xcf   : > { %1549 = vmatpush1.bf16.msra.mxu1 %v2314_v10 }
  0xd0   : > { %1672 = vmatpush1.bf16.msra.mxu0 %v2317_v11 }
  0xd1   : > { %1682 = vmatprep.subr.bf16.mxu0 %v2323_v36 }
  0xd2   : > { %1551 = vmatmul.mubr.bf16.vlgmr.msra.gmra.mrb[0].mxu1 %v2557_v32 }
  0xd3   : > { %1674 = vmatmul.mubr.bf16.vlgmr.msra.gmra.mrb[0].mxu0 %v2560_v33 }
  0xd4   : > { %1683 = vmatpush1.bf16.msra.mxu0 %v2321_v1  ;;  %1714 = vmatprep.mubr.bf16.mxu0 %v2340_v35 }
  0xd5   : > { %1684 = vmatprep.subr.bf16.mxu0 %v2326_v8 }
  0xd8   : > { %1685 = vmatpush1.bf16.msra.mxu0 %v2324_v37 }
  0xdf   : > { %1990 = vmatmul.mubr.msk.bf16.vlgmr.msra.gmra.mrb[0].mxu0 %vm1432_vm0, %v1793_v38 }
  0xe0   : > { %v376_v32 = vpop.permute.xlu0 %375 }
 0x1a5   : > { %v1552_v39 = vpop.f32.mrb[0].mxu1 }
 0x1a6   : > { %v1554_v22 = vpop.f32.mrb[1].mxu1  ;;  %v1994_v41 = vadd.f32 %v1552_v39, %v376_v32 }
 0x1a7   : > { %v1556_v7 = vpop.f32.mrb[2].mxu1  ;;  %v1996_v33 = vadd.f32 %v1554_v22, %v376_v32 }
 0x1a8   : > { %v1557_v40 = vpop.f32.mrb[3].mxu1 }
 0x1b2   : > { %v1716_v42 = vpop.f32.mrb[0].mxu0 }
 0x1b3   : > { %v1995_v43 = vadd.f32 %v1994_v41, %v1716_v42  ;;  %v1718_v44 = vpop.f32.mrb[1].mxu0 }
 0x1b4   : > { %v1997_v35 = vadd.f32 %v1996_v33, %v1718_v44  ;;  %v1720_v45 = vpop.f32.mrb[2].mxu0 }
 0x1b5   : > { %2327 = vtanh.f32 %v1995_v43  ;;  %v1721_v46 = vpop.f32.mrb[3].mxu0 }
 0x1b6   : > { %2329 = vtanh.f32 %v1997_v35 }
 0x1bf   : > { %v2328_v47 = vpop.eup %2327 }
 0x1c0   : > { %v2330_v48 = vpop.eup %2329 }
 0x1c1   : > { %v1727_v49 = vcombine.low %v2328_v47, %v2330_v48 }
 0x1c3   : > { %1729 = vst [vmem:[%s170_s4] sm:$0x77] %v1727_v49 }
 0x1c4 PF: > { %s13_s12 = sadd.s32 1, %s2337_s12  }
 0x1c5   : > { %p10_p4 = scmp.ge.s32.totalorder %s13_s12, 4  }
 0x1c7   :  { %12 = sbr.rel (!%p10_p4) target bundleno = 1 (0x1), region = 62 }

</bundles_post_ra>
